<compile_context>
chip_gen: v7x
topology: tpu7x:2x2x1
jax: 0.10.0
libtpu: 0.0.40
codegen_flags: <defaults>
</compile_context>

<pallas_src>
import numpy as np
import jax
import jax.numpy as jnp
from jax.experimental import pallas as pl
from jax.experimental.pallas import tpu as pltpu

EPS = 1e-5
HIDDEN = 5  # see NOTE above


def _sigmoid(x):
    # numerically stable sigmoid; tanh maps to the TPU EUP slot
    return 0.5 * (jnp.tanh(0.5 * x) + 1.0)


def _vmem_spec():
    return pl.BlockSpec(memory_space=pltpu.MemorySpace.VMEM)


# ----------------------------- stage 1 kernel -----------------------------
def _stage1_kernel(pt_ref, w1t_ref, b1_ref, g1_ref, be1_ref, o_ref, y_scr):
    """conv1 (transposed GEMM, 4 pool-parity groups) + ReLU + BN(batch stats) + maxpool."""
    c = y_scr.shape[1]
    # conv1 + bias + relu for each of the 4 (2x2-pool) parity groups
    for p in range(4):
        y = jnp.dot(w1t_ref[...], pt_ref[p], preferred_element_type=jnp.float32)
        y_scr[p] = jnp.maximum(y + b1_ref[...], 0.0)           # (24, N*24*24)

    # BatchNorm2d(24) training-mode stats over ALL N*48*48 positions (= all 4 groups)
    m_total = float(4 * y_scr.shape[2])
    ssum = jnp.zeros((c, 1), jnp.float32)
    for p in range(4):
        ssum = ssum + jnp.sum(y_scr[p], axis=1, keepdims=True)
    mu = ssum / m_total
    vsum = jnp.zeros((c, 1), jnp.float32)
    for p in range(4):
        d = y_scr[p] - mu
        vsum = vsum + jnp.sum(d * d, axis=1, keepdims=True)
    var = vsum / m_total                                       # biased variance
    scale = g1_ref[...] * jax.lax.rsqrt(var + EPS)
    shift = be1_ref[...] - mu * scale

    # normalize each parity group, then maxpool(2,2) == elementwise max over groups
    out = y_scr[0] * scale + shift
    for p in range(1, 4):
        out = jnp.maximum(out, y_scr[p] * scale + shift)
    o_ref[...] = out                                           # (24, N*24*24), lane-dense


# ----------------------------- stage 2 kernel -----------------------------
def _stage2_kernel(p2_ref, w2_ref, b2_ref, g2_ref, be2_ref,
                   w3_ref, b3_ref, w4_ref, b4_ref, w5_ref, b5_ref,
                   s2_ref, sel_ref,
                   wf1_ref, bf1_ref, wf2_ref, bf2_ref, wo_ref, bo_ref,
                   o_ref,
                   y2_scr, p2s_scr, y3_scr, y4_scr, y5_scr):
    # ---- conv2 (im2col GEMM, bf16 x bf16 -> f32) + bias + ReLU ----
    y2 = jnp.dot(p2_ref[...], w2_ref[...], preferred_element_type=jnp.float32)
    y2 = jnp.maximum(y2 + b2_ref[...], 0.0)                    # (N*100, 64) on 10x10 grid
    # BatchNorm2d(64), batch stats over all N*10*10 positions (before pooling)
    mu = jnp.mean(y2, axis=0, keepdims=True)
    d = y2 - mu
    var = jnp.mean(d * d, axis=0, keepdims=True)
    y2_scr[...] = d * (g2_ref[...] * jax.lax.rsqrt(var + EPS)) + be2_ref[...]

    # ---- maxpool 2x2 stride 2 on the 10x10 grid:
    #      stride-1 window max via shifted row slices, then stride-2 row subsample
    #      expressed as a small selection matmul (no gathers). ----
    L = y2_scr.shape[0] - 11
    m = jnp.maximum(
        jnp.maximum(y2_scr[pl.ds(0, L), :], y2_scr[pl.ds(1, L), :]),
        jnp.maximum(y2_scr[pl.ds(10, L), :], y2_scr[pl.ds(11, L), :]))
    p2s_scr[...] = jnp.dot(s2_ref[...], m, preferred_element_type=jnp.float32)  # (N*25, 64)

    # ---- conv3/4/5 (2x2, stride 1) as shifted multiply-accumulate on the 5x5 grid;
    #      invalid boundary rows are computed but never read downstream. ----
    def conv2x2(src_ref, w_ref, b_ref, dst_ref):
        rows = dst_ref.shape[0]
        acc = jnp.dot(src_ref[pl.ds(0, rows), :], w_ref[0],
                      preferred_element_type=jnp.float32)
        for t, off in ((1, 1), (2, 5), (3, 6)):
            acc = acc + jnp.dot(src_ref[pl.ds(off, rows), :], w_ref[t],
                                preferred_element_type=jnp.float32)
        dst_ref[...] = jnp.maximum(acc + b_ref[...], 0.0)

    conv2x2(p2s_scr, w3_ref, b3_ref, y3_scr)                   # (N*25-6, 64)
    conv2x2(y3_scr, w4_ref, b4_ref, y4_scr)                    # (N*25-12, 80)
    conv2x2(y4_scr, w5_ref, b5_ref, y5_scr)                    # (N*25-18, 80)

    # ---- maxpool 2x2 stride 1, then pick the single valid row per image (selection matmul)
    P = y5_scr.shape[0] - 6
    p3 = jnp.maximum(
        jnp.maximum(y5_scr[pl.ds(0, P), :], y5_scr[pl.ds(1, P), :]),
        jnp.maximum(y5_scr[pl.ds(5, P), :], y5_scr[pl.ds(6, P), :]))
    feats = jnp.dot(sel_ref[...], p3, preferred_element_type=jnp.float32)       # (N, 80)

    # ---- FC head: relu(sigmoid(.)) == sigmoid(.) ----
    h = _sigmoid(jnp.dot(feats, wf1_ref[...], preferred_element_type=jnp.float32)
                 + bf1_ref[...])
    h = _sigmoid(jnp.dot(h, wf2_ref[...], preferred_element_type=jnp.float32)
                 + bf2_ref[...])
    o_ref[...] = _sigmoid(jnp.dot(h, wo_ref[...], preferred_element_type=jnp.float32)
                          + bo_ref[...])


# ----------------------------- wrapper glue (pure JAX / numpy constants) ----------
def _conv1_patches_t(x_nhwc):
    """x: (N,100,100,1) -> (4, 36, N*24*24): conv1 im2col, transposed (tap-major),
    grouped by the 2x2 maxpool parity; tap order (kh, kw)."""
    x = x_nhwc[..., 0]                                          # (N, 100, 100)
    sl = {}
    for oh in range(8):
        for ow in range(8):
            sl[(oh, ow)] = x[:, oh:oh + 93:4, ow:ow + 93:4].reshape(1, -1)
    groups = []
    for r in range(2):
        for s in range(2):
            taps = [sl[(2 * r + kh, 2 * s + kw)] for kh in range(6) for kw in range(6)]
            groups.append(jnp.concatenate(taps, axis=0))        # (36, N*576)
    return jnp.stack(groups, axis=0)                            # (4, 36, N*576)


def _conv2_patches(pooled1_cm, n):
    """pooled1 (24, N*24*24) channel-major -> conv2 im2col (N*100, 864), (kh,kw,c) order."""
    x = pooled1_cm.reshape(24, n, 24, 24).transpose(1, 2, 3, 0)  # (N,24,24,24) NHWC
    cols = []
    for kh in range(6):
        for kw in range(6):
            cols.append(x[:, kh:kh + 19:2, kw:kw + 19:2, :])     # (N,10,10,24)
    p = jnp.concatenate(cols, axis=-1)                           # (N,10,10,864)
    return p.reshape(n * 100, 36 * 24)


def _pool2_select(n):
    m = np.zeros((n * 25, n * 100 - 11), np.float32)
    for b in range(n):
        for i in range(5):
            for j in range(5):
                m[b * 25 + i * 5 + j, b * 100 + 20 * i + 2 * j] = 1.0
    return jnp.asarray(m)


def _flatten_select(n):
    m = np.zeros((n, n * 25 - 24), np.float32)
    for b in range(n):
        m[b, b * 25] = 1.0
    return jnp.asarray(m)


# ----------------------------- parameters -----------------------------
def init_params(key):
    def conv_p(k, cin, cout, ksz, std=0.05):
        k1, k2 = jax.random.split(k)
        w = jax.random.normal(k1, (ksz, ksz, cin, cout), jnp.float32) * std
        b = jax.random.normal(k2, (cout,), jnp.float32) * std
        return w, b

    def lin_p(k, fin, fout, std=0.1):
        k1, k2 = jax.random.split(k)
        w = jax.random.normal(k1, (fin, fout), jnp.float32) * std
        b = jax.random.normal(k2, (fout,), jnp.float32) * std
        return w, b

    ks = jax.random.split(key, 8)
    p = {}
    w1, b1 = conv_p(ks[0], 1, 24, 6)
    p["w1t"] = w1.reshape(36, 24).T                 # (24, 36): transposed-GEMM weight
    p["b1"] = b1.reshape(24, 1)
    p["g1"] = jnp.ones((24, 1), jnp.float32)
    p["be1"] = jnp.zeros((24, 1), jnp.float32)

    w2, b2 = conv_p(ks[1], 24, 64, 6)
    p["w2"] = w2.reshape(36 * 24, 64)               # (864, 64), (kh,kw,cin) order
    p["b2"] = b2.reshape(1, 64)
    p["g2"] = jnp.ones((1, 64), jnp.float32)
    p["be2"] = jnp.zeros((1, 64), jnp.float32)

    w3, b3 = conv_p(ks[2], 64, 64, 2)
    p["w3"], p["b3"] = w3.reshape(4, 64, 64), b3.reshape(1, 64)
    w4, b4 = conv_p(ks[3], 64, 80, 2)
    p["w4"], p["b4"] = w4.reshape(4, 64, 80), b4.reshape(1, 80)
    w5, b5 = conv_p(ks[4], 80, 80, 2)
    p["w5"], p["b5"] = w5.reshape(4, 80, 80), b5.reshape(1, 80)

    w, b = lin_p(ks[5], 80, HIDDEN); p["fc1_w"], p["fc1_b"] = w, b.reshape(1, HIDDEN)
    w, b = lin_p(ks[6], 5, HIDDEN);  p["fc2_w"], p["fc2_b"] = w, b.reshape(1, HIDDEN)
    w, b = lin_p(ks[7], HIDDEN, 1);  p["out_w"], p["out_b"] = w, b.reshape(1, 1)
    return p


# ----------------------------- forward -----------------------------
@jax.jit
def forward(x_nchw, params):
    x = jnp.transpose(x_nchw, (0, 2, 3, 1)).astype(jnp.float32)  # NCHW -> NHWC
    n = x.shape[0]
    lanes = n * 24 * 24

    # ---- stage 1: conv1 + ReLU + BN1 + maxpool1 (one pallas_call) ----
    pt = _conv1_patches_t(x).astype(jnp.bfloat16)                # (4, 36, lanes)
    pooled1 = pl.pallas_call(
        _stage1_kernel,
        out_shape=jax.ShapeDtypeStruct((24, lanes), jnp.float32),
        in_specs=[_vmem_spec()] * 5,
        out_specs=_vmem_spec(),
        scratch_shapes=[pltpu.VMEM((4, 24, lanes), jnp.float32)],
    )(pt, params["w1t"].astype(jnp.bfloat16), params["b1"], params["g1"], params["be1"])

    # ---- stage 2: conv2..conv5 + pools + BN2 + FC head (one pallas_call) ----
    p2 = _conv2_patches(pooled1, n).astype(jnp.bfloat16)         # (n*100, 864)
    s2 = _pool2_select(n)                                        # (n*25, n*100-11)
    sel = _flatten_select(n)                                     # (n, n*25-24)
    out = pl.pallas_call(
        _stage2_kernel,
        out_shape=jax.ShapeDtypeStruct((n, 1), jnp.float32),
        in_specs=[_vmem_spec()] * 19,
        out_specs=_vmem_spec(),
        scratch_shapes=[
            pltpu.VMEM((n * 100, 64), jnp.float32),      # BN'd conv2 output (10x10 grid)
            pltpu.VMEM((n * 25, 64), jnp.float32),       # pooled2 (5x5 grid)
            pltpu.VMEM((n * 25 - 6, 64), jnp.float32),   # conv3 rows
            pltpu.VMEM((n * 25 - 12, 80), jnp.float32),  # conv4 rows
            pltpu.VMEM((n * 25 - 18, 80), jnp.float32),  # conv5 rows
        ],
    )(p2, params["w2"].astype(jnp.bfloat16), params["b2"], params["g2"], params["be2"],
      params["w3"], params["b3"], params["w4"], params["b4"], params["w5"], params["b5"],
      s2, sel,
      params["fc1_w"], params["fc1_b"], params["fc2_w"], params["fc2_b"],
      params["out_w"], params["out_b"])
    return out  # (N, 1)


if __name__ == "__main__":
    key = jax.random.PRNGKey(0)
    k_param, k_input = jax.random.split(key)
    params = init_params(k_param)

    # 100x100 grayscale, batch 2: the smallest input for which the flatten yields the
    # 80 features expected by Linear(80, hidden).
    x = jax.random.normal(k_input, (2, 1, 100, 100), jnp.float32)

    out = forward(x, params)
    out = jax.block_until_ready(out)
    assert out.shape == (2, 1), out.shape
    assert bool(jnp.all(jnp.isfinite(out)))
    print("KERNEL_OK")
</pallas_src>

<mosaic_0001>
module attributes {stable_mosaic.version = 11 : i64} {
  func.func @_stage1_kernel(%arg0: memref<4x36x1152xbf16, #tpu.memory_space<vmem>>, %arg1: memref<24x36xbf16, #tpu.memory_space<vmem>>, %arg2: memref<24x1xf32, #tpu.memory_space<vmem>>, %arg3: memref<24x1xf32, #tpu.memory_space<vmem>>, %arg4: memref<24x1xf32, #tpu.memory_space<vmem>>, %arg5: memref<24x1152xf32, #tpu.memory_space<vmem>>, %arg6: memref<4x24x1152xf32, #tpu.memory_space<vmem>>) attributes {dimension_semantics = [], scalar_prefetch = 0 : i64, scratch_operands = 1 : i64, tpu.core_type = #tpu.core_type<tc>} {
    %c0 = arith.constant 0 : index
    %c0_0 = arith.constant 0 : index
    %0 = vector.load %arg1[%c0, %c0_0] : memref<24x36xbf16, #tpu.memory_space<vmem>>, vector<24x36xbf16>
    %c0_1 = arith.constant 0 : index
    %c0_2 = arith.constant 0 : index
    %c0_3 = arith.constant 0 : index
    %1 = vector.load %arg0[%c0_1, %c0_2, %c0_3] : memref<4x36x1152xbf16, #tpu.memory_space<vmem>>, vector<1x36x1152xbf16>
    %2 = vector.shape_cast %1 : vector<1x36x1152xbf16> to vector<36x1152xbf16>
    %cst = arith.constant dense<0.000000e+00> : vector<24x1152xf32>
    %3 = tpu.matmul %0, %2, %cst {dimension_numbers = #tpu.dot_dimension_numbers<[1], [0], [0], [1], [0, 0, 1, 1], [], []>} : vector<24x36xbf16>, vector<36x1152xbf16>, vector<24x1152xf32> -> vector<24x1152xf32>
    %c0_4 = arith.constant 0 : index
    %c0_5 = arith.constant 0 : index
    %4 = vector.load %arg2[%c0_4, %c0_5] : memref<24x1xf32, #tpu.memory_space<vmem>>, vector<24x1xf32>
    %5 = vector.broadcast %4 : vector<24x1xf32> to vector<24x1152xf32>
    %6 = arith.addf %3, %5 : vector<24x1152xf32>
    %cst_6 = arith.constant 0.000000e+00 : f32
    %7 = vector.broadcast %cst_6 : f32 to vector<24x1152xf32>
    %8 = arith.maximumf %6, %7 : vector<24x1152xf32>
    %c0_7 = arith.constant 0 : index
    %c0_8 = arith.constant 0 : index
    %c0_9 = arith.constant 0 : index
    %9 = vector.load %arg6[%c0_7, %c0_8, %c0_9] : memref<4x24x1152xf32, #tpu.memory_space<vmem>>, vector<1x24x1152xf32>
    %10 = vector.shape_cast %9 : vector<1x24x1152xf32> to vector<24x1152xf32>
    %11 = vector.shape_cast %8 : vector<24x1152xf32> to vector<1x24x1152xf32>
    tpu.vector_store %arg6[%c0_7, %c0_8, %c0_9], %11 {strides = array<i32>} : memref<4x24x1152xf32, #tpu.memory_space<vmem>>, vector<1x24x1152xf32>,
    %c0_10 = arith.constant 0 : index
    %c0_11 = arith.constant 0 : index
    %12 = vector.load %arg1[%c0_10, %c0_11] : memref<24x36xbf16, #tpu.memory_space<vmem>>, vector<24x36xbf16>
    %c1 = arith.constant 1 : index
    %c0_12 = arith.constant 0 : index
    %c0_13 = arith.constant 0 : index
    %13 = vector.load %arg0[%c1, %c0_12, %c0_13] : memref<4x36x1152xbf16, #tpu.memory_space<vmem>>, vector<1x36x1152xbf16>
    %14 = vector.shape_cast %13 : vector<1x36x1152xbf16> to vector<36x1152xbf16>
    %cst_14 = arith.constant dense<0.000000e+00> : vector<24x1152xf32>
    %15 = tpu.matmul %12, %14, %cst_14 {dimension_numbers = #tpu.dot_dimension_numbers<[1], [0], [0], [1], [0, 0, 1, 1], [], []>} : vector<24x36xbf16>, vector<36x1152xbf16>, vector<24x1152xf32> -> vector<24x1152xf32>
    %c0_15 = arith.constant 0 : index
    %c0_16 = arith.constant 0 : index
    %16 = vector.load %arg2[%c0_15, %c0_16] : memref<24x1xf32, #tpu.memory_space<vmem>>, vector<24x1xf32>
    %17 = vector.broadcast %16 : vector<24x1xf32> to vector<24x1152xf32>
    %18 = arith.addf %15, %17 : vector<24x1152xf32>
    %cst_17 = arith.constant 0.000000e+00 : f32
    %19 = vector.broadcast %cst_17 : f32 to vector<24x1152xf32>
    %20 = arith.maximumf %18, %19 : vector<24x1152xf32>
    %c1_18 = arith.constant 1 : index
    %c0_19 = arith.constant 0 : index
    %c0_20 = arith.constant 0 : index
    %21 = vector.load %arg6[%c1_18, %c0_19, %c0_20] : memref<4x24x1152xf32, #tpu.memory_space<vmem>>, vector<1x24x1152xf32>
    %22 = vector.shape_cast %21 : vector<1x24x1152xf32> to vector<24x1152xf32>
    %23 = vector.shape_cast %20 : vector<24x1152xf32> to vector<1x24x1152xf32>
    tpu.vector_store %arg6[%c1_18, %c0_19, %c0_20], %23 {strides = array<i32>} : memref<4x24x1152xf32, #tpu.memory_space<vmem>>, vector<1x24x1152xf32>,
    %c0_21 = arith.constant 0 : index
    %c0_22 = arith.constant 0 : index
    %24 = vector.load %arg1[%c0_21, %c0_22] : memref<24x36xbf16, #tpu.memory_space<vmem>>, vector<24x36xbf16>
    %c2 = arith.constant 2 : index
    %c0_23 = arith.constant 0 : index
    %c0_24 = arith.constant 0 : index
    %25 = vector.load %arg0[%c2, %c0_23, %c0_24] : memref<4x36x1152xbf16, #tpu.memory_space<vmem>>, vector<1x36x1152xbf16>
    %26 = vector.shape_cast %25 : vector<1x36x1152xbf16> to vector<36x1152xbf16>
    %cst_25 = arith.constant dense<0.000000e+00> : vector<24x1152xf32>
    %27 = tpu.matmul %24, %26, %cst_25 {dimension_numbers = #tpu.dot_dimension_numbers<[1], [0], [0], [1], [0, 0, 1, 1], [], []>} : vector<24x36xbf16>, vector<36x1152xbf16>, vector<24x1152xf32> -> vector<24x1152xf32>
    %c0_26 = arith.constant 0 : index
    %c0_27 = arith.constant 0 : index
    %28 = vector.load %arg2[%c0_26, %c0_27] : memref<24x1xf32, #tpu.memory_space<vmem>>, vector<24x1xf32>
    %29 = vector.broadcast %28 : vector<24x1xf32> to vector<24x1152xf32>
    %30 = arith.addf %27, %29 : vector<24x1152xf32>
    %cst_28 = arith.constant 0.000000e+00 : f32
    %31 = vector.broadcast %cst_28 : f32 to vector<24x1152xf32>
    %32 = arith.maximumf %30, %31 : vector<24x1152xf32>
    %c2_29 = arith.constant 2 : index
    %c0_30 = arith.constant 0 : index
    %c0_31 = arith.constant 0 : index
    %33 = vector.load %arg6[%c2_29, %c0_30, %c0_31] : memref<4x24x1152xf32, #tpu.memory_space<vmem>>, vector<1x24x1152xf32>
    %34 = vector.shape_cast %33 : vector<1x24x1152xf32> to vector<24x1152xf32>
    %35 = vector.shape_cast %32 : vector<24x1152xf32> to vector<1x24x1152xf32>
    tpu.vector_store %arg6[%c2_29, %c0_30, %c0_31], %35 {strides = array<i32>} : memref<4x24x1152xf32, #tpu.memory_space<vmem>>, vector<1x24x1152xf32>,
    %c0_32 = arith.constant 0 : index
    %c0_33 = arith.constant 0 : index
    %36 = vector.load %arg1[%c0_32, %c0_33] : memref<24x36xbf16, #tpu.memory_space<vmem>>, vector<24x36xbf16>
    %c3 = arith.constant 3 : index
    %c0_34 = arith.constant 0 : index
    %c0_35 = arith.constant 0 : index
    %37 = vector.load %arg0[%c3, %c0_34, %c0_35] : memref<4x36x1152xbf16, #tpu.memory_space<vmem>>, vector<1x36x1152xbf16>
    %38 = vector.shape_cast %37 : vector<1x36x1152xbf16> to vector<36x1152xbf16>
    %cst_36 = arith.constant dense<0.000000e+00> : vector<24x1152xf32>
    %39 = tpu.matmul %36, %38, %cst_36 {dimension_numbers = #tpu.dot_dimension_numbers<[1], [0], [0], [1], [0, 0, 1, 1], [], []>} : vector<24x36xbf16>, vector<36x1152xbf16>, vector<24x1152xf32> -> vector<24x1152xf32>
    %c0_37 = arith.constant 0 : index
    %c0_38 = arith.constant 0 : index
    %40 = vector.load %arg2[%c0_37, %c0_38] : memref<24x1xf32, #tpu.memory_space<vmem>>, vector<24x1xf32>
    %41 = vector.broadcast %40 : vector<24x1xf32> to vector<24x1152xf32>
    %42 = arith.addf %39, %41 : vector<24x1152xf32>
    %cst_39 = arith.constant 0.000000e+00 : f32
    %43 = vector.broadcast %cst_39 : f32 to vector<24x1152xf32>
    %44 = arith.maximumf %42, %43 : vector<24x1152xf32>
    %c3_40 = arith.constant 3 : index
    %c0_41 = arith.constant 0 : index
    %c0_42 = arith.constant 0 : index
    %45 = vector.load %arg6[%c3_40, %c0_41, %c0_42] : memref<4x24x1152xf32, #tpu.memory_space<vmem>>, vector<1x24x1152xf32>
    %46 = vector.shape_cast %45 : vector<1x24x1152xf32> to vector<24x1152xf32>
    %47 = vector.shape_cast %44 : vector<24x1152xf32> to vector<1x24x1152xf32>
    tpu.vector_store %arg6[%c3_40, %c0_41, %c0_42], %47 {strides = array<i32>} : memref<4x24x1152xf32, #tpu.memory_space<vmem>>, vector<1x24x1152xf32>,
    %cst_43 = arith.constant 0.000000e+00 : f32
    %48 = vector.broadcast %cst_43 : f32 to vector<24x1xf32>
    %c0_44 = arith.constant 0 : index
    %c0_45 = arith.constant 0 : index
    %c0_46 = arith.constant 0 : index
    %49 = vector.load %arg6[%c0_44, %c0_45, %c0_46] : memref<4x24x1152xf32, #tpu.memory_space<vmem>>, vector<1x24x1152xf32>
    %50 = vector.shape_cast %49 : vector<1x24x1152xf32> to vector<24x1152xf32>
    %cst_47 = arith.constant dense<0.000000e+00> : vector<24xf32>
    %51 = vector.multi_reduction <add>, %50, %cst_47 [1] : vector<24x1152xf32> to vector<24xf32>
    %52 = vector.shape_cast %51 : vector<24xf32> to vector<24x1xf32>
    %53 = arith.addf %48, %52 : vector<24x1xf32>
    %c1_48 = arith.constant 1 : index
    %c0_49 = arith.constant 0 : index
    %c0_50 = arith.constant 0 : index
    %54 = vector.load %arg6[%c1_48, %c0_49, %c0_50] : memref<4x24x1152xf32, #tpu.memory_space<vmem>>, vector<1x24x1152xf32>
    %55 = vector.shape_cast %54 : vector<1x24x1152xf32> to vector<24x1152xf32>
    %cst_51 = arith.constant dense<0.000000e+00> : vector<24xf32>
    %56 = vector.multi_reduction <add>, %55, %cst_51 [1] : vector<24x1152xf32> to vector<24xf32>
    %57 = vector.shape_cast %56 : vector<24xf32> to vector<24x1xf32>
    %58 = arith.addf %53, %57 : vector<24x1xf32>
    %c2_52 = arith.constant 2 : index
    %c0_53 = arith.constant 0 : index
    %c0_54 = arith.constant 0 : index
    %59 = vector.load %arg6[%c2_52, %c0_53, %c0_54] : memref<4x24x1152xf32, #tpu.memory_space<vmem>>, vector<1x24x1152xf32>
    %60 = vector.shape_cast %59 : vector<1x24x1152xf32> to vector<24x1152xf32>
    %cst_55 = arith.constant dense<0.000000e+00> : vector<24xf32>
    %61 = vector.multi_reduction <add>, %60, %cst_55 [1] : vector<24x1152xf32> to vector<24xf32>
    %62 = vector.shape_cast %61 : vector<24xf32> to vector<24x1xf32>
    %63 = arith.addf %58, %62 : vector<24x1xf32>
    %c3_56 = arith.constant 3 : index
    %c0_57 = arith.constant 0 : index
    %c0_58 = arith.constant 0 : index
    %64 = vector.load %arg6[%c3_56, %c0_57, %c0_58] : memref<4x24x1152xf32, #tpu.memory_space<vmem>>, vector<1x24x1152xf32>
    %65 = vector.shape_cast %64 : vector<1x24x1152xf32> to vector<24x1152xf32>
    %cst_59 = arith.constant dense<0.000000e+00> : vector<24xf32>
    %66 = vector.multi_reduction <add>, %65, %cst_59 [1] : vector<24x1152xf32> to vector<24xf32>
    %67 = vector.shape_cast %66 : vector<24xf32> to vector<24x1xf32>
    %68 = arith.addf %63, %67 : vector<24x1xf32>
    %cst_60 = arith.constant 4.608000e+03 : f32
    %69 = vector.broadcast %cst_60 : f32 to vector<24x1xf32>
    %70 = arith.divf %68, %69 : vector<24x1xf32>
    %cst_61 = arith.constant 0.000000e+00 : f32
    %71 = vector.broadcast %cst_61 : f32 to vector<24x1xf32>
    %c0_62 = arith.constant 0 : index
    %c0_63 = arith.constant 0 : index
    %c0_64 = arith.constant 0 : index
    %72 = vector.load %arg6[%c0_62, %c0_63, %c0_64] : memref<4x24x1152xf32, #tpu.memory_space<vmem>>, vector<1x24x1152xf32>
    %73 = vector.shape_cast %72 : vector<1x24x1152xf32> to vector<24x1152xf32>
    %74 = vector.broadcast %70 : vector<24x1xf32> to vector<24x1152xf32>
    %75 = arith.subf %73, %74 : vector<24x1152xf32>
    %76 = arith.mulf %75, %75 : vector<24x1152xf32>
    %cst_65 = arith.constant dense<0.000000e+00> : vector<24xf32>
    %77 = vector.multi_reduction <add>, %76, %cst_65 [1] : vector<24x1152xf32> to vector<24xf32>
    %78 = vector.shape_cast %77 : vector<24xf32> to vector<24x1xf32>
    %79 = arith.addf %71, %78 : vector<24x1xf32>
    %c1_66 = arith.constant 1 : index
    %c0_67 = arith.constant 0 : index
    %c0_68 = arith.constant 0 : index
    %80 = vector.load %arg6[%c1_66, %c0_67, %c0_68] : memref<4x24x1152xf32, #tpu.memory_space<vmem>>, vector<1x24x1152xf32>
    %81 = vector.shape_cast %80 : vector<1x24x1152xf32> to vector<24x1152xf32>
    %82 = vector.broadcast %70 : vector<24x1xf32> to vector<24x1152xf32>
    %83 = arith.subf %81, %82 : vector<24x1152xf32>
    %84 = arith.mulf %83, %83 : vector<24x1152xf32>
    %cst_69 = arith.constant dense<0.000000e+00> : vector<24xf32>
    %85 = vector.multi_reduction <add>, %84, %cst_69 [1] : vector<24x1152xf32> to vector<24xf32>
    %86 = vector.shape_cast %85 : vector<24xf32> to vector<24x1xf32>
    %87 = arith.addf %79, %86 : vector<24x1xf32>
    %c2_70 = arith.constant 2 : index
    %c0_71 = arith.constant 0 : index
    %c0_72 = arith.constant 0 : index
    %88 = vector.load %arg6[%c2_70, %c0_71, %c0_72] : memref<4x24x1152xf32, #tpu.memory_space<vmem>>, vector<1x24x1152xf32>
    %89 = vector.shape_cast %88 : vector<1x24x1152xf32> to vector<24x1152xf32>
    %90 = vector.broadcast %70 : vector<24x1xf32> to vector<24x1152xf32>
    %91 = arith.subf %89, %90 : vector<24x1152xf32>
    %92 = arith.mulf %91, %91 : vector<24x1152xf32>
    %cst_73 = arith.constant dense<0.000000e+00> : vector<24xf32>
    %93 = vector.multi_reduction <add>, %92, %cst_73 [1] : vector<24x1152xf32> to vector<24xf32>
    %94 = vector.shape_cast %93 : vector<24xf32> to vector<24x1xf32>
    %95 = arith.addf %87, %94 : vector<24x1xf32>
    %c3_74 = arith.constant 3 : index
    %c0_75 = arith.constant 0 : index
    %c0_76 = arith.constant 0 : index
    %96 = vector.load %arg6[%c3_74, %c0_75, %c0_76] : memref<4x24x1152xf32, #tpu.memory_space<vmem>>, vector<1x24x1152xf32>
    %97 = vector.shape_cast %96 : vector<1x24x1152xf32> to vector<24x1152xf32>
    %98 = vector.broadcast %70 : vector<24x1xf32> to vector<24x1152xf32>
    %99 = arith.subf %97, %98 : vector<24x1152xf32>
    %100 = arith.mulf %99, %99 : vector<24x1152xf32>
    %cst_77 = arith.constant dense<0.000000e+00> : vector<24xf32>
    %101 = vector.multi_reduction <add>, %100, %cst_77 [1] : vector<24x1152xf32> to vector<24xf32>
    %102 = vector.shape_cast %101 : vector<24xf32> to vector<24x1xf32>
    %103 = arith.addf %95, %102 : vector<24x1xf32>
    %cst_78 = arith.constant 4.608000e+03 : f32
    %104 = vector.broadcast %cst_78 : f32 to vector<24x1xf32>
    %105 = arith.divf %103, %104 : vector<24x1xf32>
    %c0_79 = arith.constant 0 : index
    %c0_80 = arith.constant 0 : index
    %106 = vector.load %arg3[%c0_79, %c0_80] : memref<24x1xf32, #tpu.memory_space<vmem>>, vector<24x1xf32>
    %cst_81 = arith.constant 9.99999974E-6 : f32
    %107 = vector.broadcast %cst_81 : f32 to vector<24x1xf32>
    %108 = arith.addf %105, %107 : vector<24x1xf32>
    %109 = math.rsqrt %108 : vector<24x1xf32>
    %110 = arith.mulf %106, %109 : vector<24x1xf32>
    %c0_82 = arith.constant 0 : index
    %c0_83 = arith.constant 0 : index
    %111 = vector.load %arg4[%c0_82, %c0_83] : memref<24x1xf32, #tpu.memory_space<vmem>>, vector<24x1xf32>
    %112 = arith.mulf %70, %110 : vector<24x1xf32>
    %113 = arith.subf %111, %112 : vector<24x1xf32>
    %c0_84 = arith.constant 0 : index
    %c0_85 = arith.constant 0 : index
    %c0_86 = arith.constant 0 : index
    %114 = vector.load %arg6[%c0_84, %c0_85, %c0_86] : memref<4x24x1152xf32, #tpu.memory_space<vmem>>, vector<1x24x1152xf32>
    %115 = vector.shape_cast %114 : vector<1x24x1152xf32> to vector<24x1152xf32>
    %116 = vector.broadcast %110 : vector<24x1xf32> to vector<24x1152xf32>
    %117 = arith.mulf %115, %116 : vector<24x1152xf32>
    %118 = vector.broadcast %113 : vector<24x1xf32> to vector<24x1152xf32>
    %119 = arith.addf %117, %118 : vector<24x1152xf32>
    %c1_87 = arith.constant 1 : index
    %c0_88 = arith.constant 0 : index
    %c0_89 = arith.constant 0 : index
    %120 = vector.load %arg6[%c1_87, %c0_88, %c0_89] : memref<4x24x1152xf32, #tpu.memory_space<vmem>>, vector<1x24x1152xf32>
    %121 = vector.shape_cast %120 : vector<1x24x1152xf32> to vector<24x1152xf32>
    %122 = vector.broadcast %110 : vector<24x1xf32> to vector<24x1152xf32>
    %123 = arith.mulf %121, %122 : vector<24x1152xf32>
    %124 = vector.broadcast %113 : vector<24x1xf32> to vector<24x1152xf32>
    %125 = arith.addf %123, %124 : vector<24x1152xf32>
    %126 = arith.maximumf %119, %125 : vector<24x1152xf32>
    %c2_90 = arith.constant 2 : index
    %c0_91 = arith.constant 0 : index
    %c0_92 = arith.constant 0 : index
    %127 = vector.load %arg6[%c2_90, %c0_91, %c0_92] : memref<4x24x1152xf32, #tpu.memory_space<vmem>>, vector<1x24x1152xf32>
    %128 = vector.shape_cast %127 : vector<1x24x1152xf32> to vector<24x1152xf32>
    %129 = vector.broadcast %110 : vector<24x1xf32> to vector<24x1152xf32>
    %130 = arith.mulf %128, %129 : vector<24x1152xf32>
    %131 = vector.broadcast %113 : vector<24x1xf32> to vector<24x1152xf32>
    %132 = arith.addf %130, %131 : vector<24x1152xf32>
    %133 = arith.maximumf %126, %132 : vector<24x1152xf32>
    %c3_93 = arith.constant 3 : index
    %c0_94 = arith.constant 0 : index
    %c0_95 = arith.constant 0 : index
    %134 = vector.load %arg6[%c3_93, %c0_94, %c0_95] : memref<4x24x1152xf32, #tpu.memory_space<vmem>>, vector<1x24x1152xf32>
    %135 = vector.shape_cast %134 : vector<1x24x1152xf32> to vector<24x1152xf32>
    %136 = vector.broadcast %110 : vector<24x1xf32> to vector<24x1152xf32>
    %137 = arith.mulf %135, %136 : vector<24x1152xf32>
    %138 = vector.broadcast %113 : vector<24x1xf32> to vector<24x1152xf32>
    %139 = arith.addf %137, %138 : vector<24x1152xf32>
    %140 = arith.maximumf %133, %139 : vector<24x1152xf32>
    %c0_96 = arith.constant 0 : index
    %c0_97 = arith.constant 0 : index
    %141 = vector.load %arg5[%c0_96, %c0_97] : memref<24x1152xf32, #tpu.memory_space<vmem>>, vector<24x1152xf32>
    tpu.vector_store %arg5[%c0_96, %c0_97], %140 {strides = array<i32>} : memref<24x1152xf32, #tpu.memory_space<vmem>>, vector<24x1152xf32>,
    return
  }
}

module attributes {stable_mosaic.version = 11 : i64} {
  func.func @_stage2_kernel(%arg0: memref<200x864xbf16, #tpu.memory_space<vmem>>, %arg1: memref<864x64xbf16, #tpu.memory_space<vmem>>, %arg2: memref<1x64xf32, #tpu.memory_space<vmem>>, %arg3: memref<1x64xf32, #tpu.memory_space<vmem>>, %arg4: memref<1x64xf32, #tpu.memory_space<vmem>>, %arg5: memref<4x64x64xf32, #tpu.memory_space<vmem>>, %arg6: memref<1x64xf32, #tpu.memory_space<vmem>>, %arg7: memref<4x64x80xf32, #tpu.memory_space<vmem>>, %arg8: memref<1x80xf32, #tpu.memory_space<vmem>>, %arg9: memref<4x80x80xf32, #tpu.memory_space<vmem>>, %arg10: memref<1x80xf32, #tpu.memory_space<vmem>>, %arg11: memref<50x189xf32, #tpu.memory_space<vmem>>, %arg12: memref<2x26xf32, #tpu.memory_space<vmem>>, %arg13: memref<80x5xf32, #tpu.memory_space<vmem>>, %arg14: memref<1x5xf32, #tpu.memory_space<vmem>>, %arg15: memref<5x5xf32, #tpu.memory_space<vmem>>, %arg16: memref<1x5xf32, #tpu.memory_space<vmem>>, %arg17: memref<5x1xf32, #tpu.memory_space<vmem>>, %arg18: memref<1x1xf32, #tpu.memory_space<vmem>>, %arg19: memref<2x1xf32, #tpu.memory_space<vmem>>, %arg20: memref<200x64xf32, #tpu.memory_space<vmem>>, %arg21: memref<50x64xf32, #tpu.memory_space<vmem>>, %arg22: memref<44x64xf32, #tpu.memory_space<vmem>>, %arg23: memref<38x80xf32, #tpu.memory_space<vmem>>, %arg24: memref<32x80xf32, #tpu.memory_space<vmem>>) attributes {dimension_semantics = [], scalar_prefetch = 0 : i64, scratch_operands = 5 : i64, tpu.core_type = #tpu.core_type<tc>} {
    %c0 = arith.constant 0 : index
    %c0_0 = arith.constant 0 : index
    %0 = vector.load %arg0[%c0, %c0_0] : memref<200x864xbf16, #tpu.memory_space<vmem>>, vector<200x864xbf16>
    %c0_1 = arith.constant 0 : index
    %c0_2 = arith.constant 0 : index
    %1 = vector.load %arg1[%c0_1, %c0_2] : memref<864x64xbf16, #tpu.memory_space<vmem>>, vector<864x64xbf16>
    %cst = arith.constant dense<0.000000e+00> : vector<200x64xf32>
    %2 = tpu.matmul %0, %1, %cst {dimension_numbers = #tpu.dot_dimension_numbers<[1], [0], [0], [1], [0, 0, 1, 1], [], []>} : vector<200x864xbf16>, vector<864x64xbf16>, vector<200x64xf32> -> vector<200x64xf32>
    %c0_3 = arith.constant 0 : index
    %c0_4 = arith.constant 0 : index
    %3 = vector.load %arg2[%c0_3, %c0_4] : memref<1x64xf32, #tpu.memory_space<vmem>>, vector<1x64xf32>
    %4 = vector.broadcast %3 : vector<1x64xf32> to vector<200x64xf32>
    %5 = arith.addf %2, %4 : vector<200x64xf32>
    %cst_5 = arith.constant 0.000000e+00 : f32
    %6 = vector.broadcast %cst_5 : f32 to vector<200x64xf32>
    %7 = arith.maximumf %5, %6 : vector<200x64xf32>
    %cst_6 = arith.constant dense<0.000000e+00> : vector<64xf32>
    %8 = vector.multi_reduction <add>, %7, %cst_6 [0] : vector<200x64xf32> to vector<64xf32>
    %9 = vector.shape_cast %8 : vector<64xf32> to vector<1x64xf32>
    %cst_7 = arith.constant 2.000000e+02 : f32
    %10 = vector.broadcast %cst_7 : f32 to vector<1x64xf32>
    %11 = arith.divf %9, %10 : vector<1x64xf32>
    %12 = vector.broadcast %11 : vector<1x64xf32> to vector<200x64xf32>
    %13 = arith.subf %7, %12 : vector<200x64xf32>
    %14 = arith.mulf %13, %13 : vector<200x64xf32>
    %cst_8 = arith.constant dense<0.000000e+00> : vector<64xf32>
    %15 = vector.multi_reduction <add>, %14, %cst_8 [0] : vector<200x64xf32> to vector<64xf32>
    %16 = vector.shape_cast %15 : vector<64xf32> to vector<1x64xf32>
    %cst_9 = arith.constant 2.000000e+02 : f32
    %17 = vector.broadcast %cst_9 : f32 to vector<1x64xf32>
    %18 = arith.divf %16, %17 : vector<1x64xf32>
    %c0_10 = arith.constant 0 : index
    %c0_11 = arith.constant 0 : index
    %19 = vector.load %arg3[%c0_10, %c0_11] : memref<1x64xf32, #tpu.memory_space<vmem>>, vector<1x64xf32>
    %cst_12 = arith.constant 9.99999974E-6 : f32
    %20 = vector.broadcast %cst_12 : f32 to vector<1x64xf32>
    %21 = arith.addf %18, %20 : vector<1x64xf32>
    %22 = math.rsqrt %21 : vector<1x64xf32>
    %23 = arith.mulf %19, %22 : vector<1x64xf32>
    %24 = vector.broadcast %23 : vector<1x64xf32> to vector<200x64xf32>
    %25 = arith.mulf %13, %24 : vector<200x64xf32>
    %c0_13 = arith.constant 0 : index
    %c0_14 = arith.constant 0 : index
    %26 = vector.load %arg4[%c0_13, %c0_14] : memref<1x64xf32, #tpu.memory_space<vmem>>, vector<1x64xf32>
    %27 = vector.broadcast %26 : vector<1x64xf32> to vector<200x64xf32>
    %28 = arith.addf %25, %27 : vector<200x64xf32>
    %c0_15 = arith.constant 0 : index
    %c0_16 = arith.constant 0 : index
    %29 = vector.load %arg20[%c0_15, %c0_16] : memref<200x64xf32, #tpu.memory_space<vmem>>, vector<200x64xf32>
    tpu.vector_store %arg20[%c0_15, %c0_16], %28 {strides = array<i32>} : memref<200x64xf32, #tpu.memory_space<vmem>>, vector<200x64xf32>,
    %c0_17 = arith.constant 0 : index
    %c0_18 = arith.constant 0 : index
    %30 = vector.load %arg20[%c0_17, %c0_18] : memref<200x64xf32, #tpu.memory_space<vmem>>, vector<189x64xf32>
    %c1 = arith.constant 1 : index
    %c0_19 = arith.constant 0 : index
    %31 = vector.load %arg20[%c1, %c0_19] : memref<200x64xf32, #tpu.memory_space<vmem>>, vector<189x64xf32>
    %32 = arith.maximumf %30, %31 : vector<189x64xf32>
    %c10 = arith.constant 10 : index
    %c0_20 = arith.constant 0 : index
    %33 = vector.load %arg20[%c10, %c0_20] : memref<200x64xf32, #tpu.memory_space<vmem>>, vector<189x64xf32>
    %c11 = arith.constant 11 : index
    %c0_21 = arith.constant 0 : index
    %34 = vector.load %arg20[%c11, %c0_21] : memref<200x64xf32, #tpu.memory_space<vmem>>, vector<189x64xf32>
    %35 = arith.maximumf %33, %34 : vector<189x64xf32>
    %36 = arith.maximumf %32, %35 : vector<189x64xf32>
    %c0_22 = arith.constant 0 : index
    %c0_23 = arith.constant 0 : index
    %37 = vector.load %arg11[%c0_22, %c0_23] : memref<50x189xf32, #tpu.memory_space<vmem>>, vector<50x189xf32>
    %cst_24 = arith.constant dense<0.000000e+00> : vector<50x64xf32>
    %38 = tpu.matmul %37, %36, %cst_24 {dimension_numbers = #tpu.dot_dimension_numbers<[1], [0], [0], [1], [0, 0, 1, 1], [], []>} : vector<50x189xf32>, vector<189x64xf32>, vector<50x64xf32> -> vector<50x64xf32>
    %c0_25 = arith.constant 0 : index
    %c0_26 = arith.constant 0 : index
    %39 = vector.load %arg21[%c0_25, %c0_26] : memref<50x64xf32, #tpu.memory_space<vmem>>, vector<50x64xf32>
    tpu.vector_store %arg21[%c0_25, %c0_26], %38 {strides = array<i32>} : memref<50x64xf32, #tpu.memory_space<vmem>>, vector<50x64xf32>,
    %c0_27 = arith.constant 0 : index
    %c0_28 = arith.constant 0 : index
    %40 = vector.load %arg21[%c0_27, %c0_28] : memref<50x64xf32, #tpu.memory_space<vmem>>, vector<44x64xf32>
    %c0_29 = arith.constant 0 : index
    %c0_30 = arith.constant 0 : index
    %c0_31 = arith.constant 0 : index
    %41 = vector.load %arg5[%c0_29, %c0_30, %c0_31] : memref<4x64x64xf32, #tpu.memory_space<vmem>>, vector<1x64x64xf32>
    %42 = vector.shape_cast %41 : vector<1x64x64xf32> to vector<64x64xf32>
    %cst_32 = arith.constant dense<0.000000e+00> : vector<44x64xf32>
    %43 = tpu.matmul %40, %42, %cst_32 {dimension_numbers = #tpu.dot_dimension_numbers<[1], [0], [0], [1], [0, 0, 1, 1], [], []>} : vector<44x64xf32>, vector<64x64xf32>, vector<44x64xf32> -> vector<44x64xf32>
    %c1_33 = arith.constant 1 : index
    %c0_34 = arith.constant 0 : index
    %44 = vector.load %arg21[%c1_33, %c0_34] : memref<50x64xf32, #tpu.memory_space<vmem>>, vector<44x64xf32>
    %c1_35 = arith.constant 1 : index
    %c0_36 = arith.constant 0 : index
    %c0_37 = arith.constant 0 : index
    %45 = vector.load %arg5[%c1_35, %c0_36, %c0_37] : memref<4x64x64xf32, #tpu.memory_space<vmem>>, vector<1x64x64xf32>
    %46 = vector.shape_cast %45 : vector<1x64x64xf32> to vector<64x64xf32>
    %cst_38 = arith.constant dense<0.000000e+00> : vector<44x64xf32>
    %47 = tpu.matmul %44, %46, %cst_38 {dimension_numbers = #tpu.dot_dimension_numbers<[1], [0], [0], [1], [0, 0, 1, 1], [], []>} : vector<44x64xf32>, vector<64x64xf32>, vector<44x64xf32> -> vector<44x64xf32>
    %48 = arith.addf %43, %47 : vector<44x64xf32>
    %c5 = arith.constant 5 : index
    %c0_39 = arith.constant 0 : index
    %49 = vector.load %arg21[%c5, %c0_39] : memref<50x64xf32, #tpu.memory_space<vmem>>, vector<44x64xf32>
    %c2 = arith.constant 2 : index
    %c0_40 = arith.constant 0 : index
    %c0_41 = arith.constant 0 : index
    %50 = vector.load %arg5[%c2, %c0_40, %c0_41] : memref<4x64x64xf32, #tpu.memory_space<vmem>>, vector<1x64x64xf32>
    %51 = vector.shape_cast %50 : vector<1x64x64xf32> to vector<64x64xf32>
    %cst_42 = arith.constant dense<0.000000e+00> : vector<44x64xf32>
    %52 = tpu.matmul %49, %51, %cst_42 {dimension_numbers = #tpu.dot_dimension_numbers<[1], [0], [0], [1], [0, 0, 1, 1], [], []>} : vector<44x64xf32>, vector<64x64xf32>, vector<44x64xf32> -> vector<44x64xf32>
    %53 = arith.addf %48, %52 : vector<44x64xf32>
    %c6 = arith.constant 6 : index
    %c0_43 = arith.constant 0 : index
    %54 = vector.load %arg21[%c6, %c0_43] : memref<50x64xf32, #tpu.memory_space<vmem>>, vector<44x64xf32>
    %c3 = arith.constant 3 : index
    %c0_44 = arith.constant 0 : index
    %c0_45 = arith.constant 0 : index
    %55 = vector.load %arg5[%c3, %c0_44, %c0_45] : memref<4x64x64xf32, #tpu.memory_space<vmem>>, vector<1x64x64xf32>
    %56 = vector.shape_cast %55 : vector<1x64x64xf32> to vector<64x64xf32>
    %cst_46 = arith.constant dense<0.000000e+00> : vector<44x64xf32>
    %57 = tpu.matmul %54, %56, %cst_46 {dimension_numbers = #tpu.dot_dimension_numbers<[1], [0], [0], [1], [0, 0, 1, 1], [], []>} : vector<44x64xf32>, vector<64x64xf32>, vector<44x64xf32> -> vector<44x64xf32>
    %58 = arith.addf %53, %57 : vector<44x64xf32>
    %c0_47 = arith.constant 0 : index
    %c0_48 = arith.constant 0 : index
    %59 = vector.load %arg6[%c0_47, %c0_48] : memref<1x64xf32, #tpu.memory_space<vmem>>, vector<1x64xf32>
    %60 = vector.broadcast %59 : vector<1x64xf32> to vector<44x64xf32>
    %61 = arith.addf %58, %60 : vector<44x64xf32>
    %cst_49 = arith.constant 0.000000e+00 : f32
    %62 = vector.broadcast %cst_49 : f32 to vector<44x64xf32>
    %63 = arith.maximumf %61, %62 : vector<44x64xf32>
    %c0_50 = arith.constant 0 : index
    %c0_51 = arith.constant 0 : index
    %64 = vector.load %arg22[%c0_50, %c0_51] : memref<44x64xf32, #tpu.memory_space<vmem>>, vector<44x64xf32>
    tpu.vector_store %arg22[%c0_50, %c0_51], %63 {strides = array<i32>} : memref<44x64xf32, #tpu.memory_space<vmem>>, vector<44x64xf32>,
    %c0_52 = arith.constant 0 : index
    %c0_53 = arith.constant 0 : index
    %65 = vector.load %arg22[%c0_52, %c0_53] : memref<44x64xf32, #tpu.memory_space<vmem>>, vector<38x64xf32>
    %c0_54 = arith.constant 0 : index
    %c0_55 = arith.constant 0 : index
    %c0_56 = arith.constant 0 : index
    %66 = vector.load %arg7[%c0_54, %c0_55, %c0_56] : memref<4x64x80xf32, #tpu.memory_space<vmem>>, vector<1x64x80xf32>
    %67 = vector.shape_cast %66 : vector<1x64x80xf32> to vector<64x80xf32>
    %cst_57 = arith.constant dense<0.000000e+00> : vector<38x80xf32>
    %68 = tpu.matmul %65, %67, %cst_57 {dimension_numbers = #tpu.dot_dimension_numbers<[1], [0], [0], [1], [0, 0, 1, 1], [], []>} : vector<38x64xf32>, vector<64x80xf32>, vector<38x80xf32> -> vector<38x80xf32>
    %c1_58 = arith.constant 1 : index
    %c0_59 = arith.constant 0 : index
    %69 = vector.load %arg22[%c1_58, %c0_59] : memref<44x64xf32, #tpu.memory_space<vmem>>, vector<38x64xf32>
    %c1_60 = arith.constant 1 : index
    %c0_61 = arith.constant 0 : index
    %c0_62 = arith.constant 0 : index
    %70 = vector.load %arg7[%c1_60, %c0_61, %c0_62] : memref<4x64x80xf32, #tpu.memory_space<vmem>>, vector<1x64x80xf32>
    %71 = vector.shape_cast %70 : vector<1x64x80xf32> to vector<64x80xf32>
    %cst_63 = arith.constant dense<0.000000e+00> : vector<38x80xf32>
    %72 = tpu.matmul %69, %71, %cst_63 {dimension_numbers = #tpu.dot_dimension_numbers<[1], [0], [0], [1], [0, 0, 1, 1], [], []>} : vector<38x64xf32>, vector<64x80xf32>, vector<38x80xf32> -> vector<38x80xf32>
    %73 = arith.addf %68, %72 : vector<38x80xf32>
    %c5_64 = arith.constant 5 : index
    %c0_65 = arith.constant 0 : index
    %74 = vector.load %arg22[%c5_64, %c0_65] : memref<44x64xf32, #tpu.memory_space<vmem>>, vector<38x64xf32>
    %c2_66 = arith.constant 2 : index
    %c0_67 = arith.constant 0 : index
    %c0_68 = arith.constant 0 : index
    %75 = vector.load %arg7[%c2_66, %c0_67, %c0_68] : memref<4x64x80xf32, #tpu.memory_space<vmem>>, vector<1x64x80xf32>
    %76 = vector.shape_cast %75 : vector<1x64x80xf32> to vector<64x80xf32>
    %cst_69 = arith.constant dense<0.000000e+00> : vector<38x80xf32>
    %77 = tpu.matmul %74, %76, %cst_69 {dimension_numbers = #tpu.dot_dimension_numbers<[1], [0], [0], [1], [0, 0, 1, 1], [], []>} : vector<38x64xf32>, vector<64x80xf32>, vector<38x80xf32> -> vector<38x80xf32>
    %78 = arith.addf %73, %77 : vector<38x80xf32>
    %c6_70 = arith.constant 6 : index
    %c0_71 = arith.constant 0 : index
    %79 = vector.load %arg22[%c6_70, %c0_71] : memref<44x64xf32, #tpu.memory_space<vmem>>, vector<38x64xf32>
    %c3_72 = arith.constant 3 : index
    %c0_73 = arith.constant 0 : index
    %c0_74 = arith.constant 0 : index
    %80 = vector.load %arg7[%c3_72, %c0_73, %c0_74] : memref<4x64x80xf32, #tpu.memory_space<vmem>>, vector<1x64x80xf32>
    %81 = vector.shape_cast %80 : vector<1x64x80xf32> to vector<64x80xf32>
    %cst_75 = arith.constant dense<0.000000e+00> : vector<38x80xf32>
    %82 = tpu.matmul %79, %81, %cst_75 {dimension_numbers = #tpu.dot_dimension_numbers<[1], [0], [0], [1], [0, 0, 1, 1], [], []>} : vector<38x64xf32>, vector<64x80xf32>, vector<38x80xf32> -> vector<38x80xf32>
    %83 = arith.addf %78, %82 : vector<38x80xf32>
    %c0_76 = arith.constant 0 : index
    %c0_77 = arith.constant 0 : index
    %84 = vector.load %arg8[%c0_76, %c0_77] : memref<1x80xf32, #tpu.memory_space<vmem>>, vector<1x80xf32>
    %85 = vector.broadcast %84 : vector<1x80xf32> to vector<38x80xf32>
    %86 = arith.addf %83, %85 : vector<38x80xf32>
    %cst_78 = arith.constant 0.000000e+00 : f32
    %87 = vector.broadcast %cst_78 : f32 to vector<38x80xf32>
    %88 = arith.maximumf %86, %87 : vector<38x80xf32>
    %c0_79 = arith.constant 0 : index
    %c0_80 = arith.constant 0 : index
    %89 = vector.load %arg23[%c0_79, %c0_80] : memref<38x80xf32, #tpu.memory_space<vmem>>, vector<38x80xf32>
    tpu.vector_store %arg23[%c0_79, %c0_80], %88 {strides = array<i32>} : memref<38x80xf32, #tpu.memory_space<vmem>>, vector<38x80xf32>,
    %c0_81 = arith.constant 0 : index
    %c0_82 = arith.constant 0 : index
    %90 = vector.load %arg23[%c0_81, %c0_82] : memref<38x80xf32, #tpu.memory_space<vmem>>, vector<32x80xf32>
    %c0_83 = arith.constant 0 : index
    %c0_84 = arith.constant 0 : index
    %c0_85 = arith.constant 0 : index
    %91 = vector.load %arg9[%c0_83, %c0_84, %c0_85] : memref<4x80x80xf32, #tpu.memory_space<vmem>>, vector<1x80x80xf32>
    %92 = vector.shape_cast %91 : vector<1x80x80xf32> to vector<80x80xf32>
    %cst_86 = arith.constant dense<0.000000e+00> : vector<32x80xf32>
    %93 = tpu.matmul %90, %92, %cst_86 {dimension_numbers = #tpu.dot_dimension_numbers<[1], [0], [0], [1], [0, 0, 1, 1], [], []>} : vector<32x80xf32>, vector<80x80xf32>, vector<32x80xf32> -> vector<32x80xf32>
    %c1_87 = arith.constant 1 : index
    %c0_88 = arith.constant 0 : index
    %94 = vector.load %arg23[%c1_87, %c0_88] : memref<38x80xf32, #tpu.memory_space<vmem>>, vector<32x80xf32>
    %c1_89 = arith.constant 1 : index
    %c0_90 = arith.constant 0 : index
    %c0_91 = arith.constant 0 : index
    %95 = vector.load %arg9[%c1_89, %c0_90, %c0_91] : memref<4x80x80xf32, #tpu.memory_space<vmem>>, vector<1x80x80xf32>
    %96 = vector.shape_cast %95 : vector<1x80x80xf32> to vector<80x80xf32>
    %cst_92 = arith.constant dense<0.000000e+00> : vector<32x80xf32>
    %97 = tpu.matmul %94, %96, %cst_92 {dimension_numbers = #tpu.dot_dimension_numbers<[1], [0], [0], [1], [0, 0, 1, 1], [], []>} : vector<32x80xf32>, vector<80x80xf32>, vector<32x80xf32> -> vector<32x80xf32>
    %98 = arith.addf %93, %97 : vector<32x80xf32>
    %c5_93 = arith.constant 5 : index
    %c0_94 = arith.constant 0 : index
    %99 = vector.load %arg23[%c5_93, %c0_94] : memref<38x80xf32, #tpu.memory_space<vmem>>, vector<32x80xf32>
    %c2_95 = arith.constant 2 : index
    %c0_96 = arith.constant 0 : index
    %c0_97 = arith.constant 0 : index
    %100 = vector.load %arg9[%c2_95, %c0_96, %c0_97] : memref<4x80x80xf32, #tpu.memory_space<vmem>>, vector<1x80x80xf32>
    %101 = vector.shape_cast %100 : vector<1x80x80xf32> to vector<80x80xf32>
    %cst_98 = arith.constant dense<0.000000e+00> : vector<32x80xf32>
    %102 = tpu.matmul %99, %101, %cst_98 {dimension_numbers = #tpu.dot_dimension_numbers<[1], [0], [0], [1], [0, 0, 1, 1], [], []>} : vector<32x80xf32>, vector<80x80xf32>, vector<32x80xf32> -> vector<32x80xf32>
    %103 = arith.addf %98, %102 : vector<32x80xf32>
    %c6_99 = arith.constant 6 : index
    %c0_100 = arith.constant 0 : index
    %104 = vector.load %arg23[%c6_99, %c0_100] : memref<38x80xf32, #tpu.memory_space<vmem>>, vector<32x80xf32>
    %c3_101 = arith.constant 3 : index
    %c0_102 = arith.constant 0 : index
    %c0_103 = arith.constant 0 : index
    %105 = vector.load %arg9[%c3_101, %c0_102, %c0_103] : memref<4x80x80xf32, #tpu.memory_space<vmem>>, vector<1x80x80xf32>
    %106 = vector.shape_cast %105 : vector<1x80x80xf32> to vector<80x80xf32>
    %cst_104 = arith.constant dense<0.000000e+00> : vector<32x80xf32>
    %107 = tpu.matmul %104, %106, %cst_104 {dimension_numbers = #tpu.dot_dimension_numbers<[1], [0], [0], [1], [0, 0, 1, 1], [], []>} : vector<32x80xf32>, vector<80x80xf32>, vector<32x80xf32> -> vector<32x80xf32>
    %108 = arith.addf %103, %107 : vector<32x80xf32>
    %c0_105 = arith.constant 0 : index
    %c0_106 = arith.constant 0 : index
    %109 = vector.load %arg10[%c0_105, %c0_106] : memref<1x80xf32, #tpu.memory_space<vmem>>, vector<1x80xf32>
    %110 = vector.broadcast %109 : vector<1x80xf32> to vector<32x80xf32>
    %111 = arith.addf %108, %110 : vector<32x80xf32>
    %cst_107 = arith.constant 0.000000e+00 : f32
    %112 = vector.broadcast %cst_107 : f32 to vector<32x80xf32>
    %113 = arith.maximumf %111, %112 : vector<32x80xf32>
    %c0_108 = arith.constant 0 : index
    %c0_109 = arith.constant 0 : index
    %114 = vector.load %arg24[%c0_108, %c0_109] : memref<32x80xf32, #tpu.memory_space<vmem>>, vector<32x80xf32>
    tpu.vector_store %arg24[%c0_108, %c0_109], %113 {strides = array<i32>} : memref<32x80xf32, #tpu.memory_space<vmem>>, vector<32x80xf32>,
    %c0_110 = arith.constant 0 : index
    %c0_111 = arith.constant 0 : index
    %115 = vector.load %arg24[%c0_110, %c0_111] : memref<32x80xf32, #tpu.memory_space<vmem>>, vector<26x80xf32>
    %c1_112 = arith.constant 1 : index
    %c0_113 = arith.constant 0 : index
    %116 = vector.load %arg24[%c1_112, %c0_113] : memref<32x80xf32, #tpu.memory_space<vmem>>, vector<26x80xf32>
    %117 = arith.maximumf %115, %116 : vector<26x80xf32>
    %c5_114 = arith.constant 5 : index
    %c0_115 = arith.constant 0 : index
    %118 = vector.load %arg24[%c5_114, %c0_115] : memref<32x80xf32, #tpu.memory_space<vmem>>, vector<26x80xf32>
    %c6_116 = arith.constant 6 : index
    %c0_117 = arith.constant 0 : index
    %119 = vector.load %arg24[%c6_116, %c0_117] : memref<32x80xf32, #tpu.memory_space<vmem>>, vector<26x80xf32>
    %120 = arith.maximumf %118, %119 : vector<26x80xf32>
    %121 = arith.maximumf %117, %120 : vector<26x80xf32>
    %c0_118 = arith.constant 0 : index
    %c0_119 = arith.constant 0 : index
    %122 = vector.load %arg12[%c0_118, %c0_119] : memref<2x26xf32, #tpu.memory_space<vmem>>, vector<2x26xf32>
    %cst_120 = arith.constant dense<0.000000e+00> : vector<2x80xf32>
    %123 = tpu.matmul %122, %121, %cst_120 {dimension_numbers = #tpu.dot_dimension_numbers<[1], [0], [0], [1], [0, 0, 1, 1], [], []>} : vector<2x26xf32>, vector<26x80xf32>, vector<2x80xf32> -> vector<2x80xf32>
    %c0_121 = arith.constant 0 : index
    %c0_122 = arith.constant 0 : index
    %124 = vector.load %arg13[%c0_121, %c0_122] : memref<80x5xf32, #tpu.memory_space<vmem>>, vector<80x5xf32>
    %cst_123 = arith.constant dense<0.000000e+00> : vector<2x5xf32>
    %125 = tpu.matmul %123, %124, %cst_123 {dimension_numbers = #tpu.dot_dimension_numbers<[1], [0], [0], [1], [0, 0, 1, 1], [], []>} : vector<2x80xf32>, vector<80x5xf32>, vector<2x5xf32> -> vector<2x5xf32>
    %c0_124 = arith.constant 0 : index
    %c0_125 = arith.constant 0 : index
    %126 = vector.load %arg14[%c0_124, %c0_125] : memref<1x5xf32, #tpu.memory_space<vmem>>, vector<1x5xf32>
    %127 = vector.broadcast %126 : vector<1x5xf32> to vector<2x5xf32>
    %128 = arith.addf %125, %127 : vector<2x5xf32>
    %cst_126 = arith.constant 5.000000e-01 : f32
    %129 = vector.broadcast %cst_126 : f32 to vector<2x5xf32>
    %130 = arith.mulf %129, %128 : vector<2x5xf32>
    %131 = math.tanh %130 : vector<2x5xf32>
    %cst_127 = arith.constant 1.000000e+00 : f32
    %132 = vector.broadcast %cst_127 : f32 to vector<2x5xf32>
    %133 = arith.addf %131, %132 : vector<2x5xf32>
    %cst_128 = arith.constant 5.000000e-01 : f32
    %134 = vector.broadcast %cst_128 : f32 to vector<2x5xf32>
    %135 = arith.mulf %134, %133 : vector<2x5xf32>
    %c0_129 = arith.constant 0 : index
    %c0_130 = arith.constant 0 : index
    %136 = vector.load %arg15[%c0_129, %c0_130] : memref<5x5xf32, #tpu.memory_space<vmem>>, vector<5x5xf32>
    %cst_131 = arith.constant dense<0.000000e+00> : vector<2x5xf32>
    %137 = tpu.matmul %135, %136, %cst_131 {dimension_numbers = #tpu.dot_dimension_numbers<[1], [0], [0], [1], [0, 0, 1, 1], [], []>} : vector<2x5xf32>, vector<5x5xf32>, vector<2x5xf32> -> vector<2x5xf32>
    %c0_132 = arith.constant 0 : index
    %c0_133 = arith.constant 0 : index
    %138 = vector.load %arg16[%c0_132, %c0_133] : memref<1x5xf32, #tpu.memory_space<vmem>>, vector<1x5xf32>
    %139 = vector.broadcast %138 : vector<1x5xf32> to vector<2x5xf32>
    %140 = arith.addf %137, %139 : vector<2x5xf32>
    %cst_134 = arith.constant 5.000000e-01 : f32
    %141 = vector.broadcast %cst_134 : f32 to vector<2x5xf32>
    %142 = arith.mulf %141, %140 : vector<2x5xf32>
    %143 = math.tanh %142 : vector<2x5xf32>
    %cst_135 = arith.constant 1.000000e+00 : f32
    %144 = vector.broadcast %cst_135 : f32 to vector<2x5xf32>
    %145 = arith.addf %143, %144 : vector<2x5xf32>
    %cst_136 = arith.constant 5.000000e-01 : f32
    %146 = vector.broadcast %cst_136 : f32 to vector<2x5xf32>
    %147 = arith.mulf %146, %145 : vector<2x5xf32>
    %c0_137 = arith.constant 0 : index
    %c0_138 = arith.constant 0 : index
    %148 = vector.load %arg17[%c0_137, %c0_138] : memref<5x1xf32, #tpu.memory_space<vmem>>, vector<5x1xf32>
    %cst_139 = arith.constant dense<0.000000e+00> : vector<2x1xf32>
    %149 = tpu.matmul %147, %148, %cst_139 {dimension_numbers = #tpu.dot_dimension_numbers<[1], [0], [0], [1], [0, 0, 1, 1], [], []>} : vector<2x5xf32>, vector<5x1xf32>, vector<2x1xf32> -> vector<2x1xf32>
    %c0_140 = arith.constant 0 : index
    %c0_141 = arith.constant 0 : index
    %150 = vector.load %arg18[%c0_140, %c0_141] : memref<1x1xf32, #tpu.memory_space<vmem>>, vector<1x1xf32>
    %151 = vector.broadcast %150 : vector<1x1xf32> to vector<2x1xf32>
    %152 = arith.addf %149, %151 : vector<2x1xf32>
    %cst_142 = arith.constant 5.000000e-01 : f32
    %153 = vector.broadcast %cst_142 : f32 to vector<2x1xf32>
    %154 = arith.mulf %153, %152 : vector<2x1xf32>
    %155 = math.tanh %154 : vector<2x1xf32>
    %cst_143 = arith.constant 1.000000e+00 : f32
    %156 = vector.broadcast %cst_143 : f32 to vector<2x1xf32>
    %157 = arith.addf %155, %156 : vector<2x1xf32>
    %cst_144 = arith.constant 5.000000e-01 : f32
    %158 = vector.broadcast %cst_144 : f32 to vector<2x1xf32>
    %159 = arith.mulf %158, %157 : vector<2x1xf32>
    %c0_145 = arith.constant 0 : index
    %c0_146 = arith.constant 0 : index
    %160 = vector.load %arg19[%c0_145, %c0_146] : memref<2x1xf32, #tpu.memory_space<vmem>>, vector<2x1xf32>
    tpu.vector_store %arg19[%c0_145, %c0_146], %159 {strides = array<i32>} : memref<2x1xf32, #tpu.memory_space<vmem>>, vector<2x1xf32>,
    return
  }
}

</mosaic_0001>

<bundles_post_ra>
// kernel: forward.2
= control target key start
LH: loop header
LB: loop body
LE: loop exit
PB: predicated region body
PF: predicated region fallthrough
CT: control target
= control target key end

     0   :  { %v3503_v1 = vmov 0   ;;  %vm197_vm0 = vcmask 1041408   ;;  %vm190_vm1 = vcmask 293888   ;;  %s5345_s0 = inlined_call_operand.vmem [shape: bf16[4,36,1152], index: 0, kind: input, shape index: {}]   ;;  %s5346_s1 = inlined_call_operand.vmem [shape: bf16[24,36], index: 1, kind: input, shape index: {}]   ;;  %s5347_s2 = inlined_call_operand.vmem [shape: f32[24,1], index: 2, kind: input, shape index: {}]   ;;  %s5348_s3 = inlined_call_operand.vmem [shape: f32[24,1], index: 3, kind: input, shape index: {}]   ;;  %s5349_s4 = inlined_call_operand.vmem [shape: f32[24,1], index: 4, kind: input, shape index: {}]   ;;  %s5350_s5 = inlined_call_operand.vmem [shape: f32[24,1152], index: 5, kind: output, shape index: {}]  }
   0x1   :  { %v3349_v0 = vld [vmem:[%s5345_s0 + $0x4] ss:$36 sps:$4 sm:$0xff]   ;;  %257 = vmatprep.mubr.bf16.mxu0 %v3503_v1  ;;  %308 = vmatprep.mubr.bf16.mxu1 %v3503_v1  ;;  %v3351_v2 = vld [vmem:[%s5345_s0 + $0xc] ss:$36 sps:$4 sm:$0xff]   ;;  %v3357_v6 = vld [vmem:[%s5345_s0 + $0x54] ss:$36 sps:$4 sm:$0xff]  }
   0x2   :  { %3347 = vset.pattern.permute.xlu0 %v3503_v1  ;;  %3348 = vset.pattern.permute.xlu1 %v3503_v1  ;;  %v3353_v3 = vld [vmem:[%s5345_s0] ss:$36 sps:$4 sm:$0xff]   ;;  %v3354_v4 = vld [vmem:[%s5345_s0 + $0x8] ss:$36 sps:$4 sm:$0xff]   ;;  %v3360_v8 = vld [vmem:[%s5345_s0 + $0x50] ss:$36 sps:$4 sm:$0xff]  }
   0x3   :  { %225 = vmatprep.subr.bf16.mxu0 %v3349_v0  ;;  %276 = vmatprep.subr.bf16.mxu1 %v3351_v2  ;;  %v3355_v5 = vld [vmem:[%s5345_s0 + $0x4c] ss:$36 sps:$4 sm:$0xff]   ;;  %v45_v10 = vld [vmem:[%s5345_s0 + $0x98] sm:$0x33]  ;;  %v3581_v19 = vld [vmem:[%s5346_s1] sm:$0xff]  }
   0x4   :  { %226 = vmatpush1.bf16.msra.mxu0 %v3353_v3  ;;  %277 = vmatpush1.bf16.msra.mxu1 %v3354_v4  ;;  %v3359_v7 = vld [vmem:[%s5345_s0 + $0x48] ss:$36 sps:$4 sm:$0xff]   ;;  %v44_v9 = vld [vmem:[%s5345_s0 + $0x90] sm:$0x33]  ;;  %v3058_v12 = vcombine.high %v45_v10, %v45_v10  ;;  %v3057_v14 = vcombine.low %v45_v10, %v45_v10  ;;  %v3368_v17 = vld [vmem:[%s5345_s0 + $0x1c] ss:$36 sps:$4 sm:$0xff]  }
   0x5   :  { %227 = vmatprep.subr.bf16.mxu0 %v3355_v5  ;;  %278 = vmatprep.subr.bf16.mxu1 %v3357_v6  ;;  %v3056_v11 = vcombine.high %v44_v9, %v44_v9  ;;  %v3055_v13 = vcombine.low %v44_v9, %v44_v9  ;;  %v3371_v18 = vld [vmem:[%s5345_s0 + $0x14] ss:$36 sps:$4 sm:$0xff]   ;;  %v3374_v22 = vld [vmem:[%s5345_s0 + $0x64] ss:$36 sps:$4 sm:$0xff]   ;;  %v3378_v24 = vld [vmem:[%s5345_s0 + $0x5c] ss:$36 sps:$4 sm:$0xff]  }
   0x6   :  { %v205_v16 = vsel %vm197_vm0, %v3057_v14, 0  ;;  %v3366_v20 = vld [vmem:[%s5345_s0 + $0x18] ss:$36 sps:$4 sm:$0xff]   ;;  %v3369_v21 = vld [vmem:[%s5345_s0 + $0x10] ss:$36 sps:$4 sm:$0xff]   ;;  %v3675_v50 = vld [vmem:[%s5346_s1] sm:$0xff]  }
   0x7   :  { %v199_v15 = vsel %vm197_vm0, %v3055_v13, 0  ;;  %v47_v23 = vld [vmem:[%s5345_s0 + $0xa8] sm:$0x33]  ;;  %v46_v25 = vld [vmem:[%s5345_s0 + $0xa0] sm:$0x33]  ;;  %v51_v61 = vld [vmem:[%s5347_s2 + $0x10] sm:$0xff] }
   0x8   :  { %228 = vmatpush1.bf16.msra.mxu0 %v3359_v7  ;;  %279 = vmatpush1.bf16.msra.mxu1 %v3360_v8  ;;  %v3372_v26 = vld [vmem:[%s5345_s0 + $0x60] ss:$36 sps:$4 sm:$0xff]   ;;  %v3376_v27 = vld [vmem:[%s5345_s0 + $0x58] ss:$36 sps:$4 sm:$0xff]   ;;  %v3062_v28 = vcombine.high %v47_v23, %v47_v23  ;;  %v3060_v29 = vcombine.high %v46_v25, %v46_v25  ;;  %v3061_v30 = vcombine.low %v47_v23, %v47_v23  ;;  %v3375_v32 = vld [vmem:[%s5346_s1 + $0x8] ss:$0 sps:$4 sm:$0xff]  }
   0x9   :  { %3064 = vmatprep.subr.msk.bf16.mxu0 %vm197_vm0, %v3056_v11  ;;  %3067 = vmatprep.subr.msk.bf16.mxu1 %vm197_vm0, %v3058_v12  ;;  %v3059_v31 = vcombine.low %v46_v25, %v46_v25  ;;  %v3385_v35 = vld [vmem:[%s5345_s0 + $0xb8] ss:$36 sps:$4 sm:$0xff]   ;;  %v3386_v36 = vld [vmem:[%s5345_s0 + $0x20] ss:$36 sps:$4 sm:$0xff]   ;;  %v3390_v39 = vld [vmem:[%s5345_s0 + $0x68] ss:$36 sps:$4 sm:$0xff]  }
   0xa   :  { %v217_v33 = vsel %vm197_vm0, %v3061_v30, 0  ;;  %v3383_v37 = vld [vmem:[%s5345_s0 + $0xb4] ss:$36 sps:$4 sm:$0xff]   ;;  %v3389_v38 = vld [vmem:[%s5345_s0 + $0x100] ss:$36 sps:$4 sm:$0xff]   ;;  %v50_v60 = vld [vmem:[%s5347_s2 + $0x8] sm:$0xff]  ;;  %64 = vperm.xlu1 %3348, %v51_v61  }
   0xb   :  { %v211_v34 = vsel %vm197_vm0, %v3059_v31, 0  ;;  %v3098_v40 = vld [vmem:[%s5345_s0 + $0x144] sm:$0x33]  ;;  %v3387_v41 = vld [vmem:[%s5345_s0 + $0xfc] ss:$36 sps:$4 sm:$0xff]  }
   0xc   :  { %230 = vmatpush1.bf16.msra.mxu0 %v199_v15  ;;  %281 = vmatpush1.bf16.msra.mxu1 %v205_v16  ;;  %v3391_v42 = vld [vmem:[%s5345_s0 + $0xb0] ss:$0 sps:$4 sm:$0x33]   ;;  %v3124_v43 = vcombine.high %v3098_v40, %v3098_v40  ;;  %v3123_v44 = vcombine.low %v3098_v40, %v3098_v40  ;;  %v3396_v47 = vld [vmem:[%s5345_s0 + $0xc0] ss:$36 sps:$4 sm:$0xff]  }
   0xd   :  { %378 = vmatprep.subr.bf16.mxu1 %v3368_v17  ;;  %327 = vmatprep.subr.bf16.mxu0 %v3371_v18  ;;  %v223_v45 = vsel %vm197_vm0, %v3391_v42, 0  ;;  %v3400_v48 = vld [vmem:[%s5345_s0 + $0xc8] ss:$36 sps:$4 sm:$0xff]   ;;  %v3394_v49 = vld [vmem:[%s5345_s0 + $0xbc] ss:$36 sps:$4 sm:$0xff]  }
   0xe   :  { %v708_v46 = vsel %vm197_vm0, %v3123_v44, 0  ;;  %v3398_v51 = vld [vmem:[%s5345_s0 + $0xc4] ss:$36 sps:$4 sm:$0xff]   ;;  %v3406_v54 = vld [vmem:[%s5345_s0 + $0x110] ss:$36 sps:$4 sm:$0xff]  }
   0xf   :  { %3065 = vmatmul.mubr.msk.bf16.vlgmr.msra.gmra.mrb[0].mxu0 %vm190_vm1, %v3581_v19  ;;  %3068 = vmatmul.mubr.msk.bf16.vlgmr.msra.gmra.mrb[0].mxu1 %vm190_vm1, %v3581_v19  ;;  %v3683_v52 = vld [vmem:[%s5347_s2] sm:$0xff]  ;;  %v3403_v53 = vld [vmem:[%s5345_s0 + $0x108] ss:$36 sps:$4 sm:$0xff]   ;;  %v3100_v57 = vld [vmem:[%s5345_s0 + $0x154] sm:$0x33] }
  0x10   :  { %379 = vmatpush1.bf16.msra.mxu1 %v3366_v20  ;;  %328 = vmatpush1.bf16.msra.mxu0 %v3369_v21  ;;  %v3099_v55 = vld [vmem:[%s5345_s0 + $0x14c] sm:$0x33]  ;;  %v3401_v56 = vld [vmem:[%s5345_s0 + $0x104] ss:$36 sps:$4 sm:$0xff]   ;;  %v3128_v63 = vcombine.high %v3100_v57, %v3100_v57  ;;  %v3127_v0 = vcombine.low %v3100_v57, %v3100_v57  ;;  %v3415_v6 = vld [vmem:[%s5345_s0 + $0xd4] ss:$36 sps:$4 sm:$0xff]  }
  0x11   :  { %380 = vmatprep.subr.bf16.mxu1 %v3374_v22  ;;  %267 = vmatprep.mubr.bf16.mxu0 %v3503_v1  ;;  %v3404_v58 = vld [vmem:[%s5345_s0 + $0x10c] ss:$36 sps:$4 sm:$0xff]   ;;  %v3126_v59 = vcombine.high %v3099_v55, %v3099_v55  ;;  %v3125_v62 = vcombine.low %v3099_v55, %v3099_v55  ;;  %v3718_v2 = vld [vmem:[%s5346_s1 + $0x8] ss:$0 sps:$4 sm:$0xff]   ;;  %v3418_v8 = vld [vmem:[%s5345_s0 + $0x118] ss:$36 sps:$4 sm:$0xff]  }
  0x12   :  { %318 = vmatprep.mubr.bf16.mxu1 %v3503_v1  ;;  %329 = vmatprep.subr.bf16.mxu0 %v3378_v24  ;;  %v720_v4 = vsel %vm197_vm0, %v3127_v0, 0  ;;  %v3414_v5 = vld [vmem:[%s5345_s0 + $0xd0] ss:$36 sps:$4 sm:$0xff]   ;;  %v3101_v9 = vld [vmem:[%s5345_s0 + $0x15c] sm:$0x33] }
  0x13   :  { %54 = vperm.xlu0 %3347, %v3683_v52   ;;  %v714_v3 = vsel %vm197_vm0, %v3125_v62, 0  ;;  %565 = vperm.xlu1 %3348, %v3683_v52   ;;  %v3412_v7 = vld [vmem:[%s5345_s0 + $0xcc] ss:$36 sps:$4 sm:$0xff]   ;;  %v3416_v10 = vld [vmem:[%s5345_s0 + $0x114] ss:$36 sps:$4 sm:$0xff]   ;;  %v3129_v12 = vcombine.low %v3101_v9, %v3101_v9  ;;  %v3130_v13 = vcombine.high %v3101_v9, %v3101_v9 }
  0x14   :  { %381 = vmatpush1.bf16.msra.mxu1 %v3372_v26  ;;  %330 = vmatpush1.bf16.msra.mxu0 %v3376_v27  ;;  %v3419_v11 = vld [vmem:[%s5345_s0 + $0x11c] ss:$36 sps:$4 sm:$0xff]   ;;  %v3422_v15 = vld [vmem:[%s5345_s0 + $0x164] ss:$0 sps:$4 sm:$0x33]  }
  0x15   :  { %3073 = vmatprep.subr.msk.bf16.mxu1 %vm197_vm0, %v3062_v28  ;;  %3070 = vmatprep.subr.msk.bf16.mxu0 %vm197_vm0, %v3060_v29  ;;  %v726_v14 = vsel %vm197_vm0, %v3129_v12, 0  ;;  %v3425_v16 = vld [vmem:[%s5345_s0 + $0x16c] ss:$36 sps:$4 sm:$0xff]   ;;  %v732_v17 = vsel %vm197_vm0, %v3422_v15, 0  ;;  %v3428_v18 = vld [vmem:[%s5345_s0 + $0x174] ss:$36 sps:$4 sm:$0xff]  }
  0x16   :  { %v3431_v20 = vld [vmem:[%s5345_s0 + $0x1b4] ss:$36 sps:$4 sm:$0xff]   ;;  %v3434_v24 = vld [vmem:[%s5345_s0 + $0x1bc] ss:$36 sps:$4 sm:$0xff]   ;;  %v3452_v40 = vld [vmem:[%s5345_s0 + $0x1c4] ss:$36 sps:$4 sm:$0xff]  }
  0x17   :  { %3066 = vmatmul.mubr.msk.bf16.gmra.mrb[4].mxu0 %vm190_vm1, %v3375_v32  ;;  %3069 = vmatmul.mubr.msk.bf16.gmra.mrb[4].mxu1 %vm190_vm1, %v3375_v32  ;;  %v3166_v21 = vld [vmem:[%s5345_s0 + $0x1f8] sm:$0x33]  ;;  %v3426_v22 = vld [vmem:[%s5345_s0 + $0x170] ss:$36 sps:$4 sm:$0xff]   ;;  %v3167_v27 = vld [vmem:[%s5345_s0 + $0x200] sm:$0x33] }
  0x18   :  { %383 = vmatpush1.bf16.msra.mxu1 %v217_v33  ;;  %332 = vmatpush1.bf16.msra.mxu0 %v211_v34  ;;  %v3429_v23 = vld [vmem:[%s5345_s0 + $0x1b0] ss:$36 sps:$4 sm:$0xff]   ;;  %v3192_v25 = vcombine.high %v3166_v21, %v3166_v21  ;;  %v3191_v26 = vcombine.low %v3166_v21, %v3166_v21  ;;  %v3432_v28 = vld [vmem:[%s5345_s0 + $0x1b8] ss:$36 sps:$4 sm:$0xff]   ;;  %v3194_v29 = vcombine.high %v3167_v27, %v3167_v27  ;;  %v3442_v34 = vld [vmem:[%s5345_s0 + $0x184] ss:$36 sps:$4 sm:$0xff]  }
  0x19   :  { %359 = vmatprep.mubr.bf16.mxu0 %v3503_v1  ;;  %410 = vmatprep.mubr.bf16.mxu1 %v3503_v1  ;;  %v3193_v31 = vcombine.low %v3167_v27, %v3167_v27  ;;  %v3464_v55 = vld [vmem:[%s5345_s0 + $0x1d0] ss:$36 sps:$4 sm:$0xff]   ;;  %v3461_v57 = vld [vmem:[%s5345_s0 + $0x264] ss:$36 sps:$4 sm:$0xff]  }
  0x1a   :  { %734 = vmatprep.subr.bf16.mxu1 %v3385_v35  ;;  %3302 = vmatprep.subr.bf16.mxu0 %v3386_v36  ;;  %v1218_v30 = vsel %vm197_vm0, %v3191_v26, 0  ;;  %v3823_v35 = vld [vmem:[%s5346_s1] sm:$0xff]   ;;  %v3474_v0 = vld [vmem:[%s5345_s0 + $0x230] ss:$36 sps:$4 sm:$0xff]  }
  0x1b   :  { %59 = vperm.xlu0 %3347, %v50_v60   ;;  %575 = vperm.xlu1 %3348, %v51_v61   ;;  %v1224_v33 = vsel %vm197_vm0, %v3193_v31, 0  ;;  %v3475_v9 = vld [vmem:[%s5345_s0 + $0x26c] ss:$36 sps:$4 sm:$0xff]   ;;  %v3492_v21 = vld [vmem:[%s5345_s0 + $0x280] ss:$36 sps:$4 sm:$0xff]  }
  0x1f   :  { %3071 = vmatmul.mubr.msk.bf16.vlgmr.msra.gmra.mrb[8].mxu0 %vm190_vm1, %v3581_v19  ;;  %3074 = vmatmul.mubr.msk.bf16.vlgmr.msra.gmra.mrb[8].mxu1 %vm190_vm1, %v3581_v19 }
  0x20   :  { %735 = vmatpush1.bf16.msra.mxu1 %v3383_v37  ;;  %3303 = vmatpush3.bf16.msra.mxu0 %v3386_v36  ;;  %v3440_v36 = vld [vmem:[%s5345_s0 + $0x180] ss:$36 sps:$4 sm:$0xff]   ;;  %v3443_v37 = vld [vmem:[%s5345_s0 + $0x178] ss:$36 sps:$4 sm:$0xff]  }
  0x21   :  { %736 = vmatprep.subr.bf16.mxu1 %v3389_v38  ;;  %369 = vmatprep.mubr.bf16.mxu0 %v3503_v1  ;;  %v3448_v38 = vld [vmem:[%s5345_s0 + $0x1cc] ss:$36 sps:$4 sm:$0xff]  }
  0x22   :  { %420 = vmatprep.mubr.bf16.mxu1 %v3503_v1  ;;  %3304 = vmatprep.subr.bf16.mxu0 %v3390_v39 }
  0x23   :  { %570 = vperm.xlu0 %3347, %v50_v60   ;;  %1080 = vperm.xlu1 %3348, %v50_v60  }
  0x24   :  { %737 = vmatpush1.bf16.msra.mxu1 %v3387_v41  ;;  %3305 = vmatpush3.bf16.msra.mxu0 %v3390_v39  ;;  %v3169_v39 = vld [vmem:[%s5345_s0 + $0x210] sm:$0x33]  ;;  %v3168_v41 = vld [vmem:[%s5345_s0 + $0x208] sm:$0x33] }
  0x25   :  { %3342 = vmatprep.subr.msk.bf16.mxu0 %vm197_vm0, %v3391_v42  ;;  %3132 = vmatprep.subr.msk.bf16.mxu1 %vm197_vm0, %v3124_v43  ;;  %v3446_v42 = vld [vmem:[%s5345_s0 + $0x1c8] ss:$36 sps:$4 sm:$0xff]   ;;  %v3450_v43 = vld [vmem:[%s5345_s0 + $0x1c0] ss:$36 sps:$4 sm:$0xff]   ;;  %v3198_v44 = vcombine.high %v3169_v39, %v3169_v39 }
  0x27   :  { %3072 = vmatmul.mubr.msk.bf16.gmra.mrb[12].mxu0 %vm190_vm1, %v3375_v32  ;;  %3075 = vmatmul.mubr.msk.bf16.gmra.mrb[12].mxu1 %vm190_vm1, %v3375_v32 }
  0x28   :  { %3307 = vmatpush3.bf16.msra.mxu0 %v223_v45  ;;  %739 = vmatpush1.bf16.msra.mxu1 %v708_v46  ;;  %v3196_v45 = vcombine.high %v3168_v41, %v3168_v41  ;;  %v3197_v46 = vcombine.low %v3169_v39, %v3169_v39 }
  0x29   :  { %3308 = vmatprep.mubr.msk.bf16.mxu0 %vm190_vm1, %v3581_v19  ;;  %766 = vmatprep.mubr.bf16.mxu1 %v3503_v1  ;;  %v3423_v19 = vld [vmem:[%s5345_s0 + $0x168] ss:$36 sps:$4 sm:$0xff]  }
  0x2a   :  { %785 = vmatprep.subr.bf16.mxu0 %v3396_v47  ;;  %836 = vmatprep.subr.bf16.mxu1 %v3400_v48  ;;  %v3195_v47 = vcombine.low %v3168_v41, %v3168_v41  ;;  %v3449_v48 = vld [vmem:[%s5346_s1 + $0x8] ss:$0 sps:$4 sm:$0xff]  }
  0x2b   :  { %1075 = vperm.xlu0 %3347, %v3683_v52   ;;  %1585 = vperm.xlu1 %3348, %v3683_v52   ;;  %v3460_v52 = vld [vmem:[%s5345_s0 + $0x188] ss:$36 sps:$4 sm:$0xff]  }
  0x2f   :  { %3309 = vmatmul.mubr.msk.bf16.vlgmr.msra.gmra.mrb[16].mxu0 %vm190_vm1, %v3375_v32  ;;  %3133 = vmatmul.mubr.msk.bf16.vlgmr.msra.gmra.mrb[16].mxu1 %vm190_vm1, %v3675_v50  ;;  %v3445_v32 = vld [vmem:[%s5345_s0 + $0x17c] ss:$36 sps:$4 sm:$0xff]  }
  0x30   :  { %786 = vmatpush1.bf16.msra.mxu0 %v3394_v49  ;;  %837 = vmatpush1.bf16.msra.mxu1 %v3398_v51  ;;  %v1236_v49 = vsel %vm197_vm0, %v3197_v46, 0  ;;  %v3459_v51 = vld [vmem:[%s5345_s0 + $0x220] ss:$36 sps:$4 sm:$0xff]  }
  0x31   :  { %787 = vmatprep.subr.bf16.mxu0 %v3403_v53  ;;  %838 = vmatprep.subr.bf16.mxu1 %v3406_v54  ;;  %v3457_v53 = vld [vmem:[%s5345_s0 + $0x21c] ss:$36 sps:$4 sm:$0xff]   ;;  %v3463_v54 = vld [vmem:[%s5345_s0 + $0x268] ss:$36 sps:$4 sm:$0xff]  }
  0x32   :  { %776 = vmatprep.mubr.bf16.mxu1 %v3503_v1  ;;  %817 = vmatprep.mubr.bf16.mxu0 %v3503_v1 }
  0x33   :  { %1085 = vperm.xlu0 %3347, %v51_v61   ;;  %1595 = vperm.xlu1 %3348, %v51_v61  }
  0x34   :  { %788 = vmatpush1.bf16.msra.mxu0 %v3401_v56  ;;  %839 = vmatpush1.bf16.msra.mxu1 %v3404_v58  ;;  %v3234_v56 = vld [vmem:[%s5345_s0 + $0x2ac] sm:$0x33]  ;;  %v3465_v58 = vld [vmem:[%s5345_s0 + $0x218] ss:$0 sps:$4 sm:$0x33]  }
  0x35   :  { %3135 = vmatprep.subr.msk.bf16.mxu0 %vm197_vm0, %v3126_v59  ;;  %3138 = vmatprep.subr.msk.bf16.mxu1 %vm197_vm0, %v3128_v63  ;;  %v3260_v59 = vcombine.high %v3234_v56, %v3234_v56  ;;  %v1242_v61 = vsel %vm197_vm0, %v3465_v58, 0  ;;  %v3470_v63 = vld [vmem:[%s5345_s0 + $0x228] ss:$36 sps:$4 sm:$0xff]  }
  0x37   :  { %3134 = vmatmul.mubr.msk.bf16.gmra.mrb[20].mxu1 %vm190_vm1, %v3718_v2  ;;  %1590 = vperm.xlu0 %3347, %v50_v60   ;;  %v3259_v60 = vcombine.low %v3234_v56, %v3234_v56 }
  0x38   :  { %790 = vmatpush1.bf16.msra.mxu0 %v714_v3  ;;  %841 = vmatpush1.bf16.msra.mxu1 %v720_v4  ;;  %v3468_v3 = vld [vmem:[%s5345_s0 + $0x224] ss:$36 sps:$4 sm:$0xff]   ;;  %v3472_v4 = vld [vmem:[%s5345_s0 + $0x22c] ss:$36 sps:$4 sm:$0xff]  }
  0x39   :  { %887 = vmatprep.subr.bf16.mxu0 %v3414_v5  ;;  %868 = vmatprep.mubr.bf16.mxu1 %v3503_v1  ;;  %v1728_v62 = vsel %vm197_vm0, %v3259_v60, 0  ;;  %v3477_v5 = vld [vmem:[%s5345_s0 + $0x270] ss:$36 sps:$4 sm:$0xff]  }
  0x3a   :  { %3312 = vmatprep.subr.bf16.mxu1 %v3415_v6 }
  0x3b   :  { %3136 = vmatmul.mubr.msk.bf16.vlgmr.msra.gmra.mrb[20].mxu0 %vm190_vm1, %v3675_v50 }
  0x3c   :  { %888 = vmatpush1.bf16.msra.mxu0 %v3412_v7  ;;  %827 = vmatprep.mubr.bf16.mxu0 %v3503_v1  ;;  %v3235_v7 = vld [vmem:[%s5345_s0 + $0x2b4] sm:$0x33] }
  0x3d   :  { %889 = vmatprep.subr.bf16.mxu0 %v3418_v8  ;;  %v3236_v8 = vld [vmem:[%s5345_s0 + $0x2bc] sm:$0x33]  ;;  %v3261_v12 = vcombine.low %v3235_v7, %v3235_v7 }
  0x3f   :  { %3139 = vmatmul.mubr.msk.bf16.vlgmr.msra.gmra.mrb[24].mxu1 %vm190_vm1, %v3675_v50 }
  0x40   :  { %3313 = vmatpush3.bf16.msra.mxu1 %v3415_v6  ;;  %890 = vmatpush1.bf16.msra.mxu0 %v3416_v10  ;;  %v3480_v6 = vld [vmem:[%s5345_s0 + $0x278] ss:$36 sps:$4 sm:$0xff]  }
  0x41   :  { %3314 = vmatprep.subr.bf16.mxu1 %v3419_v11  ;;  %878 = vmatprep.mubr.bf16.mxu1 %v3503_v1  ;;  %v3478_v10 = vld [vmem:[%s5345_s0 + $0x274] ss:$36 sps:$4 sm:$0xff]  }
  0x42   :  { %3141 = vmatprep.subr.msk.bf16.mxu0 %vm197_vm0, %v3130_v13  ;;  %v3264_v13 = vcombine.high %v3236_v8, %v3236_v8 }
  0x43   :  { %3137 = vmatmul.mubr.msk.bf16.gmra.mrb[24].mxu0 %vm190_vm1, %v3718_v2 }
  0x44   :  { %3315 = vmatpush3.bf16.msra.mxu1 %v3419_v11  ;;  %892 = vmatpush1.bf16.msra.mxu0 %v726_v14  ;;  %v3262_v11 = vcombine.high %v3235_v7, %v3235_v7  ;;  %v3263_v14 = vcombine.low %v3236_v8, %v3236_v8 }
  0x45   :  { %919 = vmatprep.mubr.bf16.mxu0 %v3503_v1  ;;  %3343 = vmatprep.subr.msk.bf16.mxu1 %vm197_vm0, %v3422_v15  ;;  %v3482_v15 = vld [vmem:[%s5346_s1 + $0x8] ss:$0 sps:$4 sm:$0xff]  }
  0x46   :  { %1244 = vmatprep.subr.bf16.mxu0 %v3425_v16  ;;  %v1734_v16 = vsel %vm197_vm0, %v3261_v12, 0 }
  0x47   :  { %3140 = vmatmul.mubr.msk.bf16.gmra.mrb[28].mxu1 %vm190_vm1, %v3718_v2 }
  0x48   :  { %3317 = vmatpush3.bf16.msra.mxu1 %v732_v17  ;;  %3318 = vmatprep.mubr.msk.bf16.mxu1 %vm190_vm1, %v3675_v50  ;;  %v1740_v17 = vsel %vm197_vm0, %v3263_v14, 0 }
  0x49   :  { %1295 = vmatprep.subr.bf16.mxu1 %v3428_v18  ;;  %v3488_v18 = vld [vmem:[%s5345_s0 + $0x238] ss:$36 sps:$4 sm:$0xff]  }
  0x4b   :  { %3142 = vmatmul.mubr.msk.bf16.vlgmr.msra.gmra.mrb[28].mxu0 %vm190_vm1, %v3675_v50  ;;  %v1230_v50 = vsel %vm197_vm0, %v3195_v47, 0 }
  0x4c   :  { %1245 = vmatpush1.bf16.msra.mxu0 %v3423_v19  ;;  %929 = vmatprep.mubr.bf16.mxu0 %v3503_v1  ;;  %v3489_v19 = vld [vmem:[%s5345_s0 + $0x23c] ss:$36 sps:$4 sm:$0xff]  }
  0x4d   :  { %1246 = vmatprep.subr.bf16.mxu0 %v3431_v20  ;;  %v3486_v20 = vld [vmem:[%s5345_s0 + $0x234] ss:$36 sps:$4 sm:$0xff]  }
  0x4f   :  { %3319 = vmatmul.mubr.msk.bf16.vlgmr.msra.gmra.mrb[32].mxu1 %vm190_vm1, %v3718_v2 }
  0x50   :  { %1296 = vmatpush1.bf16.msra.mxu1 %v3426_v22  ;;  %1247 = vmatpush1.bf16.msra.mxu0 %v3429_v23  ;;  %v3237_v22 = vld [vmem:[%s5345_s0 + $0x2c4] sm:$0x33]  ;;  %v3490_v23 = vld [vmem:[%s5345_s0 + $0x27c] ss:$36 sps:$4 sm:$0xff]  }
  0x51   :  { %1297 = vmatprep.subr.bf16.mxu1 %v3434_v24  ;;  %3200 = vmatprep.subr.msk.bf16.mxu0 %vm197_vm0, %v3192_v25  ;;  %v3493_v24 = vld [vmem:[%s5345_s0 + $0x284] ss:$36 sps:$4 sm:$0xff]   ;;  %v3265_v25 = vcombine.low %v3237_v22, %v3237_v22  ;;  %v3266_v26 = vcombine.high %v3237_v22, %v3237_v22 }
  0x52   :  { %1327 = vmatprep.mubr.bf16.mxu1 %v3503_v1 }
  0x53   :  { %3143 = vmatmul.mubr.msk.bf16.gmra.mrb[32].mxu0 %vm190_vm1, %v3718_v2  ;;  %v3914_v2 = vld [vmem:[%s5346_s1] sm:$0xff]   ;;  %v1746_v27 = vsel %vm197_vm0, %v3265_v25, 0 }
  0x54   :  { %1298 = vmatpush1.bf16.msra.mxu1 %v3432_v28  ;;  %1249 = vmatpush1.bf16.msra.mxu0 %v1218_v30  ;;  %v3496_v28 = vld [vmem:[%s5345_s0 + $0x2cc] ss:$0 sps:$4 sm:$0x33]  }
  0x55   :  { %3203 = vmatprep.subr.msk.bf16.mxu1 %vm197_vm0, %v3194_v29  ;;  %1276 = vmatprep.mubr.bf16.mxu0 %v3503_v1  ;;  %v1752_v29 = vsel %vm197_vm0, %v3496_v28, 0 }
  0x56   :  { %1346 = vmatprep.subr.bf16.mxu0 %v3445_v32 }
  0x58   :  { %1300 = vmatpush1.bf16.msra.mxu1 %v1224_v33 }
  0x59   :  { %1397 = vmatprep.subr.bf16.mxu1 %v3442_v34 }
  0x5b   :  { %3201 = vmatmul.mubr.msk.bf16.vlgmr.msra.gmra.mrb[36].mxu0 %vm190_vm1, %v3823_v35  ;;  %3204 = vmatmul.mubr.msk.bf16.vlgmr.msra.gmra.mrb[36].mxu1 %vm190_vm1, %v3823_v35 }
  0x5c   :  { %1398 = vmatpush1.bf16.msra.mxu1 %v3440_v36  ;;  %1347 = vmatpush1.bf16.msra.mxu0 %v3443_v37 }
  0x5d   :  { %1399 = vmatprep.subr.bf16.mxu1 %v3448_v38  ;;  %1286 = vmatprep.mubr.bf16.mxu0 %v3503_v1 }
  0x5e   :  { %1337 = vmatprep.mubr.bf16.mxu1 %v3503_v1  ;;  %1348 = vmatprep.subr.bf16.mxu0 %v3452_v40 }
  0x60   :  { %1400 = vmatpush1.bf16.msra.mxu1 %v3446_v42  ;;  %1349 = vmatpush1.bf16.msra.mxu0 %v3450_v43 }
  0x61   :  { %3209 = vmatprep.subr.msk.bf16.mxu1 %vm197_vm0, %v3198_v44  ;;  %3206 = vmatprep.subr.msk.bf16.mxu0 %vm197_vm0, %v3196_v45 }
  0x63   :  { %3202 = vmatmul.mubr.msk.bf16.gmra.mrb[40].mxu0 %vm190_vm1, %v3449_v48  ;;  %3205 = vmatmul.mubr.msk.bf16.gmra.mrb[40].mxu1 %vm190_vm1, %v3449_v48 }
  0x64   :  { %1402 = vmatpush1.bf16.msra.mxu1 %v1236_v49  ;;  %1351 = vmatpush1.bf16.msra.mxu0 %v1230_v50 }
  0x65   :  { %1378 = vmatprep.mubr.bf16.mxu0 %v3503_v1  ;;  %1429 = vmatprep.mubr.bf16.mxu1 %v3503_v1 }
  0x66   :  { %1754 = vmatprep.subr.bf16.mxu1 %v3459_v51  ;;  %3322 = vmatprep.subr.bf16.mxu0 %v3460_v52 }
  0x6b   :  { %3207 = vmatmul.mubr.msk.bf16.vlgmr.msra.gmra.mrb[44].mxu0 %vm190_vm1, %v3823_v35  ;;  %3210 = vmatmul.mubr.msk.bf16.vlgmr.msra.gmra.mrb[44].mxu1 %vm190_vm1, %v3823_v35 }
  0x6c   :  { %1755 = vmatpush1.bf16.msra.mxu1 %v3457_v53  ;;  %3323 = vmatpush3.bf16.msra.mxu0 %v3460_v52 }
  0x6d   :  { %1756 = vmatprep.subr.bf16.mxu1 %v3463_v54  ;;  %1388 = vmatprep.mubr.bf16.mxu0 %v3503_v1 }
  0x6e   :  { %1439 = vmatprep.mubr.bf16.mxu1 %v3503_v1  ;;  %3324 = vmatprep.subr.bf16.mxu0 %v3464_v55 }
  0x70   :  { %1757 = vmatpush1.bf16.msra.mxu1 %v3461_v57  ;;  %3325 = vmatpush3.bf16.msra.mxu0 %v3464_v55 }
  0x71   :  { %3344 = vmatprep.subr.msk.bf16.mxu0 %vm197_vm0, %v3465_v58  ;;  %3268 = vmatprep.subr.msk.bf16.mxu1 %vm197_vm0, %v3260_v59 }
  0x73   :  { %3208 = vmatmul.mubr.msk.bf16.gmra.mrb[48].mxu0 %vm190_vm1, %v3449_v48  ;;  %3211 = vmatmul.mubr.msk.bf16.gmra.mrb[48].mxu1 %vm190_vm1, %v3449_v48 }
  0x74   :  { %3327 = vmatpush3.bf16.msra.mxu0 %v1242_v61  ;;  %1759 = vmatpush1.bf16.msra.mxu1 %v1728_v62 }
  0x75   :  { %3328 = vmatprep.mubr.msk.bf16.mxu0 %vm190_vm1, %v3823_v35  ;;  %1786 = vmatprep.mubr.bf16.mxu1 %v3503_v1 }
  0x76   :  { %1805 = vmatprep.subr.bf16.mxu0 %v3470_v63  ;;  %1856 = vmatprep.subr.bf16.mxu1 %v3474_v0 }
  0x7b   :  { %3329 = vmatmul.mubr.msk.bf16.vlgmr.msra.gmra.mrb[52].mxu0 %vm190_vm1, %v3449_v48  ;;  %3269 = vmatmul.mubr.msk.bf16.vlgmr.msra.gmra.mrb[52].mxu1 %vm190_vm1, %v3914_v2 }
  0x7c   :  { %1806 = vmatpush1.bf16.msra.mxu0 %v3468_v3  ;;  %1857 = vmatpush1.bf16.msra.mxu1 %v3472_v4 }
  0x7d   :  { %1807 = vmatprep.subr.bf16.mxu0 %v3477_v5  ;;  %1858 = vmatprep.subr.bf16.mxu1 %v3480_v6 }
  0x7e   :  { %1796 = vmatprep.mubr.bf16.mxu1 %v3503_v1  ;;  %1837 = vmatprep.mubr.bf16.mxu0 %v3503_v1 }
  0x80   :  { %1808 = vmatpush1.bf16.msra.mxu0 %v3475_v9  ;;  %1859 = vmatpush1.bf16.msra.mxu1 %v3478_v10 }
  0x81   :  { %3271 = vmatprep.subr.msk.bf16.mxu0 %vm197_vm0, %v3262_v11  ;;  %3274 = vmatprep.subr.msk.bf16.mxu1 %vm197_vm0, %v3264_v13 }
  0x83   :  { %3270 = vmatmul.mubr.msk.bf16.gmra.mrb[56].mxu1 %vm190_vm1, %v3482_v15 }
  0x84   :  { %1810 = vmatpush1.bf16.msra.mxu0 %v1734_v16  ;;  %1861 = vmatpush1.bf16.msra.mxu1 %v1740_v17 }
  0x85   :  { %1907 = vmatprep.subr.bf16.mxu0 %v3488_v18  ;;  %1888 = vmatprep.mubr.bf16.mxu1 %v3503_v1 }
  0x86   :  { %3332 = vmatprep.subr.bf16.mxu1 %v3489_v19 }
  0x87   :  { %3272 = vmatmul.mubr.msk.bf16.vlgmr.msra.gmra.mrb[56].mxu0 %vm190_vm1, %v3914_v2 }
  0x88   :  { %1908 = vmatpush1.bf16.msra.mxu0 %v3486_v20  ;;  %1847 = vmatprep.mubr.bf16.mxu0 %v3503_v1 }
  0x89   :  { %1909 = vmatprep.subr.bf16.mxu0 %v3492_v21  ;;  %v4002_v40 = vpop.permute.xlu1 %64 }
  0x8b   :  { %3275 = vmatmul.mubr.msk.bf16.vlgmr.msra.gmra.mrb[60].mxu1 %vm190_vm1, %v3914_v2 }
  0x8c   :  { %3333 = vmatpush3.bf16.msra.mxu1 %v3489_v19  ;;  %1910 = vmatpush1.bf16.msra.mxu0 %v3490_v23 }
  0x8d   :  { %3334 = vmatprep.subr.bf16.mxu1 %v3493_v24  ;;  %1898 = vmatprep.mubr.bf16.mxu1 %v3503_v1 }
  0x8e   :  { %3277 = vmatprep.subr.msk.bf16.mxu0 %vm197_vm0, %v3266_v26 }
  0x8f   :  { %3273 = vmatmul.mubr.msk.bf16.gmra.mrb[60].mxu0 %vm190_vm1, %v3482_v15 }
  0x90   :  { %3335 = vmatpush3.bf16.msra.mxu1 %v3493_v24  ;;  %1912 = vmatpush1.bf16.msra.mxu0 %v1746_v27 }
  0x91   :  { %1939 = vmatprep.mubr.bf16.mxu0 %v3503_v1  ;;  %3345 = vmatprep.subr.msk.bf16.mxu1 %vm197_vm0, %v3496_v28 }
  0x92   :  { %v3998_v30 = vpop.permute.xlu0 %54 }
  0x93   :  { %3276 = vmatmul.mubr.msk.bf16.gmra.mrb[64].mxu1 %vm190_vm1, %v3482_v15 }
  0x94   :  { %3337 = vmatpush3.bf16.msra.mxu1 %v1752_v29  ;;  %3338 = vmatprep.mubr.msk.bf16.mxu1 %vm190_vm1, %v3914_v2 }
  0x97   :  { %3278 = vmatmul.mubr.msk.bf16.vlgmr.msra.gmra.mrb[64].mxu0 %vm190_vm1, %v3914_v2 }
  0x98   :  { %1949 = vmatprep.mubr.bf16.mxu0 %v3503_v1 }
  0x9a   :  { %v4000_v39 = vpop.permute.xlu0 %59 }
  0x9b   :  { %3339 = vmatmul.mubr.msk.bf16.vlgmr.msra.gmra.mrb[68].mxu1 %vm190_vm1, %v3482_v15 }
  0x9f   :  { %3279 = vmatmul.mubr.msk.bf16.gmra.mrb[68].mxu0 %vm190_vm1, %v3482_v15 }
  0xe2   :  { %v259_v31 = vpop.f32.mrb[0].mxu0  ;;  %v310_v32 = vpop.f32.mrb[0].mxu1 }
  0xe3   :  { %v261_v33 = vpop.f32.mrb[1].mxu0  ;;  %v312_v34 = vpop.f32.mrb[1].mxu1  ;;  %v260_v44 = vadd.f32 %v259_v31, %v3998_v30  ;;  %v311_v61 = vadd.f32 %v310_v32, %v3998_v30 }
  0xe4   :  { %v263_v35 = vpop.f32.mrb[2].mxu0  ;;  %v314_v36 = vpop.f32.mrb[2].mxu1  ;;  %v262_v45 = vadd.f32 %v261_v33, %v3998_v30  ;;  %v313_v12 = vadd.f32 %v312_v34, %v3998_v30 }
  0xe5   :  { %v265_v37 = vpop.f32.mrb[3].mxu0  ;;  %v316_v38 = vpop.f32.mrb[3].mxu1  ;;  %v264_v1 = vadd.f32 %v263_v35, %v4000_v39  ;;  %v4014_v56 = vmax.f32 %v260_v44, 0.0  ;;  %v315_v58 = vadd.f32 %v314_v36, %v4000_v39  ;;  %v4034_v11 = vmax.f32 %v311_v61, 0.0 }
  0xe6   :  { %v266_v41 = vadd.f32 %v265_v37, %v4000_v39  ;;  %v4016_v57 = vmax.f32 %v262_v45, 0.0  ;;  %v317_v7 = vadd.f32 %v316_v38, %v4000_v39  ;;  %v4050_v25 = vmax.f32 %v313_v12, 0.0 }
  0xe7   :  { %v4010_v54 = vmax.f32 %v264_v1, 0.0  ;;  %5530 = vst [vmem:[#allocation5_spill] sm:$0xff] %v4014_v56  ;;  %v4029_v6 = vmax.f32 %v315_v58, 0.0  ;;  %5535 = vst [vmem:[#allocation10_spill] sm:$0xff] %v4034_v11 }
  0xe8   :  { %v4012_v55 = vmax.f32 %v266_v41, 0.0  ;;  %5531 = vst [vmem:[#allocation6_spill] sm:$0xff] %v4016_v57  ;;  %v2088_v3 = vadd.f32 %v4016_v57, %v4014_v56  ;;  %v4044_v21 = vmax.f32 %v317_v7, 0.0  ;;  %5539 = vst [vmem:[#allocation14_spill] sm:$0xff] %v4050_v25 }
  0xe9   :  { %5528 = vst [vmem:[#allocation3_spill] sm:$0xff] %v4010_v54  ;;  %5534 = vst [vmem:[#allocation9_spill] sm:$0xff] %v4029_v6 }
  0xea   :  { %v269_v42 = vpop.f32.mrb[4].mxu0  ;;  %v320_v43 = vpop.f32.mrb[4].mxu1  ;;  %5529 = vst [vmem:[#allocation4_spill] sm:$0xff] %v4012_v55  ;;  %v2098_v62 = vadd.f32 %v4012_v55, %v4010_v54  ;;  %v2089_v20 = vadd.f32 %v2088_v3, %v4034_v11  ;;  %5537 = vst [vmem:[#allocation12_spill] sm:$0xff] %v4044_v21 }
  0xeb   :  { %v271_v46 = vpop.f32.mrb[5].mxu0  ;;  %v322_v47 = vpop.f32.mrb[5].mxu1  ;;  %v270_v48 = vadd.f32 %v269_v42, %v4002_v40  ;;  %v321_v63 = vadd.f32 %v320_v43, %v4002_v40 }
  0xec   :  { %v272_v49 = vadd.f32 %v271_v46, %v4002_v40  ;;  %v273_v50 = vpop.f32.mrb[6].mxu0  ;;  %v324_v51 = vpop.f32.mrb[6].mxu1  ;;  %v2099_v17 = vadd.f32 %v2098_v62, %v4029_v6  ;;  %v323_v19 = vadd.f32 %v322_v47, %v4002_v40  ;;  %v2090_v33 = vadd.f32 %v2089_v20, %v4050_v25 }
  0xed   :  { %v274_v52 = vpop.f32.mrb[7].mxu0  ;;  %v325_v53 = vpop.f32.mrb[7].mxu1  ;;  %v4019_v59 = vmax.f32 %v270_v48, 0.0  ;;  %v4040_v18 = vmax.f32 %v321_v63, 0.0 }
  0xee   :  { %v4021_v60 = vmax.f32 %v272_v49, 0.0  ;;  %v2100_v28 = vadd.f32 %v2099_v17, %v4044_v21  ;;  %v4056_v29 = vmax.f32 %v323_v19, 0.0 }
  0xef   :  { %5532 = vst [vmem:[#allocation7_spill] sm:$0xff] %v4019_v59  ;;  %5536 = vst [vmem:[#allocation11_spill] sm:$0xff] %v4040_v18 }
  0xf0   :  { %5533 = vst [vmem:[#allocation8_spill] sm:$0xff] %v4021_v60  ;;  %v2108_v8 = vadd.f32 %v4021_v60, %v4019_v59  ;;  %5541 = vst [vmem:[#allocation16_spill] sm:$0xff] %v4056_v29 }
  0xf2   :  { %v361_v0 = vpop.f32.mrb[8].mxu0  ;;  %v412_v2 = vpop.f32.mrb[8].mxu1  ;;  %v2109_v22 = vadd.f32 %v2108_v8, %v4040_v18 }
  0xf3   :  { %v363_v4 = vpop.f32.mrb[9].mxu0  ;;  %v414_v5 = vpop.f32.mrb[9].mxu1  ;;  %v362_v13 = vadd.f32 %v361_v0, %v3998_v30  ;;  %v413_v52 = vadd.f32 %v412_v2, %v3998_v30 }
  0xf4   :  { %v365_v9 = vpop.f32.mrb[10].mxu0  ;;  %v416_v10 = vpop.f32.mrb[10].mxu1  ;;  %v364_v27 = vadd.f32 %v363_v4, %v3998_v30  ;;  %v2110_v37 = vadd.f32 %v2109_v22, %v4056_v29  ;;  %v415_v3 = vadd.f32 %v414_v5, %v3998_v30 }
  0xf5   :  { %v366_v14 = vadd.f32 %v365_v9, %v4000_v39  ;;  %v367_v15 = vpop.f32.mrb[11].mxu0  ;;  %v418_v16 = vpop.f32.mrb[11].mxu1  ;;  %v4052_v26 = vmax.f32 %v362_v13, 0.0  ;;  %v417_v50 = vadd.f32 %v416_v10, %v4000_v39  ;;  %v4086_v9 = vmax.f32 %v413_v52, 0.0 }
  0xf6   :  { %v368_v24 = vadd.f32 %v367_v15, %v4000_v39  ;;  %v4066_v45 = vmax.f32 %v364_v27, 0.0  ;;  %v419_v7 = vadd.f32 %v418_v16, %v4000_v39 }
  0xf7   :  { %v4047_v23 = vmax.f32 %v366_v14, 0.0  ;;  %5540 = vst [vmem:[#allocation15_spill] sm:$0xff] %v4052_v26  ;;  %v2091_v44 = vadd.f32 %v2090_v33, %v4052_v26  ;;  %v4083_v4 = vmax.f32 %v417_v50, 0.0  ;;  %5548 = vst [vmem:[#allocation23_spill] sm:$0xff] %v4086_v9  ;;  %v4103_v33 = vpop.permute.xlu1 %565 }
  0xf8   :  { %v4062_v1 = vmax.f32 %v368_v24, 0.0  ;;  %5543 = vst [vmem:[#allocation18_spill] sm:$0xff] %v4066_v45 }
  0xf9   :  { %5538 = vst [vmem:[#allocation13_spill] sm:$0xff] %v4047_v23  ;;  %v2101_v38 = vadd.f32 %v2100_v28, %v4047_v23  ;;  %v2092_v62 = vadd.f32 %v2091_v44, %v4066_v45  ;;  %5547 = vst [vmem:[#allocation22_spill] sm:$0xff] %v4083_v4 }
  0xfa   :  { %v371_v31 = vpop.f32.mrb[12].mxu0  ;;  %v422_v32 = vpop.f32.mrb[12].mxu1  ;;  %5542 = vst [vmem:[#allocation17_spill] sm:$0xff] %v4062_v1 }
  0xfb   :  { %v372_v34 = vadd.f32 %v371_v31, %v4002_v40  ;;  %v373_v35 = vpop.f32.mrb[13].mxu0  ;;  %v424_v36 = vpop.f32.mrb[13].mxu1  ;;  %v423_v47 = vadd.f32 %v422_v32, %v4002_v40  ;;  %v2102_v61 = vadd.f32 %v2101_v38, %v4062_v1  ;;  %v2093_v28 = vadd.f32 %v2092_v62, %v4086_v9 }
  0xfc   :  { %v374_v41 = vadd.f32 %v373_v35, %v4002_v40  ;;  %v375_v42 = vpop.f32.mrb[14].mxu0  ;;  %v426_v43 = vpop.f32.mrb[14].mxu1  ;;  %v425_v58 = vadd.f32 %v424_v36, %v4002_v40  ;;  %v4098_v31 = vmax.f32 %v419_v7, 0.0  ;;  %v4101_v32 = vmax.f32 %v415_v3, 0.0 }
  0xfd   :  { %v4068_v46 = vmax.f32 %v372_v34, 0.0  ;;  %v376_v48 = vpop.f32.mrb[15].mxu0  ;;  %v427_v49 = vpop.f32.mrb[15].mxu1  ;;  %v4079_v63 = vmax.f32 %v423_v47, 0.0  ;;  %v2103_v20 = vadd.f32 %v2102_v61, %v4083_v4 }
  0xfe   :  { %v4072_v51 = vmax.f32 %v374_v41, 0.0  ;;  %v4088_v10 = vmax.f32 %v425_v58, 0.0  ;;  %5551 = vst [vmem:[#allocation26_spill] sm:$0xff] %v4098_v31  ;;  %5552 = vst [vmem:[#allocation27_spill] sm:$0xff] %v4101_v32  ;;  %v4124_v62 = vpop.permute.xlu1 %575 }
  0xff   :  { %5544 = vst [vmem:[#allocation19_spill] sm:$0xff] %v4068_v46  ;;  %v2111_v53 = vadd.f32 %v2110_v37, %v4068_v46  ;;  %5546 = vst [vmem:[#allocation21_spill] sm:$0xff] %v4079_v63  ;;  %v2104_v36 = vadd.f32 %v2103_v20, %v4098_v31  ;;  %v2094_v37 = vadd.f32 %v2093_v28, %v4101_v32 }
 0x100   :  { %5545 = vst [vmem:[#allocation20_spill] sm:$0xff] %v4072_v51  ;;  %5549 = vst [vmem:[#allocation24_spill] sm:$0xff] %v4088_v10 }
 0x101   :  { %v2112_v0 = vadd.f32 %v2111_v53, %v4072_v51 }
 0x102   :  { %v3310_v8 = vpop.f32.mrb[16].mxu0  ;;  %v768_v2 = vpop.f32.mrb[16].mxu1 }
 0x103   :  { %v472_v12 = vadd.f32 %v3310_v8, %v4002_v40  ;;  %v463_v13 = vpop.f32.mrb[17].mxu0  ;;  %v770_v14 = vpop.f32.mrb[17].mxu1  ;;  %v2113_v15 = vadd.f32 %v2112_v0, %v4079_v63  ;;  %v769_v38 = vadd.f32 %v768_v2, %v4103_v33 }
 0x104   :  { %v464_v17 = vadd.f32 %v463_v13, %v3998_v30  ;;  %v3311_v19 = vpop.f32.mrb[18].mxu0  ;;  %v772_v5 = vpop.f32.mrb[18].mxu1  ;;  %v771_v41 = vadd.f32 %v770_v14, %v4103_v33 }
 0x105   :  { %v4094_v22 = vmax.f32 %v472_v12, 0.0  ;;  %v466_v16 = vpop.f32.mrb[19].mxu0  ;;  %v774_v24 = vpop.f32.mrb[19].mxu1  ;;  %v2114_v27 = vadd.f32 %v2113_v15, %v4088_v10  ;;  %v4120_v53 = vmax.f32 %v769_v38, 0.0 }
 0x106   :  { %v467_v40 = vadd.f32 %v466_v16, %v4000_v39  ;;  %v4105_v30 = vmax.f32 %v464_v17, 0.0  ;;  %v4114_v39 = vpop.permute.xlu0 %570  ;;  %v4122_v58 = vmax.f32 %v771_v41, 0.0 }
 0x107   :  { %5550 = vst [vmem:[#allocation25_spill] sm:$0xff] %v4094_v22  ;;  %v2115_v34 = vadd.f32 %v2114_v27, %v4094_v22  ;;  %v773_v49 = vadd.f32 %v772_v5, %v4114_v39  ;;  %v775_v50 = vadd.f32 %v774_v24, %v4114_v39  ;;  %5555 = vst [vmem:[#allocation30_spill] sm:$0xff] %v4120_v53 }
 0x108   :  { %5553 = vst [vmem:[#allocation28_spill] sm:$0xff] %v4105_v30  ;;  %v4108_v35 = vmax.f32 %v467_v40, 0.0  ;;  %v2095_v47 = vadd.f32 %v2094_v37, %v4105_v30  ;;  %5556 = vst [vmem:[#allocation31_spill] sm:$0xff] %v4122_v58  ;;  %v2148_v17 = vadd.f32 %v4122_v58, %v4120_v53 }
 0x109   :  { %2116 = vadd.xlane.f32.xlu0 %v2115_v34  ;;  %v4128_v2 = vmax.f32 %v773_v49, 0.0  ;;  %v4130_v12 = vmax.f32 %v775_v50, 0.0 }
 0x10a   :  { %5554 = vst [vmem:[#allocation29_spill] sm:$0xff] %v4108_v35  ;;  %v778_v42 = vpop.f32.mrb[20].mxu1  ;;  %v2105_v43 = vadd.f32 %v2104_v36, %v4108_v35 }
 0x10b   :  { %v780_v44 = vpop.f32.mrb[21].mxu1  ;;  %5557 = vst [vmem:[#allocation32_spill] sm:$0xff] %v4128_v2  ;;  %5558 = vst [vmem:[#allocation33_spill] sm:$0xff] %v4130_v12  ;;  %v779_v19 = vadd.f32 %v778_v42, %v4124_v62  ;;  %v2158_v37 = vadd.f32 %v4130_v12, %v4128_v2 }
 0x10c   :  { %v782_v48 = vpop.f32.mrb[22].mxu1  ;;  %2106 = vadd.xlane.f32.xlu1 %v2105_v43  ;;  %v781_v5 = vadd.f32 %v780_v44, %v4124_v62 }
 0x10d   :  { %v783_v52 = vpop.f32.mrb[23].mxu1  ;;  %2096 = vadd.xlane.f32.xlu0 %v2095_v47  ;;  %v4148_v41 = vmax.f32 %v779_v19, 0.0 }
 0x10e   :  { %v819_v61 = vpop.f32.mrb[20].mxu0  ;;  %v4150_v42 = vmax.f32 %v781_v5, 0.0 }
 0x10f   :  { %v820_v0 = vadd.f32 %v819_v61, %v4103_v33  ;;  %v821_v3 = vpop.f32.mrb[21].mxu0  ;;  %5562 = vst [vmem:[#allocation37_spill] sm:$0xff] %v4148_v41 }
 0x110   :  { %v822_v7 = vadd.f32 %v821_v3, %v4103_v33  ;;  %v823_v8 = vpop.f32.mrb[22].mxu0  ;;  %5563 = vst [vmem:[#allocation38_spill] sm:$0xff] %v4150_v42 }
 0x111   :  { %v4132_v13 = vmax.f32 %v820_v0, 0.0  ;;  %v824_v14 = vadd.f32 %v823_v8, %v4114_v39  ;;  %v825_v15 = vpop.f32.mrb[23].mxu0 }
 0x112   :  { %v870_v20 = vpop.f32.mrb[24].mxu1  ;;  %v826_v24 = vadd.f32 %v825_v15, %v4114_v39  ;;  %v4143_v40 = vmax.f32 %v822_v7, 0.0 }
 0x113   :  { %5559 = vst [vmem:[#allocation34_spill] sm:$0xff] %v4132_v13  ;;  %v4139_v16 = vmax.f32 %v824_v14, 0.0  ;;  %v872_v27 = vpop.f32.mrb[25].mxu1  ;;  %v2149_v28 = vadd.f32 %v2148_v17, %v4132_v13  ;;  %v871_v34 = vadd.f32 %v870_v20, %v4103_v33  ;;  %v2168_v17 = vadd.f32 %v4150_v42, %v4148_v41 }
 0x114   :  { %5561 = vst [vmem:[#allocation36_spill] sm:$0xff] %v4143_v40  ;;  %v874_v36 = vpop.f32.mrb[26].mxu1  ;;  %v4153_v47 = vmax.f32 %v826_v24, 0.0  ;;  %v873_v0 = vadd.f32 %v872_v27, %v4103_v33 }
 0x115   :  { %5560 = vst [vmem:[#allocation35_spill] sm:$0xff] %v4139_v16  ;;  %v876_v38 = vpop.f32.mrb[27].mxu1  ;;  %v2159_v44 = vadd.f32 %v2158_v37, %v4139_v16  ;;  %v875_v48 = vadd.f32 %v874_v36, %v4114_v39  ;;  %v2150_v52 = vadd.f32 %v2149_v28, %v4143_v40  ;;  %v4158_v61 = vmax.f32 %v871_v34, 0.0 }
 0x116   :  { %v829_v43 = vpop.f32.mrb[24].mxu0  ;;  %5564 = vst [vmem:[#allocation39_spill] sm:$0xff] %v4153_v47  ;;  %v877_v20 = vadd.f32 %v876_v38, %v4114_v39  ;;  %v4171_v27 = vmax.f32 %v873_v0, 0.0 }
 0x117   :  { %v830_v49 = vadd.f32 %v829_v43, %v4124_v62  ;;  %v831_v50 = vpop.f32.mrb[25].mxu0  ;;  %5565 = vst [vmem:[#allocation40_spill] sm:$0xff] %v4158_v61  ;;  %v2160_v19 = vadd.f32 %v2159_v44, %v4153_v47  ;;  %v4167_v5 = vmax.f32 %v875_v48, 0.0  ;;  %v2151_v28 = vadd.f32 %v2150_v52, %v4158_v61 }
 0x118   :  { %v833_v3 = vpop.f32.mrb[26].mxu0  ;;  %v832_v8 = vadd.f32 %v831_v50, %v4124_v62  ;;  %5568 = vst [vmem:[#allocation43_spill] sm:$0xff] %v4171_v27  ;;  %v4178_v48 = vmax.f32 %v877_v20, 0.0 }
 0x119   :  { %v4161_v7 = vmax.f32 %v830_v49, 0.0  ;;  %v834_v14 = vpop.f32.mrb[27].mxu0  ;;  %5567 = vst [vmem:[#allocation42_spill] sm:$0xff] %v4167_v5  ;;  %v2161_v44 = vadd.f32 %v2160_v19, %v4167_v5  ;;  %v2152_v52 = vadd.f32 %v2151_v28, %v4171_v27 }
 0x11a   :  { %v880_v15 = vpop.f32.mrb[28].mxu1  ;;  %v4174_v37 = vmax.f32 %v832_v8, 0.0  ;;  %5570 = vst [vmem:[#allocation45_spill] sm:$0xff] %v4178_v48 }
 0x11b   :  { %5566 = vst [vmem:[#allocation41_spill] sm:$0xff] %v4161_v7  ;;  %v882_v24 = vpop.f32.mrb[29].mxu1  ;;  %v2169_v36 = vadd.f32 %v2168_v17, %v4161_v7  ;;  %v881_v43 = vadd.f32 %v880_v15, %v4124_v62  ;;  %v2162_v28 = vadd.f32 %v2161_v44, %v4178_v48 }
 0x11c   :  { %v884_v34 = vpop.f32.mrb[30].mxu1  ;;  %5569 = vst [vmem:[#allocation44_spill] sm:$0xff] %v4174_v37  ;;  %v883_v0 = vadd.f32 %v882_v24, %v4124_v62 }
 0x11d   :  { %v885_v49 = vpop.f32.mrb[31].mxu1  ;;  %v2170_v8 = vadd.f32 %v2169_v36, %v4174_v37  ;;  %v4185_v34 = vmax.f32 %v881_v43, 0.0 }
 0x11e   :  { %v921_v50 = vpop.f32.mrb[28].mxu0  ;;  %v4201_v30 = vmax.f32 %v883_v0, 0.0 }
 0x11f   :  { %v922_v38 = vadd.f32 %v921_v50, %v4103_v33  ;;  %v923_v3 = vpop.f32.mrb[29].mxu0  ;;  %5571 = vst [vmem:[#allocation46_spill] sm:$0xff] %v4185_v34 }
 0x120   :  { %v924_v14 = vadd.f32 %v923_v3, %v4103_v33  ;;  %v925_v17 = vpop.f32.mrb[30].mxu0  ;;  %5576 = vst [vmem:[#allocation51_spill] sm:$0xff] %v4201_v30 }
 0x121   :  { %v4187_v15 = vmax.f32 %v922_v38, 0.0  ;;  %v926_v19 = vadd.f32 %v925_v17, %v4114_v39  ;;  %v927_v20 = vpop.f32.mrb[31].mxu0  ;;  %v2171_v17 = vadd.f32 %v2170_v8, %v4185_v34 }
 0x122   :  { %v4190_v49 = vmax.f32 %v924_v14, 0.0  ;;  %v928_v50 = vadd.f32 %v927_v20, %v4114_v39  ;;  %v3320_v22 = vpop.f32.mrb[32].mxu1 }
 0x123   :  { %5572 = vst [vmem:[#allocation47_spill] sm:$0xff] %v4187_v15  ;;  %v4194_v24 = vmax.f32 %v926_v19, 0.0  ;;  %v972_v3 = vpop.f32.mrb[33].mxu1  ;;  %v2153_v35 = vadd.f32 %v2152_v52, %v4187_v15 }
 0x124   :  { %5573 = vst [vmem:[#allocation48_spill] sm:$0xff] %v4190_v49  ;;  %v4197_v36 = vmax.f32 %v928_v50, 0.0  ;;  %v973_v43 = vadd.f32 %v972_v3, %v4103_v33  ;;  %v3321_v38 = vpop.f32.mrb[34].mxu1 }
 0x125   :  { %5574 = vst [vmem:[#allocation49_spill] sm:$0xff] %v4194_v24  ;;  %v975_v14 = vpop.f32.mrb[35].mxu1  ;;  %v2163_v20 = vadd.f32 %v2162_v28, %v4194_v24  ;;  %v2154_v7 = vadd.f32 %v2153_v35, %v4190_v49  ;;  %v2172_v28 = vadd.f32 %v2171_v17, %v4201_v30 }
 0x126   :  { %5575 = vst [vmem:[#allocation50_spill] sm:$0xff] %v4197_v36  ;;  %v4204_v37 = vmax.f32 %v973_v43, 0.0  ;;  %v931_v44 = vpop.f32.mrb[32].mxu0  ;;  %v976_v19 = vadd.f32 %v975_v14, %v4114_v39  ;;  %v981_v43 = vadd.f32 %v3320_v22, %v4124_v62 }
 0x127   :  { %v932_v52 = vadd.f32 %v931_v44, %v4124_v62  ;;  %v933_v50 = vpop.f32.mrb[33].mxu0  ;;  %v2164_v3 = vadd.f32 %v2163_v20, %v4197_v36 }
 0x128   :  { %5577 = vst [vmem:[#allocation52_spill] sm:$0xff] %v4204_v37  ;;  %v4209_v42 = vmax.f32 %v976_v19, 0.0  ;;  %v934_v33 = vadd.f32 %v933_v50, %v4124_v62  ;;  %v935_v8 = vpop.f32.mrb[34].mxu0  ;;  %v2155_v0 = vadd.f32 %v2154_v7, %v4204_v37  ;;  %v4222_v19 = vmax.f32 %v981_v43, 0.0  ;;  %v4224_v7 = vpop.permute.xlu0 %1075 }
 0x129   :  { %v4216_v38 = vmax.f32 %v932_v52, 0.0  ;;  %v936_v39 = vpop.f32.mrb[35].mxu0 }
 0x12a   :  { %5578 = vst [vmem:[#allocation53_spill] sm:$0xff] %v4209_v42  ;;  %v4218_v35 = vmax.f32 %v934_v33, 0.0  ;;  %2156 = vadd.xlane.f32.xlu0 %v2155_v0  ;;  %v2165_v14 = vadd.f32 %v2164_v3, %v4209_v42  ;;  %5581 = vst [vmem:[#allocation56_spill] sm:$0xff] %v4222_v19  ;;  %v4228_v3 = vpop.permute.xlu1 %1080 }
 0x12b   :  { %5579 = vst [vmem:[#allocation54_spill] sm:$0xff] %v4216_v38  ;;  %v2173_v44 = vadd.f32 %v2172_v28, %v4216_v38 }
 0x12c   :  { %5580 = vst [vmem:[#allocation55_spill] sm:$0xff] %v4218_v35  ;;  %2166 = vadd.xlane.f32.xlu1 %v2165_v14  ;;  %v4230_v28 = vpop.permute.xlu0 %1085 }
 0x12d   :  { %v2174_v20 = vadd.f32 %v2173_v44, %v4218_v35 }
 0x12e   :  { %v1278_v17 = vpop.f32.mrb[36].mxu0  ;;  %v1329_v50 = vpop.f32.mrb[36].mxu1 }
 0x12f   :  { %v1280_v22 = vpop.f32.mrb[37].mxu0  ;;  %v1331_v62 = vpop.f32.mrb[37].mxu1  ;;  %v2175_v52 = vadd.f32 %v2174_v20, %v4222_v19  ;;  %v1279_v37 = vadd.f32 %v1278_v17, %v4224_v7 }
 0x130   :  { %v1282_v33 = vpop.f32.mrb[38].mxu0  ;;  %v1333_v8 = vpop.f32.mrb[38].mxu1  ;;  %v1281_v35 = vadd.f32 %v1280_v22, %v4224_v7 }
 0x131   :  { %v1284_v0 = vpop.f32.mrb[39].mxu0  ;;  %v1335_v39 = vpop.f32.mrb[39].mxu1  ;;  %2176 = vadd.xlane.f32.xlu0 %v2175_v52  ;;  %v1283_v43 = vadd.f32 %v1282_v33, %v4228_v3  ;;  %v1334_v17 = vadd.f32 %v1333_v8, %v4228_v3 }
 0x132   :  { %v1285_v14 = vadd.f32 %v1284_v0, %v4228_v3  ;;  %v4242_v0 = vmax.f32 %v1279_v37, 0.0  ;;  %v4244_v51 = vmax.f32 %v1281_v35, 0.0 }
 0x133   :  { %v4238_v63 = vmax.f32 %v1283_v43, 0.0 }
 0x134   :  { %v4240_v33 = vmax.f32 %v1285_v14, 0.0  ;;  %5584 = vst [vmem:[#allocation59_spill] sm:$0xff] %v4242_v0  ;;  %5585 = vst [vmem:[#allocation60_spill] sm:$0xff] %v4244_v51  ;;  %v2208_v37 = vadd.f32 %v4244_v51, %v4242_v0  ;;  %v4257_v14 = vmax.f32 %v1334_v17, 0.0 }
 0x135   :  { %5582 = vst [vmem:[#allocation57_spill] sm:$0xff] %v4238_v63 }
 0x136   :  { %v1288_v44 = vpop.f32.mrb[40].mxu0  ;;  %v1339_v42 = vpop.f32.mrb[40].mxu1  ;;  %5583 = vst [vmem:[#allocation58_spill] sm:$0xff] %v4240_v33  ;;  %5588 = vst [vmem:[#allocation63_spill] sm:$0xff] %v4257_v14 }
 0x137   :  { %v1290_v20 = vpop.f32.mrb[41].mxu0  ;;  %v1341_v19 = vpop.f32.mrb[41].mxu1  ;;  %v1289_v38 = vadd.f32 %v1288_v44, %v4230_v28  ;;  %v1330_v44 = vadd.f32 %v1329_v50, %v4224_v7 }
 0x138   :  { %v1291_v52 = vadd.f32 %v1290_v20, %v4230_v28  ;;  %v1292_v30 = vpop.f32.mrb[42].mxu0  ;;  %v1343_v34 = vpop.f32.mrb[42].mxu1 }
 0x139   :  { %v1293_v41 = vpop.f32.mrb[43].mxu0  ;;  %v1344_v10 = vpop.f32.mrb[43].mxu1  ;;  %v4247_v22 = vmax.f32 %v1289_v38, 0.0  ;;  %v2218_v30 = vadd.f32 %v4240_v33, %v4238_v63  ;;  %v1336_v38 = vadd.f32 %v1335_v39, %v4228_v3  ;;  %v4263_v29 = vmax.f32 %v1330_v44, 0.0 }
 0x13a   :  { %v4249_v46 = vmax.f32 %v1291_v52, 0.0  ;;  %v1340_v10 = vadd.f32 %v1339_v42, %v4230_v28  ;;  %v1332_v52 = vadd.f32 %v1331_v62, %v4224_v7  ;;  %v1342_v33 = vadd.f32 %v1341_v19, %v4230_v28 }
 0x13b   :  { %5586 = vst [vmem:[#allocation61_spill] sm:$0xff] %v4247_v22  ;;  %5589 = vst [vmem:[#allocation64_spill] sm:$0xff] %v4263_v29  ;;  %v2219_v17 = vadd.f32 %v2218_v30, %v4257_v14 }
 0x13c   :  { %5587 = vst [vmem:[#allocation62_spill] sm:$0xff] %v4249_v46  ;;  %v2228_v8 = vadd.f32 %v4249_v46, %v4247_v22  ;;  %v4269_v39 = vmax.f32 %v1340_v10, 0.0  ;;  %v2209_v46 = vadd.f32 %v2208_v37, %v4263_v29  ;;  %v4272_v22 = vmax.f32 %v1336_v38, 0.0 }
 0x13d   :  { %v4278_v63 = vmax.f32 %v1332_v52, 0.0  ;;  %v4284_v10 = vmax.f32 %v1342_v33, 0.0 }
 0x13e   :  { %v1380_v41 = vpop.f32.mrb[44].mxu0  ;;  %v1431_v34 = vpop.f32.mrb[44].mxu1  ;;  %5590 = vst [vmem:[#allocation65_spill] sm:$0xff] %v4269_v39  ;;  %5591 = vst [vmem:[#allocation66_spill] sm:$0xff] %v4272_v22  ;;  %v2229_v62 = vadd.f32 %v2228_v8, %v4269_v39  ;;  %v2220_v19 = vadd.f32 %v2219_v17, %v4272_v22 }
 0x13f   :  { %v1382_v35 = vpop.f32.mrb[45].mxu0  ;;  %v1433_v43 = vpop.f32.mrb[45].mxu1  ;;  %v1381_v42 = vadd.f32 %v1380_v41, %v4224_v7  ;;  %5593 = vst [vmem:[#allocation68_spill] sm:$0xff] %v4278_v63  ;;  %5595 = vst [vmem:[#allocation70_spill] sm:$0xff] %v4284_v10  ;;  %v2210_v38 = vadd.f32 %v2209_v46, %v4278_v63 }
 0x140   :  { %v1384_v50 = vpop.f32.mrb[46].mxu0  ;;  %v1435_v20 = vpop.f32.mrb[46].mxu1  ;;  %v1383_v30 = vadd.f32 %v1382_v35, %v4224_v7 }
 0x141   :  { %v1385_v18 = vadd.f32 %v1384_v50, %v4228_v3  ;;  %v1386_v60 = vpop.f32.mrb[47].mxu0  ;;  %v1437_v59 = vpop.f32.mrb[47].mxu1  ;;  %v4280_v50 = vmax.f32 %v1381_v42, 0.0 }
 0x142   :  { %v1387_v41 = vadd.f32 %v1386_v60, %v4228_v3  ;;  %v2230_v60 = vadd.f32 %v2229_v62, %v4284_v10  ;;  %v4294_v22 = vmax.f32 %v1383_v30, 0.0  ;;  %v1436_v62 = vadd.f32 %v1435_v20, %v4228_v3 }
 0x143   :  { %v4275_v44 = vmax.f32 %v1385_v18, 0.0  ;;  %5594 = vst [vmem:[#allocation69_spill] sm:$0xff] %v4280_v50  ;;  %v2211_v33 = vadd.f32 %v2210_v38, %v4280_v50  ;;  %v1438_v20 = vadd.f32 %v1437_v59, %v4228_v3 }
 0x144   :  { %v4290_v42 = vmax.f32 %v1387_v41, 0.0  ;;  %5597 = vst [vmem:[#allocation72_spill] sm:$0xff] %v4294_v22  ;;  %v1432_v41 = vadd.f32 %v1431_v34, %v4224_v7 }
 0x145   :  { %5592 = vst [vmem:[#allocation67_spill] sm:$0xff] %v4275_v44  ;;  %v2221_v52 = vadd.f32 %v2220_v19, %v4275_v44  ;;  %v2212_v30 = vadd.f32 %v2211_v33, %v4294_v22 }
 0x146   :  { %v1390_v14 = vpop.f32.mrb[48].mxu0  ;;  %v1441_v37 = vpop.f32.mrb[48].mxu1  ;;  %5596 = vst [vmem:[#allocation71_spill] sm:$0xff] %v4290_v42 }
 0x147   :  { %v1391_v8 = vadd.f32 %v1390_v14, %v4230_v28  ;;  %v1392_v18 = vpop.f32.mrb[49].mxu0  ;;  %v1443_v39 = vpop.f32.mrb[49].mxu1  ;;  %v1442_v46 = vadd.f32 %v1441_v37, %v4230_v28  ;;  %v2222_v38 = vadd.f32 %v2221_v52, %v4290_v42  ;;  %v4326_v42 = vmax.f32 %v1438_v20, 0.0 }
 0x148   :  { %v1393_v35 = vadd.f32 %v1392_v18, %v4230_v28  ;;  %v1394_v36 = vpop.f32.mrb[50].mxu0  ;;  %v1445_v17 = vpop.f32.mrb[50].mxu1  ;;  %v4311_v18 = vmax.f32 %v1436_v62, 0.0 }
 0x149   :  { %v4296_v24 = vmax.f32 %v1391_v8, 0.0  ;;  %v1395_v14 = vpop.f32.mrb[51].mxu0  ;;  %v1446_v48 = vpop.f32.mrb[51].mxu1  ;;  %v1444_v36 = vadd.f32 %v1443_v39, %v4230_v28  ;;  %v4307_v8 = vmax.f32 %v1442_v46, 0.0  ;;  %v4314_v17 = vmax.f32 %v1432_v41, 0.0  ;;  %5605 = vst [vmem:[#allocation80_spill] sm:$0xff] %v4326_v42 }
 0x14a   :  { %v4300_v10 = vmax.f32 %v1393_v35, 0.0  ;;  %v1434_v48 = vadd.f32 %v1433_v43, %v4224_v7  ;;  %5601 = vst [vmem:[#allocation76_spill] sm:$0xff] %v4311_v18  ;;  %v2223_v62 = vadd.f32 %v2222_v38, %v4311_v18 }
 0x14b   :  { %5598 = vst [vmem:[#allocation73_spill] sm:$0xff] %v4296_v24  ;;  %v2231_v19 = vadd.f32 %v2230_v60, %v4296_v24  ;;  %5600 = vst [vmem:[#allocation75_spill] sm:$0xff] %v4307_v8  ;;  %v4316_v60 = vmax.f32 %v1444_v36, 0.0  ;;  %v2213_v36 = vadd.f32 %v2212_v30, %v4314_v17 }
 0x14c   :  { %5599 = vst [vmem:[#allocation74_spill] sm:$0xff] %v4300_v10  ;;  %5602 = vst [vmem:[#allocation77_spill] sm:$0xff] %v4314_v17  ;;  %v2224_v38 = vadd.f32 %v2223_v62, %v4326_v42 }
 0x14d   :  { %v2232_v37 = vadd.f32 %v2231_v19, %v4300_v10  ;;  %5603 = vst [vmem:[#allocation78_spill] sm:$0xff] %v4316_v60 }
 0x14e   :  { %v3330_v35 = vpop.f32.mrb[52].mxu0  ;;  %v1788_v34 = vpop.f32.mrb[52].mxu1 }
 0x14f   :  { %v1491_v39 = vadd.f32 %v3330_v35, %v4230_v28  ;;  %v1482_v52 = vpop.f32.mrb[53].mxu0  ;;  %v1790_v33 = vpop.f32.mrb[53].mxu1  ;;  %v2233_v46 = vadd.f32 %v2232_v37, %v4307_v8  ;;  %v4329_v35 = vmax.f32 %v1434_v48, 0.0 }
 0x150   :  { %v1483_v14 = vadd.f32 %v1482_v52, %v4224_v7  ;;  %v3331_v19 = vpop.f32.mrb[54].mxu0  ;;  %v1792_v43 = vpop.f32.mrb[54].mxu1 }
 0x151   :  { %v4322_v10 = vmax.f32 %v1491_v39, 0.0  ;;  %v1485_v59 = vpop.f32.mrb[55].mxu0  ;;  %v1794_v24 = vpop.f32.mrb[55].mxu1  ;;  %v2234_v41 = vadd.f32 %v2233_v46, %v4316_v60  ;;  %5606 = vst [vmem:[#allocation81_spill] sm:$0xff] %v4329_v35  ;;  %v2214_v46 = vadd.f32 %v2213_v36, %v4329_v35 }
 0x152   :  { %v1486_v28 = vadd.f32 %v1485_v59, %v4228_v3  ;;  %v4331_v37 = vmax.f32 %v1483_v14, 0.0  ;;  %v4337_v39 = vpop.permute.xlu1 %1585  ;;  %v4344_v59 = vpop.permute.xlu0 %1590 }
 0x153   :  { %5604 = vst [vmem:[#allocation79_spill] sm:$0xff] %v4322_v10  ;;  %v2235_v7 = vadd.f32 %v2234_v41, %v4322_v10  ;;  %v1789_v30 = vadd.f32 %v1788_v34, %v4337_v39  ;;  %v1791_v20 = vadd.f32 %v1790_v33, %v4337_v39  ;;  %v1793_v62 = vadd.f32 %v1792_v43, %v4344_v59 }
 0x154   :  { %5607 = vst [vmem:[#allocation82_spill] sm:$0xff] %v4331_v37  ;;  %v4334_v52 = vmax.f32 %v1486_v28, 0.0  ;;  %v2215_v19 = vadd.f32 %v2214_v46, %v4331_v37  ;;  %v1795_v28 = vadd.f32 %v1794_v24, %v4344_v59 }
 0x155   :  { %2236 = vadd.xlane.f32.xlu1 %v2235_v7  ;;  %v4348_v36 = vmax.f32 %v1789_v30, 0.0  ;;  %v4350_v34 = vmax.f32 %v1791_v20, 0.0 }
 0x156   :  { %5608 = vst [vmem:[#allocation83_spill] sm:$0xff] %v4334_v52  ;;  %v1798_v3 = vpop.f32.mrb[56].mxu1  ;;  %v2225_v48 = vadd.f32 %v2224_v38, %v4334_v52  ;;  %v4354_v37 = vpop.permute.xlu1 %1595  ;;  %v4358_v43 = vmax.f32 %v1795_v28, 0.0 }
 0x157   :  { %v1800_v14 = vpop.f32.mrb[57].mxu1  ;;  %5609 = vst [vmem:[#allocation84_spill] sm:$0xff] %v4348_v36  ;;  %5610 = vst [vmem:[#allocation85_spill] sm:$0xff] %v4350_v34  ;;  %v2268_v20 = vadd.f32 %v4350_v34, %v4348_v36 }
 0x158   :  { %v1802_v41 = vpop.f32.mrb[58].mxu1  ;;  %2226 = vadd.xlane.f32.xlu0 %v2225_v48  ;;  %v4356_v48 = vmax.f32 %v1793_v62, 0.0  ;;  %5612 = vst [vmem:[#allocation87_spill] sm:$0xff] %v4358_v43 }
 0x159   :  { %v1803_v7 = vpop.f32.mrb[59].mxu1  ;;  %2216 = vadd.xlane.f32.xlu1 %v2215_v19  ;;  %v1799_v41 = vadd.f32 %v1798_v3, %v4354_v37 }
 0x15a   :  { %v1839_v33 = vpop.f32.mrb[56].mxu0  ;;  %5611 = vst [vmem:[#allocation86_spill] sm:$0xff] %v4356_v48  ;;  %v1801_v7 = vadd.f32 %v1800_v14, %v4354_v37  ;;  %v2278_v42 = vadd.f32 %v4358_v43, %v4356_v48 }
 0x15b   :  { %v1840_v38 = vadd.f32 %v1839_v33, %v4337_v39  ;;  %v1841_v10 = vpop.f32.mrb[57].mxu0  ;;  %v4376_v3 = vmax.f32 %v1799_v41, 0.0 }
 0x15c   :  { %v1842_v46 = vadd.f32 %v1841_v10, %v4337_v39  ;;  %v1843_v52 = vpop.f32.mrb[58].mxu0  ;;  %v4378_v14 = vmax.f32 %v1801_v7, 0.0 }
 0x15d   :  { %v4360_v24 = vmax.f32 %v1840_v38, 0.0  ;;  %v1844_v30 = vadd.f32 %v1843_v52, %v4344_v59  ;;  %v1845_v19 = vpop.f32.mrb[59].mxu0  ;;  %5616 = vst [vmem:[#allocation91_spill] sm:$0xff] %v4376_v3 }
 0x15e   :  { %v1890_v10 = vpop.f32.mrb[60].mxu1  ;;  %v1846_v62 = vadd.f32 %v1845_v19, %v4344_v59  ;;  %v4371_v38 = vmax.f32 %v1842_v46, 0.0  ;;  %5617 = vst [vmem:[#allocation92_spill] sm:$0xff] %v4378_v14 }
 0x15f   :  { %5613 = vst [vmem:[#allocation88_spill] sm:$0xff] %v4360_v24  ;;  %v4367_v33 = vmax.f32 %v1844_v30, 0.0  ;;  %v1892_v60 = vpop.f32.mrb[61].mxu1  ;;  %v2269_v28 = vadd.f32 %v2268_v20, %v4360_v24  ;;  %v1891_v52 = vadd.f32 %v1890_v10, %v4337_v39 }
 0x160   :  { %5615 = vst [vmem:[#allocation90_spill] sm:$0xff] %v4371_v38  ;;  %v1894_v8 = vpop.f32.mrb[62].mxu1  ;;  %v4381_v19 = vmax.f32 %v1846_v62, 0.0  ;;  %v1893_v43 = vadd.f32 %v1892_v60, %v4337_v39  ;;  %v2288_v62 = vadd.f32 %v4378_v14, %v4376_v3 }
 0x161   :  { %5614 = vst [vmem:[#allocation89_spill] sm:$0xff] %v4367_v33  ;;  %v1896_v18 = vpop.f32.mrb[63].mxu1  ;;  %v2279_v44 = vadd.f32 %v2278_v42, %v4367_v33  ;;  %v1895_v20 = vadd.f32 %v1894_v8, %v4344_v59  ;;  %v2270_v10 = vadd.f32 %v2269_v28, %v4371_v38  ;;  %v4386_v47 = vmax.f32 %v1891_v52, 0.0 }
 0x162   :  { %v1849_v30 = vpop.f32.mrb[60].mxu0  ;;  %5618 = vst [vmem:[#allocation93_spill] sm:$0xff] %v4381_v19  ;;  %v1897_v28 = vadd.f32 %v1896_v18, %v4344_v59  ;;  %v4399_v60 = vmax.f32 %v1893_v43, 0.0 }
 0x163   :  { %v1850_v46 = vadd.f32 %v1849_v30, %v4354_v37  ;;  %v1851_v5 = vpop.f32.mrb[61].mxu0  ;;  %5619 = vst [vmem:[#allocation94_spill] sm:$0xff] %v4386_v47  ;;  %v2280_v8 = vadd.f32 %v2279_v44, %v4381_v19  ;;  %v4395_v30 = vmax.f32 %v1895_v20, 0.0  ;;  %v2271_v33 = vadd.f32 %v2270_v10, %v4386_v47 }
 0x164   :  { %v1853_v41 = vpop.f32.mrb[62].mxu0  ;;  %v1852_v7 = vadd.f32 %v1851_v5, %v4354_v37  ;;  %5622 = vst [vmem:[#allocation97_spill] sm:$0xff] %v4399_v60  ;;  %v4406_v20 = vmax.f32 %v1897_v28, 0.0 }
 0x165   :  { %v4389_v48 = vmax.f32 %v1850_v46, 0.0  ;;  %v1854_v16 = vpop.f32.mrb[63].mxu0  ;;  %5621 = vst [vmem:[#allocation96_spill] sm:$0xff] %v4395_v30  ;;  %v2281_v44 = vadd.f32 %v2280_v8, %v4395_v30  ;;  %v2272_v10 = vadd.f32 %v2271_v33, %v4399_v60 }
 0x166   :  { %v1900_v42 = vpop.f32.mrb[64].mxu1  ;;  %v4402_v5 = vmax.f32 %v1852_v7, 0.0  ;;  %5624 = vst [vmem:[#allocation99_spill] sm:$0xff] %v4406_v20 }
 0x167   :  { %5620 = vst [vmem:[#allocation95_spill] sm:$0xff] %v4389_v48  ;;  %v1902_v52 = vpop.f32.mrb[65].mxu1  ;;  %v2289_v41 = vadd.f32 %v2288_v62, %v4389_v48  ;;  %v1901_v16 = vadd.f32 %v1900_v42, %v4354_v37  ;;  %v2282_v33 = vadd.f32 %v2281_v44, %v4406_v20 }
 0x168   :  { %v1904_v46 = vpop.f32.mrb[66].mxu1  ;;  %5623 = vst [vmem:[#allocation98_spill] sm:$0xff] %v4402_v5  ;;  %v1903_v43 = vadd.f32 %v1902_v52, %v4354_v37 }
 0x169   :  { %v1905_v12 = vpop.f32.mrb[67].mxu1  ;;  %v2290_v7 = vadd.f32 %v2289_v41, %v4402_v5  ;;  %v4413_v48 = vmax.f32 %v1901_v16, 0.0 }
 0x16a   :  { %v1941_v14 = vpop.f32.mrb[64].mxu0  ;;  %v4429_v5 = vmax.f32 %v1903_v43, 0.0 }
 0x16b   :  { %v1942_v18 = vadd.f32 %v1941_v14, %v4337_v39  ;;  %v1943_v3 = vpop.f32.mrb[65].mxu0  ;;  %5625 = vst [vmem:[#allocation100_spill] sm:$0xff] %v4413_v48 }
 0x16c   :  { %v1944_v46 = vadd.f32 %v1943_v3, %v4337_v39  ;;  %v1945_v62 = vpop.f32.mrb[66].mxu0  ;;  %5630 = vst [vmem:[#allocation105_spill] sm:$0xff] %v4429_v5 }
 0x16d   :  { %v4415_v12 = vmax.f32 %v1942_v18, 0.0  ;;  %v1946_v42 = vadd.f32 %v1945_v62, %v4344_v59  ;;  %v1947_v8 = vpop.f32.mrb[67].mxu0  ;;  %v2291_v62 = vadd.f32 %v2290_v7, %v4413_v48 }
 0x16e   :  { %v4418_v28 = vmax.f32 %v1944_v46, 0.0  ;;  %v1948_v14 = vadd.f32 %v1947_v8, %v4344_v59  ;;  %v3340_v30 = vpop.f32.mrb[68].mxu1 }
 0x16f   :  { %5626 = vst [vmem:[#allocation101_spill] sm:$0xff] %v4415_v12  ;;  %v4422_v52 = vmax.f32 %v1946_v42, 0.0  ;;  %v1992_v3 = vpop.f32.mrb[69].mxu1  ;;  %v2273_v19 = vadd.f32 %v2272_v10, %v4415_v12 }
 0x170   :  { %5627 = vst [vmem:[#allocation102_spill] sm:$0xff] %v4418_v28  ;;  %v4425_v41 = vmax.f32 %v1948_v14, 0.0  ;;  %v1993_v16 = vadd.f32 %v1992_v3, %v4337_v39  ;;  %v3341_v18 = vpop.f32.mrb[70].mxu1 }
 0x171   :  { %5628 = vst [vmem:[#allocation103_spill] sm:$0xff] %v4422_v52  ;;  %v1995_v46 = vpop.f32.mrb[71].mxu1  ;;  %v2283_v8 = vadd.f32 %v2282_v33, %v4422_v52  ;;  %v2274_v20 = vadd.f32 %v2273_v19, %v4418_v28  ;;  %v2292_v33 = vadd.f32 %v2291_v62, %v4429_v5 }
 0x172   :  { %5629 = vst [vmem:[#allocation104_spill] sm:$0xff] %v4425_v41  ;;  %v4432_v2 = vmax.f32 %v1993_v16, 0.0  ;;  %v1951_v44 = vpop.f32.mrb[68].mxu0  ;;  %v1996_v42 = vadd.f32 %v1995_v46, %v4344_v59  ;;  %v2001_v16 = vadd.f32 %v3340_v30, %v4354_v37 }
 0x173   :  { %v1952_v10 = vadd.f32 %v1951_v44, %v4354_v37  ;;  %v1953_v14 = vpop.f32.mrb[69].mxu0  ;;  %v2284_v3 = vadd.f32 %v2283_v8, %v4425_v41 }
 0x174   :  { %5631 = vst [vmem:[#allocation106_spill] sm:$0xff] %v4432_v2  ;;  %v4437_v31 = vmax.f32 %v1996_v42, 0.0  ;;  %v1954_v39 = vadd.f32 %v1953_v14, %v4354_v37  ;;  %v2275_v43 = vadd.f32 %v2274_v20, %v4432_v2  ;;  %v1955_v7 = vpop.f32.mrb[70].mxu0  ;;  %v4450_v42 = vmax.f32 %v2001_v16, 0.0 }
 0x175   :  { %v4444_v18 = vmax.f32 %v1952_v10, 0.0  ;;  %v1956_v59 = vpop.f32.mrb[71].mxu0 }
 0x176   :  { %5632 = vst [vmem:[#allocation107_spill] sm:$0xff] %v4437_v31  ;;  %v4446_v19 = vmax.f32 %v1954_v39, 0.0  ;;  %2276 = vadd.xlane.f32.xlu0 %v2275_v43  ;;  %v2285_v46 = vadd.f32 %v2284_v3, %v4437_v31  ;;  %5635 = vst [vmem:[#allocation110_spill] sm:$0xff] %v4450_v42 }
 0x177   :  { %5633 = vst [vmem:[#allocation108_spill] sm:$0xff] %v4444_v18  ;;  %v2293_v44 = vadd.f32 %v2292_v33, %v4444_v18 }
 0x178   :  { %5634 = vst [vmem:[#allocation109_spill] sm:$0xff] %v4446_v19  ;;  %2286 = vadd.xlane.f32.xlu1 %v2285_v46 }
 0x179   :  { %v2294_v20 = vadd.f32 %v2293_v44, %v4446_v19 }
 0x17b   :  { %v2295_v8 = vadd.f32 %v2294_v20, %v4450_v42 }
 0x17d   :  { %2296 = vadd.xlane.f32.xlu0 %v2295_v8 }
 0x196   :  { %v2117_v62 = vpop.xlane.xlu0 %2116 }
 0x199   :  { %v2107_v37 = vpop.xlane.xlu1 %2106 }
 0x19a   :  { %v2097_v30 = vpop.xlane.xlu0 %2096 }
 0x1b7   :  { %v2157_v14 = vpop.xlane.xlu0 %2156 }
 0x1b8   :  { %v2178_v3 = vadd.f32 %v2157_v14, %v2097_v30 }
 0x1b9   :  { %v2167_v10 = vpop.xlane.xlu1 %2166 }
 0x1ba   :  { %v2179_v16 = vadd.f32 %v2167_v10, %v2107_v37 }
 0x1be   :  { %v2177_v7 = vpop.xlane.xlu0 %2176 }
 0x1bf   :  { %v2180_v2 = vadd.f32 %v2177_v7, %v2117_v62 }
 0x1e2   :  { %v2237_v39 = vpop.xlane.xlu1 %2236 }
 0x1e3   :  { %v4456_v8 = vadd.f32 %v2237_v39, %v2180_v2 }
 0x1e5   :  { %v2227_v43 = vpop.xlane.xlu0 %2226 }
 0x1e6   :  { %v2217_v59 = vpop.xlane.xlu1 %2216  ;;  %v2239_v20 = vadd.f32 %v2227_v43, %v2179_v16 }
 0x1e7   :  { %v2238_v31 = vadd.f32 %v2217_v59, %v2178_v3 }
 0x203   :  { %v2277_v33 = vpop.xlane.xlu0 %2276 }
 0x204   :  { %v2298_v46 = vadd.f32 %v2277_v33, %v2238_v31 }
 0x205   :  { %v2287_v44 = vpop.xlane.xlu1 %2286 }
 0x206   :  { %v4454_v18 = vmul.f32 0.00021701389, %v2298_v46  ;;  %v2299_v14 = vadd.f32 %v2287_v44, %v2239_v20 }
 0x208   :  { %v2305_v42 = vsub.f32 %v4014_v56, %v4454_v18  ;;  %v2306_v19 = vsub.f32 %v4016_v57, %v4454_v18  ;;  %v2307_v30 = vsub.f32 %v4034_v11, %v4454_v18  ;;  %v2308_v31 = vsub.f32 %v4050_v25, %v4454_v18 }
 0x209   :  { %v2309_v62 = vsub.f32 %v4052_v26, %v4454_v18  ;;  %v2310_v2 = vsub.f32 %v4066_v45, %v4454_v18  ;;  %v2311_v37 = vsub.f32 %v4086_v9, %v4454_v18  ;;  %v4474_v10 = vsub.f32 %v4101_v32, %v4454_v18 }
 0x20a   :  { %v2392_v39 = vsub.f32 %v4120_v53, %v4454_v18  ;;  %v2393_v7 = vsub.f32 %v4122_v58, %v4454_v18  ;;  %v2394_v43 = vsub.f32 %v4132_v13, %v4454_v18  ;;  %v2395_v59 = vsub.f32 %v4143_v40, %v4454_v18 }
 0x20b   :  { %5636 = vst [vmem:[#allocation111_spill] sm:$0xff] %v4474_v10  ;;  %v2396_v3 = vsub.f32 %v4158_v61, %v4454_v18  ;;  %v2397_v33 = vsub.f32 %v4171_v27, %v4454_v18  ;;  %v2398_v46 = vsub.f32 %v4187_v15, %v4454_v18  ;;  %v4492_v16 = vsub.f32 %v4190_v49, %v4454_v18 }
 0x20c   :  { %v2479_v44 = vsub.f32 %v4242_v0, %v4454_v18  ;;  %v2480_v20 = vsub.f32 %v4244_v51, %v4454_v18  ;;  %v2481_v40 = vsub.f32 %v4263_v29, %v4454_v18  ;;  %v2482_v61 = vsub.f32 %v4278_v63, %v4454_v18 }
 0x20d   :  { %v2483_v27 = vsub.f32 %v4280_v50, %v4454_v18  ;;  %v2484_v15 = vsub.f32 %v4294_v22, %v4454_v18  ;;  %v2485_v49 = vsub.f32 %v4314_v17, %v4454_v18  ;;  %v4510_v0 = vsub.f32 %v4329_v35, %v4454_v18 }
 0x20e   :  { %v4514_v51 = vsub.f32 %v4348_v36, %v4454_v18  ;;  %v4518_v63 = vsub.f32 %v4350_v34, %v4454_v18  ;;  %v4522_v50 = vsub.f32 %v4360_v24, %v4454_v18  ;;  %v4526_v22 = vsub.f32 %v4371_v38, %v4454_v18 }
 0x20f   :  { %5637 = vst [vmem:[#allocation112_spill] sm:$0xff] %v4510_v0  ;;  %v4530_v35 = vsub.f32 %v4386_v47, %v4454_v18  ;;  %v4534_v36 = vsub.f32 %v4399_v60, %v4454_v18  ;;  %v4536_v17 = vmul.f32 0.00021701389, %v2299_v14  ;;  %v4540_v34 = vsub.f32 %v4415_v12, %v4454_v18  ;;  %v5661_v0 = vld [vmem:[#allocation76_spill] sm:$0xff] }
 0x210   :  { %v4544_v24 = vsub.f32 %v4418_v28, %v4454_v18  ;;  %v4546_v38 = vmul.f32 %v2305_v42, %v2305_v42  ;;  %v4548_v29 = vmul.f32 %v2306_v19, %v2306_v19  ;;  %v4550_v47 = vmul.f32 %v2307_v30, %v2307_v30 }
 0x211   :  { %5638 = vst [vmem:[#allocation113_spill] sm:$0xff] %v4536_v17  ;;  %v4552_v13 = vmul.f32 %v2308_v31, %v2308_v31  ;;  %v4554_v60 = vmul.f32 %v2309_v62, %v2309_v62  ;;  %v4556_v14 = vmul.f32 %v2310_v2, %v2310_v2  ;;  %v2314_v12 = vsub.f32 %v4010_v54, %v4536_v17  ;;  %v5644_v2 = vld [vmem:[#allocation26_spill] sm:$0xff]  ;;  %v5647_v54 = vld [vmem:[#allocation33_spill] sm:$0xff] }
 0x212   :  { %5639 = vst [vmem:[#allocation114_spill] sm:$0xff] %v4544_v24  ;;  %v2315_v58 = vsub.f32 %v4012_v55, %v4536_v17  ;;  %v2316_v42 = vsub.f32 %v4029_v6, %v4536_v17  ;;  %v4564_v28 = vmul.f32 %v2311_v37, %v2311_v37  ;;  %v2317_v19 = vsub.f32 %v4044_v21, %v4536_v17  ;;  %v5646_v6 = vld [vmem:[#allocation32_spill] sm:$0xff]  ;;  %v5648_v21 = vld [vmem:[#allocation35_spill] sm:$0xff] }
 0x213   :  { %5640 = vst [vmem:[#allocation115_spill] sm:$0xff] %v4552_v13  ;;  %5641 = vst [vmem:[#allocation116_spill] sm:$0xff] %v4554_v60  ;;  %v2318_v30 = vsub.f32 %v4047_v23, %v4536_v17  ;;  %v2319_v31 = vsub.f32 %v4062_v1, %v4536_v17  ;;  %v2320_v62 = vsub.f32 %v4083_v4, %v4536_v17  ;;  %v5649_v23 = vld [vmem:[#allocation39_spill] sm:$0xff]  ;;  %v5650_v1 = vld [vmem:[#allocation42_spill] sm:$0xff] }
 0x214   :  { %5642 = vst [vmem:[#allocation117_spill] sm:$0xff] %v4556_v14  ;;  %5643 = vst [vmem:[#allocation118_spill] sm:$0xff] %v4564_v28  ;;  %v4576_v55 = vsub.f32 %v5644_v2, %v4536_v17  ;;  %v2401_v37 = vsub.f32 %v5646_v6, %v4536_v17  ;;  %v2402_v53 = vsub.f32 %v5647_v54, %v4536_v17  ;;  %v5651_v4 = vld [vmem:[#allocation45_spill] sm:$0xff]  ;;  %v5653_v6 = vld [vmem:[#allocation50_spill] sm:$0xff] }
 0x215   :  { %v2403_v32 = vsub.f32 %v5648_v21, %v4536_v17  ;;  %v2404_v9 = vsub.f32 %v5649_v23, %v4536_v17  ;;  %v2405_v45 = vsub.f32 %v5650_v1, %v4536_v17  ;;  %v4590_v26 = vsub.f32 %v5651_v4, %v4536_v17  ;;  %v5652_v2 = vld [vmem:[#allocation49_spill] sm:$0xff]  ;;  %v5662_v28 = vld [vmem:[#allocation80_spill] sm:$0xff] }
 0x216   :  { %5645 = vst [vmem:[#allocation119_spill] sm:$0xff] %v4576_v55  ;;  %v4594_v25 = vsub.f32 %v5652_v2, %v4536_v17  ;;  %v4598_v54 = vsub.f32 %v5653_v6, %v4536_v17  ;;  %v4600_v11 = vmul.f32 %v2392_v39, %v2392_v39  ;;  %v4602_v21 = vmul.f32 %v2393_v7, %v2393_v7  ;;  %v5655_v2 = vld [vmem:[#allocation57_spill] sm:$0xff]  ;;  %v5656_v6 = vld [vmem:[#allocation58_spill] sm:$0xff]  ;;  %v5657_v7 = vld [vmem:[#allocation63_spill] sm:$0xff] }
 0x217   :  { %v4604_v23 = vmul.f32 %v2394_v43, %v2394_v43  ;;  %v4606_v57 = vmul.f32 %v2395_v59, %v2395_v59  ;;  %v4608_v1 = vmul.f32 %v2396_v3, %v2396_v3  ;;  %v4610_v4 = vmul.f32 %v2397_v33, %v2397_v33  ;;  %v5658_v59 = vld [vmem:[#allocation66_spill] sm:$0xff]  ;;  %v5659_v33 = vld [vmem:[#allocation67_spill] sm:$0xff] }
 0x218   :  { %5654 = vst [vmem:[#allocation120_spill] sm:$0xff] %v4598_v54  ;;  %v4612_v56 = vmul.f32 %v2398_v46, %v2398_v46  ;;  %v4616_v55 = vsub.f32 %v5655_v2, %v4536_v17  ;;  %v4620_v39 = vsub.f32 %v5656_v6, %v4536_v17  ;;  %v4624_v43 = vsub.f32 %v5657_v7, %v4536_v17  ;;  %v5660_v54 = vld [vmem:[#allocation71_spill] sm:$0xff] }
 0x219   :  { %v4628_v3 = vsub.f32 %v5658_v59, %v4536_v17  ;;  %v4632_v46 = vsub.f32 %v5659_v33, %v4536_v17  ;;  %v4636_v2 = vsub.f32 %v5660_v54, %v4536_v17  ;;  %v4640_v6 = vsub.f32 %v5661_v0, %v4536_v17  ;;  %v5668_v0 = vld [vmem:[#allocation86_spill] sm:$0xff] }
 0x21a   :  { %v4644_v7 = vsub.f32 %v5662_v28, %v4536_v17  ;;  %v4646_v24 = vmul.f32 %v2479_v44, %v2479_v44  ;;  %v4648_v59 = vmul.f32 %v2480_v20, %v2480_v20  ;;  %v4650_v14 = vmul.f32 %v2481_v40, %v2481_v40  ;;  %v2297_v28 = vpop.xlane.xlu0 %2296  ;;  %v5669_v44 = vld [vmem:[#allocation87_spill] sm:$0xff]  ;;  %v5670_v40 = vld [vmem:[#allocation89_spill] sm:$0xff] }
 0x21b   :  { %v4652_v33 = vmul.f32 %v2482_v61, %v2482_v61  ;;  %v4654_v60 = vmul.f32 %v2483_v27, %v2483_v27  ;;  %v4656_v54 = vmul.f32 %v2484_v15, %v2484_v15  ;;  %v4658_v10 = vmul.f32 %v2485_v49, %v2485_v49  ;;  %v5671_v61 = vld [vmem:[#allocation93_spill] sm:$0xff]  ;;  %v5672_v15 = vld [vmem:[#allocation96_spill] sm:$0xff] }
 0x21c   :  { %5663 = vst [vmem:[#allocation121_spill] sm:$0xff] %v4644_v7  ;;  %v4662_v13 = vsub.f32 %v5668_v0, %v4536_v17  ;;  %v4666_v7 = vsub.f32 %v5669_v44, %v4536_v17  ;;  %v4670_v20 = vsub.f32 %v5670_v40, %v4536_v17  ;;  %v4674_v27 = vsub.f32 %v5671_v61, %v4536_v17  ;;  %v5673_v0 = vld [vmem:[#allocation99_spill] sm:$0xff] }
 0x21d   :  { %5664 = vst [vmem:[#allocation122_spill] sm:$0xff] %v4652_v33  ;;  %5665 = vst [vmem:[#allocation123_spill] sm:$0xff] %v4654_v60  ;;  %v4678_v49 = vsub.f32 %v5672_v15, %v4536_v17  ;;  %v4686_v44 = vsub.f32 %v4422_v52, %v4536_v17  ;;  %v4690_v40 = vsub.f32 %v4425_v41, %v4536_v17 }
 0x21e   :  { %5666 = vst [vmem:[#allocation124_spill] sm:$0xff] %v4656_v54  ;;  %5667 = vst [vmem:[#allocation125_spill] sm:$0xff] %v4658_v10  ;;  %v4682_v10 = vsub.f32 %v5673_v0, %v4536_v17  ;;  %v4694_v61 = vmul.f32 %v4514_v51, %v4514_v51  ;;  %v4698_v15 = vmul.f32 %v4518_v63, %v4518_v63  ;;  %v5697_v54 = vld [vmem:[#allocation24_spill] sm:$0xff] }
 0x21f   :  { %5674 = vst [vmem:[#allocation126_spill] sm:$0xff] %v4686_v44  ;;  %5675 = vst [vmem:[#allocation127_spill] sm:$0xff] %v4690_v40  ;;  %v4702_v0 = vmul.f32 %v4522_v50, %v4522_v50  ;;  %v4706_v52 = vmul.f32 %v4526_v22, %v4526_v22  ;;  %v2300_v44 = vadd.f32 %v2297_v28, %v4456_v8 }
 0x220   :  { %v4711_v41 = vmul.f32 %v4530_v35, %v4530_v35  ;;  %v4715_v51 = vmul.f32 %v4534_v36, %v4534_v36  ;;  %v4719_v63 = vmul.f32 %v4540_v34, %v4540_v34  ;;  %v4721_v50 = vmul.f32 %v2314_v12, %v2314_v12 }
 0x221   :  { %5676 = vst [vmem:[#allocation128_spill] sm:$0xff] %v4702_v0  ;;  %5677 = vst [vmem:[#allocation129_spill] sm:$0xff] %v4706_v52  ;;  %v4723_v40 = vmul.f32 0.00021701389, %v2300_v44  ;;  %v4725_v22 = vmul.f32 %v2315_v58, %v2315_v58  ;;  %v4727_v17 = vmul.f32 %v2316_v42, %v2316_v42  ;;  %v4729_v28 = vmul.f32 %v2317_v19, %v2317_v19  ;;  %v5689_v19 = vld [vmem:[#allocation7_spill] sm:$0xff] }
 0x222   :  { %5678 = vst [vmem:[#allocation130_spill] sm:$0xff] %v4711_v41  ;;  %5679 = vst [vmem:[#allocation131_spill] sm:$0xff] %v4715_v51  ;;  %v4731_v35 = vmul.f32 %v2318_v30, %v2318_v30  ;;  %v4733_v8 = vmul.f32 %v2319_v31, %v2319_v31  ;;  %v4735_v36 = vmul.f32 %v2320_v62, %v2320_v62  ;;  %v5690_v31 = vld [vmem:[#allocation8_spill] sm:$0xff]  ;;  %v5691_v62 = vld [vmem:[#allocation11_spill] sm:$0xff] }
 0x223   :  { %5680 = vst [vmem:[#allocation132_spill] sm:$0xff] %v4719_v63  ;;  %5681 = vst [vmem:[#allocation133_spill] sm:$0xff] %v4723_v40  ;;  %v4739_v34 = vadd.f32 %v4548_v29, %v4546_v38  ;;  %v4741_v12 = vmul.f32 %v2401_v37, %v2401_v37  ;;  %v4743_v44 = vmul.f32 %v2402_v53, %v2402_v53  ;;  %v5693_v29 = vld [vmem:[#allocation16_spill] sm:$0xff]  ;;  %v5694_v53 = vld [vmem:[#allocation19_spill] sm:$0xff] }
 0x224   :  { %5682 = vst [vmem:[#allocation134_spill] sm:$0xff] %v4727_v17  ;;  %5683 = vst [vmem:[#allocation135_spill] sm:$0xff] %v4729_v28  ;;  %v4745_v58 = vmul.f32 %v2403_v32, %v2403_v32  ;;  %v4747_v42 = vmul.f32 %v2404_v9, %v2404_v9  ;;  %v2323_v30 = vsub.f32 %v5689_v19, %v4723_v40  ;;  %v5695_v9 = vld [vmem:[#allocation20_spill] sm:$0xff] }
 0x225   :  { %5684 = vst [vmem:[#allocation136_spill] sm:$0xff] %v4731_v35  ;;  %5685 = vst [vmem:[#allocation137_spill] sm:$0xff] %v4733_v8  ;;  %v2324_v8 = vsub.f32 %v5690_v31, %v4723_v40  ;;  %v4755_v63 = vmul.f32 %v2405_v45, %v2405_v45  ;;  %v2326_v38 = vsub.f32 %v5693_v29, %v4723_v40  ;;  %v5696_v35 = vld [vmem:[#allocation21_spill] sm:$0xff] }
 0x226   :  { %5686 = vst [vmem:[#allocation138_spill] sm:$0xff] %v4735_v36  ;;  %5687 = vst [vmem:[#allocation139_spill] sm:$0xff] %v4745_v58  ;;  %v2325_v36 = vsub.f32 %v5691_v62, %v4723_v40  ;;  %v2327_v32 = vsub.f32 %v5694_v53, %v4723_v40  ;;  %v2328_v37 = vsub.f32 %v5695_v9, %v4723_v40  ;;  %v5699_v62 = vld [vmem:[#allocation37_spill] sm:$0xff]  ;;  %v5702_v53 = vld [vmem:[#allocation44_spill] sm:$0xff] }
 0x227   :  { %5688 = vst [vmem:[#allocation140_spill] sm:$0xff] %v4747_v42  ;;  %5692 = vst [vmem:[#allocation141_spill] sm:$0xff] %v4755_v63  ;;  %v2329_v19 = vsub.f32 %v5696_v35, %v4723_v40  ;;  %v4767_v31 = vsub.f32 %v5697_v54, %v4723_v40  ;;  %v2410_v45 = vsub.f32 %v5699_v62, %v4723_v40  ;;  %v5700_v63 = vld [vmem:[#allocation38_spill] sm:$0xff]  ;;  %v5701_v29 = vld [vmem:[#allocation41_spill] sm:$0xff] }
 0x228   :  { %v2411_v51 = vsub.f32 %v5700_v63, %v4723_v40  ;;  %v2412_v60 = vsub.f32 %v5701_v29, %v4723_v40  ;;  %v2413_v42 = vsub.f32 %v5702_v53, %v4723_v40  ;;  %v5703_v9 = vld [vmem:[#allocation46_spill] sm:$0xff]  ;;  %v5704_v35 = vld [vmem:[#allocation51_spill] sm:$0xff]  ;;  %v4789_v63 = vmul.f32 %v4590_v26, %v4590_v26 }
 0x229   :  { %5698 = vst [vmem:[#allocation142_spill] sm:$0xff] %v4767_v31  ;;  %v2414_v41 = vsub.f32 %v5703_v9, %v4723_v40  ;;  %v2415_v28 = vsub.f32 %v5704_v35, %v4723_v40  ;;  %v5705_v54 = vld [vmem:[#allocation54_spill] sm:$0xff]  ;;  %v5706_v62 = vld [vmem:[#allocation55_spill] sm:$0xff]  ;;  %v4793_v53 = vmul.f32 %v4594_v25, %v4594_v25  ;;  %v2446_v9 = vadd.f32 %v4602_v21, %v4600_v11  ;;  %v5710_v35 = vld [vmem:[#allocation61_spill] sm:$0xff] }
 0x22a   :  { %v2416_v31 = vsub.f32 %v5705_v54, %v4723_v40  ;;  %v4785_v52 = vsub.f32 %v5706_v62, %v4723_v40  ;;  %5708 = vst [vmem:[#allocation144_spill] sm:$0xff] %v4789_v63  ;;  %v2497_v29 = vsub.f32 %v5710_v35, %v4723_v40  ;;  %v5711_v54 = vld [vmem:[#allocation62_spill] sm:$0xff]  ;;  %v5712_v62 = vld [vmem:[#allocation65_spill] sm:$0xff]  ;;  %v5716_v11 = vld [vmem:[#allocation75_spill] sm:$0xff] }
 0x22b   :  { %5709 = vst [vmem:[#allocation145_spill] sm:$0xff] %v4793_v53  ;;  %v2498_v33 = vsub.f32 %v5711_v54, %v4723_v40  ;;  %v5713_v58 = vld [vmem:[#allocation70_spill] sm:$0xff]  ;;  %v5714_v63 = vld [vmem:[#allocation73_spill] sm:$0xff]  ;;  %v2503_v21 = vsub.f32 %v5716_v11, %v4723_v40  ;;  %v2515_v54 = vmul.f32 %v4616_v55, %v4616_v55  ;;  %v4829_v11 = vmul.f32 %v4632_v46, %v4632_v46  ;;  %v5725_v46 = vld [vmem:[#allocation95_spill] sm:$0xff] }
 0x22c   :  { %5707 = vst [vmem:[#allocation143_spill] sm:$0xff] %v4785_v52  ;;  %v2499_v52 = vsub.f32 %v5712_v62, %v4723_v40  ;;  %v2500_v26 = vsub.f32 %v5713_v58, %v4723_v40  ;;  %v2501_v17 = vsub.f32 %v5714_v63, %v4723_v40  ;;  %v5715_v25 = vld [vmem:[#allocation74_spill] sm:$0xff]  ;;  %v2516_v62 = vmul.f32 %v4620_v39, %v4620_v39 }
 0x22d   :  { %v2502_v53 = vsub.f32 %v5715_v25, %v4723_v40  ;;  %v5717_v35 = vld [vmem:[#allocation78_spill] sm:$0xff]  ;;  %v4821_v58 = vmul.f32 %v4624_v43, %v4624_v43  ;;  %v4825_v25 = vmul.f32 %v4628_v3, %v4628_v3  ;;  %5720 = vst [vmem:[#allocation148_spill] sm:$0xff] %v4829_v11  ;;  %v4837_v55 = vmul.f32 %v4640_v6, %v4640_v6  ;;  %v5723_v43 = vld [vmem:[#allocation91_spill] sm:$0xff]  ;;  %v5724_v3 = vld [vmem:[#allocation92_spill] sm:$0xff] }
 0x22e   :  { %v4813_v0 = vsub.f32 %v5717_v35, %v4723_v40  ;;  %v4833_v35 = vmul.f32 %v4636_v2, %v4636_v2  ;;  %v2533_v39 = vadd.f32 %v4648_v59, %v4646_v24  ;;  %v2584_v63 = vsub.f32 %v5723_v43, %v4723_v40  ;;  %v5727_v24 = vld [vmem:[#allocation108_spill] sm:$0xff]  ;;  %v5729_v43 = vld [vmem:[#allocation109_spill] sm:$0xff] }
 0x22f   :  { %5719 = vst [vmem:[#allocation147_spill] sm:$0xff] %v4825_v25  ;;  %5722 = vst [vmem:[#allocation150_spill] sm:$0xff] %v4837_v55  ;;  %v2586_v11 = vsub.f32 %v5725_v46, %v4723_v40  ;;  %v5726_v25 = vld [vmem:[#allocation98_spill] sm:$0xff]  ;;  %v2589_v6 = vsub.f32 %v4429_v5, %v4723_v40  ;;  %v4855_v59 = vsub.f32 %v5727_v24, %v4723_v40  ;;  %v5731_v5 = vld [vmem:[#allocation52_spill] sm:$0xff] }
 0x230   :  { %5718 = vst [vmem:[#allocation146_spill] sm:$0xff] %v4813_v0  ;;  %5721 = vst [vmem:[#allocation149_spill] sm:$0xff] %v4833_v35  ;;  %v2585_v0 = vsub.f32 %v5724_v3, %v4723_v40  ;;  %v2587_v2 = vsub.f32 %v5726_v25, %v4723_v40  ;;  %v2588_v35 = vsub.f32 %v4413_v48, %v4723_v40 }
 0x231   :  { %5728 = vst [vmem:[#allocation151_spill] sm:$0xff] %v4855_v59  ;;  %v4859_v55 = vsub.f32 %v5729_v43, %v4723_v40  ;;  %v2602_v46 = vmul.f32 %v4662_v13, %v4662_v13  ;;  %v2603_v25 = vmul.f32 %v4666_v7, %v4666_v7  ;;  %v4867_v48 = vmul.f32 %v4670_v20, %v4670_v20 }
 0x232   :  { %v2400_v3 = vsub.f32 %v5731_v5, %v4454_v18  ;;  %v4873_v24 = vmul.f32 %v4674_v27, %v4674_v27  ;;  %v4877_v43 = vmul.f32 %v4678_v49, %v4678_v49  ;;  %v4881_v13 = vmul.f32 %v4682_v10, %v4682_v10 }
 0x233   :  { %5730 = vst [vmem:[#allocation152_spill] sm:$0xff] %v4859_v55  ;;  %v2447_v7 = vadd.f32 %v2446_v9, %v4604_v23  ;;  %v2620_v20 = vadd.f32 %v4698_v15, %v4694_v61  ;;  %v2426_v5 = vmul.f32 %v4492_v16, %v4492_v16  ;;  %v2350_v55 = vmul.f32 %v2323_v30, %v2323_v30 }
 0x234   :  { %5732 = vst [vmem:[#allocation153_spill] sm:$0xff] %v4873_v24  ;;  %5733 = vst [vmem:[#allocation154_spill] sm:$0xff] %v4877_v43  ;;  %v2351_v40 = vmul.f32 %v2324_v8, %v2324_v8  ;;  %v2427_v27 = vmul.f32 %v2400_v3, %v2400_v3  ;;  %v2352_v24 = vmul.f32 %v2325_v36, %v2325_v36 }
 0x235   :  { %5734 = vst [vmem:[#allocation155_spill] sm:$0xff] %v4881_v13  ;;  %v2448_v59 = vadd.f32 %v2447_v7, %v4606_v57  ;;  %v4889_v49 = vmul.f32 %v2326_v38, %v2326_v38  ;;  %v4891_v43 = vmul.f32 %v2327_v32, %v2327_v32  ;;  %v4893_v10 = vmul.f32 %v2328_v37, %v2328_v37  ;;  %v5742_v7 = vld [vmem:[#allocation122_spill] sm:$0xff] }
 0x236   :  { %v4895_v13 = vmul.f32 %v2329_v19, %v2329_v19  ;;  %v2360_v23 = vadd.f32 %v4739_v34, %v4550_v47  ;;  %v2369_v16 = vadd.f32 %v4725_v22, %v4721_v50  ;;  %v2437_v15 = vmul.f32 %v2410_v45, %v2410_v45 }
 0x237   :  { %v2449_v61 = vadd.f32 %v2448_v59, %v4608_v1  ;;  %v2438_v8 = vmul.f32 %v2411_v51, %v2411_v51  ;;  %v2439_v57 = vmul.f32 %v2412_v60, %v2412_v60  ;;  %v4902_v36 = vmul.f32 %v2413_v42, %v2413_v42 }
 0x238   :  { %v4904_v30 = vmul.f32 %v2414_v41, %v2414_v41  ;;  %v4906_v38 = vmul.f32 %v2415_v28, %v2415_v28  ;;  %v4909_v32 = vmul.f32 %v2416_v31, %v2416_v31  ;;  %v2456_v47 = vadd.f32 %v4743_v44, %v4741_v12 }
 0x239   :  { %v2450_v19 = vadd.f32 %v2449_v61, %v4610_v4  ;;  %v2524_v1 = vmul.f32 %v2497_v29, %v2497_v29  ;;  %v2525_v34 = vmul.f32 %v2498_v33, %v2498_v33  ;;  %v2526_v9 = vmul.f32 %v2499_v52, %v2499_v52  ;;  %v5735_v33 = vld [vmem:[#allocation128_spill] sm:$0xff]  ;;  %v5745_v61 = vld [vmem:[#allocation117_spill] sm:$0xff] }
 0x23a   :  { %v4913_v50 = vmul.f32 %v2500_v26, %v2500_v26  ;;  %v4915_v51 = vmul.f32 %v2501_v17, %v2501_v17  ;;  %v4918_v41 = vmul.f32 %v2502_v53, %v2502_v53  ;;  %v4920_v22 = vmul.f32 %v2503_v21, %v2503_v21  ;;  %v5736_v29 = vld [vmem:[#allocation28_spill] sm:$0xff]  ;;  %v5737_v53 = vld [vmem:[#allocation115_spill] sm:$0xff]  ;;  %v5738_v21 = vld [vmem:[#allocation134_spill] sm:$0xff] }
 0x23b   :  { %v2451_v60 = vadd.f32 %v2450_v19, %v4612_v56  ;;  %v2534_v4 = vadd.f32 %v2533_v39, %v4650_v14  ;;  %v2543_v28 = vadd.f32 %v2516_v62, %v2515_v54  ;;  %v2611_v42 = vmul.f32 %v2584_v63, %v2584_v63  ;;  %v5739_v54 = vld [vmem:[#allocation111_spill] sm:$0xff]  ;;  %v5740_v62 = vld [vmem:[#allocation116_spill] sm:$0xff] }
 0x23c   :  { %v2612_v31 = vmul.f32 %v2585_v0, %v2585_v0  ;;  %v2613_v37 = vmul.f32 %v2586_v11, %v2586_v11  ;;  %v2614_v44 = vmul.f32 %v2587_v2, %v2587_v2  ;;  %v2621_v52 = vadd.f32 %v2620_v20, %v5735_v33  ;;  %v5741_v39 = vld [vmem:[#allocation139_spill] sm:$0xff]  ;;  %v5743_v20 = vld [vmem:[#allocation129_spill] sm:$0xff]  ;;  %v5748_v33 = vld [vmem:[#allocation130_spill] sm:$0xff] }
 0x23d   :  { %v2452_v12 = vadd.f32 %v2451_v60, %v2426_v5  ;;  %v2313_v17 = vsub.f32 %v5736_v29, %v4454_v18  ;;  %v4926_v45 = vmul.f32 %v2588_v35, %v2588_v35  ;;  %v2630_v56 = vadd.f32 %v2603_v25, %v2602_v46 }
 0x23e   :  { %v2361_v26 = vadd.f32 %v2360_v23, %v5737_v53  ;;  %v2370_v3 = vadd.f32 %v2369_v16, %v5738_v21  ;;  %v4930_v14 = vmul.f32 %v2589_v6, %v2589_v6  ;;  %v2339_v0 = vmul.f32 %v5739_v54, %v5739_v54  ;;  %v5744_v6 = vld [vmem:[#allocation106_spill] sm:$0xff] }
 0x23f   :  { %v2453_v59 = vadd.f32 %v2452_v12, %v2427_v27  ;;  %v2379_v5 = vadd.f32 %v2351_v40, %v2350_v55  ;;  %v2340_v63 = vmul.f32 %v2313_v17, %v2313_v17  ;;  %v2457_v2 = vadd.f32 %v2456_v47, %v5741_v39  ;;  %v5746_v55 = vld [vmem:[#allocation135_spill] sm:$0xff]  ;;  %v5747_v47 = vld [vmem:[#allocation114_spill] sm:$0xff]  ;;  %v5750_v17 = vld [vmem:[#allocation140_spill] sm:$0xff] }
 0x240   :  { %v2362_v11 = vadd.f32 %v2361_v26, %v5740_v62  ;;  %v2535_v35 = vadd.f32 %v2534_v4, %v5742_v7  ;;  %v2466_v25 = vadd.f32 %v2438_v8, %v2437_v15  ;;  %v2544_v46 = vadd.f32 %v2543_v28, %v4821_v58  ;;  %v5749_v58 = vld [vmem:[#allocation118_spill] sm:$0xff]  ;;  %v5751_v26 = vld [vmem:[#allocation123_spill] sm:$0xff]  ;;  %v5755_v62 = vld [vmem:[#allocation124_spill] sm:$0xff] }
 0x241   :  { %2454 = vadd.xlane.f32.xlu0 %v2453_v59  ;;  %v2622_v23 = vadd.f32 %v2621_v52, %v5743_v20  ;;  %v2574_v27 = vsub.f32 %v5744_v6, %v4454_v18  ;;  %v2553_v19 = vadd.f32 %v2525_v34, %v2524_v1  ;;  %v2631_v40 = vadd.f32 %v2630_v56, %v4867_v48  ;;  %v5752_v59 = vld [vmem:[#allocation131_spill] sm:$0xff]  ;;  %v5757_v39 = vld [vmem:[#allocation132_spill] sm:$0xff]  ;;  %v5758_v20 = vld [vmem:[#allocation153_spill] sm:$0xff] }
 0x242   :  { %v2363_v16 = vadd.f32 %v2362_v11, %v5745_v61  ;;  %v2371_v60 = vadd.f32 %v2370_v3, %v5746_v55  ;;  %v2640_v12 = vadd.f32 %v2612_v31, %v2611_v42  ;;  %v2600_v4 = vmul.f32 %v5747_v47, %v5747_v47  ;;  %v5753_v48 = vld [vmem:[#allocation147_spill] sm:$0xff]  ;;  %v5754_v42 = vld [vmem:[#allocation82_spill] sm:$0xff] }
 0x243   :  { %v2623_v15 = vadd.f32 %v2622_v23, %v5748_v33  ;;  %v2380_v8 = vadd.f32 %v2379_v5, %v2352_v24  ;;  %v2601_v52 = vmul.f32 %v2574_v27, %v2574_v27  ;;  %v2458_v53 = vadd.f32 %v2457_v2, %v5750_v17  ;;  %v5756_v24 = vld [vmem:[#allocation136_spill] sm:$0xff] }
 0x244   :  { %v2364_v28 = vadd.f32 %v2363_v16, %v5749_v58  ;;  %v2536_v21 = vadd.f32 %v2535_v35, %v5751_v26  ;;  %v2467_v34 = vadd.f32 %v2466_v25, %v2439_v57  ;;  %v2545_v56 = vadd.f32 %v2544_v46, %v5753_v48  ;;  %v5759_v35 = vld [vmem:[#allocation112_spill] sm:$0xff]  ;;  %v5760_v46 = vld [vmem:[#allocation125_spill] sm:$0xff] }
 0x245   :  { %v2624_v1 = vadd.f32 %v2623_v15, %v5752_v59  ;;  %v2487_v31 = vsub.f32 %v5754_v42, %v4454_v18  ;;  %v2554_v54 = vadd.f32 %v2553_v19, %v2526_v9  ;;  %v2372_v5 = vadd.f32 %v2371_v60, %v5756_v24  ;;  %v5761_v9 = vld [vmem:[#allocation141_spill] sm:$0xff]  ;;  %v5762_v60 = vld [vmem:[#allocation148_spill] sm:$0xff]  ;;  %v5769_v59 = vld [vmem:[#allocation138_spill] sm:$0xff] }
 0x246   :  { %v2365_v3 = vadd.f32 %v2364_v28, %v2339_v0  ;;  %v2537_v11 = vadd.f32 %v2536_v21, %v5755_v62  ;;  %v2632_v2 = vadd.f32 %v2631_v40, %v5758_v20  ;;  %v2641_v23 = vadd.f32 %v2640_v12, %v2613_v37  ;;  %v5763_v40 = vld [vmem:[#allocation113_spill] sm:$0xff]  ;;  %v5766_v28 = vld [vmem:[#allocation151_spill] sm:$0xff] }
 0x247   :  { %v2625_v7 = vadd.f32 %v2624_v1, %v5757_v39  ;;  %v2513_v27 = vmul.f32 %v5759_v35, %v5759_v35  ;;  %v2514_v25 = vmul.f32 %v2487_v31, %v2487_v31  ;;  %v2381_v16 = vadd.f32 %v2380_v8, %v4889_v49  ;;  %v5764_v12 = vld [vmem:[#allocation29_spill] sm:$0xff]  ;;  %v5771_v31 = vld [vmem:[#allocation144_spill] sm:$0xff] }
 0x248   :  { %v2366_v57 = vadd.f32 %v2365_v3, %v2340_v63  ;;  %v2538_v61 = vadd.f32 %v2537_v11, %v5760_v46  ;;  %v2459_v19 = vadd.f32 %v2458_v53, %v5761_v9  ;;  %v2468_v55 = vadd.f32 %v2467_v34, %v4902_v36  ;;  %v5765_v63 = vld [vmem:[#allocation137_spill] sm:$0xff]  ;;  %v5768_v36 = vld [vmem:[#allocation119_spill] sm:$0xff]  ;;  %v5774_v39 = vld [vmem:[#allocation120_spill] sm:$0xff] }
 0x249   :  { %v2626_v0 = vadd.f32 %v2625_v7, %v2600_v4  ;;  %v2546_v47 = vadd.f32 %v2545_v56, %v5762_v60  ;;  %v2555_v37 = vadd.f32 %v2554_v54, %v4913_v50  ;;  %v2322_v15 = vsub.f32 %v5764_v12, %v5763_v40  ;;  %v5767_v4 = vld [vmem:[#allocation154_spill] sm:$0xff]  ;;  %v5770_v48 = vld [vmem:[#allocation53_spill] sm:$0xff] }
 0x24a   :  { %2367 = vadd.xlane.f32.xlu1 %v2366_v57  ;;  %v2539_v33 = vadd.f32 %v2538_v61, %v2513_v27  ;;  %v2373_v58 = vadd.f32 %v2372_v5, %v5765_v63  ;;  %v2617_v17 = vmul.f32 %v5766_v28, %v5766_v28  ;;  %v2633_v8 = vadd.f32 %v2632_v2, %v5767_v4  ;;  %v5773_v24 = vld [vmem:[#allocation149_spill] sm:$0xff]  ;;  %v5777_v27 = vld [vmem:[#allocation150_spill] sm:$0xff]  ;;  %v5782_v63 = vld [vmem:[#allocation143_spill] sm:$0xff] }
 0x24b   :  { %v2627_v49 = vadd.f32 %v2626_v0, %v2601_v52  ;;  %v2642_v53 = vadd.f32 %v2641_v23, %v2614_v44  ;;  %v2348_v21 = vmul.f32 %v5768_v36, %v5768_v36  ;;  %v2382_v50 = vadd.f32 %v2381_v16, %v4891_v43  ;;  %v5772_v52 = vld [vmem:[#allocation83_spill] sm:$0xff]  ;;  %v5775_v7 = vld [vmem:[#allocation145_spill] sm:$0xff] }
 0x24c   :  { %v2540_v26 = vadd.f32 %v2539_v33, %v2514_v25  ;;  %v2374_v1 = vadd.f32 %v2373_v58, %v5769_v59  ;;  %v2469_v34 = vadd.f32 %v2468_v55, %v4904_v30  ;;  %v2409_v56 = vsub.f32 %v5770_v48, %v5763_v40  ;;  %v5776_v2 = vld [vmem:[#allocation121_spill] sm:$0xff]  ;;  %v5780_v55 = vld [vmem:[#allocation142_spill] sm:$0xff]  ;;  %v5781_v33 = vld [vmem:[#allocation56_spill] sm:$0xff] }
 0x24d   :  { %2628 = vadd.xlane.f32.xlu0 %v2627_v49  ;;  %v2460_v3 = vadd.f32 %v2459_v19, %v5771_v31  ;;  %v2496_v54 = vsub.f32 %v5772_v52, %v5763_v40  ;;  %v2349_v44 = vmul.f32 %v2322_v15, %v2322_v15  ;;  %v2556_v11 = vadd.f32 %v2555_v37, %v4915_v51  ;;  %v5778_v25 = vld [vmem:[#allocation133_spill] sm:$0xff]  ;;  %v5787_v31 = vld [vmem:[#allocation152_spill] sm:$0xff] }
 0x24e   :  { %2541 = vadd.xlane.f32.xlu1 %v2540_v26  ;;  %v2375_v62 = vadd.f32 %v2374_v1, %v2348_v21  ;;  %v2547_v5 = vadd.f32 %v2546_v47, %v5773_v24  ;;  %v2643_v43 = vadd.f32 %v2642_v53, %v4926_v45  ;;  %v2435_v30 = vmul.f32 %v5774_v39, %v5774_v39  ;;  %v5779_v46 = vld [vmem:[#allocation25_spill] sm:$0xff]  ;;  %v5783_v53 = vld [vmem:[#allocation79_spill] sm:$0xff] }
 0x24f   :  { %v2461_v20 = vadd.f32 %v2460_v3, %v5775_v7  ;;  %v2522_v23 = vmul.f32 %v5776_v2, %v5776_v2  ;;  %v2331_v61 = vsub.f32 %v5779_v46, %v5778_v25  ;;  %v2383_v51 = vadd.f32 %v2382_v50, %v4893_v10  ;;  %v5785_v50 = vld [vmem:[#allocation126_spill] sm:$0xff] }
 0x250   :  { %v2376_v35 = vadd.f32 %v2375_v62, %v2349_v44  ;;  %v2548_v57 = vadd.f32 %v2547_v5, %v5777_v27  ;;  %v2436_v16 = vmul.f32 %v2409_v56, %v2409_v56  ;;  %v2523_v9 = vmul.f32 %v2496_v54, %v2496_v54 }
 0x251   :  { %v2462_v0 = vadd.f32 %v2461_v20, %v2435_v30  ;;  %v2470_v45 = vadd.f32 %v2469_v34, %v4906_v38  ;;  %v2357_v60 = vmul.f32 %v5780_v55, %v5780_v55  ;;  %v2384_v47 = vadd.f32 %v2383_v51, %v4895_v13  ;;  %v5784_v13 = vld [vmem:[#allocation146_spill] sm:$0xff]  ;;  %v5790_v30 = vld [vmem:[#allocation127_spill] sm:$0xff] }
 0x252   :  { %2377 = vadd.xlane.f32.xlu0 %v2376_v35  ;;  %v2549_v19 = vadd.f32 %v2548_v57, %v2522_v23  ;;  %v2418_v37 = vsub.f32 %v5781_v33, %v5778_v25  ;;  %v2444_v58 = vmul.f32 %v5782_v63, %v5782_v63  ;;  %v2557_v28 = vadd.f32 %v2556_v11, %v4918_v41  ;;  %v5786_v34 = vld [vmem:[#allocation110_spill] sm:$0xff]  ;;  %v5788_v11 = vld [vmem:[#allocation155_spill] sm:$0xff] }
 0x253   :  { %v2463_v15 = vadd.f32 %v2462_v0, %v2436_v16  ;;  %v2471_v10 = vadd.f32 %v2470_v45, %v4909_v32  ;;  %v2358_v38 = vmul.f32 %v2331_v61, %v2331_v61  ;;  %v2385_v4 = vadd.f32 %v2384_v47, %v2357_v60 }
 0x254   :  { %v2550_v49 = vadd.f32 %v2549_v19, %v2523_v9  ;;  %v2505_v26 = vsub.f32 %v5783_v53, %v5778_v25  ;;  %v2531_v21 = vmul.f32 %v5784_v13, %v5784_v13  ;;  %v2558_v59 = vadd.f32 %v2557_v28, %v4920_v22 }
 0x255   :  { %2464 = vadd.xlane.f32.xlu1 %v2463_v15  ;;  %v2472_v36 = vadd.f32 %v2471_v10, %v2444_v58  ;;  %v2644_v1 = vadd.f32 %v2643_v43, %v4930_v14  ;;  %v2608_v32 = vmul.f32 %v5785_v50, %v5785_v50  ;;  %v2445_v41 = vmul.f32 %v2418_v37, %v2418_v37  ;;  %v5789_v43 = vld [vmem:[#allocation107_spill] sm:$0xff] }
 0x256   :  { %2551 = vadd.xlane.f32.xlu0 %v2550_v49  ;;  %v2592_v56 = vsub.f32 %v5786_v34, %v5778_v25  ;;  %v2618_v3 = vmul.f32 %v5787_v31, %v5787_v31  ;;  %v2386_v54 = vadd.f32 %v2385_v4, %v2358_v38  ;;  %v2559_v44 = vadd.f32 %v2558_v59, %v2531_v21  ;;  %v2656_v4 = vld [vmem:[%s5348_s3] sm:$0xff] }
 0x257   :  { %v2645_v62 = vadd.f32 %v2644_v1, %v2617_v17  ;;  %v2634_v24 = vadd.f32 %v2633_v8, %v5788_v11  ;;  %v2473_v5 = vadd.f32 %v2472_v36, %v2445_v41  ;;  %v2532_v22 = vmul.f32 %v2505_v26, %v2505_v26  ;;  %v2657_v11 = vld [vmem:[%s5348_s3 + $0x8] sm:$0xff] }
 0x258   :  { %v2583_v39 = vsub.f32 %v5789_v43, %v5763_v40  ;;  %v2609_v7 = vmul.f32 %v5790_v30, %v5790_v30  ;;  %v2619_v2 = vmul.f32 %v2592_v56, %v2592_v56 }
 0x259   :  { %2387 = vadd.xlane.f32.xlu1 %v2386_v54  ;;  %v2646_v14 = vadd.f32 %v2645_v62, %v2618_v3  ;;  %v2635_v20 = vadd.f32 %v2634_v24, %v2608_v32  ;;  %v2560_v23 = vadd.f32 %v2559_v44, %v2532_v22  ;;  %v2668_v32 = vld [vmem:[%s5349_s4] sm:$0xff]  ;;  %v2658_v44 = vld [vmem:[%s5348_s3 + $0x10] sm:$0xff] }
 0x25a   :  { %2474 = vadd.xlane.f32.xlu0 %v2473_v5  ;;  %v2610_v17 = vmul.f32 %v2583_v39, %v2583_v39  ;;  %v2669_v39 = vld [vmem:[%s5349_s4 + $0x8] sm:$0xff] }
 0x25b   :  { %v2636_v35 = vadd.f32 %v2635_v20, %v2609_v7  ;;  %v2647_v27 = vadd.f32 %v2646_v14, %v2619_v2 }
 0x25d   :  { %2561 = vadd.xlane.f32.xlu1 %v2560_v23  ;;  %v2637_v8 = vadd.f32 %v2636_v35, %v2610_v17  ;;  %v5791_v23 = vld [vmem:[#allocation5_spill] sm:$0xff] }
 0x25e   :  { %2648 = vadd.xlane.f32.xlu0 %v2647_v27  ;;  %v5792_v27 = vld [vmem:[#allocation6_spill] sm:$0xff] }
 0x261   :  { %2638 = vadd.xlane.f32.xlu1 %v2637_v8  ;;  %v5793_v8 = vld [vmem:[#allocation10_spill] sm:$0xff] }
 0x2ce   :  { %v2455_v57 = vpop.xlane.xlu0 %2454 }
 0x2d7   :  { %v2368_v61 = vpop.xlane.xlu1 %2367 }
 0x2d8   :  { %v2476_v51 = vadd.f32 %v2455_v57, %v2368_v61  ;;  %v5794_v61 = vld [vmem:[#allocation14_spill] sm:$0xff] }
 0x2da   :  { %v2629_v16 = vpop.xlane.xlu0 %2628 }
 0x2db   :  { %v2542_v0 = vpop.xlane.xlu1 %2541 }
 0x2dc   :  { %v2563_v9 = vadd.f32 %v2542_v0, %v2476_v51  ;;  %v5795_v51 = vld [vmem:[#allocation15_spill] sm:$0xff]  ;;  %v5796_v0 = vld [vmem:[#allocation18_spill] sm:$0xff] }
 0x2de   :  { %v2650_v45 = vadd.f32 %v2629_v16, %v2563_v9 }
 0x2df   :  { %v2378_v19 = vpop.xlane.xlu0 %2377 }
 0x2e0   :  { %v2653_v55 = vmul.f32 0.00021701389, %v2650_v45  ;;  %v5797_v45 = vld [vmem:[#allocation23_spill] sm:$0xff] }
 0x2e2   :  { %v2659_v60 = vadd.f32 1e-05, %v2653_v55  ;;  %v2465_v47 = vpop.xlane.xlu1 %2464 }
 0x2e3   :  { %v2552_v37 = vpop.xlane.xlu0 %2551  ;;  %v2477_v28 = vadd.f32 %v2465_v47, %v2378_v19  ;;  %v5799_v47 = vld [vmem:[#allocation30_spill] sm:$0xff] }
 0x2e4   :  { %3497 = vrsqrt.f32 %v2659_v60 }
 0x2e5   :  { %v2564_v26 = vadd.f32 %v2552_v37, %v2477_v28  ;;  %v5802_v28 = vld [vmem:[#allocation36_spill] sm:$0xff] }
 0x2e6   :  { %v2388_v15 = vpop.xlane.xlu1 %2387 }
 0x2e7   :  { %v2475_v63 = vpop.xlane.xlu0 %2474 }
 0x2e8   :  { %v2478_v58 = vadd.f32 %v2475_v63, %v2388_v15  ;;  %v5800_v15 = vld [vmem:[#allocation31_spill] sm:$0xff] }
 0x2ea   :  { %v2562_v10 = vpop.xlane.xlu1 %2561 }
 0x2eb   :  { %v2565_v49 = vadd.f32 %v2562_v10, %v2478_v58  ;;  %v2649_v38 = vpop.xlane.xlu0 %2648  ;;  %v5801_v58 = vld [vmem:[#allocation34_spill] sm:$0xff] }
 0x2ed   :  { %v2652_v36 = vadd.f32 %v2649_v38, %v2565_v49  ;;  %v5803_v38 = vld [vmem:[#allocation40_spill] sm:$0xff] }
 0x2ee   :  { %v3498_v13 = vpop.eup %3497  ;;  %v2639_v21 = vpop.xlane.xlu1 %2638 }
 0x2ef   :  { %v2651_v59 = vadd.f32 %v2639_v21, %v2564_v26  ;;  %v2655_v1 = vmul.f32 0.00021701389, %v2652_v36  ;;  %v2665_v50 = vmul.f32 %v3498_v13, %v2656_v4  ;;  %v5804_v26 = vld [vmem:[#allocation43_spill] sm:$0xff] }
 0x2f0   :  { %v5805_v13 = vld [vmem:[#allocation47_spill] sm:$0xff] }
 0x2f1   :  { %v2654_v41 = vmul.f32 0.00021701389, %v2651_v59  ;;  %v2661_v56 = vadd.f32 1e-05, %v2655_v1  ;;  %2679 = vperm.xlu1 %3348, %v2665_v50   ;;  %v2671_v31 = vmul.f32 %v2665_v50, %v4454_v18  ;;  %v2670_v18 = vld [vmem:[%s5349_s4 + $0x10] sm:$0xff]  ;;  %v5806_v59 = vld [vmem:[#allocation48_spill] sm:$0xff] }
 0x2f2   :  { %v5807_v50 = vld [vmem:[#allocation52_spill] sm:$0xff] }
 0x2f3   :  { %v2660_v3 = vadd.f32 1e-05, %v2654_v41  ;;  %3499 = vrsqrt.f32 %v2661_v56  ;;  %v2674_v54 = vsub.f32 %v2668_v32, %v2671_v31  ;;  %v5808_v41 = vld [vmem:[#allocation59_spill] sm:$0xff]  ;;  %v5809_v56 = vld [vmem:[#allocation60_spill] sm:$0xff] }
 0x2f5   :  { %3501 = vrsqrt.f32 %v2660_v3  ;;  %2721 = vperm.xlu1 %3348, %v2674_v54   ;;  %v5810_v3 = vld [vmem:[#allocation64_spill] sm:$0xff] }
 0x2fd   :  { %v3500_v62 = vpop.eup %3499 }
 0x2fe   :  { %v2667_v24 = vmul.f32 %v3500_v62, %v2658_v44  ;;  %v5811_v44 = vld [vmem:[#allocation68_spill] sm:$0xff] }
 0x2ff   :  { %v3502_v5 = vpop.eup %3501 }
 0x300   :  { %v2666_v22 = vmul.f32 %v3502_v5, %v2657_v11  ;;  %2689 = vperm.xlu1 %3348, %v2667_v24   ;;  %v2673_v14 = vmul.f32 %v2667_v24, %v5778_v25  ;;  %v5812_v11 = vld [vmem:[#allocation69_spill] sm:$0xff]  ;;  %v5813_v5 = vld [vmem:[#allocation72_spill] sm:$0xff] }
 0x302   :  { %2684 = vperm.xlu0 %3347, %v2666_v22   ;;  %v2672_v30 = vmul.f32 %v2666_v22, %v5763_v40  ;;  %v2676_v7 = vsub.f32 %v2670_v18, %v2673_v14  ;;  %v5798_v40 = vld [vmem:[#allocation27_spill] sm:$0xff]  ;;  %v5814_v22 = vld [vmem:[#allocation77_spill] sm:$0xff] }
 0x304   :  { %v2675_v20 = vsub.f32 %v2669_v39, %v2672_v30  ;;  %2731 = vperm.xlu1 %3348, %v2676_v7   ;;  %v5815_v39 = vld [vmem:[#allocation81_spill] sm:$0xff] }
 0x306   :  { %2726 = vperm.xlu0 %3347, %v2675_v20   ;;  %v5816_v20 = vld [vmem:[#allocation84_spill] sm:$0xff] }
 0x370   :  { %v2680_v2 = vpop.permute.xlu1 %2679 }
 0x371   :  { %v2692_v35 = vmul.f32 %v2680_v2, %v5791_v23  ;;  %v2693_v17 = vmul.f32 %v2680_v2, %v5792_v27  ;;  %v2694_v57 = vmul.f32 %v2680_v2, %v5793_v8  ;;  %v2695_v25 = vmul.f32 %v2680_v2, %v5794_v61  ;;  %v5817_v8 = vld [vmem:[#allocation85_spill] sm:$0xff] }
 0x372   :  { %v2696_v16 = vmul.f32 %v2680_v2, %v5795_v51  ;;  %v2697_v9 = vmul.f32 %v2680_v2, %v5796_v0  ;;  %v2698_v19 = vmul.f32 %v2680_v2, %v5797_v45  ;;  %v2699_v55 = vmul.f32 %v2680_v2, %v5798_v40  ;;  %v5818_v51 = vld [vmem:[#allocation88_spill] sm:$0xff]  ;;  %v5819_v45 = vld [vmem:[#allocation90_spill] sm:$0xff] }
 0x373   :  { %v2700_v60 = vmul.f32 %v2680_v2, %v5736_v29  ;;  %v2761_v37 = vmul.f32 %v2680_v2, %v5799_v47  ;;  %v2762_v63 = vmul.f32 %v2680_v2, %v5800_v15  ;;  %v2763_v10 = vmul.f32 %v2680_v2, %v5801_v58  ;;  %v5820_v47 = vld [vmem:[#allocation94_spill] sm:$0xff]  ;;  %v5821_v58 = vld [vmem:[#allocation97_spill] sm:$0xff] }
 0x374   :  { %v2764_v49 = vmul.f32 %v2680_v2, %v5802_v28  ;;  %v2765_v4 = vmul.f32 %v2680_v2, %v5803_v38  ;;  %v2766_v36 = vmul.f32 %v2680_v2, %v5804_v26  ;;  %v2767_v21 = vmul.f32 %v2680_v2, %v5805_v13  ;;  %v5070_v27 = vpop.permute.xlu1 %2721  ;;  %v5822_v38 = vld [vmem:[#allocation101_spill] sm:$0xff]  ;;  %v5823_v13 = vld [vmem:[#allocation102_spill] sm:$0xff] }
 0x375   :  { %v2768_v1 = vmul.f32 %v2680_v2, %v5806_v59  ;;  %v2769_v32 = vmul.f32 %v2680_v2, %v5807_v50  ;;  %v2842_v29 = vmul.f32 %v2680_v2, %v5808_v41  ;;  %v2843_v31 = vmul.f32 %v2680_v2, %v5809_v56 }
 0x376   :  { %v2844_v54 = vmul.f32 %v2680_v2, %v5810_v3  ;;  %v2845_v62 = vmul.f32 %v2680_v2, %v5811_v44  ;;  %v2846_v24 = vmul.f32 %v2680_v2, %v5812_v11  ;;  %v2847_v18 = vmul.f32 %v2680_v2, %v5813_v5 }
 0x377   :  { %v2848_v14 = vmul.f32 %v2680_v2, %v5814_v22  ;;  %v2849_v30 = vmul.f32 %v2680_v2, %v5815_v39  ;;  %v2850_v7 = vmul.f32 %v2680_v2, %v5754_v42  ;;  %v2923_v23 = vmul.f32 %v2680_v2, %v5816_v20 }
 0x378   :  { %v2924_v61 = vmul.f32 %v2680_v2, %v5817_v8  ;;  %v2925_v0 = vmul.f32 %v2680_v2, %v5818_v51  ;;  %v2926_v40 = vmul.f32 %v2680_v2, %v5819_v45  ;;  %v2927_v15 = vmul.f32 %v2680_v2, %v5820_v47 }
 0x379   :  { %v2928_v28 = vmul.f32 %v2680_v2, %v5821_v58  ;;  %v2929_v26 = vmul.f32 %v2680_v2, %v5822_v38  ;;  %v2930_v59 = vmul.f32 %v2680_v2, %v5823_v13  ;;  %v2931_v42 = vmul.f32 %v2680_v2, %v5744_v6 }
 0x37a   :  { %v2734_v50 = vadd.f32 %v5070_v27, %v2692_v35  ;;  %v2735_v41 = vadd.f32 %v5070_v27, %v2693_v17  ;;  %v2736_v56 = vadd.f32 %v5070_v27, %v2694_v57  ;;  %v2737_v3 = vadd.f32 %v5070_v27, %v2695_v25 }
 0x37b   :  { %v2738_v44 = vadd.f32 %v5070_v27, %v2696_v16  ;;  %v2739_v11 = vadd.f32 %v5070_v27, %v2697_v9  ;;  %v2740_v5 = vadd.f32 %v5070_v27, %v2698_v19  ;;  %v2741_v22 = vadd.f32 %v5070_v27, %v2699_v55 }
 0x37c   :  { %v2742_v39 = vadd.f32 %v5070_v27, %v2700_v60  ;;  %v2788_v6 = vadd.f32 %v2761_v37, %v5070_v27  ;;  %v2789_v2 = vadd.f32 %v2762_v63, %v5070_v27  ;;  %v2790_v35 = vadd.f32 %v2763_v10, %v5070_v27 }
 0x37d   :  { %v2791_v17 = vadd.f32 %v2764_v49, %v5070_v27  ;;  %v2792_v57 = vadd.f32 %v2765_v4, %v5070_v27  ;;  %v2793_v25 = vadd.f32 %v2766_v36, %v5070_v27  ;;  %v2794_v16 = vadd.f32 %v2767_v21, %v5070_v27 }
 0x37e   :  { %v2795_v9 = vadd.f32 %v2768_v1, %v5070_v27  ;;  %v2796_v19 = vadd.f32 %v2769_v32, %v5070_v27  ;;  %v2815_v55 = vmax.f32 %v2734_v50, %v2788_v6  ;;  %v2816_v60 = vmax.f32 %v2735_v41, %v2789_v2 }
 0x37f   :  { %v2817_v20 = vmax.f32 %v2736_v56, %v2790_v35  ;;  %v2818_v37 = vmax.f32 %v2737_v3, %v2791_v17  ;;  %v2819_v8 = vmax.f32 %v2738_v44, %v2792_v57  ;;  %v2820_v63 = vmax.f32 %v2739_v11, %v2793_v25  ;;  %v5827_v25 = vld [vmem:[#allocation16_spill] sm:$0xff] }
 0x380   :  { %v2821_v51 = vmax.f32 %v2740_v5, %v2794_v16  ;;  %v2822_v10 = vmax.f32 %v2741_v22, %v2795_v9  ;;  %v2823_v45 = vmax.f32 %v2742_v39, %v2796_v19  ;;  %v2869_v49 = vadd.f32 %v2842_v29, %v5070_v27  ;;  %v2690_v5 = vpop.permute.xlu1 %2689  ;;  %v5828_v9 = vld [vmem:[#allocation19_spill] sm:$0xff] }
 0x381   :  { %v2870_v4 = vadd.f32 %v2843_v31, %v5070_v27  ;;  %v2871_v36 = vadd.f32 %v2844_v54, %v5070_v27  ;;  %v2872_v21 = vadd.f32 %v2845_v62, %v5070_v27  ;;  %v2873_v1 = vadd.f32 %v2846_v24, %v5070_v27 }
 0x382   :  { %v2874_v32 = vadd.f32 %v2847_v18, %v5070_v27  ;;  %v2875_v47 = vadd.f32 %v2848_v14, %v5070_v27  ;;  %v2876_v58 = vadd.f32 %v2849_v30, %v5070_v27  ;;  %v2877_v38 = vadd.f32 %v2850_v7, %v5070_v27 }
 0x383   :  { %v2896_v13 = vmax.f32 %v2815_v55, %v2869_v49  ;;  %v2897_v50 = vmax.f32 %v2816_v60, %v2870_v4  ;;  %v2898_v41 = vmax.f32 %v2817_v20, %v2871_v36  ;;  %v2899_v29 = vmax.f32 %v2818_v37, %v2872_v21  ;;  %v5829_v55 = vld [vmem:[#allocation20_spill] sm:$0xff]  ;;  %v5830_v20 = vld [vmem:[#allocation21_spill] sm:$0xff]  ;;  %v5833_v49 = vld [vmem:[#allocation38_spill] sm:$0xff] }
 0x384   :  { %v2900_v56 = vmax.f32 %v2819_v8, %v2873_v1  ;;  %v2901_v31 = vmax.f32 %v2820_v63, %v2874_v32  ;;  %v2902_v3 = vmax.f32 %v2821_v51, %v2875_v47  ;;  %v2903_v54 = vmax.f32 %v2822_v10, %v2876_v58  ;;  %v5831_v8 = vld [vmem:[#allocation24_spill] sm:$0xff]  ;;  %v5832_v10 = vld [vmem:[#allocation37_spill] sm:$0xff]  ;;  %v5836_v47 = vld [vmem:[#allocation46_spill] sm:$0xff] }
 0x385   :  { %v2904_v44 = vmax.f32 %v2823_v45, %v2877_v38  ;;  %v2950_v62 = vadd.f32 %v2923_v23, %v5070_v27  ;;  %v2951_v24 = vadd.f32 %v2924_v61, %v5070_v27  ;;  %v2952_v18 = vadd.f32 %v2925_v0, %v5070_v27  ;;  %v5834_v36 = vld [vmem:[#allocation41_spill] sm:$0xff]  ;;  %v5835_v1 = vld [vmem:[#allocation44_spill] sm:$0xff]  ;;  %v5837_v38 = vld [vmem:[#allocation51_spill] sm:$0xff] }
 0x386   :  { %v2953_v14 = vadd.f32 %v2926_v40, %v5070_v27  ;;  %v2954_v30 = vadd.f32 %v2927_v15, %v5070_v27  ;;  %v2955_v7 = vadd.f32 %v2928_v28, %v5070_v27  ;;  %v2956_v11 = vadd.f32 %v2929_v26, %v5070_v27  ;;  %v5824_v15 = vld [vmem:[#allocation7_spill] sm:$0xff] }
 0x387   :  { %v2957_v22 = vadd.f32 %v2930_v59, %v5070_v27  ;;  %v2958_v39 = vadd.f32 %v2931_v42, %v5070_v27  ;;  %v2977_v6 = vmax.f32 %v2896_v13, %v2950_v62  ;;  %v2978_v2 = vmax.f32 %v2897_v50, %v2951_v24  ;;  %v5825_v27 = vld [vmem:[#allocation8_spill] sm:$0xff]  ;;  %v5826_v59 = vld [vmem:[#allocation11_spill] sm:$0xff]  ;;  %v5838_v50 = vld [vmem:[#allocation54_spill] sm:$0xff] }
 0x388   :  { %v2979_v23 = vmax.f32 %v2898_v41, %v2952_v18  ;;  %v2980_v35 = vmax.f32 %v2899_v29, %v2953_v14  ;;  %v2981_v61 = vmax.f32 %v2900_v56, %v2954_v30  ;;  %v2982_v17 = vmax.f32 %v2901_v31, %v2955_v7  ;;  %v5839_v29 = vld [vmem:[#allocation55_spill] sm:$0xff]  ;;  %v5842_v62 = vld [vmem:[#allocation65_spill] sm:$0xff]  ;;  %v5843_v18 = vld [vmem:[#allocation70_spill] sm:$0xff] }
 0x389   :  { %v2983_v0 = vmax.f32 %v2902_v3, %v2956_v11  ;;  %v2984_v57 = vmax.f32 %v2903_v54, %v2957_v22  ;;  %v2985_v40 = vmax.f32 %v2904_v44, %v2958_v39  ;;  %3004 = vst [vmem:[%s5350_s5] sm:$0xff] %v2977_v6  ;;  %3005 = vst [vmem:[%s5350_s5 + $0x8] sm:$0xff] %v2978_v2  ;;  %v5840_v3 = vld [vmem:[#allocation61_spill] sm:$0xff]  ;;  %v5841_v54 = vld [vmem:[#allocation62_spill] sm:$0xff]  ;;  %v5168_v2 = vpop.permute.xlu1 %2731 }
 0x38a   :  { %v2710_v28 = vmul.f32 %v2690_v5, %v5824_v15  ;;  %3006 = vst [vmem:[%s5350_s5 + $0x10] sm:$0xff] %v2979_v23  ;;  %3007 = vst [vmem:[%s5350_s5 + $0x18] sm:$0xff] %v2980_v35  ;;  %v2711_v26 = vmul.f32 %v2690_v5, %v5825_v27  ;;  %v2712_v42 = vmul.f32 %v2690_v5, %v5826_v59  ;;  %v5844_v30 = vld [vmem:[#allocation73_spill] sm:$0xff]  ;;  %v5845_v11 = vld [vmem:[#allocation74_spill] sm:$0xff] }
 0x38b   :  { %3008 = vst [vmem:[%s5350_s5 + $0x20] sm:$0xff] %v2981_v61  ;;  %3009 = vst [vmem:[%s5350_s5 + $0x28] sm:$0xff] %v2982_v17  ;;  %v2713_v16 = vmul.f32 %v2690_v5, %v5827_v25  ;;  %v2714_v19 = vmul.f32 %v2690_v5, %v5828_v9  ;;  %v2715_v60 = vmul.f32 %v2690_v5, %v5829_v55  ;;  %v5846_v39 = vld [vmem:[#allocation75_spill] sm:$0xff]  ;;  %v5847_v23 = vld [vmem:[#allocation78_spill] sm:$0xff] }
 0x38c   :  { %3010 = vst [vmem:[%s5350_s5 + $0x30] sm:$0xff] %v2983_v0  ;;  %3011 = vst [vmem:[%s5350_s5 + $0x38] sm:$0xff] %v2984_v57  ;;  %v2716_v37 = vmul.f32 %v2690_v5, %v5830_v20  ;;  %v2717_v63 = vmul.f32 %v2690_v5, %v5831_v8  ;;  %v2718_v51 = vmul.f32 %v2690_v5, %v5779_v46  ;;  %v5848_v61 = vld [vmem:[#allocation91_spill] sm:$0xff]  ;;  %v5849_v0 = vld [vmem:[#allocation92_spill] sm:$0xff] }
 0x38d   :  { %3012 = vst [vmem:[%s5350_s5 + $0x40] sm:$0xff] %v2985_v40  ;;  %v2779_v45 = vmul.f32 %v2690_v5, %v5832_v10  ;;  %v2780_v4 = vmul.f32 %v2690_v5, %v5833_v49  ;;  %v2781_v21 = vmul.f32 %v2690_v5, %v5834_v36  ;;  %v2782_v32 = vmul.f32 %v2690_v5, %v5835_v1  ;;  %v5850_v40 = vld [vmem:[#allocation95_spill] sm:$0xff]  ;;  %v5851_v27 = vld [vmem:[#allocation98_spill] sm:$0xff]  ;;  %v5852_v25 = vld [vmem:[#allocation100_spill] sm:$0xff] }
 0x38e   :  { %v2783_v58 = vmul.f32 %v2690_v5, %v5836_v47  ;;  %v2784_v13 = vmul.f32 %v2690_v5, %v5837_v38  ;;  %v2785_v41 = vmul.f32 %v2690_v5, %v5838_v50  ;;  %v2786_v56 = vmul.f32 %v2690_v5, %v5839_v29  ;;  %v5853_v55 = vld [vmem:[#allocation105_spill] sm:$0xff]  ;;  %v5854_v8 = vld [vmem:[#allocation108_spill] sm:$0xff] }
 0x38f   :  { %v2787_v31 = vmul.f32 %v2690_v5, %v5781_v33  ;;  %v2860_v46 = vmul.f32 %v2690_v5, %v5840_v3  ;;  %v2861_v44 = vmul.f32 %v2690_v5, %v5841_v54  ;;  %v2862_v24 = vmul.f32 %v2690_v5, %v5842_v62  ;;  %v5855_v49 = vld [vmem:[#allocation109_spill] sm:$0xff] }
 0x390   :  { %v2863_v14 = vmul.f32 %v2690_v5, %v5843_v18  ;;  %v2864_v7 = vmul.f32 %v2690_v5, %v5844_v30  ;;  %v2865_v22 = vmul.f32 %v2690_v5, %v5845_v11  ;;  %v2866_v6 = vmul.f32 %v2690_v5, %v5846_v39 }
 0x391   :  { %v2867_v35 = vmul.f32 %v2690_v5, %v5847_v23  ;;  %v2868_v33 = vmul.f32 %v2690_v5, %v5783_v53  ;;  %v2941_v17 = vmul.f32 %v2690_v5, %v5848_v61  ;;  %v2942_v57 = vmul.f32 %v2690_v5, %v5849_v0 }
 0x392   :  { %v2943_v15 = vmul.f32 %v2690_v5, %v5850_v40  ;;  %v2944_v59 = vmul.f32 %v2690_v5, %v5851_v27  ;;  %v2945_v9 = vmul.f32 %v2690_v5, %v5852_v25  ;;  %v2946_v20 = vmul.f32 %v2690_v5, %v5853_v55 }
 0x393   :  { %v2947_v10 = vmul.f32 %v2690_v5, %v5854_v8  ;;  %v2948_v36 = vmul.f32 %v2690_v5, %v5855_v49  ;;  %v2949_v1 = vmul.f32 %v2690_v5, %v5786_v34  ;;  %v2752_v53 = vadd.f32 %v5168_v2, %v2710_v28 }
 0x394   :  { %v2753_v47 = vadd.f32 %v5168_v2, %v2711_v26  ;;  %v2754_v38 = vadd.f32 %v5168_v2, %v2712_v42  ;;  %v2755_v50 = vadd.f32 %v5168_v2, %v2713_v16  ;;  %v2756_v29 = vadd.f32 %v5168_v2, %v2714_v19 }
 0x395   :  { %v2757_v3 = vadd.f32 %v5168_v2, %v2715_v60  ;;  %v2758_v54 = vadd.f32 %v5168_v2, %v2716_v37  ;;  %v2759_v62 = vadd.f32 %v5168_v2, %v2717_v63  ;;  %v2760_v18 = vadd.f32 %v5168_v2, %v2718_v51 }
 0x396   :  { %v2806_v34 = vadd.f32 %v2779_v45, %v5168_v2  ;;  %v2807_v5 = vadd.f32 %v2780_v4, %v5168_v2  ;;  %v2808_v28 = vadd.f32 %v2781_v21, %v5168_v2  ;;  %v2809_v26 = vadd.f32 %v2782_v32, %v5168_v2 }
 0x397   :  { %v2810_v42 = vadd.f32 %v2783_v58, %v5168_v2  ;;  %v2811_v16 = vadd.f32 %v2784_v13, %v5168_v2  ;;  %v2812_v19 = vadd.f32 %v2785_v41, %v5168_v2  ;;  %v2813_v60 = vadd.f32 %v2786_v56, %v5168_v2 }
 0x398   :  { %v2814_v37 = vadd.f32 %v2787_v31, %v5168_v2  ;;  %v2833_v63 = vmax.f32 %v2752_v53, %v2806_v34  ;;  %v2834_v51 = vmax.f32 %v2753_v47, %v2807_v5  ;;  %v2835_v30 = vmax.f32 %v2754_v38, %v2808_v28  ;;  %v5859_v5 = vld [vmem:[#allocation12_spill] sm:$0xff] }
 0x399   :  { %v2836_v45 = vmax.f32 %v2755_v50, %v2809_v26  ;;  %v2837_v11 = vmax.f32 %v2756_v29, %v2810_v42  ;;  %v2838_v4 = vmax.f32 %v2757_v3, %v2811_v16  ;;  %v2839_v39 = vmax.f32 %v2758_v54, %v2812_v19  ;;  %v5860_v26 = vld [vmem:[#allocation13_spill] sm:$0xff] }
 0x39a   :  { %v2840_v21 = vmax.f32 %v2759_v62, %v2813_v60  ;;  %v2841_v23 = vmax.f32 %v2760_v18, %v2814_v37  ;;  %v2887_v32 = vadd.f32 %v2860_v46, %v5168_v2  ;;  %v2888_v58 = vadd.f32 %v2861_v44, %v5168_v2  ;;  %v5861_v16 = vld [vmem:[#allocation17_spill] sm:$0xff]  ;;  %v5862_v60 = vld [vmem:[#allocation22_spill] sm:$0xff] }
 0x39b   :  { %v2889_v13 = vadd.f32 %v2862_v24, %v5168_v2  ;;  %v2890_v41 = vadd.f32 %v2863_v14, %v5168_v2  ;;  %v2891_v56 = vadd.f32 %v2864_v7, %v5168_v2  ;;  %v2892_v31 = vadd.f32 %v2865_v22, %v5168_v2 }
 0x39c   :  { %v2893_v61 = vadd.f32 %v2866_v6, %v5168_v2  ;;  %v2894_v0 = vadd.f32 %v2867_v35, %v5168_v2  ;;  %v2895_v40 = vadd.f32 %v2868_v33, %v5168_v2  ;;  %v2914_v27 = vmax.f32 %v2833_v63, %v2887_v32  ;;  %v2685_v35 = vpop.permute.xlu0 %2684  ;;  %v5863_v63 = vld [vmem:[#allocation26_spill] sm:$0xff]  ;;  %v5867_v32 = vld [vmem:[#allocation39_spill] sm:$0xff] }
 0x39d   :  { %v2915_v25 = vmax.f32 %v2834_v51, %v2888_v58  ;;  %v2916_v55 = vmax.f32 %v2835_v30, %v2889_v13  ;;  %v2917_v46 = vmax.f32 %v2836_v45, %v2890_v41  ;;  %v2918_v8 = vmax.f32 %v2837_v11, %v2891_v56  ;;  %v5864_v45 = vld [vmem:[#allocation32_spill] sm:$0xff]  ;;  %v5868_v13 = vld [vmem:[#allocation42_spill] sm:$0xff]  ;;  %v5869_v56 = vld [vmem:[#allocation45_spill] sm:$0xff] }
 0x39e   :  { %v2919_v44 = vmax.f32 %v2838_v4, %v2892_v31  ;;  %v2920_v49 = vmax.f32 %v2839_v39, %v2893_v61  ;;  %v2921_v24 = vmax.f32 %v2840_v21, %v2894_v0  ;;  %v2922_v53 = vmax.f32 %v2841_v23, %v2895_v40  ;;  %v5865_v4 = vld [vmem:[#allocation33_spill] sm:$0xff]  ;;  %v5866_v21 = vld [vmem:[#allocation35_spill] sm:$0xff]  ;;  %v5871_v40 = vld [vmem:[#allocation50_spill] sm:$0xff] }
 0x39f   :  { %v2968_v14 = vadd.f32 %v2941_v17, %v5168_v2  ;;  %v2969_v7 = vadd.f32 %v2942_v57, %v5168_v2  ;;  %v2970_v22 = vadd.f32 %v2943_v15, %v5168_v2  ;;  %v2971_v6 = vadd.f32 %v2944_v59, %v5168_v2  ;;  %v5870_v61 = vld [vmem:[#allocation49_spill] sm:$0xff] }
 0x3a0   :  { %v2972_v33 = vadd.f32 %v2945_v9, %v5168_v2  ;;  %v2973_v47 = vadd.f32 %v2946_v20, %v5168_v2  ;;  %v2974_v38 = vadd.f32 %v2947_v10, %v5168_v2  ;;  %v2975_v50 = vadd.f32 %v2948_v36, %v5168_v2  ;;  %v5857_v20 = vld [vmem:[#allocation4_spill] sm:$0xff]  ;;  %v5858_v36 = vld [vmem:[#allocation9_spill] sm:$0xff] }
 0x3a1   :  { %v2976_v29 = vadd.f32 %v2949_v1, %v5168_v2  ;;  %v2995_v3 = vmax.f32 %v2914_v27, %v2968_v14  ;;  %v2996_v54 = vmax.f32 %v2915_v25, %v2969_v7  ;;  %v2997_v17 = vmax.f32 %v2916_v55, %v2970_v22  ;;  %v5856_v2 = vld [vmem:[#allocation3_spill] sm:$0xff]  ;;  %v5872_v55 = vld [vmem:[#allocation57_spill] sm:$0xff] }
 0x3a2   :  { %v2998_v62 = vmax.f32 %v2917_v46, %v2971_v6  ;;  %v2999_v57 = vmax.f32 %v2918_v8, %v2972_v33  ;;  %v3000_v18 = vmax.f32 %v2919_v44, %v2973_v47  ;;  %v3001_v15 = vmax.f32 %v2920_v49, %v2974_v38  ;;  %v5873_v46 = vld [vmem:[#allocation58_spill] sm:$0xff]  ;;  %v5874_v44 = vld [vmem:[#allocation63_spill] sm:$0xff]  ;;  %v5878_v33 = vld [vmem:[#allocation76_spill] sm:$0xff] }
 0x3a3   :  { %v3002_v34 = vmax.f32 %v2921_v24, %v2975_v50  ;;  %v3003_v59 = vmax.f32 %v2922_v53, %v2976_v29  ;;  %3022 = vst [vmem:[%s5350_s5 + $0x90] sm:$0xff] %v2995_v3  ;;  %3023 = vst [vmem:[%s5350_s5 + $0x98] sm:$0xff] %v2996_v54  ;;  %v2701_v9 = vmul.f32 %v2685_v35, %v5856_v2  ;;  %v5875_v24 = vld [vmem:[#allocation66_spill] sm:$0xff]  ;;  %v5876_v14 = vld [vmem:[#allocation67_spill] sm:$0xff]  ;;  %v5270_v29 = vpop.permute.xlu0 %2726 }
 0x3a4   :  { %3024 = vst [vmem:[%s5350_s5 + $0xa0] sm:$0xff] %v2997_v17  ;;  %v2702_v10 = vmul.f32 %v2685_v35, %v5857_v20  ;;  %3025 = vst [vmem:[%s5350_s5 + $0xa8] sm:$0xff] %v2998_v62  ;;  %v2703_v1 = vmul.f32 %v2685_v35, %v5858_v36  ;;  %v2704_v28 = vmul.f32 %v2685_v35, %v5859_v5  ;;  %v5877_v22 = vld [vmem:[#allocation71_spill] sm:$0xff]  ;;  %v5879_v38 = vld [vmem:[#allocation80_spill] sm:$0xff] }
 0x3a5   :  { %3026 = vst [vmem:[%s5350_s5 + $0xb0] sm:$0xff] %v2999_v57  ;;  %3027 = vst [vmem:[%s5350_s5 + $0xb8] sm:$0xff] %v3000_v18  ;;  %v2705_v42 = vmul.f32 %v2685_v35, %v5860_v26  ;;  %v2706_v19 = vmul.f32 %v2685_v35, %v5861_v16  ;;  %v2707_v37 = vmul.f32 %v2685_v35, %v5862_v60  ;;  %v5880_v3 = vld [vmem:[#allocation86_spill] sm:$0xff]  ;;  %v5881_v17 = vld [vmem:[#allocation87_spill] sm:$0xff] }
 0x3a6   :  { %3028 = vst [vmem:[%s5350_s5 + $0xc0] sm:$0xff] %v3001_v15  ;;  %3029 = vst [vmem:[%s5350_s5 + $0xc8] sm:$0xff] %v3002_v34  ;;  %v2708_v51 = vmul.f32 %v2685_v35, %v5863_v63  ;;  %v2709_v30 = vmul.f32 %v2685_v35, %v5764_v12  ;;  %v2770_v11 = vmul.f32 %v2685_v35, %v5864_v45  ;;  %v5882_v57 = vld [vmem:[#allocation89_spill] sm:$0xff]  ;;  %v5885_v20 = vld [vmem:[#allocation99_spill] sm:$0xff] }
 0x3a7   :  { %3030 = vst [vmem:[%s5350_s5 + $0xd0] sm:$0xff] %v3003_v59  ;;  %v2771_v39 = vmul.f32 %v2685_v35, %v5865_v4  ;;  %v2772_v23 = vmul.f32 %v2685_v35, %v5866_v21  ;;  %v2773_v58 = vmul.f32 %v2685_v35, %v5867_v32  ;;  %v2774_v41 = vmul.f32 %v2685_v35, %v5868_v13  ;;  %v5883_v15 = vld [vmem:[#allocation93_spill] sm:$0xff]  ;;  %v5884_v59 = vld [vmem:[#allocation96_spill] sm:$0xff]  ;;  %v5886_v5 = vld [vmem:[#allocation103_spill] sm:$0xff] }
 0x3a8   :  { %v2775_v31 = vmul.f32 %v2685_v35, %v5869_v56  ;;  %v2776_v0 = vmul.f32 %v2685_v35, %v5870_v61  ;;  %v2777_v27 = vmul.f32 %v2685_v35, %v5871_v40  ;;  %v2778_v25 = vmul.f32 %v2685_v35, %v5770_v48  ;;  %v5887_v16 = vld [vmem:[#allocation104_spill] sm:$0xff] }
 0x3a9   :  { %v2851_v12 = vmul.f32 %v2685_v35, %v5872_v55  ;;  %v2852_v8 = vmul.f32 %v2685_v35, %v5873_v46  ;;  %v2853_v49 = vmul.f32 %v2685_v35, %v5874_v44  ;;  %v2854_v53 = vmul.f32 %v2685_v35, %v5875_v24 }
 0x3aa   :  { %v2855_v7 = vmul.f32 %v2685_v35, %v5876_v14  ;;  %v2856_v6 = vmul.f32 %v2685_v35, %v5877_v22  ;;  %v2857_v47 = vmul.f32 %v2685_v35, %v5878_v33  ;;  %v2858_v50 = vmul.f32 %v2685_v35, %v5879_v38 }
 0x3ab   :  { %v2859_v48 = vmul.f32 %v2685_v35, %v5772_v52  ;;  %v2932_v54 = vmul.f32 %v2685_v35, %v5880_v3  ;;  %v2933_v62 = vmul.f32 %v2685_v35, %v5881_v17  ;;  %v2934_v18 = vmul.f32 %v2685_v35, %v5882_v57 }
 0x3ac   :  { %v2935_v34 = vmul.f32 %v2685_v35, %v5883_v15  ;;  %v2936_v2 = vmul.f32 %v2685_v35, %v5884_v59  ;;  %v2937_v36 = vmul.f32 %v2685_v35, %v5885_v20  ;;  %v2938_v26 = vmul.f32 %v2685_v35, %v5886_v5 }
 0x3ad   :  { %v2939_v60 = vmul.f32 %v2685_v35, %v5887_v16  ;;  %v2940_v63 = vmul.f32 %v2685_v35, %v5789_v43  ;;  %v2743_v52 = vadd.f32 %v5270_v29, %v2701_v9  ;;  %v2744_v45 = vadd.f32 %v5270_v29, %v2702_v10 }
 0x3ae   :  { %v2745_v4 = vadd.f32 %v5270_v29, %v2703_v1  ;;  %v2746_v21 = vadd.f32 %v5270_v29, %v2704_v28  ;;  %v2747_v32 = vadd.f32 %v5270_v29, %v2705_v42  ;;  %v2748_v13 = vadd.f32 %v5270_v29, %v2706_v19 }
 0x3af   :  { %v2749_v56 = vadd.f32 %v5270_v29, %v2707_v37  ;;  %v2750_v61 = vadd.f32 %v5270_v29, %v2708_v51  ;;  %v2751_v40 = vadd.f32 %v5270_v29, %v2709_v30  ;;  %v2797_v43 = vadd.f32 %v2770_v11, %v5270_v29 }
 0x3b0   :  { %v2798_v35 = vadd.f32 %v2771_v39, %v5270_v29  ;;  %v2799_v9 = vadd.f32 %v2772_v23, %v5270_v29  ;;  %v2800_v10 = vadd.f32 %v2773_v58, %v5270_v29  ;;  %v2801_v1 = vadd.f32 %v2774_v41, %v5270_v29 }
 0x3b1   :  { %v2802_v28 = vadd.f32 %v2775_v31, %v5270_v29  ;;  %v2803_v42 = vadd.f32 %v2776_v0, %v5270_v29  ;;  %v2804_v19 = vadd.f32 %v2777_v27, %v5270_v29  ;;  %v2805_v37 = vadd.f32 %v2778_v25, %v5270_v29 }
 0x3b2   :  { %v2824_v51 = vmax.f32 %v2743_v52, %v2797_v43  ;;  %v2825_v30 = vmax.f32 %v2744_v45, %v2798_v35  ;;  %v2826_v55 = vmax.f32 %v2745_v4, %v2799_v9  ;;  %v2827_v11 = vmax.f32 %v2746_v21, %v2800_v10 }
 0x3b3   :  { %v2828_v46 = vmax.f32 %v2747_v32, %v2801_v1  ;;  %v2829_v39 = vmax.f32 %v2748_v13, %v2802_v28  ;;  %v2830_v44 = vmax.f32 %v2749_v56, %v2803_v42  ;;  %v2831_v23 = vmax.f32 %v2750_v61, %v2804_v19 }
 0x3b4   :  { %v2832_v24 = vmax.f32 %v2751_v40, %v2805_v37  ;;  %v2878_v58 = vadd.f32 %v2851_v12, %v5270_v29  ;;  %v2879_v41 = vadd.f32 %v2852_v8, %v5270_v29  ;;  %v2880_v31 = vadd.f32 %v2853_v49, %v5270_v29 }
 0x3b5   :  { %v2881_v0 = vadd.f32 %v2854_v53, %v5270_v29  ;;  %v2882_v27 = vadd.f32 %v2855_v7, %v5270_v29  ;;  %v2883_v25 = vadd.f32 %v2856_v6, %v5270_v29  ;;  %v2884_v14 = vadd.f32 %v2857_v47, %v5270_v29 }
 0x3b6   :  { %v2885_v22 = vadd.f32 %v2858_v50, %v5270_v29  ;;  %v2886_v33 = vadd.f32 %v2859_v48, %v5270_v29  ;;  %v2905_v38 = vmax.f32 %v2824_v51, %v2878_v58  ;;  %v2906_v3 = vmax.f32 %v2825_v30, %v2879_v41 }
 0x3b7   :  { %v2907_v17 = vmax.f32 %v2826_v55, %v2880_v31  ;;  %v2908_v12 = vmax.f32 %v2827_v11, %v2881_v0  ;;  %v2909_v57 = vmax.f32 %v2828_v46, %v2882_v27  ;;  %v2910_v8 = vmax.f32 %v2829_v39, %v2883_v25 }
 0x3b8   :  { %v2911_v15 = vmax.f32 %v2830_v44, %v2884_v14  ;;  %v2912_v49 = vmax.f32 %v2831_v23, %v2885_v22  ;;  %v2913_v59 = vmax.f32 %v2832_v24, %v2886_v33  ;;  %v2959_v53 = vadd.f32 %v2932_v54, %v5270_v29 }
 0x3b9   :  { %v2960_v7 = vadd.f32 %v2933_v62, %v5270_v29  ;;  %v2961_v6 = vadd.f32 %v2934_v18, %v5270_v29  ;;  %v2962_v47 = vadd.f32 %v2935_v34, %v5270_v29  ;;  %v2963_v50 = vadd.f32 %v2936_v2, %v5270_v29 }
 0x3ba   :  { %v2964_v48 = vadd.f32 %v2937_v36, %v5270_v29  ;;  %v2965_v20 = vadd.f32 %v2938_v26, %v5270_v29  ;;  %v2966_v5 = vadd.f32 %v2939_v60, %v5270_v29  ;;  %v2967_v16 = vadd.f32 %v2940_v63, %v5270_v29 }
 0x3bb   :  { %v2986_v52 = vmax.f32 %v2905_v38, %v2959_v53  ;;  %v2987_v45 = vmax.f32 %v2906_v3, %v2960_v7  ;;  %v2988_v4 = vmax.f32 %v2907_v17, %v2961_v6  ;;  %v2989_v54 = vmax.f32 %v2908_v12, %v2962_v47 }
 0x3bc   :  { %v2990_v21 = vmax.f32 %v2909_v57, %v2963_v50  ;;  %v2991_v62 = vmax.f32 %v2910_v8, %v2964_v48  ;;  %v2992_v32 = vmax.f32 %v2911_v15, %v2965_v20  ;;  %v2993_v18 = vmax.f32 %v2912_v49, %v2966_v5 }
 0x3bd   :  { %v2994_v13 = vmax.f32 %v2913_v59, %v2967_v16  ;;  %3013 = vst [vmem:[%s5350_s5 + $0x48] sm:$0xff] %v2986_v52  ;;  %3014 = vst [vmem:[%s5350_s5 + $0x50] sm:$0xff] %v2987_v45 }
 0x3be   :  { %3015 = vst [vmem:[%s5350_s5 + $0x58] sm:$0xff] %v2988_v4  ;;  %3016 = vst [vmem:[%s5350_s5 + $0x60] sm:$0xff] %v2989_v54 }
 0x3bf   :  { %3017 = vst [vmem:[%s5350_s5 + $0x68] sm:$0xff] %v2990_v21  ;;  %3018 = vst [vmem:[%s5350_s5 + $0x70] sm:$0xff] %v2991_v62 }
 0x3c0   :  { %3019 = vst [vmem:[%s5350_s5 + $0x78] sm:$0xff] %v2992_v32  ;;  %3020 = vst [vmem:[%s5350_s5 + $0x80] sm:$0xff] %v2993_v18 }
 0x3c1   :  { %3021 = vst [vmem:[%s5350_s5 + $0x88] sm:$0xff] %v2994_v13 }

// kernel: forward.3
= control target key start
LH: loop header
LB: loop body
LE: loop exit
PB: predicated region body
PF: predicated region fallthrough
CT: control target
= control target key end

     0   :  { %v7525_v38 = vmov 0.0   ;;  %vm5860_vm0 = vmmov 0   ;;  %vm1048_vm1 = vcmask 785408   ;;  %vm1657_vm2 = vcmask 523264   ;;  %s7502_s1 = inlined_call_operand.vmem [shape: bf16[864,64], index: 1, kind: input, shape index: {}]   ;;  %s7503_s0 = inlined_call_operand.vmem [shape: bf16[200,864], index: 0, kind: input, shape index: {}]   ;;  %s7504_s2 = inlined_call_operand.vmem [shape: f32[1,64], index: 2, kind: input, shape index: {}]   ;;  %s7505_s11 = inlined_call_operand.vmem [shape: f32[50,189], index: 11, kind: input, shape index: {}]   ;;  %s7506_s5 = inlined_call_operand.vmem [shape: f32[4,64,64], index: 5, kind: input, shape index: {}]   ;;  %s7507_s3 = inlined_call_operand.vmem [shape: f32[1,64], index: 3, kind: input, shape index: {}]   ;;  %s7508_s4 = inlined_call_operand.vmem [shape: f32[1,64], index: 4, kind: input, shape index: {}]   ;;  %s7509_s7 = inlined_call_operand.vmem [shape: f32[4,64,80], index: 7, kind: input, shape index: {}]   ;;  %s7510_s6 = inlined_call_operand.vmem [shape: f32[1,64], index: 6, kind: input, shape index: {}]   ;;  %s7511_s9 = inlined_call_operand.vmem [shape: f32[4,80,80], index: 9, kind: input, shape index: {}]   ;;  %s7512_s8 = inlined_call_operand.vmem [shape: f32[1,80], index: 8, kind: input, shape index: {}]   ;;  %s7513_s10 = inlined_call_operand.vmem [shape: f32[1,80], index: 10, kind: input, shape index: {}]   ;;  %s7514_s13 = inlined_call_operand.vmem [shape: f32[80,5], index: 13, kind: input, shape index: {}]   ;;  %s7515_s12 = inlined_call_operand.vmem [shape: f32[2,26], index: 12, kind: input, shape index: {}]   ;;  %s7516_s15 = inlined_call_operand.vmem [shape: f32[5,5], index: 15, kind: input, shape index: {}]   ;;  %s7517_s14 = inlined_call_operand.vmem [shape: f32[1,5], index: 14, kind: input, shape index: {}]   ;;  %s7518_s17 = inlined_call_operand.vmem [shape: f32[5,1], index: 17, kind: input, shape index: {}]   ;;  %s7519_s18 = inlined_call_operand.<no memory space> [shape: f32[1,1], index: 18, kind: input, shape index: {}]   ;;  %s7520_s16 = inlined_call_operand.vmem [shape: f32[1,5], index: 16, kind: input, shape index: {}]   ;;  %s7521_s19 = inlined_call_operand.vmem [shape: f32[2,1], index: 19, kind: output, shape index: {}]  }
   0x1   :  { %7532 = sst [smem:[#allocation8_spill]] %s7502_s1  ;;  %vm2095_vm3 = vcmask 498688   ;;  %vm2117_vm4 = vcmask 1044480   ;;  %vm5862_vm5 = vmmov 1   ;;  %vm2227_vm7 = vcmask 517120  }
   0x2   :  { %7533 = sst [smem:[#allocation9_spill]] %s7503_s0  ;;  %s7536_s20 = sld [smem:[#allocation8_spill]]  ;;  %vm5420_vm6 = vmpackc.low %vm2117_vm4, %vm5862_vm5  ;;  %vm2776_vm8 = vcmask 519168   ;;  %vm3280_vm9 = vcmask 654336   ;;  %vm3285_vm10 = vcmask 652288   ;;  %vm3794_vm11 = vcmask 1041408  }
   0x3   :  { %7534 = sst [smem:[#allocation10_spill]] %s7504_s2  ;;  %s7537_s25 = sld [smem:[#allocation9_spill]]  ;;  %vm5619_vm12 = vmpackc.low %vm3794_vm11, %vm5862_vm5  ;;  %vm3790_vm13 = vcmask 211968   ;;  %vm3970_vm14 = vcmask 39936   ;;  %vm4139_vm15 = vcmask 1024  }
   0x4   :  { %7535 = sst [smem:[#allocation11_spill]] %s7505_s11  ;;  %s7538_s30 = sld [smem:[#allocation10_spill]] }
   0x8   :  { %v5670_v0 = vld [vmem:[%s7536_s20 + $0x40] sm:$0xff]   ;;  %v5674_v4 = vld [vmem:[%s7536_s20 + $0x48] sm:$0xff]   ;;  %v5678_v8 = vld [vmem:[%s7536_s20 + $0x50] sm:$0xff]  }
   0x9   :  { %v5671_v1 = vld [vmem:[%s7536_s20] sm:$0xff]   ;;  %4464 = vmatprep.subr.bf16.mxu0 %v5670_v0  ;;  %v5675_v5 = vld [vmem:[%s7536_s20 + $0x8] sm:$0xff]   ;;  %v5679_v9 = vld [vmem:[%s7536_s20 + $0x10] sm:$0xff]  }
   0xa   :  { %v5672_v2 = vld [vmem:[%s7536_s20 + $0xc0] sm:$0xff]   ;;  %4465 = vmatpush3.bf16.msra.mxu0 %v5671_v1  ;;  %v5676_v6 = vld [vmem:[%s7536_s20 + $0xc8] sm:$0xff]   ;;  %v5680_v10 = vld [vmem:[%s7536_s20 + $0xd0] sm:$0xff]  }
   0xb   :  { %v5673_v3 = vld [vmem:[%s7536_s20 + $0x80] sm:$0xff]   ;;  %4558 = vmatprep.subr.bf16.mxu1 %v5672_v2  ;;  %4466 = vmatprep.subr.bf16.mxu0 %v5674_v4  ;;  %v5677_v7 = vld [vmem:[%s7536_s20 + $0x88] sm:$0xff]   ;;  %v5681_v11 = vld [vmem:[%s7536_s20 + $0x90] sm:$0xff]  }
   0xc   :  { %4559 = vmatpush3.bf16.msra.mxu1 %v5673_v3  ;;  %v5682_v12 = vld [vmem:[%s7536_s20 + $0x58] sm:$0xff]   ;;  %v5686_v16 = vld [vmem:[%s7536_s20 + $0x60] sm:$0xff]   ;;  %v5690_v20 = vld [vmem:[%s7536_s20 + $0x68] sm:$0xff]  }
   0xd   :  { %4560 = vmatprep.subr.bf16.mxu1 %v5676_v6  ;;  %v5683_v13 = vld [vmem:[%s7536_s20 + $0x18] sm:$0xff]   ;;  %v5687_v17 = vld [vmem:[%s7536_s20 + $0x20] sm:$0xff]   ;;  %v5691_v21 = vld [vmem:[%s7536_s20 + $0x28] sm:$0xff]  }
   0xe   :  { %4467 = vmatpush3.bf16.msra.mxu0 %v5675_v5  ;;  %v5684_v14 = vld [vmem:[%s7536_s20 + $0xd8] sm:$0xff]   ;;  %v5688_v18 = vld [vmem:[%s7536_s20 + $0xe0] sm:$0xff]   ;;  %v5692_v22 = vld [vmem:[%s7536_s20 + $0xe8] sm:$0xff]  }
   0xf   :  { %4468 = vmatprep.subr.bf16.mxu0 %v5678_v8  ;;  %v5685_v15 = vld [vmem:[%s7536_s20 + $0x98] sm:$0xff]   ;;  %v5689_v19 = vld [vmem:[%s7536_s20 + $0xa0] sm:$0xff]   ;;  %v5693_v23 = vld [vmem:[%s7536_s20 + $0xa8] sm:$0xff]  }
  0x10   :  { %4561 = vmatpush3.bf16.msra.mxu1 %v5677_v7  ;;  %v5694_v24 = vld [vmem:[%s7536_s20 + $0x70] sm:$0xff]   ;;  %v5698_v28 = vld [vmem:[%s7536_s20 + $0x78] sm:$0xff]   ;;  %v5703_v32 = vld [vmem:[%s7537_s25 + $0x4] ss:$28 sps:$4 sm:$0xff]  }
  0x11   :  { %4562 = vmatprep.subr.bf16.mxu1 %v5680_v10  ;;  %v5695_v25 = vld [vmem:[%s7536_s20 + $0x30] sm:$0xff]   ;;  %v5699_v29 = vld [vmem:[%s7536_s20 + $0x38] sm:$0xff]   ;;  %1120 = vmatprep.mubr.bf16.mxu0 %v5703_v32  ;;  %v5705_v34 = vld [vmem:[%s7537_s25 + $0x8] ss:$28 sps:$4 sm:$0xff]  }
  0x12   :  { %4469 = vmatpush3.bf16.msra.mxu0 %v5679_v9  ;;  %v5696_v26 = vld [vmem:[%s7536_s20 + $0xf0] sm:$0xff]   ;;  %v5700_v30 = vld [vmem:[%s7536_s20 + $0xf8] sm:$0xff]   ;;  %v5707_v35 = vld [vmem:[%s7537_s25 + $0xc] ss:$28 sps:$4 sm:$0xff]  }
  0x13   :  { %4470 = vmatprep.subr.bf16.mxu0 %v5682_v12  ;;  %v5697_v27 = vld [vmem:[%s7536_s20 + $0xb0] sm:$0xff]   ;;  %v5701_v31 = vld [vmem:[%s7537_s25] ss:$28 sps:$4 sm:$0xff]   ;;  %1256 = vmatprep.mubr.bf16.mxu1 %v5707_v35  ;;  %v5720_v44 = vld [vmem:[%s7537_s25 + $0xac] ss:$28 sps:$4 sm:$0xff]  }
  0x14   :  { %4563 = vmatpush3.bf16.msra.mxu1 %v5681_v11  ;;  %v5704_v33 = vld [vmem:[%s7536_s20 + $0xb8] sm:$0xff]   ;;  %v5711_v37 = vld [vmem:[%s7537_s25 + $0x44] ss:$28 sps:$4 sm:$0xff]   ;;  %v5714_v40 = vld [vmem:[%s7537_s25 + $0x74] ss:$28 sps:$4 sm:$0xff]  }
  0x15   :  { %4564 = vmatprep.subr.bf16.mxu1 %v5684_v14  ;;  %v5708_v36 = vld [vmem:[%s7537_s25 + $0x3c] ss:$28 sps:$4 sm:$0xff]   ;;  %v5716_v43 = vld [vmem:[%s7537_s25 + $0x70] ss:$28 sps:$4 sm:$0xff]   ;;  %v5747_v47 = vld [vmem:[%s7536_s20 + $0x140] sm:$0xff]  }
  0x16   :  { %4471 = vmatpush3.bf16.msra.mxu0 %v5683_v13  ;;  %v5710_v39 = vld [vmem:[%s7537_s25 + $0x38] ss:$28 sps:$4 sm:$0xff]   ;;  %v5713_v41 = vld [vmem:[%s7537_s25 + $0x40] ss:$28 sps:$4 sm:$0xff]   ;;  %v5722_v48 = vld [vmem:[%s7537_s25 + $0xa8] ss:$28 sps:$4 sm:$0xff]  }
  0x17   :  { %4472 = vmatprep.subr.bf16.mxu0 %v5686_v16  ;;  %v5717_v42 = vld [vmem:[%s7537_s25 + $0x7c] ss:$28 sps:$4 sm:$0xff]   ;;  %v5723_v46 = vld [vmem:[%s7537_s25 + $0xb4] ss:$28 sps:$4 sm:$0xff]   ;;  %v5750_v49 = vld [vmem:[%s7536_s20 + $0x100] sm:$0xff]  }
  0x18   :  { %4565 = vmatpush3.bf16.msra.mxu1 %v5685_v15  ;;  %v5719_v45 = vld [vmem:[%s7537_s25 + $0x78] ss:$28 sps:$4 sm:$0xff]   ;;  %v5726_v50 = vld [vmem:[%s7537_s25 + $0xe4] ss:$28 sps:$4 sm:$0xff]   ;;  %v5725_v52 = vld [vmem:[%s7537_s25 + $0xb0] ss:$28 sps:$4 sm:$0xff]  }
  0x19   :  { %4566 = vmatprep.subr.bf16.mxu1 %v5688_v18  ;;  %v5752_v51 = vld [vmem:[%s7536_s20 + $0x180] sm:$0xff]   ;;  %v5729_v53 = vld [vmem:[%s7537_s25 + $0xec] ss:$28 sps:$4 sm:$0xff]   ;;  %v5732_v58 = vld [vmem:[%s7537_s25 + $0x11c] ss:$28 sps:$4 sm:$0xff]  }
  0x1a   :  { %4473 = vmatpush3.bf16.msra.mxu0 %v5687_v17  ;;  %v5759_v54 = vld [vmem:[%s7536_s20 + $0x148] sm:$0xff]   ;;  %v5728_v56 = vld [vmem:[%s7537_s25 + $0xe0] ss:$28 sps:$4 sm:$0xff]   ;;  %v5770_v59 = vld [vmem:[%s7536_s20 + $0x150] sm:$0xff]  }
  0x1b   :  { %4474 = vmatprep.subr.bf16.mxu0 %v5690_v20  ;;  %v5760_v55 = vld [vmem:[%s7536_s20 + $0x108] sm:$0xff]   ;;  %v5735_v61 = vld [vmem:[%s7537_s25 + $0x124] ss:$28 sps:$4 sm:$0xff]   ;;  %v5774_v62 = vld [vmem:[%s7536_s20 + $0x110] sm:$0xff]  }
  0x1c   :  { %4567 = vmatpush3.bf16.msra.mxu1 %v5689_v19  ;;  %v5731_v57 = vld [vmem:[%s7537_s25 + $0xe8] ss:$28 sps:$4 sm:$0xff]   ;;  %v5734_v63 = vld [vmem:[%s7537_s25 + $0x118] ss:$28 sps:$4 sm:$0xff]   ;;  %v5737_v4 = vld [vmem:[%s7537_s25 + $0x120] ss:$28 sps:$4 sm:$0xff]  }
  0x1d   :  { %4568 = vmatprep.subr.bf16.mxu1 %v5692_v22  ;;  %v5771_v60 = vld [vmem:[%s7536_s20 + $0x188] sm:$0xff]   ;;  %v5776_v0 = vld [vmem:[%s7536_s20 + $0x158] sm:$0xff]   ;;  %v5738_v2 = vld [vmem:[%s7537_s25 + $0x154] ss:$28 sps:$4 sm:$0xff]  }
  0x1e   :  { %4475 = vmatpush3.bf16.msra.mxu0 %v5691_v21  ;;  %v5777_v1 = vld [vmem:[%s7536_s20 + $0x118] sm:$0xff]   ;;  %v5781_v3 = vld [vmem:[%s7536_s20 + $0x160] sm:$0xff]   ;;  %v5786_v7 = vld [vmem:[%s7536_s20 + $0x190] sm:$0xff]  }
  0x1f   :  { %4476 = vmatprep.subr.bf16.mxu0 %v5694_v24  ;;  %v5741_v5 = vld [vmem:[%s7537_s25 + $0x15c] ss:$28 sps:$4 sm:$0xff]   ;;  %v5784_v6 = vld [vmem:[%s7536_s20 + $0x120] sm:$0xff]   ;;  %v5740_v8 = vld [vmem:[%s7537_s25 + $0x150] ss:$28 sps:$4 sm:$0xff]  }
  0x20   :  { %4569 = vmatpush3.bf16.msra.mxu1 %v5693_v23  ;;  %v5787_v9 = vld [vmem:[%s7536_s20 + $0x168] sm:$0xff]   ;;  %v5743_v12 = vld [vmem:[%s7537_s25 + $0x158] ss:$28 sps:$4 sm:$0xff]   ;;  %v5796_v17 = vld [vmem:[%s7536_s20 + $0x1a0] sm:$0xff]  }
  0x21   :  { %4570 = vmatprep.subr.bf16.mxu1 %v5696_v26  ;;  %v5788_v10 = vld [vmem:[%s7536_s20 + $0x128] sm:$0xff]   ;;  %v5790_v13 = vld [vmem:[%s7536_s20 + $0x198] sm:$0xff]   ;;  %v5748_v14 = vld [vmem:[%s7537_s25 + $0x194] ss:$28 sps:$4 sm:$0xff]  }
  0x22   :  { %4477 = vmatpush3.bf16.msra.mxu0 %v5695_v25  ;;  %v5744_v11 = vld [vmem:[%s7537_s25 + $0x18c] ss:$28 sps:$4 sm:$0xff]   ;;  %v5792_v15 = vld [vmem:[%s7536_s20 + $0x170] sm:$0xff]   ;;  %v5797_v18 = vld [vmem:[%s7536_s20 + $0x178] sm:$0xff]  }
  0x23   :  { %4478 = vmatprep.subr.bf16.mxu0 %v5698_v28  ;;  %v5794_v16 = vld [vmem:[%s7536_s20 + $0x130] sm:$0xff]   ;;  %v5746_v19 = vld [vmem:[%s7537_s25 + $0x188] ss:$28 sps:$4 sm:$0xff]   ;;  %v5798_v20 = vld [vmem:[%s7536_s20 + $0x138] sm:$0xff]  }
  0x24   :  { %4571 = vmatpush3.bf16.msra.mxu1 %v5697_v27  ;;  %v5802_v21 = vld [vmem:[%s7536_s20 + $0x1a8] sm:$0xff]   ;;  %v5753_v22 = vld [vmem:[%s7537_s25 + $0x1c4] ss:$28 sps:$4 sm:$0xff]   ;;  %v5761_v26 = vld [vmem:[%s7537_s25 + $0x1fc] ss:$28 sps:$4 sm:$0xff]   ;;  %s7544_s20 = sld [smem:[#allocation11_spill]] }
  0x25   :  { %4572 = vmatprep.subr.bf16.mxu1 %v5700_v30  ;;  %v5751_v23 = vld [vmem:[%s7537_s25 + $0x190] ss:$28 sps:$4 sm:$0xff]   ;;  %v5755_v25 = vld [vmem:[%s7537_s25 + $0x1c0] ss:$28 sps:$4 sm:$0xff]   ;;  %v5758_v27 = vld [vmem:[%s7537_s25 + $0x1c8] ss:$28 sps:$4 sm:$0xff]  }
  0x26   :  { %4479 = vmatpush3.bf16.msra.mxu0 %v5699_v29  ;;  %v5756_v24 = vld [vmem:[%s7537_s25 + $0x1cc] ss:$28 sps:$4 sm:$0xff]   ;;  %v5764_v28 = vld [vmem:[%s7537_s25 + $0x204] ss:$28 sps:$4 sm:$0xff]   ;;  %v5763_v29 = vld [vmem:[%s7537_s25 + $0x1f8] ss:$28 sps:$4 sm:$0xff]  }
  0x27   :  { %4652 = vmatprep.subr.bf16.mxu0 %v5747_v47  ;;  %v5767_v30 = vld [vmem:[%s7537_s25 + $0x234] ss:$28 sps:$4 sm:$0xff]   ;;  %v5772_v32 = vld [vmem:[%s7537_s25 + $0x23c] ss:$28 sps:$4 sm:$0xff]  }
  0x28   :  { %4573 = vmatpush3.bf16.msra.mxu1 %v5704_v33  ;;  %v5769_v33 = vld [vmem:[%s7537_s25 + $0x230] ss:$28 sps:$4 sm:$0xff]   ;;  %v5775_v35 = vld [vmem:[%s7537_s25 + $0x238] ss:$28 sps:$4 sm:$0xff]  }
  0x29   :  { %1121 = vmatmul.mubr.bf16.vlgmr.msra.gmra.mrb[0].mxu0 %v5701_v31  ;;  %4949 = vmatprep.subr.bf16.mxu1 %v7525_v38  ;;  %v5766_v31 = vld [vmem:[%s7537_s25 + $0x200] ss:$28 sps:$4 sm:$0xff]   ;;  %v5799_v47 = vld [vmem:[%s7537_s25 + $0x10] ss:$28 sps:$4 sm:$0xff]  }
  0x2a   :  { %1128 = vmatprep.mubr.bf16.mxu0 %v5708_v36  ;;  %4653 = vmatpush3.bf16.msra.mxu0 %v5750_v49  ;;  %v5782_v36 = vld [vmem:[%s7537_s25 + $0x274] ss:$28 sps:$4 sm:$0xff]  }
  0x2b   :  { %1257 = vmatmul.mubr.bf16.vlgmr.msra.gmra.mrb[0].mxu1 %v5705_v34  ;;  %4654 = vmatprep.subr.bf16.mxu0 %v5759_v54  ;;  %v5778_v34 = vld [vmem:[%s7537_s25 + $0x26c] ss:$28 sps:$4 sm:$0xff]   ;;  %v5803_v49 = vld [vmem:[%s7537_s25 + $0x18] ss:$28 sps:$4 sm:$0xff]  }
  0x2c   :  { %1264 = vmatprep.mubr.bf16.mxu1 %v5711_v37  ;;  %4950 = vmatpush3.bf16.msra.mxu1 %v5752_v51  ;;  %v161_v37 = vld [vmem:[%s7537_s25 + $0x2a0] sm:$0xff]  ;;  %v5812_v54 = vld [vmem:[%s7537_s25 + $0xbc] ss:$28 sps:$4 sm:$0xff]  }
  0x2d   :  { %4951 = vmatprep.subr.bf16.mxu1 %v7525_v38  ;;  %v5808_v51 = vld [vmem:[%s7537_s25 + $0x84] ss:$28 sps:$4 sm:$0xff]  }
  0x2e   :  { %4655 = vmatpush3.bf16.msra.mxu0 %v5760_v55  ;;  %v5811_v55 = vld [vmem:[%s7537_s25 + $0x88] ss:$28 sps:$4 sm:$0xff]  }
  0x2f   :  { %4656 = vmatprep.subr.bf16.mxu0 %v5770_v59  ;;  %v5818_v59 = vld [vmem:[%s7537_s25 + $0xf0] ss:$28 sps:$4 sm:$0xff]  }
  0x30   :  { %4952 = vmatpush3.bf16.msra.mxu1 %v5771_v60  ;;  %v5820_v60 = vld [vmem:[%s7537_s25 + $0x12c] ss:$28 sps:$4 sm:$0xff]  }
  0x31   :  { %1129 = vmatmul.mubr.bf16.gmra.mrb[4].mxu0 %v5710_v39  ;;  %4953 = vmatprep.subr.bf16.mxu1 %v7525_v38  ;;  %v5780_v39 = vld [vmem:[%s7537_s25 + $0x268] ss:$28 sps:$4 sm:$0xff]  }
  0x32   :  { %1136 = vmatprep.mubr.bf16.mxu0 %v5714_v40  ;;  %4657 = vmatpush3.bf16.msra.mxu0 %v5774_v62  ;;  %v4231_v40 = vcombine.high %v161_v37, %v161_v37  ;;  %v5822_v62 = vld [vmem:[%s7537_s25 + $0x128] ss:$28 sps:$4 sm:$0xff]  }
  0x33   :  { %1265 = vmatmul.mubr.bf16.gmra.mrb[4].mxu1 %v5713_v41  ;;  %4658 = vmatprep.subr.bf16.mxu0 %v5776_v0  ;;  %v162_v41 = vld [vmem:[%s7537_s25 + $0x2a8] sm:$0xff] }
  0x34   :  { %1272 = vmatprep.mubr.bf16.mxu1 %v5717_v42  ;;  %4954 = vmatpush3.bf16.msra.mxu1 %v5786_v7  ;;  %v5785_v42 = vld [vmem:[%s7537_s25 + $0x270] ss:$28 sps:$4 sm:$0xff]  }
  0x35   :  { %4955 = vmatprep.subr.bf16.mxu1 %v7525_v38  ;;  %v5823_v0 = vld [vmem:[%s7537_s25 + $0x130] ss:$28 sps:$4 sm:$0xff]  }
  0x36   :  { %4659 = vmatpush3.bf16.msra.mxu0 %v5777_v1  ;;  %v5826_v1 = vld [vmem:[%s7537_s25 + $0x160] ss:$28 sps:$4 sm:$0xff]   ;;  %v5834_v7 = vld [vmem:[%s7537_s25 + $0x1d0] ss:$28 sps:$4 sm:$0xff]  }
  0x37   :  { %4660 = vmatprep.subr.bf16.mxu0 %v5781_v3  ;;  %v5827_v3 = vld [vmem:[%s7537_s25 + $0x168] ss:$28 sps:$4 sm:$0xff]  }
  0x38   :  { %4956 = vmatpush3.bf16.msra.mxu1 %v5790_v13  ;;  %v5842_v13 = vld [vmem:[%s7537_s25 + $0x240] ss:$28 sps:$4 sm:$0xff]  }
  0x39   :  { %1137 = vmatmul.mubr.bf16.gmra.mrb[8].mxu0 %v5716_v43  ;;  %4957 = vmatprep.subr.bf16.mxu1 %v7525_v38  ;;  %v4233_v43 = vcombine.high %v162_v41, %v162_v41 }
  0x3a   :  { %1144 = vmatprep.mubr.bf16.mxu0 %v5720_v44  ;;  %4661 = vmatpush3.bf16.msra.mxu0 %v5784_v6  ;;  %v4230_v44 = vcombine.low %v161_v37, %v161_v37  ;;  %v5831_v6 = vld [vmem:[%s7537_s25 + $0x1a0] ss:$28 sps:$4 sm:$0xff]  }
  0x3b   :  { %1273 = vmatmul.mubr.bf16.gmra.mrb[8].mxu1 %v5719_v45  ;;  %4662 = vmatprep.subr.bf16.mxu0 %v5787_v9  ;;  %v5801_v45 = vld [vmem:[%s7537_s25 + $0x14] ss:$28 sps:$4 sm:$0xff]  }
  0x3c   :  { %1280 = vmatprep.mubr.bf16.mxu1 %v5723_v46  ;;  %4958 = vmatpush3.bf16.msra.mxu1 %v5796_v17  ;;  %v4232_v46 = vcombine.low %v162_v41, %v162_v41  ;;  %v5835_v9 = vld [vmem:[%s7537_s25 + $0x1d8] ss:$28 sps:$4 sm:$0xff]  }
  0x3d   :  { %4959 = vmatprep.subr.bf16.mxu1 %v7525_v38  ;;  %v5846_v17 = vld [vmem:[%s7537_s25 + $0x278] ss:$28 sps:$4 sm:$0xff]  }
  0x3e   :  { %4663 = vmatpush3.bf16.msra.mxu0 %v5788_v10  ;;  %v5838_v10 = vld [vmem:[%s7537_s25 + $0x208] ss:$28 sps:$4 sm:$0xff]  }
  0x3f   :  { %4664 = vmatprep.subr.bf16.mxu0 %v5792_v15  ;;  %v5843_v15 = vld [vmem:[%s7537_s25 + $0x248] ss:$28 sps:$4 sm:$0xff]  }
  0x40   :  { %4960 = vmatpush3.bf16.msra.mxu1 %v5802_v21  ;;  %v5850_v21 = vld [vmem:[%s7537_s25 + $0x2b8] ss:$0 sps:$4 sm:$0xff]  }
  0x41   :  { %1145 = vmatmul.mubr.bf16.gmra.mrb[12].mxu0 %v5722_v48  ;;  %v5804_v48 = vld [vmem:[%s7537_s25 + $0x4c] ss:$28 sps:$4 sm:$0xff]  }
  0x42   :  { %1152 = vmatprep.mubr.bf16.mxu0 %v5726_v50  ;;  %4665 = vmatpush3.bf16.msra.mxu0 %v5794_v16  ;;  %v5806_v50 = vld [vmem:[%s7537_s25 + $0x48] ss:$28 sps:$4 sm:$0xff]   ;;  %v163_v16 = vld [vmem:[%s7537_s25 + $0x2b0] sm:$0xff] }
  0x43   :  { %1281 = vmatmul.mubr.bf16.gmra.mrb[12].mxu1 %v5725_v52  ;;  %4666 = vmatprep.subr.bf16.mxu0 %v5797_v18  ;;  %v5807_v52 = vld [vmem:[%s7537_s25 + $0x50] ss:$28 sps:$4 sm:$0xff]   ;;  %v4235_v18 = vcombine.high %v163_v16, %v163_v16 }
  0x44   :  { %1288 = vmatprep.mubr.bf16.mxu1 %v5729_v53  ;;  %v5810_v53 = vld [vmem:[%s7537_s25 + $0x80] ss:$28 sps:$4 sm:$0xff]  }
  0x46   :  { %4667 = vmatpush3.bf16.msra.mxu0 %v5798_v20  ;;  %v4234_v20 = vcombine.low %v163_v16, %v163_v16 }
  0x49   :  { %1153 = vmatmul.mubr.bf16.gmra.mrb[16].mxu0 %v5728_v56  ;;  %v5814_v56 = vld [vmem:[%s7537_s25 + $0xb8] ss:$28 sps:$4 sm:$0xff]  }
  0x4a   :  { %1160 = vmatprep.mubr.bf16.mxu0 %v5732_v58  ;;  %v5815_v58 = vld [vmem:[%s7537_s25 + $0xc0] ss:$28 sps:$4 sm:$0xff]  }
  0x4b   :  { %1289 = vmatmul.mubr.bf16.gmra.mrb[16].mxu1 %v5731_v57  ;;  %v5816_v57 = vld [vmem:[%s7537_s25 + $0xf4] ss:$28 sps:$4 sm:$0xff]  }
  0x4c   :  { %1296 = vmatprep.mubr.bf16.mxu1 %v5735_v61  ;;  %v5819_v61 = vld [vmem:[%s7537_s25 + $0xf8] ss:$28 sps:$4 sm:$0xff]  }
  0x51   :  { %1161 = vmatmul.mubr.bf16.gmra.mrb[20].mxu0 %v5734_v63  ;;  %v5824_v63 = vld [vmem:[%s7537_s25 + $0x164] ss:$28 sps:$4 sm:$0xff]  }
  0x52   :  { %1168 = vmatprep.mubr.bf16.mxu0 %v5738_v2  ;;  %v5828_v2 = vld [vmem:[%s7537_s25 + $0x19c] ss:$28 sps:$4 sm:$0xff]  }
  0x53   :  { %1297 = vmatmul.mubr.bf16.gmra.mrb[20].mxu1 %v5737_v4  ;;  %v5830_v4 = vld [vmem:[%s7537_s25 + $0x198] ss:$28 sps:$4 sm:$0xff]  }
  0x54   :  { %1304 = vmatprep.mubr.bf16.mxu1 %v5741_v5  ;;  %v5832_v5 = vld [vmem:[%s7537_s25 + $0x1d4] ss:$28 sps:$4 sm:$0xff]  }
  0x59   :  { %1169 = vmatmul.mubr.bf16.gmra.mrb[24].mxu0 %v5740_v8  ;;  %v5836_v8 = vld [vmem:[%s7537_s25 + $0x20c] ss:$28 sps:$4 sm:$0xff]  }
  0x5a   :  { %1176 = vmatprep.mubr.bf16.mxu0 %v5744_v11  ;;  %v5840_v11 = vld [vmem:[%s7537_s25 + $0x244] ss:$28 sps:$4 sm:$0xff]  }
  0x5b   :  { %1305 = vmatmul.mubr.bf16.gmra.mrb[24].mxu1 %v5743_v12  ;;  %v5839_v12 = vld [vmem:[%s7537_s25 + $0x210] ss:$28 sps:$4 sm:$0xff]  }
  0x5c   :  { %1312 = vmatprep.mubr.bf16.mxu1 %v5748_v14  ;;  %v5844_v14 = vld [vmem:[%s7537_s25 + $0x27c] ss:$28 sps:$4 sm:$0xff]  }
  0x61   :  { %1177 = vmatmul.mubr.bf16.gmra.mrb[28].mxu0 %v5746_v19  ;;  %v5847_v19 = vld [vmem:[%s7537_s25 + $0x280] ss:$28 sps:$4 sm:$0xff]  }
  0x62   :  { %1184 = vmatprep.mubr.bf16.mxu0 %v5753_v22 }
  0x63   :  { %1313 = vmatmul.mubr.bf16.gmra.mrb[28].mxu1 %v5751_v23  ;;  %v6437_v23 = vld [vmem:[%s7538_s30] ss:$0 sm:$0xff] }
  0x64   :  { %1320 = vmatprep.mubr.bf16.mxu1 %v5756_v24 }
  0x69   :  { %1185 = vmatmul.mubr.bf16.gmra.mrb[32].mxu0 %v5755_v25 }
  0x6a   :  { %1192 = vmatprep.mubr.bf16.mxu0 %v5761_v26 }
  0x6b   :  { %1321 = vmatmul.mubr.bf16.gmra.mrb[32].mxu1 %v5758_v27 }
  0x6c   :  { %1328 = vmatprep.mubr.bf16.mxu1 %v5764_v28 }
  0x71   :  { %1193 = vmatmul.mubr.bf16.gmra.mrb[36].mxu0 %v5763_v29 }
  0x72   :  { %1200 = vmatprep.mubr.bf16.mxu0 %v5767_v30 }
  0x73   :  { %1329 = vmatmul.mubr.bf16.gmra.mrb[36].mxu1 %v5766_v31 }
  0x74   :  { %1336 = vmatprep.mubr.bf16.mxu1 %v5772_v32 }
  0x79   :  { %1201 = vmatmul.mubr.bf16.gmra.mrb[40].mxu0 %v5769_v33 }
  0x7a   :  { %1208 = vmatprep.mubr.bf16.mxu0 %v5778_v34 }
  0x7b   :  { %1337 = vmatmul.mubr.bf16.gmra.mrb[40].mxu1 %v5775_v35 }
  0x7c   :  { %1344 = vmatprep.mubr.bf16.mxu1 %v5782_v36 }
  0x81   :  { %1209 = vmatmul.mubr.bf16.gmra.mrb[44].mxu0 %v5780_v39 }
  0x82   :  { %1216 = vmatprep.mubr.bf16.mxu0 %v4231_v40 }
  0x83   :  { %1345 = vmatmul.mubr.bf16.gmra.mrb[44].mxu1 %v5785_v42 }
  0x84   :  { %1352 = vmatprep.mubr.bf16.mxu1 %v4233_v43 }
  0x89   :  { %1217 = vmatmul.mubr.bf16.gmra.mrb[48].mxu0 %v4230_v44 }
  0x8a   :  { %1392 = vmatprep.mubr.bf16.mxu0 %v5801_v45 }
  0x8b   :  { %1353 = vmatmul.mubr.bf16.gmra.mrb[48].mxu1 %v4232_v46 }
  0x8c   :  { %4961 = vmatprep.mubr.msk.bf16.mxu1 %vm5860_vm0, %v7525_v38 }
  0x91   :  { %1393 = vmatmul.mubr.bf16.vlgmr.msra.gmra.mrb[52].mxu0 %v5799_v47 }
  0x92   :  { %1400 = vmatprep.mubr.bf16.mxu0 %v5804_v48 }
  0x93   :  { %4962 = vmatmul.mubr.msk.bf16.vlgmr.msra.gmra.mrb[52].mxu1 %vm1048_vm1, %v5803_v49 }
  0x94   :  { %4965 = vmatprep.mubr.msk.bf16.mxu1 %vm5860_vm0, %v7525_v38 }
  0x99   :  { %1401 = vmatmul.mubr.bf16.gmra.mrb[56].mxu0 %v5806_v50 }
  0x9a   :  { %1408 = vmatprep.mubr.bf16.mxu0 %v5808_v51 }
  0x9b   :  { %4966 = vmatmul.mubr.msk.bf16.gmra.mrb[56].mxu1 %vm1048_vm1, %v5807_v52 }
  0x9c   :  { %4969 = vmatprep.mubr.msk.bf16.mxu1 %vm5860_vm0, %v7525_v38 }
  0xa1   :  { %1409 = vmatmul.mubr.bf16.gmra.mrb[60].mxu0 %v5810_v53 }
  0xa2   :  { %1416 = vmatprep.mubr.bf16.mxu0 %v5812_v54 }
  0xa3   :  { %4970 = vmatmul.mubr.msk.bf16.gmra.mrb[60].mxu1 %vm1048_vm1, %v5811_v55 }
  0xa4   :  { %4973 = vmatprep.mubr.msk.bf16.mxu1 %vm5860_vm0, %v7525_v38 }
  0xa9   :  { %1417 = vmatmul.mubr.bf16.gmra.mrb[64].mxu0 %v5814_v56 }
  0xaa   :  { %1424 = vmatprep.mubr.bf16.mxu0 %v5816_v57 }
  0xab   :  { %4974 = vmatmul.mubr.msk.bf16.gmra.mrb[64].mxu1 %vm1048_vm1, %v5815_v58 }
  0xac   :  { %4977 = vmatprep.mubr.msk.bf16.mxu1 %vm5860_vm0, %v7525_v38 }
  0xb1   :  { %1425 = vmatmul.mubr.bf16.gmra.mrb[68].mxu0 %v5818_v59 }
  0xb2   :  { %1432 = vmatprep.mubr.bf16.mxu0 %v5820_v60 }
  0xb3   :  { %4978 = vmatmul.mubr.msk.bf16.gmra.mrb[68].mxu1 %vm1048_vm1, %v5819_v61 }
  0xb4   :  { %4981 = vmatprep.mubr.msk.bf16.mxu1 %vm5860_vm0, %v7525_v38 }
  0xb9   :  { %1433 = vmatmul.mubr.bf16.gmra.mrb[72].mxu0 %v5822_v62 }
  0xba   :  { %1440 = vmatprep.mubr.bf16.mxu0 %v5824_v63 }
  0xbb   :  { %4982 = vmatmul.mubr.msk.bf16.gmra.mrb[72].mxu1 %vm1048_vm1, %v5823_v0 }
  0xbc   :  { %4985 = vmatprep.mubr.msk.bf16.mxu1 %vm5860_vm0, %v7525_v38 }
  0xc1   :  { %1441 = vmatmul.mubr.bf16.gmra.mrb[76].mxu0 %v5826_v1 }
  0xc2   :  { %1448 = vmatprep.mubr.bf16.mxu0 %v5828_v2 }
  0xc3   :  { %4986 = vmatmul.mubr.msk.bf16.gmra.mrb[76].mxu1 %vm1048_vm1, %v5827_v3 }
  0xc4   :  { %4989 = vmatprep.mubr.msk.bf16.mxu1 %vm5860_vm0, %v7525_v38 }
  0xc9   :  { %1449 = vmatmul.mubr.bf16.gmra.mrb[80].mxu0 %v5830_v4 }
  0xca   :  { %1456 = vmatprep.mubr.bf16.mxu0 %v5832_v5 }
  0xcb   :  { %4990 = vmatmul.mubr.msk.bf16.gmra.mrb[80].mxu1 %vm1048_vm1, %v5831_v6 }
  0xcc   :  { %4993 = vmatprep.mubr.msk.bf16.mxu1 %vm5860_vm0, %v7525_v38 }
  0xd1   :  { %1457 = vmatmul.mubr.bf16.gmra.mrb[84].mxu0 %v5834_v7 }
  0xd2   :  { %1464 = vmatprep.mubr.bf16.mxu0 %v5836_v8 }
  0xd3   :  { %4994 = vmatmul.mubr.msk.bf16.gmra.mrb[84].mxu1 %vm1048_vm1, %v5835_v9 }
  0xd4   :  { %4997 = vmatprep.mubr.msk.bf16.mxu1 %vm5860_vm0, %v7525_v38 }
  0xd9   :  { %1465 = vmatmul.mubr.bf16.gmra.mrb[88].mxu0 %v5838_v10 }
  0xda   :  { %1472 = vmatprep.mubr.bf16.mxu0 %v5840_v11 }
  0xdb   :  { %4998 = vmatmul.mubr.msk.bf16.gmra.mrb[88].mxu1 %vm1048_vm1, %v5839_v12 }
  0xdc   :  { %5001 = vmatprep.mubr.msk.bf16.mxu1 %vm5860_vm0, %v7525_v38 }
  0xe1   :  { %1473 = vmatmul.mubr.bf16.gmra.mrb[92].mxu0 %v5842_v13 }
  0xe2   :  { %1480 = vmatprep.mubr.bf16.mxu0 %v5844_v14 }
  0xe3   :  { %5002 = vmatmul.mubr.msk.bf16.gmra.mrb[92].mxu1 %vm1048_vm1, %v5843_v15 }
  0xe4   :  { %5005 = vmatprep.mubr.msk.bf16.mxu1 %vm5860_vm0, %v7525_v38 }
  0xe9   :  { %1481 = vmatmul.mubr.bf16.gmra.mrb[96].mxu0 %v5846_v17 }
  0xea   :  { %1488 = vmatprep.mubr.bf16.mxu0 %v4235_v18 }
  0xeb   :  { %5006 = vmatmul.mubr.msk.bf16.gmra.mrb[96].mxu1 %vm1048_vm1, %v5847_v19 }
  0xec   :  { %5009 = vmatprep.mubr.msk.bf16.mxu1 %vm5860_vm0, %v7525_v38 }
  0xf1   :  { %1489 = vmatmul.mubr.bf16.gmra.mrb[100].mxu0 %v4234_v20 }
  0xf3   :  { %5010 = vmatmul.mubr.msk.bf16.gmra.mrb[100].mxu1 %vm1048_vm1, %v5850_v21 }
  0xfc   :  { %v4480_v22 = vpop.f32.mrb[0].mxu0 }
  0xfd   :  { %v4481_v24 = vpop.f32.mrb[1].mxu0 }
  0xfe   :  { %v4482_v25 = vadd.f32 %v4481_v24, %v4480_v22  ;;  %v4483_v26 = vpop.f32.mrb[2].mxu0  ;;  %v4574_v27 = vpop.f32.mrb[0].mxu1 }
  0xff   :  { %v4484_v28 = vpop.f32.mrb[3].mxu0  ;;  %v4575_v31 = vpop.f32.mrb[1].mxu1 }
 0x100   :  { %v1123_v29 = vadd.f32 %v4482_v25, %v6437_v23  ;;  %v4485_v30 = vadd.f32 %v4484_v28, %v4483_v26  ;;  %v4576_v32 = vadd.f32 %v4575_v31, %v4574_v27  ;;  %v4577_v33 = vpop.f32.mrb[2].mxu1 }
 0x101   :  { %v4578_v35 = vpop.f32.mrb[3].mxu1 }
 0x102   :  { %v1126_v34 = vadd.f32 %v4485_v30, %v6437_v23  ;;  %v6441_v36 = vadd.f32 %v4576_v32, %v1123_v29  ;;  %v4579_v37 = vadd.f32 %v4578_v35, %v4577_v33 }
 0x104   :  { %v4486_v39 = vpop.f32.mrb[4].mxu0  ;;  %v6443_v40 = vadd.f32 %v4579_v37, %v1126_v34 }
 0x105   :  { %v4487_v41 = vpop.f32.mrb[5].mxu0 }
 0x106   :  { %v4488_v42 = vadd.f32 %v4487_v41, %v4486_v39  ;;  %v4489_v43 = vpop.f32.mrb[6].mxu0  ;;  %v4580_v44 = vpop.f32.mrb[4].mxu1 }
 0x107   :  { %v4490_v45 = vpop.f32.mrb[7].mxu0  ;;  %v4581_v48 = vpop.f32.mrb[5].mxu1 }
 0x108   :  { %v1131_v46 = vadd.f32 %v4488_v42, %v6437_v23  ;;  %v4491_v47 = vadd.f32 %v4490_v45, %v4489_v43  ;;  %v4582_v49 = vadd.f32 %v4581_v48, %v4580_v44  ;;  %v4583_v50 = vpop.f32.mrb[6].mxu1 }
 0x109   :  { %v4584_v52 = vpop.f32.mrb[7].mxu1 }
 0x10a   :  { %v1134_v51 = vadd.f32 %v4491_v47, %v6437_v23  ;;  %v6447_v53 = vadd.f32 %v4582_v49, %v1131_v46  ;;  %v4585_v54 = vadd.f32 %v4584_v52, %v4583_v50 }
 0x10c   :  { %v4492_v55 = vpop.f32.mrb[8].mxu0  ;;  %v6449_v56 = vadd.f32 %v4585_v54, %v1134_v51 }
 0x10d   :  { %v4493_v57 = vpop.f32.mrb[9].mxu0 }
 0x10e   :  { %v4494_v58 = vadd.f32 %v4493_v57, %v4492_v55  ;;  %v4495_v59 = vpop.f32.mrb[10].mxu0  ;;  %v4586_v60 = vpop.f32.mrb[8].mxu1 }
 0x10f   :  { %v4496_v61 = vpop.f32.mrb[11].mxu0  ;;  %v4587_v0 = vpop.f32.mrb[9].mxu1 }
 0x110   :  { %v1139_v62 = vadd.f32 %v4494_v58, %v6437_v23  ;;  %v4497_v63 = vadd.f32 %v4496_v61, %v4495_v59  ;;  %v4588_v1 = vadd.f32 %v4587_v0, %v4586_v60  ;;  %v4589_v2 = vpop.f32.mrb[10].mxu1 }
 0x111   :  { %v4590_v4 = vpop.f32.mrb[11].mxu1 }
 0x112   :  { %v1142_v3 = vadd.f32 %v4497_v63, %v6437_v23  ;;  %v6453_v5 = vadd.f32 %v4588_v1, %v1139_v62  ;;  %v4591_v6 = vadd.f32 %v4590_v4, %v4589_v2 }
 0x114   :  { %v4498_v7 = vpop.f32.mrb[12].mxu0  ;;  %v6455_v8 = vadd.f32 %v4591_v6, %v1142_v3 }
 0x115   :  { %v4499_v9 = vpop.f32.mrb[13].mxu0 }
 0x116   :  { %v4500_v10 = vadd.f32 %v4499_v9, %v4498_v7  ;;  %v4501_v11 = vpop.f32.mrb[14].mxu0  ;;  %v4592_v12 = vpop.f32.mrb[12].mxu1 }
 0x117   :  { %v4502_v13 = vpop.f32.mrb[15].mxu0  ;;  %v4593_v16 = vpop.f32.mrb[13].mxu1 }
 0x118   :  { %v1147_v14 = vadd.f32 %v4500_v10, %v6437_v23  ;;  %v4503_v15 = vadd.f32 %v4502_v13, %v4501_v11  ;;  %v4594_v17 = vadd.f32 %v4593_v16, %v4592_v12  ;;  %v4595_v18 = vpop.f32.mrb[14].mxu1 }
 0x119   :  { %v4596_v20 = vpop.f32.mrb[15].mxu1 }
 0x11a   :  { %v1150_v19 = vadd.f32 %v4503_v15, %v6437_v23  ;;  %v6459_v21 = vadd.f32 %v4594_v17, %v1147_v14  ;;  %v4597_v22 = vadd.f32 %v4596_v20, %v4595_v18 }
 0x11c   :  { %v4504_v24 = vpop.f32.mrb[16].mxu0  ;;  %v6461_v25 = vadd.f32 %v4597_v22, %v1150_v19 }
 0x11d   :  { %v4505_v26 = vpop.f32.mrb[17].mxu0 }
 0x11e   :  { %v4506_v27 = vadd.f32 %v4505_v26, %v4504_v24  ;;  %v4507_v28 = vpop.f32.mrb[18].mxu0  ;;  %v4598_v29 = vpop.f32.mrb[16].mxu1 }
 0x11f   :  { %v4508_v30 = vpop.f32.mrb[19].mxu0  ;;  %v4599_v33 = vpop.f32.mrb[17].mxu1 }
 0x120   :  { %v1155_v31 = vadd.f32 %v4506_v27, %v6437_v23  ;;  %v4509_v32 = vadd.f32 %v4508_v30, %v4507_v28  ;;  %v4600_v34 = vadd.f32 %v4599_v33, %v4598_v29  ;;  %v4601_v35 = vpop.f32.mrb[18].mxu1 }
 0x121   :  { %v4602_v39 = vpop.f32.mrb[19].mxu1 }
 0x122   :  { %v1158_v37 = vadd.f32 %v4509_v32, %v6437_v23  ;;  %v6465_v41 = vadd.f32 %v4600_v34, %v1155_v31  ;;  %v4603_v42 = vadd.f32 %v4602_v39, %v4601_v35 }
 0x124   :  { %v4510_v43 = vpop.f32.mrb[20].mxu0  ;;  %v6467_v44 = vadd.f32 %v4603_v42, %v1158_v37 }
 0x125   :  { %v4511_v45 = vpop.f32.mrb[21].mxu0 }
 0x126   :  { %v4512_v46 = vadd.f32 %v4511_v45, %v4510_v43  ;;  %v4513_v47 = vpop.f32.mrb[22].mxu0  ;;  %v4604_v48 = vpop.f32.mrb[20].mxu1 }
 0x127   :  { %v4514_v49 = vpop.f32.mrb[23].mxu0  ;;  %v4605_v52 = vpop.f32.mrb[21].mxu1 }
 0x128   :  { %v1163_v50 = vadd.f32 %v4512_v46, %v6437_v23  ;;  %v4515_v51 = vadd.f32 %v4514_v49, %v4513_v47  ;;  %v4606_v54 = vadd.f32 %v4605_v52, %v4604_v48  ;;  %v4607_v55 = vpop.f32.mrb[22].mxu1 }
 0x129   :  { %v4608_v58 = vpop.f32.mrb[23].mxu1 }
 0x12a   :  { %v1166_v57 = vadd.f32 %v4515_v51, %v6437_v23  ;;  %v6471_v59 = vadd.f32 %v4606_v54, %v1163_v50  ;;  %v4609_v60 = vadd.f32 %v4608_v58, %v4607_v55 }
 0x12c   :  { %v4516_v61 = vpop.f32.mrb[24].mxu0  ;;  %v6473_v62 = vadd.f32 %v4609_v60, %v1166_v57 }
 0x12d   :  { %v4517_v63 = vpop.f32.mrb[25].mxu0 }
 0x12e   :  { %v4518_v0 = vadd.f32 %v4517_v63, %v4516_v61  ;;  %v4519_v1 = vpop.f32.mrb[26].mxu0  ;;  %v4610_v2 = vpop.f32.mrb[24].mxu1 }
 0x12f   :  { %v4520_v3 = vpop.f32.mrb[27].mxu0  ;;  %v4611_v7 = vpop.f32.mrb[25].mxu1 }
 0x130   :  { %v1171_v4 = vadd.f32 %v4518_v0, %v6437_v23  ;;  %v4521_v6 = vadd.f32 %v4520_v3, %v4519_v1  ;;  %v4612_v9 = vadd.f32 %v4611_v7, %v4610_v2  ;;  %v4613_v10 = vpop.f32.mrb[26].mxu1 }
 0x131   :  { %v4614_v12 = vpop.f32.mrb[27].mxu1 }
 0x132   :  { %v1174_v11 = vadd.f32 %v4521_v6, %v6437_v23  ;;  %v6477_v13 = vadd.f32 %v4612_v9, %v1171_v4  ;;  %v4615_v14 = vadd.f32 %v4614_v12, %v4613_v10 }
 0x134   :  { %v4522_v15 = vpop.f32.mrb[28].mxu0  ;;  %v6479_v16 = vadd.f32 %v4615_v14, %v1174_v11 }
 0x135   :  { %v4523_v17 = vpop.f32.mrb[29].mxu0 }
 0x136   :  { %v4524_v18 = vadd.f32 %v4523_v17, %v4522_v15  ;;  %v4525_v19 = vpop.f32.mrb[30].mxu0  ;;  %v4616_v20 = vpop.f32.mrb[28].mxu1 }
 0x137   :  { %v4526_v22 = vpop.f32.mrb[31].mxu0  ;;  %v4617_v27 = vpop.f32.mrb[29].mxu1 }
 0x138   :  { %v1179_v24 = vadd.f32 %v4524_v18, %v6437_v23  ;;  %v4527_v26 = vadd.f32 %v4526_v22, %v4525_v19  ;;  %v4618_v28 = vadd.f32 %v4617_v27, %v4616_v20  ;;  %v4619_v29 = vpop.f32.mrb[30].mxu1 }
 0x139   :  { %v4620_v31 = vpop.f32.mrb[31].mxu1 }
 0x13a   :  { %v1182_v30 = vadd.f32 %v4527_v26, %v6437_v23  ;;  %v6483_v32 = vadd.f32 %v4618_v28, %v1179_v24  ;;  %v4621_v33 = vadd.f32 %v4620_v31, %v4619_v29 }
 0x13c   :  { %v4528_v34 = vpop.f32.mrb[32].mxu0  ;;  %v6485_v35 = vadd.f32 %v4621_v33, %v1182_v30 }
 0x13d   :  { %v4529_v37 = vpop.f32.mrb[33].mxu0 }
 0x13e   :  { %v4530_v39 = vadd.f32 %v4529_v37, %v4528_v34  ;;  %v4531_v42 = vpop.f32.mrb[34].mxu0  ;;  %v4622_v43 = vpop.f32.mrb[32].mxu1 }
 0x13f   :  { %v4532_v45 = vpop.f32.mrb[35].mxu0  ;;  %v4623_v48 = vpop.f32.mrb[33].mxu1 }
 0x140   :  { %v1187_v46 = vadd.f32 %v4530_v39, %v6437_v23  ;;  %v4533_v47 = vadd.f32 %v4532_v45, %v4531_v42  ;;  %v4624_v49 = vadd.f32 %v4623_v48, %v4622_v43  ;;  %v4625_v50 = vpop.f32.mrb[34].mxu1 }
 0x141   :  { %v4626_v52 = vpop.f32.mrb[35].mxu1 }
 0x142   :  { %v1190_v51 = vadd.f32 %v4533_v47, %v6437_v23  ;;  %v6489_v54 = vadd.f32 %v4624_v49, %v1187_v46  ;;  %v4627_v55 = vadd.f32 %v4626_v52, %v4625_v50 }
 0x144   :  { %v4534_v57 = vpop.f32.mrb[36].mxu0  ;;  %v6491_v58 = vadd.f32 %v4627_v55, %v1190_v51 }
 0x145   :  { %v4535_v60 = vpop.f32.mrb[37].mxu0 }
 0x146   :  { %v4536_v61 = vadd.f32 %v4535_v60, %v4534_v57  ;;  %v4537_v63 = vpop.f32.mrb[38].mxu0  ;;  %v4628_v0 = vpop.f32.mrb[36].mxu1 }
 0x147   :  { %v4538_v1 = vpop.f32.mrb[39].mxu0  ;;  %v4629_v4 = vpop.f32.mrb[37].mxu1 }
 0x148   :  { %v1195_v2 = vadd.f32 %v4536_v61, %v6437_v23  ;;  %v4539_v3 = vadd.f32 %v4538_v1, %v4537_v63  ;;  %v4630_v6 = vadd.f32 %v4629_v4, %v4628_v0  ;;  %v4631_v7 = vpop.f32.mrb[38].mxu1 }
 0x149   :  { %v4632_v10 = vpop.f32.mrb[39].mxu1 }
 0x14a   :  { %v1198_v9 = vadd.f32 %v4539_v3, %v6437_v23  ;;  %v6495_v11 = vadd.f32 %v4630_v6, %v1195_v2  ;;  %v4633_v12 = vadd.f32 %v4632_v10, %v4631_v7 }
 0x14c   :  { %v4540_v14 = vpop.f32.mrb[40].mxu0  ;;  %v6497_v15 = vadd.f32 %v4633_v12, %v1198_v9 }
 0x14d   :  { %v4541_v17 = vpop.f32.mrb[41].mxu0 }
 0x14e   :  { %v4542_v18 = vadd.f32 %v4541_v17, %v4540_v14  ;;  %v4543_v19 = vpop.f32.mrb[42].mxu0  ;;  %v4634_v20 = vpop.f32.mrb[40].mxu1 }
 0x14f   :  { %v4544_v22 = vpop.f32.mrb[43].mxu0  ;;  %v4635_v27 = vpop.f32.mrb[41].mxu1 }
 0x150   :  { %v1203_v24 = vadd.f32 %v4542_v18, %v6437_v23  ;;  %v4545_v26 = vadd.f32 %v4544_v22, %v4543_v19  ;;  %v4636_v28 = vadd.f32 %v4635_v27, %v4634_v20  ;;  %v4637_v29 = vpop.f32.mrb[42].mxu1 }
 0x151   :  { %v4638_v31 = vpop.f32.mrb[43].mxu1 }
 0x152   :  { %v1206_v30 = vadd.f32 %v4545_v26, %v6437_v23  ;;  %v6501_v33 = vadd.f32 %v4636_v28, %v1203_v24  ;;  %v4639_v34 = vadd.f32 %v4638_v31, %v4637_v29 }
 0x154   :  { %v4546_v37 = vpop.f32.mrb[44].mxu0  ;;  %v6503_v39 = vadd.f32 %v4639_v34, %v1206_v30 }
 0x155   :  { %v4547_v42 = vpop.f32.mrb[45].mxu0 }
 0x156   :  { %v4548_v43 = vadd.f32 %v4547_v42, %v4546_v37  ;;  %v4549_v45 = vpop.f32.mrb[46].mxu0  ;;  %v4640_v46 = vpop.f32.mrb[44].mxu1 }
 0x157   :  { %v4550_v47 = vpop.f32.mrb[47].mxu0  ;;  %v4641_v50 = vpop.f32.mrb[45].mxu1 }
 0x158   :  { %v1211_v48 = vadd.f32 %v4548_v43, %v6437_v23  ;;  %v4551_v49 = vadd.f32 %v4550_v47, %v4549_v45  ;;  %v4642_v51 = vadd.f32 %v4641_v50, %v4640_v46  ;;  %v4643_v52 = vpop.f32.mrb[46].mxu1 }
 0x159   :  { %v4644_v57 = vpop.f32.mrb[47].mxu1 }
 0x15a   :  { %v1214_v55 = vadd.f32 %v4551_v49, %v6437_v23  ;;  %v6507_v60 = vadd.f32 %v4642_v51, %v1211_v48  ;;  %v4645_v61 = vadd.f32 %v4644_v57, %v4643_v52 }
 0x15c   :  { %v4552_v63 = vpop.f32.mrb[48].mxu0  ;;  %v6509_v0 = vadd.f32 %v4645_v61, %v1214_v55 }
 0x15d   :  { %v4553_v1 = vpop.f32.mrb[49].mxu0 }
 0x15e   :  { %v4554_v2 = vadd.f32 %v4553_v1, %v4552_v63  ;;  %v4555_v3 = vpop.f32.mrb[50].mxu0  ;;  %v4646_v4 = vpop.f32.mrb[48].mxu1 }
 0x15f   :  { %v4556_v6 = vpop.f32.mrb[51].mxu0  ;;  %v4647_v9 = vpop.f32.mrb[49].mxu1 }
 0x160   :  { %v1219_v7 = vadd.f32 %v4554_v2, %v6437_v23  ;;  %v4648_v10 = vadd.f32 %v4647_v9, %v4646_v4  ;;  %v4649_v12 = vpop.f32.mrb[50].mxu1 }
 0x161   :  { %v4650_v14 = vpop.f32.mrb[51].mxu1 }
 0x162   :  { %v6512_v17 = vadd.f32 %v4648_v10, %v1219_v7 }
 0x164   :  { %v4668_v18 = vpop.f32.mrb[52].mxu0 }
 0x165   :  { %v4669_v19 = vpop.f32.mrb[53].mxu0 }
 0x166   :  { %v4670_v20 = vadd.f32 %v4669_v19, %v4668_v18  ;;  %v4671_v22 = vpop.f32.mrb[54].mxu0  ;;  %v1530_v24 = vpop.f32.mrb[52].mxu1 }
 0x167   :  { %v4672_v26 = vpop.f32.mrb[55].mxu0  ;;  %v4963_v29 = vpop.f32.mrb[53].mxu1 }
 0x168   :  { %v1395_v27 = vadd.f32 %v4670_v20, %v6441_v36  ;;  %v4673_v28 = vadd.f32 %v4672_v26, %v4671_v22  ;;  %v1533_v30 = vpop.f32.mrb[54].mxu1 }
 0x169   :  { %v4964_v34 = vpop.f32.mrb[55].mxu1 }
 0x16a   :  { %v6515_v31 = vadd.f32 %v1530_v24, %v1395_v27  ;;  %v1398_v23 = vadd.f32 %v4673_v28, %v6443_v40 }
 0x16c   :  { %v1632_v37 = vmax.f32 %v6515_v31, 0.0  ;;  %v6519_v42 = vadd.f32 %v1533_v30, %v1398_v23  ;;  %v4674_v43 = vpop.f32.mrb[56].mxu0 }
 0x16d   :  { %v4675_v45 = vpop.f32.mrb[57].mxu0 }
 0x16e   :  { %v1633_v46 = vmax.f32 %v6519_v42, 0.0  ;;  %v4676_v47 = vadd.f32 %v4675_v45, %v4674_v43  ;;  %v4677_v48 = vpop.f32.mrb[58].mxu0  ;;  %v1538_v36 = vpop.f32.mrb[56].mxu1  ;;  %v1658_v50 = vsel %vm1657_vm2, %v1632_v37, 0.0 }
 0x16f   :  { %v4678_v49 = vpop.f32.mrb[59].mxu0  ;;  %v4967_v55 = vpop.f32.mrb[57].mxu1 }
 0x170   :  { %v1659_v40 = vsel %vm1657_vm2, %v1633_v46, 0.0  ;;  %v1403_v51 = vadd.f32 %v4676_v47, %v6447_v53  ;;  %v4679_v52 = vadd.f32 %v4678_v49, %v4677_v48  ;;  %v1541_v61 = vpop.f32.mrb[58].mxu1 }
 0x171   :  { %v1660_v57 = vadd.f32 %v1659_v40, %v1658_v50  ;;  %v4968_v2 = vpop.f32.mrb[59].mxu1 }
 0x172   :  { %v6529_v63 = vadd.f32 %v1538_v36, %v1403_v51  ;;  %v1406_v1 = vadd.f32 %v4679_v52, %v6449_v56 }
 0x174   :  { %v1634_v3 = vmax.f32 %v6529_v63, 0.0  ;;  %v6533_v4 = vadd.f32 %v1541_v61, %v1406_v1  ;;  %v4680_v6 = vpop.f32.mrb[60].mxu0 }
 0x175   :  { %v4681_v7 = vpop.f32.mrb[61].mxu0 }
 0x176   :  { %v1661_v9 = vsel %vm1657_vm2, %v1634_v3, 0.0  ;;  %v1635_v53 = vmax.f32 %v6533_v4, 0.0  ;;  %v4682_v10 = vadd.f32 %v4681_v7, %v4680_v6  ;;  %v4683_v12 = vpop.f32.mrb[62].mxu0  ;;  %v1546_v18 = vpop.f32.mrb[60].mxu1 }
 0x177   :  { %v1662_v14 = vadd.f32 %v1661_v9, %v1660_v57  ;;  %v4684_v19 = vpop.f32.mrb[63].mxu0  ;;  %v4971_v24 = vpop.f32.mrb[61].mxu1 }
 0x178   :  { %v1663_v56 = vsel %vm1657_vm2, %v1635_v53, 0.0  ;;  %v1411_v20 = vadd.f32 %v4682_v10, %v6453_v5  ;;  %v4685_v22 = vadd.f32 %v4684_v19, %v4683_v12  ;;  %v1549_v27 = vpop.f32.mrb[62].mxu1 }
 0x179   :  { %v1664_v26 = vadd.f32 %v1663_v56, %v1662_v14  ;;  %v4972_v30 = vpop.f32.mrb[63].mxu1 }
 0x17a   :  { %v6543_v28 = vadd.f32 %v1546_v18, %v1411_v20  ;;  %v1414_v29 = vadd.f32 %v4685_v22, %v6455_v8 }
 0x17c   :  { %v1636_v23 = vmax.f32 %v6543_v28, 0.0  ;;  %v6547_v34 = vadd.f32 %v1549_v27, %v1414_v29  ;;  %v4686_v43 = vpop.f32.mrb[64].mxu0 }
 0x17d   :  { %v4687_v45 = vpop.f32.mrb[65].mxu0 }
 0x17e   :  { %v1665_v47 = vsel %vm1657_vm2, %v1636_v23, 0.0  ;;  %v1637_v5 = vmax.f32 %v6547_v34, 0.0  ;;  %v4688_v48 = vadd.f32 %v4687_v45, %v4686_v43  ;;  %v4689_v36 = vpop.f32.mrb[66].mxu0  ;;  %v1554_v50 = vpop.f32.mrb[64].mxu1 }
 0x17f   :  { %v1666_v49 = vadd.f32 %v1665_v47, %v1664_v26  ;;  %v4690_v40 = vpop.f32.mrb[67].mxu0  ;;  %v4975_v55 = vpop.f32.mrb[65].mxu1 }
 0x180   :  { %v1667_v8 = vsel %vm1657_vm2, %v1637_v5, 0.0  ;;  %v1419_v51 = vadd.f32 %v4688_v48, %v6459_v21  ;;  %v4691_v52 = vadd.f32 %v4690_v40, %v4689_v36  ;;  %v1557_v61 = vpop.f32.mrb[66].mxu1 }
 0x181   :  { %v1668_v57 = vadd.f32 %v1667_v8, %v1666_v49  ;;  %v4976_v6 = vpop.f32.mrb[67].mxu1 }
 0x182   :  { %v6557_v1 = vadd.f32 %v1554_v50, %v1419_v51  ;;  %v1422_v2 = vadd.f32 %v4691_v52, %v6461_v25 }
 0x184   :  { %v1638_v7 = vmax.f32 %v6557_v1, 0.0  ;;  %v6561_v9 = vadd.f32 %v1557_v61, %v1422_v2  ;;  %v4692_v10 = vpop.f32.mrb[68].mxu0 }
 0x185   :  { %v4693_v12 = vpop.f32.mrb[69].mxu0 }
 0x186   :  { %v1669_v14 = vsel %vm1657_vm2, %v1638_v7, 0.0  ;;  %v1639_v21 = vmax.f32 %v6561_v9, 0.0  ;;  %v4694_v18 = vadd.f32 %v4693_v12, %v4692_v10  ;;  %v4695_v19 = vpop.f32.mrb[70].mxu0  ;;  %v1562_v20 = vpop.f32.mrb[68].mxu1 }
 0x187   :  { %v1670_v56 = vadd.f32 %v1669_v14, %v1668_v57  ;;  %v4696_v22 = vpop.f32.mrb[71].mxu0  ;;  %v4979_v27 = vpop.f32.mrb[69].mxu1 }
 0x188   :  { %v1671_v25 = vsel %vm1657_vm2, %v1639_v21, 0.0  ;;  %v1427_v24 = vadd.f32 %v4694_v18, %v6465_v41  ;;  %v4697_v26 = vadd.f32 %v4696_v22, %v4695_v19  ;;  %v1565_v30 = vpop.f32.mrb[70].mxu1 }
 0x189   :  { %v1672_v29 = vadd.f32 %v1671_v25, %v1670_v56  ;;  %v4980_v47 = vpop.f32.mrb[71].mxu1 }
 0x18a   :  { %v6571_v43 = vadd.f32 %v1562_v20, %v1427_v24  ;;  %v1430_v45 = vadd.f32 %v4697_v26, %v6467_v44 }
 0x18c   :  { %v1640_v48 = vmax.f32 %v6571_v43, 0.0  ;;  %v6575_v36 = vadd.f32 %v1565_v30, %v1430_v45  ;;  %v4698_v49 = vpop.f32.mrb[72].mxu0 }
 0x18d   :  { %v4699_v50 = vpop.f32.mrb[73].mxu0 }
 0x18e   :  { %v1673_v40 = vsel %vm1657_vm2, %v1640_v48, 0.0  ;;  %v1641_v41 = vmax.f32 %v6575_v36, 0.0  ;;  %v4700_v8 = vadd.f32 %v4699_v50, %v4698_v49  ;;  %v4701_v51 = vpop.f32.mrb[74].mxu0  ;;  %v1570_v55 = vpop.f32.mrb[72].mxu1 }
 0x18f   :  { %v1674_v52 = vadd.f32 %v1673_v40, %v1672_v29  ;;  %v4702_v57 = vpop.f32.mrb[75].mxu0  ;;  %v4983_v6 = vpop.f32.mrb[73].mxu1 }
 0x190   :  { %v1675_v44 = vsel %vm1657_vm2, %v1641_v41, 0.0  ;;  %v1435_v61 = vadd.f32 %v4700_v8, %v6471_v59  ;;  %v4703_v2 = vadd.f32 %v4702_v57, %v4701_v51  ;;  %v1573_v12 = vpop.f32.mrb[74].mxu1 }
 0x191   :  { %v1676_v10 = vadd.f32 %v1675_v44, %v1674_v52  ;;  %v4984_v19 = vpop.f32.mrb[75].mxu1 }
 0x192   :  { %v6585_v14 = vadd.f32 %v1570_v55, %v1435_v61  ;;  %v1438_v18 = vadd.f32 %v4703_v2, %v6473_v62 }
 0x194   :  { %v1642_v56 = vmax.f32 %v6585_v14, 0.0  ;;  %v6589_v20 = vadd.f32 %v1573_v12, %v1438_v18  ;;  %v4704_v22 = vpop.f32.mrb[76].mxu0 }
 0x195   :  { %v4705_v25 = vpop.f32.mrb[77].mxu0 }
 0x196   :  { %v1677_v24 = vsel %vm1657_vm2, %v1642_v56, 0.0  ;;  %v1643_v59 = vmax.f32 %v6589_v20, 0.0  ;;  %v4706_v26 = vadd.f32 %v4705_v25, %v4704_v22  ;;  %v4707_v27 = vpop.f32.mrb[78].mxu0  ;;  %v1578_v30 = vpop.f32.mrb[76].mxu1 }
 0x197   :  { %v1678_v29 = vadd.f32 %v1677_v24, %v1676_v10  ;;  %v4708_v45 = vpop.f32.mrb[79].mxu0  ;;  %v4987_v50 = vpop.f32.mrb[77].mxu1 }
 0x198   :  { %v1679_v62 = vsel %vm1657_vm2, %v1643_v59, 0.0  ;;  %v1443_v47 = vadd.f32 %v4706_v26, %v6477_v13  ;;  %v4709_v49 = vadd.f32 %v4708_v45, %v4707_v27  ;;  %v1581_v8 = vpop.f32.mrb[78].mxu1 }
 0x199   :  { %v1680_v40 = vadd.f32 %v1679_v62, %v1678_v29  ;;  %v4988_v55 = vpop.f32.mrb[79].mxu1 }
 0x19a   :  { %v6599_v51 = vadd.f32 %v1578_v30, %v1443_v47  ;;  %v1446_v52 = vadd.f32 %v4709_v49, %v6479_v16 }
 0x19c   :  { %v1644_v57 = vmax.f32 %v6599_v51, 0.0  ;;  %v6603_v44 = vadd.f32 %v1581_v8, %v1446_v52  ;;  %v4710_v61 = vpop.f32.mrb[80].mxu0 }
 0x19d   :  { %v4711_v2 = vpop.f32.mrb[81].mxu0 }
 0x19e   :  { %v1681_v6 = vsel %vm1657_vm2, %v1644_v57, 0.0  ;;  %v1645_v13 = vmax.f32 %v6603_v44, 0.0  ;;  %v4712_v10 = vadd.f32 %v4711_v2, %v4710_v61  ;;  %v4713_v12 = vpop.f32.mrb[82].mxu0  ;;  %v1586_v19 = vpop.f32.mrb[80].mxu1 }
 0x19f   :  { %v1682_v18 = vadd.f32 %v1681_v6, %v1680_v40  ;;  %v4714_v22 = vpop.f32.mrb[83].mxu0  ;;  %v4991_v26 = vpop.f32.mrb[81].mxu1 }
 0x1a0   :  { %v1683_v16 = vsel %vm1657_vm2, %v1645_v13, 0.0  ;;  %v1451_v25 = vadd.f32 %v4712_v10, %v6483_v32  ;;  %v4715_v24 = vadd.f32 %v4714_v22, %v4713_v12  ;;  %v1589_v29 = vpop.f32.mrb[82].mxu1 }
 0x1a1   :  { %v1684_v27 = vadd.f32 %v1683_v16, %v1682_v18  ;;  %v4992_v62 = vpop.f32.mrb[83].mxu1 }
 0x1a2   :  { %v6613_v30 = vadd.f32 %v1586_v19, %v1451_v25  ;;  %v1454_v45 = vadd.f32 %v4715_v24, %v6485_v35 }
 0x1a4   :  { %v1646_v47 = vmax.f32 %v6613_v30, 0.0  ;;  %v6617_v49 = vadd.f32 %v1589_v29, %v1454_v45  ;;  %v4716_v50 = vpop.f32.mrb[84].mxu0 }
 0x1a5   :  { %v4717_v40 = vpop.f32.mrb[85].mxu0 }
 0x1a6   :  { %v1685_v8 = vsel %vm1657_vm2, %v1646_v47, 0.0  ;;  %v1647_v32 = vmax.f32 %v6617_v49, 0.0  ;;  %v4718_v52 = vadd.f32 %v4717_v40, %v4716_v50  ;;  %v4719_v55 = vpop.f32.mrb[86].mxu0  ;;  %v1594_v2 = vpop.f32.mrb[84].mxu1 }
 0x1a7   :  { %v1686_v61 = vadd.f32 %v1685_v8, %v1684_v27  ;;  %v4720_v6 = vpop.f32.mrb[87].mxu0  ;;  %v4995_v18 = vpop.f32.mrb[85].mxu1 }
 0x1a8   :  { %v1687_v35 = vsel %vm1657_vm2, %v1647_v32, 0.0  ;;  %v1459_v10 = vadd.f32 %v4718_v52, %v6489_v54  ;;  %v4721_v12 = vadd.f32 %v4720_v6, %v4719_v55  ;;  %v1597_v22 = vpop.f32.mrb[86].mxu1 }
 0x1a9   :  { %v1688_v19 = vadd.f32 %v1687_v35, %v1686_v61  ;;  %v4996_v24 = vpop.f32.mrb[87].mxu1 }
 0x1aa   :  { %v6627_v16 = vadd.f32 %v1594_v2, %v1459_v10  ;;  %v1462_v25 = vadd.f32 %v4721_v12, %v6491_v58 }
 0x1ac   :  { %v1648_v26 = vmax.f32 %v6627_v16, 0.0  ;;  %v6631_v27 = vadd.f32 %v1597_v22, %v1462_v25  ;;  %v4722_v29 = vpop.f32.mrb[88].mxu0 }
 0x1ad   :  { %v4723_v45 = vpop.f32.mrb[89].mxu0 }
 0x1ae   :  { %v1689_v62 = vsel %vm1657_vm2, %v1648_v26, 0.0  ;;  %v7531_v54 = vmax.f32 %v6631_v27, 0.0  ;;  %v4724_v50 = vadd.f32 %v4723_v45, %v4722_v29  ;;  %v4725_v40 = vpop.f32.mrb[90].mxu0  ;;  %v1602_v52 = vpop.f32.mrb[88].mxu1  ;;  %v7539_v1 = vmax.f32 %v6631_v27, 0.0 }
 0x1af   :  { %v1690_v8 = vadd.f32 %v1689_v62, %v1688_v19  ;;  %v4726_v55 = vpop.f32.mrb[91].mxu0  ;;  %v4999_v6 = vpop.f32.mrb[89].mxu1 }
 0x1b0   :  { %v1691_v58 = vsel %vm1657_vm2, %v7531_v54, 0.0  ;;  %v1467_v61 = vadd.f32 %v4724_v50, %v6495_v11  ;;  %v4727_v2 = vadd.f32 %v4726_v55, %v4725_v40  ;;  %v1605_v10 = vpop.f32.mrb[90].mxu1 }
 0x1b1   :  { %v1692_v35 = vadd.f32 %v1691_v58, %v1690_v8  ;;  %v5000_v22 = vpop.f32.mrb[91].mxu1 }
 0x1b2   :  { %v6641_v12 = vadd.f32 %v1602_v52, %v1467_v61  ;;  %v1470_v18 = vadd.f32 %v4727_v2, %v6497_v15 }
 0x1b4   :  { %v7529_v25 = vmax.f32 %v6641_v12, 0.0  ;;  %v6645_v19 = vadd.f32 %v1605_v10, %v1470_v18  ;;  %v4728_v24 = vpop.f32.mrb[92].mxu0  ;;  %v7540_v9 = vmax.f32 %v6641_v12, 0.0 }
 0x1b5   :  { %v4729_v29 = vpop.f32.mrb[93].mxu0 }
 0x1b6   :  { %v1693_v45 = vsel %vm1657_vm2, %v7529_v25, 0.0  ;;  %v7528_v11 = vmax.f32 %v6645_v19, 0.0  ;;  %v4730_v62 = vadd.f32 %v4729_v29, %v4728_v24  ;;  %v4731_v50 = vpop.f32.mrb[94].mxu0  ;;  %v1610_v8 = vpop.f32.mrb[92].mxu1  ;;  %v7541_v43 = vmax.f32 %v6645_v19, 0.0 }
 0x1b7   :  { %v1694_v40 = vadd.f32 %v1693_v45, %v1692_v35  ;;  %v4732_v52 = vpop.f32.mrb[95].mxu0  ;;  %v5003_v61 = vpop.f32.mrb[93].mxu1 }
 0x1b8   :  { %v1695_v15 = vsel %vm1657_vm2, %v7528_v11, 0.0  ;;  %v1475_v55 = vadd.f32 %v4730_v62, %v6501_v33  ;;  %v4733_v58 = vadd.f32 %v4732_v52, %v4731_v50  ;;  %v1613_v6 = vpop.f32.mrb[94].mxu1 }
 0x1b9   :  { %v1696_v2 = vadd.f32 %v1695_v15, %v1694_v40  ;;  %v5004_v22 = vpop.f32.mrb[95].mxu1 }
 0x1ba   :  { %v6655_v10 = vadd.f32 %v1610_v8, %v1475_v55  ;;  %v1478_v18 = vadd.f32 %v4733_v58, %v6503_v39 }
 0x1bc   :  { %v7527_v24 = vmax.f32 %v6655_v10, 0.0  ;;  %v6659_v35 = vadd.f32 %v1613_v6, %v1478_v18  ;;  %v4734_v29 = vpop.f32.mrb[96].mxu0  ;;  %v7542_v36 = vmax.f32 %v6655_v10, 0.0 }
 0x1bd   :  { %v4735_v45 = vpop.f32.mrb[97].mxu0 }
 0x1be   :  { %v1697_v38 = vsel %vm1657_vm2, %v7527_v24, 0.0  ;;  %v7530_v33 = vmax.f32 %v6659_v35, 0.0  ;;  %v4736_v62 = vadd.f32 %v4735_v45, %v4734_v29  ;;  %v4737_v50 = vpop.f32.mrb[98].mxu0  ;;  %v1618_v8 = vpop.f32.mrb[96].mxu1  ;;  %v7543_v14 = vmax.f32 %v6659_v35, 0.0 }
 0x1bf   :  { %v1698_v40 = vadd.f32 %v1697_v38, %v1696_v2  ;;  %v4738_v52 = vpop.f32.mrb[99].mxu0  ;;  %v5007_v58 = vpop.f32.mrb[97].mxu1  ;;  %v5861_v2 = vmov 0.0|0.0  }
 0x1c0   :  { %v1699_v39 = vsel %vm1657_vm2, %v7530_v33, 0.0  ;;  %v1483_v15 = vadd.f32 %v4736_v62, %v6507_v60  ;;  %v4739_v55 = vadd.f32 %v4738_v52, %v4737_v50  ;;  %v1621_v6 = vpop.f32.mrb[98].mxu1  ;;  %5385 = vmatprep.subr.bf16.mxu0 %v5861_v2 }
 0x1c1   :  { %v1700_v61 = vadd.f32 %v1699_v39, %v1698_v40  ;;  %v5008_v24 = vpop.f32.mrb[99].mxu1 }
 0x1c2   :  { %v1619_v18 = vadd.f32 %v1618_v8, %v1483_v15  ;;  %v1486_v22 = vadd.f32 %v4739_v55, %v6509_v0 }
 0x1c4   :  { %v1654_v11 = vmax.f32 %v1619_v18, 0.0  ;;  %v1622_v29 = vadd.f32 %v1621_v6, %v1486_v22  ;;  %v4740_v45 = vpop.f32.mrb[100].mxu0 }
 0x1c5   :  { %v4741_v38 = vpop.f32.mrb[101].mxu0 }
 0x1c6   :  { %v1701_v25 = vsel %vm1657_vm2, %v1654_v11, 0.0  ;;  %v1655_v33 = vmax.f32 %v1622_v29, 0.0  ;;  %v4742_v54 = vadd.f32 %v4741_v38, %v4740_v45  ;;  %v4743_v60 = vpop.f32.mrb[102].mxu0  ;;  %v1626_v50 = vpop.f32.mrb[100].mxu1 }
 0x1c7   :  { %v1702_v62 = vadd.f32 %v1701_v25, %v1700_v61  ;;  %v4744_v40 = vpop.f32.mrb[103].mxu0  ;;  %v5011_v24 = vpop.f32.mrb[101].mxu1 }
 0x1c8   :  { %v1703_v8 = vsel %vm1657_vm2, %v1655_v33, 0.0  ;;  %v1491_v0 = vadd.f32 %v4742_v54, %v6512_v17  ;;  %v1629_v39 = vpop.f32.mrb[102].mxu1 }
 0x1c9   :  { %v1704_v52 = vadd.f32 %v1703_v8, %v1702_v62  ;;  %v5012_v55 = vpop.f32.mrb[103].mxu1 }
 0x1ca   :  { %v1627_v15 = vadd.f32 %v1626_v50, %v1491_v0 }
 0x1cc   :  { %v1656_v58 = vmax.f32 %v1627_v15, 0.0 }
 0x1ce   :  { %v1705_v6 = vsel %vm1657_vm2, %v1656_v58, 0.0 }
 0x1cf   :  { %v1706_v18 = vadd.f32 %v1705_v6, %v1704_v52 }
 0x1d1   :  { %v1707_v22 = vrot.slane %v1706_v18, 4 }
 0x1d3   :  { %v1708_v29 = vadd.f32 %v1707_v22, %v1706_v18 }
 0x1d5   :  { %v1709_v45 = vrot.slane %v1708_v29, 2 }
 0x1d7   :  { %v1710_v38 = vadd.f32 %v1709_v45, %v1708_v29 }
 0x1d9   :  { %v1711_v25 = vrot.slane %v1710_v38, 1 }
 0x1db   :  { %v1712_v61 = vadd.f32 %v1711_v25, %v1710_v38 }
 0x1dd   :  { %v1714_v60 = vmul.f32 0.005, %v1712_v61 }
 0x1df   :  { %v6677_v40 = vsub.f32 %v1632_v37, %v1714_v60  ;;  %v6681_v17 = vsub.f32 %v1633_v46, %v1714_v60  ;;  %v6685_v54 = vsub.f32 %v1634_v3, %v1714_v60  ;;  %v6689_v62 = vsub.f32 %v1635_v53, %v1714_v60 }
 0x1e0   :  { %v6693_v50 = vsub.f32 %v1636_v23, %v1714_v60  ;;  %v6697_v31 = vsub.f32 %v1637_v5, %v1714_v60  ;;  %v6701_v37 = vsub.f32 %v1638_v7, %v1714_v60  ;;  %v6705_v42 = vsub.f32 %v1639_v21, %v1714_v60 }
 0x1e1   :  { %v6709_v46 = vsub.f32 %v1640_v48, %v1714_v60  ;;  %v6713_v63 = vsub.f32 %v1641_v41, %v1714_v60  ;;  %v6717_v3 = vsub.f32 %v1642_v56, %v1714_v60  ;;  %v6721_v4 = vsub.f32 %v1643_v59, %v1714_v60 }
 0x1e2   :  { %v6725_v53 = vsub.f32 %v1644_v57, %v1714_v60  ;;  %v6729_v28 = vsub.f32 %v1645_v13, %v1714_v60  ;;  %v6733_v23 = vsub.f32 %v1646_v47, %v1714_v60  ;;  %v6737_v34 = vsub.f32 %v1647_v32, %v1714_v60 }
 0x1e3   :  { %v6741_v5 = vsub.f32 %v1648_v26, %v1714_v60  ;;  %v6745_v7 = vsub.f32 %v7539_v1, %v1714_v60  ;;  %v6749_v21 = vsub.f32 %v7540_v9, %v1714_v60  ;;  %v6753_v48 = vsub.f32 %v7541_v43, %v1714_v60 }
 0x1e4   :  { %v6757_v41 = vsub.f32 %v7542_v36, %v1714_v60  ;;  %v6761_v56 = vsub.f32 %v7543_v14, %v1714_v60  ;;  %v6763_v20 = vsub.f32 %v1654_v11, %v1714_v60  ;;  %v6765_v59 = vsub.f32 %v1655_v33, %v1714_v60 }
 0x1e5   :  { %v6767_v51 = vsub.f32 %v1656_v58, %v1714_v60  ;;  %v1740_v57 = vmul.f32 %v6677_v40, %v6677_v40  ;;  %v1741_v44 = vmul.f32 %v6681_v17, %v6681_v17  ;;  %v1742_v13 = vmul.f32 %v6685_v54, %v6685_v54 }
 0x1e6   :  { %v1743_v30 = vmul.f32 %v6689_v62, %v6689_v62  ;;  %v1744_v16 = vmul.f32 %v6693_v50, %v6693_v50  ;;  %v1745_v12 = vmul.f32 %v6697_v31, %v6697_v31  ;;  %v1746_v10 = vmul.f32 %v6701_v37, %v6701_v37 }
 0x1e7   :  { %v1765_v47 = vsel %vm1657_vm2, %v1740_v57, 0.0  ;;  %v1766_v49 = vsel %vm1657_vm2, %v1741_v44, 0.0  ;;  %v1768_v26 = vsel %vm1657_vm2, %v1742_v13, 0.0  ;;  %v1747_v8 = vmul.f32 %v6705_v42, %v6705_v42 }
 0x1e8   :  { %v1767_v32 = vadd.f32 %v1766_v49, %v1765_v47  ;;  %v1770_v19 = vsel %vm1657_vm2, %v1743_v30, 0.0  ;;  %v1772_v35 = vsel %vm1657_vm2, %v1744_v16, 0.0  ;;  %v1774_v0 = vsel %vm1657_vm2, %v1745_v12, 0.0  ;;  %v2082_v49 = vld [vmem:[%s7544_s20 + $0x8] sm:$0xff] }
 0x1e9   :  { %v1748_v52 = vmul.f32 %v6709_v46, %v6709_v46  ;;  %v1776_v39 = vsel %vm1657_vm2, %v1746_v10, 0.0  ;;  %v1749_v55 = vmul.f32 %v6713_v63, %v6713_v63  ;;  %v1778_v58 = vsel %vm1657_vm2, %v1747_v8, 0.0  ;;  %4306 = vmatprep.mubr.msk.f32.mxu0 %vm2095_vm3, %v2082_v49 }
 0x1ea   :  { %v1769_v27 = vadd.f32 %v1768_v26, %v1767_v32  ;;  %v1750_v18 = vmul.f32 %v6717_v3, %v6717_v3  ;;  %v1751_v45 = vmul.f32 %v6721_v4, %v6721_v4  ;;  %v1752_v61 = vmul.f32 %v6725_v53, %v6725_v53 }
 0x1eb   :  { %v1780_v22 = vsel %vm1657_vm2, %v1748_v52, 0.0  ;;  %v1782_v38 = vsel %vm1657_vm2, %v1749_v55, 0.0  ;;  %v1753_v9 = vmul.f32 %v6729_v28, %v6729_v28  ;;  %v1754_v14 = vmul.f32 %v6733_v23, %v6733_v23 }
 0x1ec   :  { %v1771_v11 = vadd.f32 %v1770_v19, %v1769_v27  ;;  %v1784_v60 = vsel %vm1657_vm2, %v1750_v18, 0.0  ;;  %v1786_v43 = vsel %vm1657_vm2, %v1751_v45, 0.0  ;;  %v1788_v57 = vsel %vm1657_vm2, %v1752_v61, 0.0 }
 0x1ed   :  { %v1755_v13 = vmul.f32 %v6737_v34, %v6737_v34  ;;  %v1790_v30 = vsel %vm1657_vm2, %v1753_v9, 0.0  ;;  %v1756_v32 = vmul.f32 %v6741_v5, %v6741_v5  ;;  %v1792_v16 = vsel %vm1657_vm2, %v1754_v14, 0.0 }
 0x1ee   :  { %v1773_v33 = vadd.f32 %v1772_v35, %v1771_v11  ;;  %v1757_v27 = vmul.f32 %v6745_v7, %v6745_v7  ;;  %v1758_v11 = vmul.f32 %v6749_v21, %v6749_v21 }
 0x1ef   :  { %v1794_v12 = vsel %vm1657_vm2, %v1755_v13, 0.0  ;;  %v1796_v10 = vsel %vm1657_vm2, %v1756_v32, 0.0  ;;  %v4314_v13 = vld [vmem:[%s7506_s5 + $0x48] sm:$0xff]  ;;  %v4316_v32 = vld [vmem:[%s7506_s5 + $0x58] sm:$0xff] }
 0x1f0   :  { %v1775_v24 = vadd.f32 %v1774_v0, %v1773_v33  ;;  %v1759_v33 = vmul.f32 %v6753_v48, %v6753_v48  ;;  %v1798_v8 = vsel %vm1657_vm2, %v1757_v27, 0.0  ;;  %v1800_v52 = vsel %vm1657_vm2, %v1758_v11, 0.0 }
 0x1f2   :  { %v1777_v15 = vadd.f32 %v1776_v39, %v1775_v24  ;;  %v1760_v24 = vmul.f32 %v6757_v41, %v6757_v41  ;;  %v1802_v55 = vsel %vm1657_vm2, %v1759_v33, 0.0  ;;  %v1821_v33 = vld [vmem:[%s7507_s3] sm:$0x1] }
 0x1f4   :  { %v1779_v6 = vadd.f32 %v1778_v58, %v1777_v15  ;;  %v1761_v15 = vmul.f32 %v6761_v56, %v6761_v56  ;;  %v1804_v18 = vsel %vm1657_vm2, %v1760_v24, 0.0 }
 0x1f6   :  { %v1781_v29 = vadd.f32 %v1780_v22, %v1779_v6  ;;  %v1762_v6 = vmul.f32 %v6763_v20, %v6763_v20  ;;  %v1806_v45 = vsel %vm1657_vm2, %v1761_v15, 0.0 }
 0x1f8   :  { %v1783_v25 = vadd.f32 %v1782_v38, %v1781_v29  ;;  %v1763_v29 = vmul.f32 %v6765_v59, %v6765_v59  ;;  %v1808_v61 = vsel %vm1657_vm2, %v1762_v6, 0.0 }
 0x1fa   :  { %v1785_v1 = vadd.f32 %v1784_v60, %v1783_v25  ;;  %v1764_v25 = vmul.f32 %v6767_v51, %v6767_v51 }
 0x1fc   :  { %v1787_v36 = vadd.f32 %v1786_v43, %v1785_v1  ;;  %v1810_v1 = vsel %vm1657_vm2, %v1763_v29, 0.0  ;;  %v1812_v43 = vsel %vm1657_vm2, %v1764_v25, 0.0 }
 0x1fe   :  { %v1789_v44 = vadd.f32 %v1788_v57, %v1787_v36 }
 0x200   :  { %v1791_v47 = vadd.f32 %v1790_v30, %v1789_v44  ;;  %v4313_v44 = vld [vmem:[%s7506_s5 + $0x40] sm:$0xff]  ;;  %v4315_v30 = vld [vmem:[%s7506_s5 + $0x50] sm:$0xff] }
 0x201   :  { %v5422_v49 = vpack.c.bf16 %v4314_v13, %v4313_v44 }
 0x202   :  { %v1793_v26 = vadd.f32 %v1792_v16, %v1791_v47  ;;  %v5426_v16 = vpack.c.bf16 %v4316_v32, %v4315_v30 }
 0x203   :  { %5423 = vmatprep.subr.bf16.mxu1 %v5422_v49 }
 0x204   :  { %v1795_v19 = vadd.f32 %v1794_v12, %v1793_v26  ;;  %5425 = vmatpush3.bf16.msra.mxu1 %v5422_v49 }
 0x205   :  { %5427 = vmatprep.subr.bf16.mxu1 %v5426_v16 }
 0x206   :  { %v1797_v35 = vadd.f32 %v1796_v10, %v1795_v19  ;;  %v1826_v10 = vlaneseq }
 0x208   :  { %v1799_v0 = vadd.f32 %v1798_v8, %v1797_v35  ;;  %5429 = vmatpush3.bf16.msra.mxu1 %v5426_v16  ;;  %v1827_v35 = vshrl.u32 %v1826_v10, 7 }
 0x20a   :  { %v1801_v39 = vadd.f32 %v1800_v52, %v1799_v0  ;;  %v1828_v8 = vsub.s32 0, %v1827_v35 }
 0x20c   :  { %v1803_v58 = vadd.f32 %v1802_v55, %v1801_v39 }
 0x20e   :  { %v1805_v22 = vadd.f32 %v1804_v18, %v1803_v58 }
 0x210   :  { %v1807_v38 = vadd.f32 %v1806_v45, %v1805_v22 }
 0x212   :  { %v1809_v60 = vadd.f32 %v1808_v61, %v1807_v38 }
 0x214   :  { %v1811_v9 = vadd.f32 %v1810_v1, %v1809_v60 }
 0x216   :  { %v1813_v36 = vadd.f32 %v1812_v43, %v1811_v9 }
 0x218   :  { %v1814_v14 = vrot.slane %v1813_v36, 4 }
 0x21a   :  { %v1815_v57 = vadd.f32 %v1814_v14, %v1813_v36 }
 0x21c   :  { %v1816_v47 = vrot.slane %v1815_v57, 2 }
 0x21e   :  { %v1817_v26 = vadd.f32 %v1816_v47, %v1815_v57 }
 0x220   :  { %v1818_v27 = vrot.slane %v1817_v26, 1 }
 0x222   :  { %v1819_v12 = vadd.f32 %v1818_v27, %v1817_v26 }
 0x224   :  { %v1820_v19 = vmul.f32 0.005, %v1819_v12 }
 0x226   :  { %v1822_v11 = vadd.f32 1e-05, %v1820_v19 }
 0x228   :  { %5851 = vrsqrt.f32 %v1822_v11 }
 0x232   :  { %v5852_v0 = vpop.eup %5851 }
 0x233   :  { %v1824_v24 = vmul.f32 %v5852_v0, %v1821_v33 }
 0x235   :  { %v1829_v52 = vrot.slane %v1824_v24, %v1828_v8 }
 0x237   :  { %v6864_v39 = vmul.f32 %v1829_v52, %v6709_v46  ;;  %v6867_v15 = vmul.f32 %v1829_v52, %v6713_v63  ;;  %v1841_v55 = vmul.f32 %v1829_v52, %v6717_v3  ;;  %v1842_v58 = vmul.f32 %v1829_v52, %v6721_v4  ;;  %v4304_v46 = vld [vmem:[%s7508_s4] ss:$0 sm:$0xff] }
 0x238   :  { %v1843_v6 = vmul.f32 %v1829_v52, %v6725_v53  ;;  %v1844_v18 = vmul.f32 %v1829_v52, %v6729_v28  ;;  %v1845_v22 = vmul.f32 %v1829_v52, %v6733_v23  ;;  %v1846_v29 = vmul.f32 %v1829_v52, %v6737_v34 }
 0x239   :  { %v1847_v45 = vmul.f32 %v1829_v52, %v6741_v5  ;;  %v1848_v63 = vmul.f32 %v1829_v52, %v6745_v7  ;;  %v1849_v3 = vmul.f32 %v1829_v52, %v6749_v21  ;;  %v1850_v4 = vmul.f32 %v1829_v52, %v6753_v48 }
 0x23a   :  { %v1851_v53 = vmul.f32 %v1829_v52, %v6757_v41  ;;  %v1852_v28 = vmul.f32 %v1829_v52, %v6761_v56  ;;  %v1853_v23 = vmul.f32 %v1829_v52, %v6763_v20  ;;  %v1854_v34 = vmul.f32 %v1829_v52, %v6765_v59 }
 0x23b   :  { %v1855_v38 = vmul.f32 %v1829_v52, %v6767_v51  ;;  %v1873_v25 = vadd.f32 %v4304_v46, %v1841_v55  ;;  %v1874_v61 = vadd.f32 %v4304_v46, %v1842_v58  ;;  %v1875_v60 = vadd.f32 %v4304_v46, %v1843_v6 }
 0x23c   :  { %v1876_v5 = vadd.f32 %v4304_v46, %v1844_v18  ;;  %v1877_v1 = vadd.f32 %v4304_v46, %v1845_v22  ;;  %v1878_v7 = vadd.f32 %v4304_v46, %v1846_v29  ;;  %v1879_v9 = vadd.f32 %v4304_v46, %v1847_v45 }
 0x23d   :  { %v1880_v21 = vadd.f32 %v4304_v46, %v1848_v63  ;;  %v1881_v43 = vadd.f32 %v4304_v46, %v1849_v3  ;;  %v1882_v48 = vadd.f32 %v4304_v46, %v1850_v4  ;;  %v1883_v36 = vadd.f32 %v4304_v46, %v1851_v53  ;;  %1900 = vst.msk [vmem:[#allocation2 + $0x60] sm:$0xff] %vm1657_vm2, %v1875_v60 }
 0x23e   :  { %1898 = vst.msk [vmem:[#allocation2 + $0x50] sm:$0xff] %vm1657_vm2, %v1873_v25  ;;  %1899 = vst.msk [vmem:[#allocation2 + $0x58] sm:$0xff] %vm1657_vm2, %v1874_v61  ;;  %v1884_v41 = vadd.f32 %v4304_v46, %v1852_v28  ;;  %v1885_v56 = vadd.f32 %v4304_v46, %v1853_v23  ;;  %v1886_v20 = vadd.f32 %v4304_v46, %v1854_v34 }
 0x23f   :  { %v1887_v59 = vadd.f32 %v4304_v46, %v1855_v38  ;;  %1901 = vst.msk [vmem:[#allocation2 + $0x68] sm:$0xff] %vm1657_vm2, %v1876_v5  ;;  %1902 = vst.msk [vmem:[#allocation2 + $0x70] sm:$0xff] %vm1657_vm2, %v1877_v1  ;;  %v1831_v51 = vmul.f32 %v1829_v52, %v6677_v40  ;;  %v1832_v14 = vmul.f32 %v1829_v52, %v6681_v17 }
 0x240   :  { %1903 = vst.msk [vmem:[#allocation2 + $0x78] sm:$0xff] %vm1657_vm2, %v1878_v7  ;;  %1904 = vst.msk [vmem:[#allocation2 + $0x80] sm:$0xff] %vm1657_vm2, %v1879_v9  ;;  %v1833_v57 = vmul.f32 %v1829_v52, %v6685_v54  ;;  %v1834_v44 = vmul.f32 %v1829_v52, %v6689_v62  ;;  %v1835_v13 = vmul.f32 %v1829_v52, %v6693_v50 }
 0x241   :  { %1905 = vst.msk [vmem:[#allocation2 + $0x88] sm:$0xff] %vm1657_vm2, %v1880_v21  ;;  %1906 = vst.msk [vmem:[#allocation2 + $0x90] sm:$0xff] %vm1657_vm2, %v1881_v43  ;;  %v1836_v30 = vmul.f32 %v1829_v52, %v6697_v31  ;;  %v1837_v40 = vmul.f32 %v1829_v52, %v6701_v37  ;;  %v1838_v17 = vmul.f32 %v1829_v52, %v6705_v42 }
 0x242   :  { %1907 = vst.msk [vmem:[#allocation2 + $0x98] sm:$0xff] %vm1657_vm2, %v1882_v48  ;;  %1908 = vst.msk [vmem:[#allocation2 + $0xa0] sm:$0xff] %vm1657_vm2, %v1883_v36  ;;  %v1863_v47 = vadd.f32 %v4304_v46, %v1831_v51  ;;  %v1864_v54 = vadd.f32 %v4304_v46, %v1832_v14  ;;  %v1865_v49 = vadd.f32 %v4304_v46, %v1833_v57 }
 0x243   :  { %1909 = vst.msk [vmem:[#allocation2 + $0xa8] sm:$0xff] %vm1657_vm2, %v1884_v41  ;;  %1910 = vst.msk [vmem:[#allocation2 + $0xb0] sm:$0xff] %vm1657_vm2, %v1885_v56  ;;  %v1866_v62 = vadd.f32 %v4304_v46, %v1834_v44  ;;  %v1867_v32 = vadd.f32 %v4304_v46, %v1835_v13  ;;  %v1868_v16 = vadd.f32 %v4304_v46, %v1836_v30 }
 0x244   :  { %1911 = vst.msk [vmem:[#allocation2 + $0xb8] sm:$0xff] %vm1657_vm2, %v1886_v20  ;;  %1912 = vst.msk [vmem:[#allocation2 + $0xc0] sm:$0xff] %vm1657_vm2, %v1887_v59  ;;  %v1869_v26 = vadd.f32 %v4304_v46, %v1837_v40  ;;  %v1870_v27 = vadd.f32 %v4304_v46, %v1838_v17  ;;  %v1871_v50 = vadd.f32 %v4304_v46, %v6864_v39 }
 0x245   :  { %1888 = vst.msk [vmem:[#allocation2] sm:$0xff] %vm1657_vm2, %v1863_v47  ;;  %1889 = vst.msk [vmem:[#allocation2 + $0x8] sm:$0xff] %vm1657_vm2, %v1864_v54  ;;  %v1872_v31 = vadd.f32 %v4304_v46, %v6867_v15  ;;  %v1994_v57 = vld [vmem:[#allocation2 + $0x52] sm:$0xff] }
 0x246   :  { %1890 = vst.msk [vmem:[#allocation2 + $0x10] sm:$0xff] %vm1657_vm2, %v1865_v49  ;;  %1891 = vst.msk [vmem:[#allocation2 + $0x18] sm:$0xff] %vm1657_vm2, %v1866_v62  ;;  %v2018_v47 = vld [vmem:[#allocation2 + $0x53] sm:$0xff] }
 0x247   :  { %1892 = vst.msk [vmem:[#allocation2 + $0x20] sm:$0xff] %vm1657_vm2, %v1867_v32  ;;  %1893 = vst.msk [vmem:[#allocation2 + $0x28] sm:$0xff] %vm1657_vm2, %v1868_v16 }
 0x248   :  { %1894 = vst.msk [vmem:[#allocation2 + $0x30] sm:$0xff] %vm1657_vm2, %v1869_v26  ;;  %1895 = vst.msk [vmem:[#allocation2 + $0x38] sm:$0xff] %vm1657_vm2, %v1870_v27 }
 0x249   :  { %1896 = vst.msk [vmem:[#allocation2 + $0x40] sm:$0xff] %vm1657_vm2, %v1871_v50  ;;  %1897 = vst.msk [vmem:[#allocation2 + $0x48] sm:$0xff] %vm1657_vm2, %v1872_v31 }
 0x24c   :  { %v1913_v37 = vld [vmem:[#allocation2] sm:$0xff]  ;;  %v1914_v42 = vld [vmem:[#allocation2 + $0x8] sm:$0xff] }
 0x24d   :  { %v1937_v12 = vld [vmem:[#allocation2 + $0x1] sm:$0xff]  ;;  %v1938_v19 = vld [vmem:[#allocation2 + $0x9] sm:$0xff]  ;;  %v1986_v35 = vld [vmem:[#allocation2 + $0x12] sm:$0xff] }
 0x24e   :  { %v1961_v11 = vmax.f32 %v1913_v37, %v1937_v12  ;;  %v1985_v10 = vld [vmem:[#allocation2 + $0xa] sm:$0xff]  ;;  %v1962_v33 = vmax.f32 %v1914_v42, %v1938_v19  ;;  %v2010_v0 = vld [vmem:[#allocation2 + $0x13] sm:$0xff]  ;;  %v1988_v29 = vld [vmem:[#allocation2 + $0x22] sm:$0xff]  ;;  %v2042_v19 = vmax.f32 %v1994_v57, %v2018_v47 }
 0x24f   :  { %v2009_v8 = vld [vmem:[#allocation2 + $0xb] sm:$0xff]  ;;  %v2034_v39 = vmax.f32 %v1986_v35, %v2010_v0  ;;  %v1916_v15 = vld [vmem:[#allocation2 + $0x18] sm:$0xff]  ;;  %v2012_v3 = vld [vmem:[#allocation2 + $0x23] sm:$0xff] }
 0x250   :  { %v1915_v24 = vld [vmem:[#allocation2 + $0x10] sm:$0xff]  ;;  %v2033_v52 = vmax.f32 %v1985_v10, %v2009_v8  ;;  %v1940_v58 = vld [vmem:[#allocation2 + $0x19] sm:$0xff]  ;;  %v1918_v28 = vld [vmem:[#allocation2 + $0x28] sm:$0xff]  ;;  %v2036_v23 = vmax.f32 %v1988_v29, %v2012_v3 }
 0x251   :  { %v1939_v55 = vld [vmem:[#allocation2 + $0x11] sm:$0xff]  ;;  %v1964_v18 = vmax.f32 %v1916_v15, %v1940_v58  ;;  %v1987_v22 = vld [vmem:[#allocation2 + $0x1a] sm:$0xff]  ;;  %v2058_v63 = vmax.f32 %v1962_v33, %v2034_v39  ;;  %v1942_v38 = vld [vmem:[#allocation2 + $0x29] sm:$0xff] }
 0x252   :  { %v1963_v6 = vmax.f32 %v1915_v24, %v1939_v55  ;;  %v2011_v46 = vld [vmem:[#allocation2 + $0x1b] sm:$0xff]  ;;  %v2057_v45 = vmax.f32 %v1961_v11, %v2033_v52  ;;  %v1989_v25 = vld [vmem:[#allocation2 + $0x2a] sm:$0xff]  ;;  %v1966_v1 = vmax.f32 %v1918_v28, %v1942_v38  ;;  %v1990_v7 = vld [vmem:[#allocation2 + $0x32] sm:$0xff] }
 0x253   :  { %v2035_v4 = vmax.f32 %v1987_v22, %v2011_v46  ;;  %v1917_v53 = vld [vmem:[#allocation2 + $0x20] sm:$0xff]  ;;  %v2013_v9 = vld [vmem:[#allocation2 + $0x2b] sm:$0xff]  ;;  %v2014_v21 = vld [vmem:[#allocation2 + $0x33] sm:$0xff]  ;;  %v2060_v43 = vmax.f32 %v1964_v18, %v2036_v23 }
 0x254   :  { %v1941_v34 = vld [vmem:[#allocation2 + $0x21] sm:$0xff]  ;;  %v5386_v61 = vpack.c.bf16 %v2058_v63, %v2057_v45  ;;  %v2037_v48 = vmax.f32 %v1989_v25, %v2013_v9  ;;  %v2038_v36 = vmax.f32 %v1990_v7, %v2014_v21  ;;  %v1919_v41 = vld [vmem:[#allocation2 + $0x30] sm:$0xff]  ;;  %v1920_v56 = vld [vmem:[#allocation2 + $0x38] sm:$0xff] }
 0x255   :  { %v2059_v60 = vmax.f32 %v1963_v6, %v2035_v4  ;;  %v1965_v5 = vmax.f32 %v1917_v53, %v1941_v34  ;;  %v1943_v20 = vld [vmem:[#allocation2 + $0x31] sm:$0xff]  ;;  %v1944_v59 = vld [vmem:[#allocation2 + $0x39] sm:$0xff]  ;;  %v1992_v14 = vld [vmem:[#allocation2 + $0x42] sm:$0xff] }
 0x256   :  { %5387 = vmatpush1.bf16.msra.mxu0 %v5386_v61  ;;  %v1991_v51 = vld [vmem:[#allocation2 + $0x3a] sm:$0xff]  ;;  %v2062_v13 = vmax.f32 %v1966_v1, %v2038_v36  ;;  %v1967_v30 = vmax.f32 %v1919_v41, %v1943_v20  ;;  %v2016_v17 = vld [vmem:[#allocation2 + $0x43] sm:$0xff]  ;;  %v1968_v49 = vmax.f32 %v1920_v56, %v1944_v59  ;;  %v2017_v37 = vld [vmem:[#allocation2 + $0x4b] sm:$0xff] }
 0x257   :  { %5388 = vmatprep.subr.bf16.mxu0 %v5861_v2  ;;  %v2061_v44 = vmax.f32 %v1965_v5, %v2037_v48  ;;  %v2015_v40 = vld [vmem:[#allocation2 + $0x3b] sm:$0xff]  ;;  %v5389_v54 = vpack.c.bf16 %v2060_v43, %v2059_v60  ;;  %v2040_v32 = vmax.f32 %v1992_v14, %v2016_v17  ;;  %v1922_v26 = vld [vmem:[#allocation2 + $0x48] sm:$0xff]  ;;  %v1923_v11 = vld [vmem:[#allocation2 + $0x50] sm:$0xff] }
 0x258   :  { %v2039_v62 = vmax.f32 %v1991_v51, %v2015_v40  ;;  %v1921_v16 = vld [vmem:[#allocation2 + $0x40] sm:$0xff]  ;;  %v1946_v50 = vld [vmem:[#allocation2 + $0x49] sm:$0xff]  ;;  %v1924_v10 = vld [vmem:[#allocation2 + $0x58] sm:$0xff] }
 0x259   :  { %v1945_v27 = vld [vmem:[#allocation2 + $0x41] sm:$0xff]  ;;  %v1993_v31 = vld [vmem:[#allocation2 + $0x4a] sm:$0xff]  ;;  %v5392_v42 = vpack.c.bf16 %v2062_v13, %v2061_v44  ;;  %v2064_v8 = vmax.f32 %v1968_v49, %v2040_v32  ;;  %v1970_v0 = vmax.f32 %v1922_v26, %v1946_v50  ;;  %v1948_v52 = vld [vmem:[#allocation2 + $0x59] sm:$0xff] }
 0x25a   :  { %5390 = vmatpush1.bf16.msra.mxu0 %v5389_v54  ;;  %v1969_v12 = vmax.f32 %v1921_v16, %v1945_v27  ;;  %v1947_v35 = vld [vmem:[#allocation2 + $0x51] sm:$0xff]  ;;  %v2063_v33 = vmax.f32 %v1967_v30, %v2039_v62  ;;  %v2041_v24 = vmax.f32 %v1993_v31, %v2017_v37  ;;  %v1995_v39 = vld [vmem:[#allocation2 + $0x5a] sm:$0xff]  ;;  %v1996_v55 = vld [vmem:[#allocation2 + $0x62] sm:$0xff]  ;;  %v1972_v29 = vmax.f32 %v1924_v10, %v1948_v52 }
 0x25b   :  { %5391 = vmatprep.subr.bf16.mxu0 %v5861_v2  ;;  %v2019_v15 = vld [vmem:[#allocation2 + $0x5b] sm:$0xff]  ;;  %v2020_v58 = vld [vmem:[#allocation2 + $0x63] sm:$0xff]  ;;  %v1971_v22 = vmax.f32 %v1923_v11, %v1947_v35  ;;  %v2066_v28 = vmax.f32 %v1970_v0, %v2042_v19  ;;  %v1998_v34 = vld [vmem:[#allocation2 + $0x72] sm:$0xff] }
 0x25c   :  { %v1925_v6 = vld [vmem:[#allocation2 + $0x60] sm:$0xff]  ;;  %v1926_v18 = vld [vmem:[#allocation2 + $0x68] sm:$0xff]  ;;  %v2043_v46 = vmax.f32 %v1995_v39, %v2019_v15  ;;  %v5395_v4 = vpack.c.bf16 %v2064_v8, %v2063_v33  ;;  %v2065_v53 = vmax.f32 %v1969_v12, %v2041_v24  ;;  %v2044_v23 = vmax.f32 %v1996_v55, %v2020_v58  ;;  %v2022_v25 = vld [vmem:[#allocation2 + $0x73] sm:$0xff] }
 0x25d   :  { %v1949_v45 = vld [vmem:[#allocation2 + $0x61] sm:$0xff]  ;;  %v1950_v63 = vld [vmem:[#allocation2 + $0x69] sm:$0xff]  ;;  %v2046_v1 = vmax.f32 %v1998_v34, %v2022_v25  ;;  %v1928_v9 = vld [vmem:[#allocation2 + $0x78] sm:$0xff] }
 0x25e   :  { %5393 = vmatpush1.bf16.msra.mxu0 %v5392_v42  ;;  %v1997_v3 = vld [vmem:[#allocation2 + $0x6a] sm:$0xff]  ;;  %v1973_v61 = vmax.f32 %v1925_v6, %v1949_v45  ;;  %v1974_v60 = vmax.f32 %v1926_v18, %v1950_v63  ;;  %v5398_v21 = vpack.c.bf16 %v2066_v28, %v2065_v53  ;;  %v2067_v43 = vmax.f32 %v1971_v22, %v2043_v46  ;;  %v1999_v41 = vld [vmem:[#allocation2 + $0x7a] sm:$0xff]  ;;  %v2000_v59 = vld [vmem:[#allocation2 + $0x82] sm:$0xff] }
 0x25f   :  { %5394 = vmatprep.subr.bf16.mxu0 %v5861_v2  ;;  %v2021_v38 = vld [vmem:[#allocation2 + $0x6b] sm:$0xff]  ;;  %v2068_v48 = vmax.f32 %v1972_v29, %v2044_v23  ;;  %v2023_v56 = vld [vmem:[#allocation2 + $0x7b] sm:$0xff]  ;;  %v2024_v51 = vld [vmem:[#allocation2 + $0x83] sm:$0xff] }
 0x260   :  { %v2045_v5 = vmax.f32 %v1997_v3, %v2021_v38  ;;  %v1927_v7 = vld [vmem:[#allocation2 + $0x70] sm:$0xff]  ;;  %v1952_v20 = vld [vmem:[#allocation2 + $0x79] sm:$0xff]  ;;  %v2070_v57 = vmax.f32 %v1974_v60, %v2046_v1  ;;  %v2047_v13 = vmax.f32 %v1999_v41, %v2023_v56  ;;  %v1930_v40 = vld [vmem:[#allocation2 + $0x88] sm:$0xff]  ;;  %v2048_v54 = vmax.f32 %v2000_v59, %v2024_v51 }
 0x261   :  { %v1951_v36 = vld [vmem:[#allocation2 + $0x71] sm:$0xff]  ;;  %v1929_v30 = vld [vmem:[#allocation2 + $0x80] sm:$0xff]  ;;  %v5401_v17 = vpack.c.bf16 %v2068_v48, %v2067_v43  ;;  %v1976_v47 = vmax.f32 %v1928_v9, %v1952_v20  ;;  %v1954_v62 = vld [vmem:[#allocation2 + $0x89] sm:$0xff] }
 0x262   :  { %5396 = vmatpush1.bf16.msra.mxu0 %v5395_v4  ;;  %v2069_v14 = vmax.f32 %v1973_v61, %v2045_v5  ;;  %v1975_v44 = vmax.f32 %v1927_v7, %v1951_v36  ;;  %v1953_v49 = vld [vmem:[#allocation2 + $0x81] sm:$0xff]  ;;  %v2001_v32 = vld [vmem:[#allocation2 + $0x8a] sm:$0xff]  ;;  %v2002_v16 = vld [vmem:[#allocation2 + $0x92] sm:$0xff]  ;;  %v1978_v33 = vmax.f32 %v1930_v40, %v1954_v62 }
 0x263   :  { %5397 = vmatprep.subr.bf16.mxu0 %v5861_v2  ;;  %v2025_v26 = vld [vmem:[#allocation2 + $0x8b] sm:$0xff]  ;;  %v2026_v27 = vld [vmem:[#allocation2 + $0x93] sm:$0xff]  ;;  %v1977_v12 = vmax.f32 %v1929_v30, %v1953_v49  ;;  %v2072_v35 = vmax.f32 %v1976_v47, %v2048_v54  ;;  %v2004_v24 = vld [vmem:[#allocation2 + $0xa2] sm:$0xff] }
 0x264   :  { %v1931_v50 = vld [vmem:[#allocation2 + $0x90] sm:$0xff]  ;;  %v1932_v31 = vld [vmem:[#allocation2 + $0x98] sm:$0xff]  ;;  %v5404_v37 = vpack.c.bf16 %v2070_v57, %v2069_v14  ;;  %v2071_v42 = vmax.f32 %v1975_v44, %v2047_v13  ;;  %v2049_v8 = vmax.f32 %v2001_v32, %v2025_v26  ;;  %v2050_v0 = vmax.f32 %v2002_v16, %v2026_v27  ;;  %v2028_v39 = vld [vmem:[#allocation2 + $0xa3] sm:$0xff] }
 0x265   :  { %v1955_v19 = vld [vmem:[#allocation2 + $0x91] sm:$0xff]  ;;  %v1956_v11 = vld [vmem:[#allocation2 + $0x99] sm:$0xff]  ;;  %v2052_v6 = vmax.f32 %v2004_v24, %v2028_v39  ;;  %v1934_v22 = vld [vmem:[#allocation2 + $0xa8] sm:$0xff] }
 0x266   :  { %5399 = vmatpush1.bf16.msra.mxu0 %v5398_v21  ;;  %v2003_v10 = vld [vmem:[#allocation2 + $0x9a] sm:$0xff]  ;;  %v1979_v15 = vmax.f32 %v1931_v50, %v1955_v19  ;;  %v1980_v55 = vmax.f32 %v1932_v31, %v1956_v11  ;;  %v5407_v29 = vpack.c.bf16 %v2072_v35, %v2071_v42  ;;  %v2073_v46 = vmax.f32 %v1977_v12, %v2049_v8  ;;  %v2005_v3 = vld [vmem:[#allocation2 + $0xaa] sm:$0xff]  ;;  %v2006_v28 = vld [vmem:[#allocation2 + $0xb2] sm:$0xff] }
 0x267   :  { %5400 = vmatprep.subr.bf16.mxu0 %v5861_v2  ;;  %v2027_v52 = vld [vmem:[#allocation2 + $0x9b] sm:$0xff]  ;;  %v2074_v45 = vmax.f32 %v1978_v33, %v2050_v0  ;;  %v2029_v4 = vld [vmem:[#allocation2 + $0xab] sm:$0xff]  ;;  %v2030_v23 = vld [vmem:[#allocation2 + $0xb3] sm:$0xff]  ;;  %v7545_v11 = vmov 0.0  }
 0x268   :  { %v2051_v58 = vmax.f32 %v2003_v10, %v2027_v52  ;;  %v1933_v18 = vld [vmem:[#allocation2 + $0xa0] sm:$0xff]  ;;  %v1958_v53 = vld [vmem:[#allocation2 + $0xa9] sm:$0xff]  ;;  %v2076_v38 = vmax.f32 %v1980_v55, %v2052_v6  ;;  %v2053_v61 = vmax.f32 %v2005_v3, %v2029_v4  ;;  %v1936_v5 = vld [vmem:[#allocation2 + $0xb8] sm:$0x1f]  ;;  %v2054_v9 = vmax.f32 %v2006_v28, %v2030_v23 }
 0x269   :  { %v1957_v63 = vld [vmem:[#allocation2 + $0xa1] sm:$0xff]  ;;  %v1935_v60 = vld [vmem:[#allocation2 + $0xb0] sm:$0xff]  ;;  %v5410_v1 = vpack.c.bf16 %v2074_v45, %v2073_v46  ;;  %v1982_v7 = vmax.f32 %v1934_v22, %v1958_v53  ;;  %v1960_v43 = vld [vmem:[#allocation2 + $0xb9] sm:$0x1f] }
 0x26a   :  { %5402 = vmatpush1.bf16.msra.mxu0 %v5401_v17  ;;  %v2075_v34 = vmax.f32 %v1979_v15, %v2051_v58  ;;  %v1981_v25 = vmax.f32 %v1933_v18, %v1957_v63  ;;  %v1959_v21 = vld [vmem:[#allocation2 + $0xb1] sm:$0xff]  ;;  %v2007_v48 = vld [vmem:[#allocation2 + $0xba] sm:$0xff]  ;;  %v2008_v36 = vld [vmem:[#allocation2 + $0xc2] sm:$0x1f]  ;;  %v1984_v57 = vmax.f32 %v1936_v5, %v1960_v43 }
 0x26b   :  { %5403 = vmatprep.subr.bf16.mxu0 %v5861_v2  ;;  %v2031_v41 = vld [vmem:[#allocation2 + $0xbb] sm:$0xff]  ;;  %v2032_v56 = vld [vmem:[#allocation2 + $0xc3] sm:$0x1f]  ;;  %v1983_v51 = vmax.f32 %v1935_v60, %v1959_v21  ;;  %v2078_v14 = vmax.f32 %v1982_v7, %v2054_v9  ;;  %v2083_v62 = vld [vmem:[%s7544_s20 + $0x10] sm:$0xff] }
 0x26c   :  { %v5413_v20 = vpack.c.bf16 %v2076_v38, %v2075_v34  ;;  %v2077_v59 = vmax.f32 %v1981_v25, %v2053_v61  ;;  %v2055_v44 = vmax.f32 %v2007_v48, %v2031_v41  ;;  %v2056_v13 = vmax.f32 %v2008_v36, %v2032_v56  ;;  %v2081_v54 = vld [vmem:[%s7544_s20] sm:$0xff]  ;;  %v2084_v49 = vld [vmem:[%s7544_s20 + $0x18] sm:$0xff]  ;;  %v2086_v32 = vld [vmem:[%s7544_s20 + $0x28] sm:$0xff] }
 0x26d   :  { %v2085_v16 = vld [vmem:[%s7544_s20 + $0x20] sm:$0xff]  ;;  %v2088_v26 = vld [vmem:[%s7544_s20 + $0x38] sm:$0xff]  ;;  %v2087_v27 = vld [vmem:[%s7544_s20 + $0x30] sm:$0xff] }
 0x26e   :  { %5405 = vmatpush1.bf16.msra.mxu0 %v5404_v37  ;;  %v5416_v30 = vpack.c.bf16 %v2078_v14, %v2077_v59  ;;  %v2079_v40 = vmax.f32 %v1983_v51, %v2055_v44  ;;  %v2080_v17 = vmax.f32 %v1984_v57, %v2056_v13  ;;  %v2090_v50 = vld [vmem:[%s7544_s20 + $0x48] sm:$0xff]  ;;  %v2089_v31 = vld [vmem:[%s7544_s20 + $0x40] sm:$0xff]  ;;  %v2092_v37 = vld [vmem:[%s7544_s20 + $0x58] sm:$0xff] }
 0x26f   :  { %5406 = vmatprep.subr.bf16.mxu0 %v5861_v2  ;;  %v2091_v42 = vld [vmem:[%s7544_s20 + $0x50] sm:$0xff]  ;;  %v2094_v12 = vld [vmem:[%s7544_s20 + $0x68] sm:$0x3]  ;;  %v2093_v19 = vld [vmem:[%s7544_s20 + $0x60] sm:$0x3] }
 0x270   :  { %v5419_v47 = vpack.c.bf16 %v2080_v17, %v2079_v40  ;;  %v4317_v10 = vld [vmem:[%s7506_s5 + $0x60] sm:$0xff]  ;;  %v4318_v35 = vld [vmem:[%s7506_s5 + $0x68] sm:$0xff]  ;;  %v4319_v33 = vld [vmem:[%s7506_s5 + $0x70] sm:$0xff] }
 0x271   :  { %v5430_v8 = vpack.c.bf16 %v4318_v35, %v4317_v10  ;;  %v4320_v0 = vld [vmem:[%s7506_s5 + $0x78] sm:$0xff]  ;;  %v2235_v52 = vld [vmem:[%s7506_s5] sm:$0xff]  ;;  %v2236_v39 = vld [vmem:[%s7506_s5 + $0x8] sm:$0xff] }
 0x272   :  { %5408 = vmatpush1.bf16.msra.mxu0 %v5407_v29  ;;  %v5434_v24 = vpack.c.bf16 %v4320_v0, %v4319_v33  ;;  %v5438_v15 = vpack.c.bf16 %v2236_v39, %v2235_v52  ;;  %v4362_v55 = vld [vmem:[%s7509_s7 + $0x40] sm:$0xff]  ;;  %v4363_v58 = vld [vmem:[%s7509_s7 + $0x48] sm:$0xff]  ;;  %v2237_v53 = vld [vmem:[%s7506_s5 + $0x10] sm:$0xff] }
 0x273   :  { %5409 = vmatprep.subr.bf16.mxu0 %v5861_v2  ;;  %5431 = vmatprep.subr.bf16.mxu1 %v5430_v8  ;;  %v5487_v6 = vpack.c.bf16 %v4363_v58, %v4362_v55  ;;  %v2238_v28 = vld [vmem:[%s7506_s5 + $0x18] sm:$0xff]  ;;  %v2239_v61 = vld [vmem:[%s7506_s5 + $0x20] sm:$0xff]  ;;  %v2240_v60 = vld [vmem:[%s7506_s5 + $0x28] sm:$0xff] }
 0x274   :  { %5433 = vmatpush3.bf16.msra.mxu1 %v5430_v8  ;;  %v5442_v34 = vpack.c.bf16 %v2238_v28, %v2237_v53  ;;  %v2241_v21 = vld [vmem:[%s7506_s5 + $0x30] sm:$0xff]  ;;  %v2242_v43 = vld [vmem:[%s7506_s5 + $0x38] sm:$0xff]  ;;  %v4334_v59 = vld [vmem:[%s7506_s5 + $0x88] sm:$0xff] }
 0x275   :  { %5435 = vmatprep.subr.bf16.mxu1 %v5434_v24  ;;  %v5450_v36 = vpack.c.bf16 %v2242_v43, %v2241_v21  ;;  %v4335_v13 = vld [vmem:[%s7506_s5 + $0x90] sm:$0xff]  ;;  %v4350_v33 = vld [vmem:[%s7506_s5 + $0xd8] sm:$0xff]  ;;  %v4352_v52 = vld [vmem:[%s7506_s5 + $0xe8] sm:$0xff] }
 0x276   :  { %5411 = vmatpush1.bf16.msra.mxu0 %v5410_v1  ;;  %v5446_v1 = vpack.c.bf16 %v2240_v60, %v2239_v61  ;;  %v4349_v35 = vld [vmem:[%s7506_s5 + $0xd0] sm:$0xff]  ;;  %v4384_v21 = vld [vmem:[%s7509_s7 + $0xa0] sm:$0xff] }
 0x277   :  { %5412 = vmatprep.subr.bf16.mxu0 %v5861_v2  ;;  %v5474_v8 = vpack.c.bf16 %v4350_v33, %v4349_v35  ;;  %v4353_v58 = vld [vmem:[%s7506_s5 + $0xf0] sm:$0xff] }
 0x278   :  { %5437 = vmatpush3.bf16.msra.mxu1 %v5434_v24  ;;  %v4351_v24 = vld [vmem:[%s7506_s5 + $0xe0] sm:$0xff]  ;;  %v4382_v61 = vld [vmem:[%s7509_s7 + $0x90] sm:$0xff] }
 0x279   :  { %5439 = vmatprep.subr.bf16.mxu1 %v5438_v15  ;;  %v2785_v33 = vld [vmem:[%s7509_s7 + $0x10] sm:$0xff] }
 0x27a   :  { %5414 = vmatpush1.bf16.msra.mxu0 %v5413_v20  ;;  %v4333_v20 = vld [vmem:[%s7506_s5 + $0x80] sm:$0xff] }
 0x27b   :  { %5415 = vmatprep.subr.bf16.mxu0 %v5861_v2  ;;  %v5454_v44 = vpack.c.bf16 %v4334_v59, %v4333_v20  ;;  %v4386_v20 = vld [vmem:[%s7509_s7 + $0xb0] sm:$0xff] }
 0x27e   :  { %5417 = vmatpush1.bf16.msra.mxu0 %v5416_v30  ;;  %v4336_v30 = vld [vmem:[%s7506_s5 + $0x98] sm:$0xff] }
 0x27f   :  { %5418 = vmatprep.subr.bf16.mxu0 %v5861_v2  ;;  %v5458_v17 = vpack.c.bf16 %v4336_v30, %v4335_v13 }
 0x282   :  { %5421 = vmatpush1.bf16.msk.msra.mxu0 %vm5420_vm6, %v5419_v47 }
 0x283   :  { %5486 = vmatprep.subr.bf16.mxu0 %v5861_v2 }
 0x285   :  { %2186 = vmatmul.mubr.f32.vlgmr.msra.gmra.mrb[104].mxu0 %v2081_v54  ;;  %v4337_v54 = vld [vmem:[%s7506_s5 + $0xa0] sm:$0xff] }
 0x286   :  { %4307 = vmatprep.mubr.msk.f32.mxu0 %vm2095_vm3, %v2084_v49  ;;  %5488 = vmatpush3.bf16.msra.mxu0 %v5487_v6  ;;  %v4338_v49 = vld [vmem:[%s7506_s5 + $0xa8] sm:$0xff]  ;;  %v4354_v6 = vld [vmem:[%s7506_s5 + $0xf8] sm:$0xff] }
 0x287   :  { %5489 = vmatprep.subr.bf16.mxu0 %v5861_v2 }
 0x289   :  { %2191 = vmatmul.mubr.f32.gmra.mrb[106].mxu0 %v2083_v62 }
 0x28a   :  { %4308 = vmatprep.mubr.msk.f32.mxu0 %vm2095_vm3, %v2086_v32  ;;  %v5462_v32 = vpack.c.bf16 %v4338_v49, %v4337_v54 }
 0x28d   :  { %2196 = vmatmul.mubr.f32.gmra.mrb[108].mxu0 %v2085_v16 }
 0x28e   :  { %4309 = vmatprep.mubr.msk.f32.mxu0 %vm2095_vm3, %v2088_v26  ;;  %v4339_v26 = vld [vmem:[%s7506_s5 + $0xb0] sm:$0xff] }
 0x291   :  { %2201 = vmatmul.mubr.f32.gmra.mrb[110].mxu0 %v2087_v27  ;;  %v4340_v27 = vld [vmem:[%s7506_s5 + $0xb8] sm:$0xff] }
 0x292   :  { %4310 = vmatprep.mubr.msk.f32.mxu0 %vm2095_vm3, %v2090_v50 }
 0x295   :  { %2206 = vmatmul.mubr.f32.gmra.mrb[112].mxu0 %v2089_v31  ;;  %v5466_v31 = vpack.c.bf16 %v4340_v27, %v4339_v26 }
 0x296   :  { %4311 = vmatprep.mubr.msk.f32.mxu0 %vm2095_vm3, %v2092_v37 }
 0x299   :  { %2211 = vmatmul.mubr.f32.gmra.mrb[114].mxu0 %v2091_v42  ;;  %v4347_v42 = vld [vmem:[%s7506_s5 + $0xc0] sm:$0xff] }
 0x29a   :  { %4312 = vmatprep.mubr.msk.f32.mxu0 %vm2095_vm3, %v2094_v12  ;;  %v4348_v12 = vld [vmem:[%s7506_s5 + $0xc8] sm:$0xff] }
 0x29b   :  { %v5470_v10 = vpack.c.bf16 %v4348_v12, %v4347_v42  ;;  %v2784_v42 = vld [vmem:[%s7509_s7 + $0x8] sm:$0xff] }
 0x29d   :  { %2216 = vmatmul.mubr.f32.gmra.mrb[116].mxu0 %v2093_v19 }
 0x29e   :  { %5129 = vmatprep.mubr.msk.f32.mxu0 %vm5860_vm0, %v7545_v11 }
 0x358   :  { %v2187_v18 = vpop.f32.mrb[104].mxu0 }
 0x359   :  { %2221 = vst.msk [vmem:[#allocation3] sm:$0xff] %vm1657_vm2, %v2187_v18  ;;  %v2189_v22 = vpop.f32.mrb[105].mxu0 }
 0x35a   :  { %v5482_v22 = vpack.c.bf16 %v4354_v6, %v4353_v58  ;;  %v2788_v58 = vld [vmem:[%s7509_s7 + $0x28] sm:$0xff] }
 0x35c   :  { %v2192_v29 = vpop.f32.mrb[106].mxu0 }
 0x35d   :  { %2222 = vst.msk [vmem:[#allocation3 + $0x8] sm:$0xff] %vm1657_vm2, %v2192_v29  ;;  %v2194_v46 = vpop.f32.mrb[107].mxu0 }
 0x360   :  { %v2197_v45 = vpop.f32.mrb[108].mxu0  ;;  %v2229_v40 = vld [vmem:[#allocation3] sm:$0xff] }
 0x361   :  { %2223 = vst.msk [vmem:[#allocation3 + $0x10] sm:$0xff] %vm1657_vm2, %v2197_v45  ;;  %v2199_v63 = vpop.f32.mrb[109].mxu0  ;;  %v4380_v45 = vld [vmem:[%s7509_s7 + $0x80] sm:$0xff] }
 0x362   :  { %v4381_v63 = vld [vmem:[%s7509_s7 + $0x88] sm:$0xff] }
 0x364   :  { %v2202_v3 = vpop.f32.mrb[110].mxu0  ;;  %v2243_v4 = vld [vmem:[#allocation3 + $0x1] sm:$0xff] }
 0x365   :  { %2224 = vst.msk [vmem:[#allocation3 + $0x18] sm:$0xff] %vm1657_vm2, %v2202_v3  ;;  %v2204_v23 = vpop.f32.mrb[111].mxu0  ;;  %5029 = vmatprep.mubr.msk.f32.mxu1 %vm1657_vm2, %v2243_v4  ;;  %v2230_v47 = vld [vmem:[#allocation3 + $0x8] sm:$0xff]  ;;  %v5511_v3 = vpack.c.bf16 %v4381_v63, %v4380_v45 }
 0x366   :  { %v2484_v19 = vld [vmem:[#allocation3 + $0x5] sm:$0xff] }
 0x367   :  { %v2618_v46 = vld [vmem:[#allocation3 + $0x6] sm:$0xff] }
 0x368   :  { %v2207_v38 = vpop.f32.mrb[112].mxu0  ;;  %v2244_v25 = vld [vmem:[#allocation3 + $0x9] sm:$0xff] }
 0x369   :  { %2225 = vst.msk [vmem:[#allocation3 + $0x20] sm:$0xff] %vm1657_vm2, %v2207_v38  ;;  %5030 = vmatmul.mubr.msk.f32.vlgmr.msra.gmra.mrb[104].mxu1 %vm1657_vm2, %v2244_v25  ;;  %v2209_v5 = vpop.f32.mrb[113].mxu0  ;;  %v2231_v62 = vld [vmem:[#allocation3 + $0x10] sm:$0xff]  ;;  %v4364_v38 = vld [vmem:[%s7509_s7 + $0x50] sm:$0xff] }
 0x36a   :  { %5441 = vmatpush3.bf16.msra.mxu1 %v5438_v15  ;;  %v2485_v0 = vld [vmem:[#allocation3 + $0xd] sm:$0xff]  ;;  %v5478_v15 = vpack.c.bf16 %v4352_v52, %v4351_v24 }
 0x36b   :  { %5443 = vmatprep.subr.bf16.mxu1 %v5442_v34  ;;  %v2619_v4 = vld [vmem:[#allocation3 + $0xe] sm:$0xff] }
 0x36c   :  { %v2212_v7 = vpop.f32.mrb[114].mxu0  ;;  %v2245_v9 = vld [vmem:[#allocation3 + $0x11] sm:$0xff] }
 0x36d   :  { %2226 = vst.msk [vmem:[#allocation3 + $0x28] sm:$0xff] %vm1657_vm2, %v2212_v7  ;;  %5032 = vmatprep.mubr.msk.f32.mxu1 %vm1657_vm2, %v2245_v9  ;;  %v2214_v48 = vpop.f32.mrb[115].mxu0  ;;  %v2232_v16 = vld [vmem:[#allocation3 + $0x18] sm:$0xff]  ;;  %v4365_v25 = vld [vmem:[%s7509_s7 + $0x58] sm:$0xff]  ;;  %v4367_v9 = vld [vmem:[%s7509_s7 + $0x68] sm:$0xff] }
 0x36e   :  { %5445 = vmatpush3.bf16.msra.mxu1 %v5442_v34  ;;  %v2486_v39 = vld [vmem:[#allocation3 + $0x15] sm:$0xff]  ;;  %v5490_v60 = vpack.c.bf16 %v4365_v25, %v4364_v38  ;;  %v4385_v48 = vld [vmem:[%s7509_s7 + $0xa8] sm:$0xff]  ;;  %v4395_v38 = vld [vmem:[%s7509_s7 + $0xd0] sm:$0xff] }
 0x36f   :  { %5447 = vmatprep.subr.bf16.mxu1 %v5446_v1  ;;  %v2620_v53 = vld [vmem:[#allocation3 + $0x16] sm:$0xff] }
 0x370   :  { %v2246_v41 = vld [vmem:[#allocation3 + $0x19] sm:$0xff]  ;;  %v2217_v56 = vpop.f32.mrb[116].mxu0  ;;  %v4383_v5 = vld [vmem:[%s7509_s7 + $0x98] sm:$0xff]  ;;  %5491 = vmatpush3.bf16.msra.mxu0 %v5490_v60 }
 0x371   :  { %5033 = vmatmul.mubr.msk.f32.gmra.mrb[106].mxu1 %vm1657_vm2, %v2246_v41  ;;  %2228 = vst.msk [vmem:[#allocation3 + $0x30] sm:$0x3] %vm2227_vm7, %v2217_v56  ;;  %v2219_v51 = vpop.f32.mrb[117].mxu0  ;;  %v2233_v50 = vld [vmem:[#allocation3 + $0x20] sm:$0xff]  ;;  %5492 = vmatprep.subr.bf16.mxu0 %v5861_v2  ;;  %v4366_v7 = vld [vmem:[%s7509_s7 + $0x60] sm:$0xff]  ;;  %v4368_v41 = vld [vmem:[%s7509_s7 + $0x70] sm:$0xff] }
 0x372   :  { %5449 = vmatpush3.bf16.msra.mxu1 %v5446_v1  ;;  %v2487_v55 = vld [vmem:[#allocation3 + $0x1d] sm:$0xff]  ;;  %v5514_v1 = vpack.c.bf16 %v4383_v5, %v4382_v61  ;;  %v5493_v43 = vpack.c.bf16 %v4367_v9, %v4366_v7  ;;  %v4369_v56 = vld [vmem:[%s7509_s7 + $0x78] sm:$0xff] }
 0x373   :  { %5451 = vmatprep.subr.bf16.mxu1 %v5450_v36  ;;  %v2621_v28 = vld [vmem:[#allocation3 + $0x1e] sm:$0xff]  ;;  %v5496_v59 = vpack.c.bf16 %v4369_v56, %v4368_v41  ;;  %v4387_v51 = vld [vmem:[%s7509_s7 + $0xb8] sm:$0xff] }
 0x374   :  { %v2247_v14 = vld [vmem:[#allocation3 + $0x21] sm:$0xff]  ;;  %v2248_v57 = vld [vmem:[#allocation3 + $0x29] sm:$0xf]  ;;  %5494 = vmatpush3.bf16.msra.mxu0 %v5493_v43  ;;  %v2786_v24 = vld [vmem:[%s7509_s7 + $0x18] sm:$0xff] }
 0x375   :  { %5035 = vmatprep.mubr.msk.f32.mxu1 %vm1657_vm2, %v2247_v14  ;;  %v2234_v37 = vld [vmem:[#allocation3 + $0x28] sm:$0xf]  ;;  %5495 = vmatprep.subr.bf16.mxu0 %v5861_v2  ;;  %v5520_v14 = vpack.c.bf16 %v4387_v51, %v4386_v20  ;;  %v5502_v52 = vpack.c.bf16 %v2786_v24, %v2785_v33  ;;  %v4396_v25 = vld [vmem:[%s7509_s7 + $0xd8] sm:$0xff]  ;;  %v4397_v5 = vld [vmem:[%s7509_s7 + $0xe0] sm:$0xff] }
 0x376   :  { %5036 = vmatmul.mubr.msk.f32.gmra.mrb[108].mxu1 %vm1657_vm2, %v2248_v57  ;;  %v2488_v18 = vld [vmem:[#allocation3 + $0x25] sm:$0xff]  ;;  %v4361_v57 = vld [vmem:[%s7510_s6] ss:$0 sm:$0xff]  ;;  %v5526_v60 = vpack.c.bf16 %v4396_v25, %v4395_v38  ;;  %v4400_v43 = vld [vmem:[%s7509_s7 + $0xf8] sm:$0xff] }
 0x377   :  { %5453 = vmatpush3.bf16.msra.mxu1 %v5450_v36  ;;  %5054 = vmatprep.mubr.msk.f32.mxu1 %vm1657_vm2, %v2229_v40  ;;  %v2622_v23 = vld [vmem:[#allocation3 + $0x26] sm:$0xff]  ;;  %v5517_v36 = vpack.c.bf16 %v4385_v48, %v4384_v21  ;;  %v3299_v33 = vld [vmem:[%s7511_s9 + $0x40] sm:$0xff] }
 0x378   :  { %5455 = vmatprep.subr.bf16.mxu1 %v5454_v44  ;;  %v2489_v29 = vld [vmem:[#allocation3 + $0x2d] sm:$0xf]  ;;  %5497 = vmatpush3.bf16.msra.mxu0 %v5496_v59 }
 0x379   :  { %v2623_v34 = vld [vmem:[#allocation3 + $0x2e] sm:$0xf]  ;;  %5498 = vmatprep.subr.bf16.mxu0 %v5861_v2 }
 0x37a   :  { %5055 = vmatmul.mubr.msk.f32.vlgmr.msra.gmra.mrb[104].mxu1 %vm1657_vm2, %v2230_v47  ;;  %v4399_v21 = vld [vmem:[%s7509_s7 + $0xf0] sm:$0xff] }
 0x37b   :  { %5457 = vmatpush3.bf16.msra.mxu1 %v5454_v44  ;;  %5057 = vmatprep.mubr.msk.f32.mxu1 %vm1657_vm2, %v2231_v62 }
 0x37c   :  { %5459 = vmatprep.subr.bf16.mxu1 %v5458_v17 }
 0x37e   :  { %5058 = vmatmul.mubr.msk.f32.gmra.mrb[106].mxu1 %vm1657_vm2, %v2232_v16 }
 0x37f   :  { %5461 = vmatpush3.bf16.msra.mxu1 %v5458_v17  ;;  %5060 = vmatprep.mubr.msk.f32.mxu1 %vm1657_vm2, %v2233_v50 }
 0x380   :  { %5463 = vmatprep.subr.bf16.mxu1 %v5462_v32 }
 0x382   :  { %5061 = vmatmul.mubr.msk.f32.gmra.mrb[108].mxu1 %vm1657_vm2, %v2234_v37  ;;  %v2783_v37 = vld [vmem:[%s7509_s7] sm:$0xff] }
 0x383   :  { %5465 = vmatpush3.bf16.msra.mxu1 %v5462_v32  ;;  %5079 = vmatprep.mubr.msk.f32.mxu1 %vm1657_vm2, %v2484_v19  ;;  %v5499_v35 = vpack.c.bf16 %v2784_v42, %v2783_v37  ;;  %v3297_v37 = vld [vmem:[%s7511_s9 + $0x30] sm:$0xff]  ;;  %v3298_v42 = vld [vmem:[%s7511_s9 + $0x38] sm:$0xff] }
 0x384   :  { %5467 = vmatprep.subr.bf16.mxu1 %v5466_v31 }
 0x387   :  { %5469 = vmatpush3.bf16.msra.mxu1 %v5466_v31 }
 0x388   :  { %5471 = vmatprep.subr.bf16.mxu1 %v5470_v10 }
 0x38a   :  { %5080 = vmatmul.mubr.msk.f32.vlgmr.msra.gmra.mrb[104].mxu1 %vm1657_vm2, %v2485_v0 }
 0x38b   :  { %5473 = vmatpush3.bf16.msra.mxu1 %v5470_v10  ;;  %5082 = vmatprep.mubr.msk.f32.mxu1 %vm1657_vm2, %v2486_v39  ;;  %v2787_v39 = vld [vmem:[%s7509_s7 + $0x20] sm:$0xff] }
 0x38c   :  { %5475 = vmatprep.subr.bf16.mxu1 %v5474_v8  ;;  %v5505_v6 = vpack.c.bf16 %v2788_v58, %v2787_v39  ;;  %v4415_v58 = vld [vmem:[%s7511_s9 + $0x90] sm:$0xff] }
 0x38e   :  { %5083 = vmatmul.mubr.msk.f32.gmra.mrb[106].mxu1 %vm1657_vm2, %v2487_v55 }
 0x38f   :  { %5477 = vmatpush3.bf16.msra.mxu1 %v5474_v8  ;;  %5085 = vmatprep.mubr.msk.f32.mxu1 %vm1657_vm2, %v2488_v18  ;;  %v2789_v18 = vld [vmem:[%s7509_s7 + $0x30] sm:$0xff] }
 0x390   :  { %5479 = vmatprep.subr.bf16.mxu1 %v5478_v15 }
 0x392   :  { %5086 = vmatmul.mubr.msk.f32.gmra.mrb[108].mxu1 %vm1657_vm2, %v2489_v29 }
 0x393   :  { %5481 = vmatpush3.bf16.msra.mxu1 %v5478_v15  ;;  %5104 = vmatprep.mubr.msk.f32.mxu1 %vm1657_vm2, %v2618_v46  ;;  %v2790_v46 = vld [vmem:[%s7509_s7 + $0x38] sm:$0xff] }
 0x394   :  { %5483 = vmatprep.subr.bf16.mxu1 %v5482_v22  ;;  %v5508_v45 = vpack.c.bf16 %v2790_v46, %v2789_v18  ;;  %v4416_v18 = vld [vmem:[%s7511_s9 + $0x98] sm:$0xff] }
 0x397   :  { %5485 = vmatpush3.bf16.msra.mxu1 %v5482_v22 }
 0x398   :  { %5510 = vmatprep.subr.bf16.mxu1 %v5861_v2 }
 0x39a   :  { %5105 = vmatmul.mubr.msk.f32.vlgmr.msra.gmra.mrb[104].mxu1 %vm1657_vm2, %v2619_v4  ;;  %v4393_v4 = vld [vmem:[%s7509_s7 + $0xc0] sm:$0xff] }
 0x39b   :  { %5107 = vmatprep.mubr.msk.f32.mxu1 %vm1657_vm2, %v2620_v53  ;;  %5512 = vmatpush3.bf16.msra.mxu1 %v5511_v3  ;;  %v4394_v53 = vld [vmem:[%s7509_s7 + $0xc8] sm:$0xff] }
 0x39c   :  { %5513 = vmatprep.subr.bf16.mxu1 %v5861_v2 }
 0x39e   :  { %5108 = vmatmul.mubr.msk.f32.gmra.mrb[106].mxu1 %vm1657_vm2, %v2621_v28 }
 0x39f   :  { %5110 = vmatprep.mubr.msk.f32.mxu1 %vm1657_vm2, %v2622_v23  ;;  %5515 = vmatpush3.bf16.msra.mxu1 %v5514_v1  ;;  %v4398_v1 = vld [vmem:[%s7509_s7 + $0xe8] sm:$0xff] }
 0x3a0   :  { %5516 = vmatprep.subr.bf16.mxu1 %v5861_v2  ;;  %v5529_v9 = vpack.c.bf16 %v4398_v1, %v4397_v5 }
 0x3a2   :  { %5111 = vmatmul.mubr.msk.f32.gmra.mrb[108].mxu1 %vm1657_vm2, %v2623_v34  ;;  %v5523_v34 = vpack.c.bf16 %v4394_v53, %v4393_v4 }
 0x3a3   :  { %5191 = vmatprep.mubr.msk.f32.mxu1 %vm5860_vm0, %v7545_v11  ;;  %5518 = vmatpush3.bf16.msra.mxu1 %v5517_v36  ;;  %v5532_v36 = vpack.c.bf16 %v4400_v43, %v4399_v21 }
 0x3a4   :  { %5519 = vmatprep.subr.bf16.mxu1 %v5861_v2 }
 0x3a7   :  { %5521 = vmatpush3.bf16.msra.mxu1 %v5520_v14 }
 0x46d   :  { %v5106_v44 = vpop.f32.mrb[104].mxu1 }
 0x46e   :  { %v2760_v13 = vadd.f32 %v5106_v44, %v4361_v57  ;;  %v2717_v30 = vpop.f32.mrb[105].mxu1  ;;  %v3291_v44 = vld [vmem:[%s7511_s9] sm:$0xff] }
 0x46f   :  { %v2759_v40 = vadd.f32 %v4361_v57, %v2717_v30 }
 0x470   :  { %v2766_v17 = vmax.f32 %v2760_v13, 0.0  ;;  %v3292_v13 = vld [vmem:[%s7511_s9 + $0x8] sm:$0xff] }
 0x471   :  { %v2765_v47 = vmax.f32 %v2759_v40, 0.0  ;;  %v5109_v54 = vpop.f32.mrb[106].mxu1  ;;  %v5554_v30 = vpack.c.bf16 %v3292_v13, %v3291_v44  ;;  %v3293_v40 = vld [vmem:[%s7511_s9 + $0x10] sm:$0xff] }
 0x472   :  { %2772 = vst.msk [vmem:[#allocation4 + $0x8] sm:$0xff] %vm1657_vm2, %v2766_v17  ;;  %v2762_v49 = vadd.f32 %v5109_v54, %v4361_v57  ;;  %v2727_v62 = vpop.f32.mrb[107].mxu1  ;;  %v3294_v17 = vld [vmem:[%s7511_s9 + $0x18] sm:$0xff] }
 0x473   :  { %2771 = vst.msk [vmem:[#allocation4] sm:$0xff] %vm1657_vm2, %v2765_v47  ;;  %v2761_v32 = vadd.f32 %v4361_v57, %v2727_v62  ;;  %5555 = vmatprep.subr.bf16.mxu1 %v5554_v30  ;;  %v4407_v47 = vld [vmem:[%s7511_s9 + $0x50] sm:$0xff]  ;;  %v5558_v54 = vpack.c.bf16 %v3294_v17, %v3293_v40 }
 0x474   :  { %v2768_v16 = vmax.f32 %v2762_v49, 0.0  ;;  %v4408_v49 = vld [vmem:[%s7511_s9 + $0x58] sm:$0xff] }
 0x475   :  { %v2767_v26 = vmax.f32 %v2761_v32, 0.0  ;;  %v5112_v27 = vpop.f32.mrb[108].mxu1  ;;  %v5534_v62 = vpack.c.bf16 %v4408_v49, %v4407_v47  ;;  %v3295_v32 = vld [vmem:[%s7511_s9 + $0x20] sm:$0xff] }
 0x476   :  { %2774 = vst.msk [vmem:[#allocation4 + $0x18] sm:$0xff] %vm1657_vm2, %v2768_v16  ;;  %v2764_v50 = vadd.f32 %v5112_v27, %v4361_v57  ;;  %v2737_v31 = vpop.f32.mrb[109].mxu1  ;;  %v3296_v16 = vld [vmem:[%s7511_s9 + $0x28] sm:$0xff] }
 0x477   :  { %2773 = vst.msk [vmem:[#allocation4 + $0x10] sm:$0xff] %vm1657_vm2, %v2767_v26  ;;  %v2763_v12 = vadd.f32 %v4361_v57, %v2737_v31  ;;  %v4409_v26 = vld [vmem:[%s7511_s9 + $0x60] sm:$0xff]  ;;  %v5562_v27 = vpack.c.bf16 %v3296_v16, %v3295_v32 }
 0x478   :  { %v2770_v19 = vmax.f32 %v2764_v50, 0.0  ;;  %v4410_v50 = vld [vmem:[%s7511_s9 + $0x68] sm:$0xff] }
 0x479   :  { %v2769_v10 = vmax.f32 %v2763_v12, 0.0  ;;  %v2779_v7 = vld [vmem:[#allocation4 + $0x8] sm:$0xff]  ;;  %v5538_v31 = vpack.c.bf16 %v4410_v50, %v4409_v26  ;;  %v4411_v12 = vld [vmem:[%s7511_s9 + $0x70] sm:$0xff] }
 0x47a   :  { %2777 = vst.msk [vmem:[#allocation4 + $0x28] sm:$0xf] %vm2776_vm8, %v2770_v19  ;;  %v2791_v8 = vld [vmem:[#allocation4 + $0x1] sm:$0xff]  ;;  %v5566_v19 = vpack.c.bf16 %v3298_v42, %v3297_v37 }
 0x47b   :  { %v3015_v0 = vld [vmem:[#allocation4 + $0x5] sm:$0xff]  ;;  %2775 = vst.msk [vmem:[#allocation4 + $0x20] sm:$0xff] %vm1657_vm2, %v2769_v10  ;;  %5130 = vmatmul.mubr.msk.f32.vlgmr.msra.gmra.mrb[118].mxu0 %vm1657_vm2, %v2791_v8  ;;  %v4412_v10 = vld [vmem:[%s7511_s9 + $0x78] sm:$0xff] }
 0x47c   :  { %5192 = vmatmul.mubr.msk.f32.vlgmr.msra.gmra.mrb[110].mxu1 %vm1657_vm2, %v3015_v0  ;;  %5132 = vmatprep.mubr.msk.f32.mxu0 %vm5860_vm0, %v7545_v11  ;;  %v2778_v61 = vld [vmem:[#allocation4] sm:$0xff]  ;;  %v3300_v8 = vld [vmem:[%s7511_s9 + $0x48] sm:$0xff] }
 0x47d   :  { %5194 = vmatprep.mubr.msk.f32.mxu1 %vm5860_vm0, %v7545_v11  ;;  %5500 = vmatpush3.bf16.msra.mxu0 %v5499_v35  ;;  %v2781_v41 = vld [vmem:[#allocation4 + $0x18] sm:$0xff]  ;;  %v3139_v20 = vld [vmem:[#allocation4 + $0x6] sm:$0xff]  ;;  %v5542_v35 = vpack.c.bf16 %v4412_v10, %v4411_v12  ;;  %v5570_v24 = vpack.c.bf16 %v3300_v8, %v3299_v33 }
 0x47e   :  { %v2792_v15 = vld [vmem:[#allocation4 + $0x9] sm:$0xff]  ;;  %5501 = vmatprep.subr.bf16.mxu0 %v5861_v2  ;;  %v2793_v22 = vld [vmem:[#allocation4 + $0x11] sm:$0xff]  ;;  %5557 = vmatpush3.bf16.msra.mxu1 %v5554_v30  ;;  %v4413_v0 = vld [vmem:[%s7511_s9 + $0x80] sm:$0xff] }
 0x47f   :  { %v3016_v55 = vld [vmem:[#allocation4 + $0xd] sm:$0xff]  ;;  %5133 = vmatmul.mubr.msk.f32.gmra.mrb[120].mxu0 %vm1657_vm2, %v2792_v15  ;;  %v3017_v29 = vld [vmem:[#allocation4 + $0x15] sm:$0xff]  ;;  %5559 = vmatprep.subr.bf16.mxu1 %v5558_v54  ;;  %v4425_v15 = vld [vmem:[%s7511_s9 + $0xa0] sm:$0xff] }
 0x480   :  { %5195 = vmatmul.mubr.msk.f32.gmra.mrb[112].mxu1 %vm1657_vm2, %v3016_v55  ;;  %5135 = vmatprep.mubr.msk.f32.mxu0 %vm5860_vm0, %v7545_v11  ;;  %v2780_v48 = vld [vmem:[#allocation4 + $0x10] sm:$0xff]  ;;  %v4426_v55 = vld [vmem:[%s7511_s9 + $0xa8] sm:$0xff] }
 0x481   :  { %5197 = vmatprep.mubr.msk.f32.mxu1 %vm5860_vm0, %v7545_v11  ;;  %5503 = vmatpush3.bf16.msra.mxu0 %v5502_v52  ;;  %v3140_v59 = vld [vmem:[#allocation4 + $0xe] sm:$0xff]  ;;  %v3141_v51 = vld [vmem:[#allocation4 + $0x16] sm:$0xff] }
 0x482   :  { %5504 = vmatprep.subr.bf16.mxu0 %v5861_v2  ;;  %v2794_v63 = vld [vmem:[#allocation4 + $0x19] sm:$0xff]  ;;  %v2795_v28 = vld [vmem:[#allocation4 + $0x21] sm:$0x3f]  ;;  %5561 = vmatpush3.bf16.msra.mxu1 %v5558_v54  ;;  %v4414_v52 = vld [vmem:[%s7511_s9 + $0x88] sm:$0xff] }
 0x483   :  { %5136 = vmatmul.mubr.msk.f32.gmra.mrb[122].mxu0 %vm1657_vm2, %v2793_v22  ;;  %v3018_v3 = vld [vmem:[#allocation4 + $0x1d] sm:$0xff]  ;;  %v3019_v23 = vld [vmem:[#allocation4 + $0x25] sm:$0x3f]  ;;  %5563 = vmatprep.subr.bf16.mxu1 %v5562_v27  ;;  %v5546_v39 = vpack.c.bf16 %v4414_v52, %v4413_v0  ;;  %v5550_v22 = vpack.c.bf16 %v4416_v18, %v4415_v58 }
 0x484   :  { %5198 = vmatmul.mubr.msk.f32.gmra.mrb[114].mxu1 %vm1657_vm2, %v3017_v29  ;;  %5138 = vmatprep.mubr.msk.f32.mxu0 %vm5860_vm0, %v7545_v11  ;;  %v2782_v56 = vld [vmem:[#allocation4 + $0x20] sm:$0x3f]  ;;  %v3143_v57 = vld [vmem:[#allocation4 + $0x26] sm:$0x3f] }
 0x485   :  { %5200 = vmatprep.mubr.msk.f32.mxu1 %vm5860_vm0, %v7545_v11  ;;  %5506 = vmatpush3.bf16.msra.mxu0 %v5505_v6  ;;  %v3142_v14 = vld [vmem:[#allocation4 + $0x1e] sm:$0xff]  ;;  %v7337_v6 = vpack.c.bf16 %v4426_v55, %v4425_v15 }
 0x486   :  { %5507 = vmatprep.subr.bf16.mxu0 %v5861_v2  ;;  %5565 = vmatpush3.bf16.msra.mxu1 %v5562_v27  ;;  %v4406_v27 = vld [vmem:[%s7512_s8] ss:$0 sm:$0xff] }
 0x487   :  { %5139 = vmatmul.mubr.msk.f32.gmra.mrb[124].mxu0 %vm1657_vm2, %v2794_v63  ;;  %5567 = vmatprep.subr.bf16.mxu1 %v5566_v19 }
 0x488   :  { %5201 = vmatmul.mubr.msk.f32.gmra.mrb[116].mxu1 %vm1657_vm2, %v3018_v3  ;;  %5141 = vmatprep.mubr.msk.f32.mxu0 %vm5860_vm0, %v7545_v11 }
 0x489   :  { %5203 = vmatprep.mubr.msk.f32.mxu1 %vm5860_vm0, %v7545_v11  ;;  %5509 = vmatpush3.bf16.msra.mxu0 %v5508_v45 }
 0x48a   :  { %5522 = vmatprep.subr.bf16.mxu0 %v5861_v2  ;;  %5569 = vmatpush3.bf16.msra.mxu1 %v5566_v19 }
 0x48b   :  { %5142 = vmatmul.mubr.msk.f32.gmra.mrb[126].mxu0 %vm1657_vm2, %v2795_v28  ;;  %5571 = vmatprep.subr.bf16.mxu1 %v5570_v24 }
 0x48c   :  { %5204 = vmatmul.mubr.msk.f32.gmra.mrb[118].mxu1 %vm1657_vm2, %v3019_v23  ;;  %5160 = vmatprep.mubr.msk.f32.mxu0 %vm5860_vm0, %v7545_v11 }
 0x48e   :  { %5573 = vmatpush3.bf16.msra.mxu1 %v5570_v24 }
 0x48f   :  { %5161 = vmatmul.mubr.msk.f32.vlgmr.msra.gmra.mrb[128].mxu0 %vm1657_vm2, %v2778_v61  ;;  %5575 = vmatprep.subr.bf16.mxu1 %v7337_v6 }
 0x490   :  { %5163 = vmatprep.mubr.msk.f32.mxu0 %vm5860_vm0, %v7545_v11  ;;  %5524 = vmatpush3.bf16.msra.mxu0 %v5523_v34 }
 0x491   :  { %5525 = vmatprep.subr.bf16.mxu0 %v5861_v2 }
 0x493   :  { %5164 = vmatmul.mubr.msk.f32.gmra.mrb[130].mxu0 %vm1657_vm2, %v2779_v7 }
 0x494   :  { %5166 = vmatprep.mubr.msk.f32.mxu0 %vm5860_vm0, %v7545_v11  ;;  %5527 = vmatpush3.bf16.msra.mxu0 %v5526_v60 }
 0x495   :  { %5528 = vmatprep.subr.bf16.mxu0 %v5861_v2 }
 0x497   :  { %5167 = vmatmul.mubr.msk.f32.gmra.mrb[132].mxu0 %vm1657_vm2, %v2780_v48 }
 0x498   :  { %5169 = vmatprep.mubr.msk.f32.mxu0 %vm5860_vm0, %v7545_v11  ;;  %5530 = vmatpush3.bf16.msra.mxu0 %v5529_v9 }
 0x499   :  { %5531 = vmatprep.subr.bf16.mxu0 %v5861_v2 }
 0x49b   :  { %5170 = vmatmul.mubr.msk.f32.gmra.mrb[134].mxu0 %vm1657_vm2, %v2781_v41 }
 0x49c   :  { %5172 = vmatprep.mubr.msk.f32.mxu0 %vm5860_vm0, %v7545_v11  ;;  %5533 = vmatpush3.bf16.msra.mxu0 %v5532_v36 }
 0x49d   :  { %5535 = vmatprep.subr.bf16.mxu0 %v5534_v62 }
 0x49f   :  { %5173 = vmatmul.mubr.msk.f32.gmra.mrb[136].mxu0 %vm1657_vm2, %v2782_v56 }
 0x4a0   :  { %5222 = vmatprep.mubr.msk.f32.mxu0 %vm5860_vm0, %v7545_v11 }
 0x4a3   :  { %5223 = vmatmul.mubr.msk.f32.vlgmr.msra.gmra.mrb[138].mxu0 %vm1657_vm2, %v3139_v20 }
 0x4a4   :  { %5225 = vmatprep.mubr.msk.f32.mxu0 %vm5860_vm0, %v7545_v11  ;;  %5537 = vmatpush3.bf16.msra.mxu0 %v5534_v62 }
 0x4a5   :  { %5539 = vmatprep.subr.bf16.mxu0 %v5538_v31 }
 0x4a7   :  { %5226 = vmatmul.mubr.msk.f32.gmra.mrb[140].mxu0 %vm1657_vm2, %v3140_v59 }
 0x4a8   :  { %5228 = vmatprep.mubr.msk.f32.mxu0 %vm5860_vm0, %v7545_v11  ;;  %5541 = vmatpush3.bf16.msra.mxu0 %v5538_v31 }
 0x4a9   :  { %5543 = vmatprep.subr.bf16.mxu0 %v5542_v35 }
 0x4ab   :  { %5229 = vmatmul.mubr.msk.f32.gmra.mrb[142].mxu0 %vm1657_vm2, %v3141_v51 }
 0x4ac   :  { %5231 = vmatprep.mubr.msk.f32.mxu0 %vm5860_vm0, %v7545_v11  ;;  %5545 = vmatpush3.bf16.msra.mxu0 %v5542_v35 }
 0x4ad   :  { %5547 = vmatprep.subr.bf16.mxu0 %v5546_v39 }
 0x4af   :  { %5232 = vmatmul.mubr.msk.f32.gmra.mrb[144].mxu0 %vm1657_vm2, %v3142_v14 }
 0x4b0   :  { %5234 = vmatprep.mubr.msk.f32.mxu0 %vm5860_vm0, %v7545_v11  ;;  %5549 = vmatpush3.bf16.msra.mxu0 %v5546_v39 }
 0x4b1   :  { %5551 = vmatprep.subr.bf16.mxu0 %v5550_v22 }
 0x4b3   :  { %5235 = vmatmul.mubr.msk.f32.gmra.mrb[146].mxu0 %vm1657_vm2, %v3143_v57 }
 0x4b4   :  { %5553 = vmatpush3.bf16.msra.mxu0 %v5550_v22  ;;  %v4427_v22 = vld [vmem:[%s7511_s9 + $0xb0] sm:$0xff] }
 0x4b5   :  { %5614 = vmatprep.subr.bf16.mxu0 %v5861_v2 }
 0x54e   :  { %v2886_v29 = vpop.f32.mrb[118].mxu0 }
 0x54f   :  { %v3110_v46 = vpop.f32.mrb[110].mxu1  ;;  %v5131_v45 = vpop.f32.mrb[119].mxu0 }
 0x550   :  { %v5193_v63 = vpop.f32.mrb[111].mxu1 }
 0x552   :  { %v2891_v3 = vpop.f32.mrb[120].mxu0 }
 0x553   :  { %v3115_v4 = vpop.f32.mrb[112].mxu1  ;;  %v5134_v53 = vpop.f32.mrb[121].mxu0 }
 0x554   :  { %v5196_v28 = vpop.f32.mrb[113].mxu1 }
 0x555   :  { %v4429_v28 = vld [vmem:[%s7511_s9 + $0xc0] sm:$0xff] }
 0x556   :  { %v2896_v23 = vpop.f32.mrb[122].mxu0 }
 0x557   :  { %v3120_v34 = vpop.f32.mrb[114].mxu1  ;;  %v5137_v38 = vpop.f32.mrb[123].mxu0 }
 0x558   :  { %v5199_v25 = vpop.f32.mrb[115].mxu1  ;;  %v4430_v38 = vld [vmem:[%s7511_s9 + $0xc8] sm:$0xff] }
 0x55a   :  { %v2901_v61 = vpop.f32.mrb[124].mxu0 }
 0x55b   :  { %v3125_v60 = vpop.f32.mrb[116].mxu1  ;;  %v5140_v5 = vpop.f32.mrb[125].mxu0 }
 0x55c   :  { %v5202_v1 = vpop.f32.mrb[117].mxu1  ;;  %v4431_v5 = vld [vmem:[%s7511_s9 + $0xd0] sm:$0xff] }
 0x55e   :  { %v2906_v7 = vpop.f32.mrb[126].mxu0 }
 0x55f   :  { %v3130_v9 = vpop.f32.mrb[118].mxu1  ;;  %v5143_v21 = vpop.f32.mrb[127].mxu0 }
 0x560   :  { %v5205_v43 = vpop.f32.mrb[119].mxu1  ;;  %v4433_v21 = vld [vmem:[%s7511_s9 + $0xe0] sm:$0xff] }
 0x562   :  { %v2991_v48 = vpop.f32.mrb[128].mxu0 }
 0x563   :  { %v2992_v36 = vadd.f32 %v2991_v48, %v2886_v29  ;;  %v5162_v41 = vpop.f32.mrb[129].mxu0  ;;  %v4428_v29 = vld [vmem:[%s7511_s9 + $0xb8] sm:$0xff] }
 0x564   :  { %v5578_v53 = vpack.c.bf16 %v4428_v29, %v4427_v22 }
 0x565   :  { %v3134_v56 = vadd.f32 %v3110_v46, %v2992_v36  ;;  %v4434_v36 = vld [vmem:[%s7511_s9 + $0xe8] sm:$0xff] }
 0x566   :  { %v2996_v20 = vpop.f32.mrb[130].mxu0 }
 0x567   :  { %v2997_v59 = vadd.f32 %v2996_v20, %v2891_v3  ;;  %v5165_v51 = vpop.f32.mrb[131].mxu0 }
 0x568   :  { %v4440_v51 = vld [vmem:[%s7511_s9 + $0xf8] sm:$0xff] }
 0x569   :  { %v3135_v14 = vadd.f32 %v3115_v4, %v2997_v59  ;;  %v4439_v59 = vld [vmem:[%s7511_s9 + $0xf0] sm:$0xff] }
 0x56a   :  { %v3001_v57 = vpop.f32.mrb[132].mxu0 }
 0x56b   :  { %v3002_v44 = vadd.f32 %v3001_v57, %v2896_v23  ;;  %v5168_v13 = vpop.f32.mrb[133].mxu0  ;;  %v4441_v57 = vld [vmem:[%s7511_s9 + $0x100] sm:$0xff] }
 0x56d   :  { %v3136_v30 = vadd.f32 %v3120_v34, %v3002_v44  ;;  %v4442_v44 = vld [vmem:[%s7511_s9 + $0x108] sm:$0xff] }
 0x56e   :  { %v3006_v40 = vpop.f32.mrb[134].mxu0  ;;  %v5598_v13 = vpack.c.bf16 %v4442_v44, %v4441_v57 }
 0x56f   :  { %v3007_v17 = vadd.f32 %v3006_v40, %v2901_v61  ;;  %v5171_v47 = vpop.f32.mrb[135].mxu0  ;;  %v4443_v40 = vld [vmem:[%s7511_s9 + $0x110] sm:$0xff] }
 0x571   :  { %v3137_v54 = vadd.f32 %v3125_v60, %v3007_v17  ;;  %v5582_v60 = vpack.c.bf16 %v4430_v38, %v4429_v28  ;;  %v4444_v17 = vld [vmem:[%s7511_s9 + $0x118] sm:$0xff] }
 0x572   :  { %v3011_v49 = vpop.f32.mrb[136].mxu0 }
 0x573   :  { %v3012_v62 = vadd.f32 %v3011_v49, %v2906_v7  ;;  %v5174_v32 = vpop.f32.mrb[137].mxu0 }
 0x574   :  { %v4446_v32 = vld [vmem:[%s7511_s9 + $0x128] sm:$0xff] }
 0x575   :  { %v3138_v16 = vadd.f32 %v3130_v9, %v3012_v62  ;;  %v4432_v9 = vld [vmem:[%s7511_s9 + $0xd8] sm:$0xff]  ;;  %v4445_v62 = vld [vmem:[%s7511_s9 + $0x120] sm:$0xff] }
 0x576   :  { %v3234_v26 = vpop.f32.mrb[138].mxu0 }
 0x577   :  { %v3258_v50 = vadd.f32 %v3234_v26, %v3134_v56  ;;  %v5224_v31 = vpop.f32.mrb[139].mxu0  ;;  %v5590_v56 = vpack.c.bf16 %v4434_v36, %v4433_v21  ;;  %v5606_v26 = vpack.c.bf16 %v4446_v32, %v4445_v62  ;;  %v3789_v32 = vld [vmem:[%s7515_s12] sm:$0x3] }
 0x579   :  { %v3270_v37 = vadd.f32 %v4406_v27, %v3258_v50  ;;  %v4448_v50 = vld [vmem:[%s7511_s9 + $0x138] sm:$0xff] }
 0x57a   :  { %v3239_v42 = vpop.f32.mrb[140].mxu0 }
 0x57b   :  { %v3275_v12 = vmax.f32 %v3270_v37, 0.0  ;;  %v3259_v19 = vadd.f32 %v3239_v42, %v3135_v14  ;;  %v5227_v10 = vpop.f32.mrb[141].mxu0  ;;  %v5594_v14 = vpack.c.bf16 %v4440_v51, %v4439_v59 }
 0x57d   :  { %3281 = vst.msk [vmem:[#allocation5] sm:$0xff] %vm3280_vm9, %v3275_v12  ;;  %v3271_v35 = vadd.f32 %v4406_v27, %v3259_v19 }
 0x57e   :  { %v3244_v33 = vpop.f32.mrb[142].mxu0 }
 0x57f   :  { %v3276_v8 = vmax.f32 %v3271_v35, 0.0  ;;  %v3260_v0 = vadd.f32 %v3244_v33, %v3136_v30  ;;  %v5230_v24 = vpop.f32.mrb[143].mxu0 }
 0x581   :  { %3282 = vst.msk [vmem:[#allocation5 + $0x8] sm:$0xff] %vm3280_vm9, %v3276_v8  ;;  %v3272_v52 = vadd.f32 %v4406_v27, %v3260_v0  ;;  %v4453_v0 = vld [vmem:[%s7513_s10] ss:$0 sm:$0xff] }
 0x582   :  { %v3249_v39 = vpop.f32.mrb[144].mxu0 }
 0x583   :  { %v3277_v15 = vmax.f32 %v3272_v52, 0.0  ;;  %v3261_v55 = vadd.f32 %v3249_v39, %v3137_v54  ;;  %v5233_v58 = vpop.f32.mrb[145].mxu0  ;;  %v5602_v54 = vpack.c.bf16 %v4444_v17, %v4443_v40 }
 0x584   :  { %v3287_v18 = vld [vmem:[#allocation5] sm:$0xff] }
 0x585   :  { %3283 = vst.msk [vmem:[#allocation5 + $0x10] sm:$0xff] %vm3280_vm9, %v3277_v15  ;;  %v3273_v46 = vadd.f32 %v4406_v27, %v3261_v55  ;;  %5283 = vmatprep.mubr.msk.f32.mxu1 %vm3280_vm9, %v3287_v18 }
 0x586   :  { %v3254_v45 = vpop.f32.mrb[146].mxu0 }
 0x587   :  { %v3278_v63 = vmax.f32 %v3273_v46, 0.0  ;;  %v3262_v3 = vadd.f32 %v3254_v45, %v3138_v16  ;;  %v5236_v4 = vpop.f32.mrb[147].mxu0 }
 0x588   :  { %v3301_v23 = vld [vmem:[#allocation5 + $0x1] sm:$0xff] }
 0x589   :  { %v3288_v34 = vld [vmem:[#allocation5 + $0x8] sm:$0xff]  ;;  %3284 = vst.msk [vmem:[#allocation5 + $0x18] sm:$0xff] %vm3280_vm9, %v3278_v63  ;;  %v3274_v25 = vadd.f32 %v4406_v27, %v3262_v3  ;;  %5257 = vmatprep.mubr.msk.f32.mxu0 %vm3280_vm9, %v3301_v23  ;;  %v4447_v27 = vld [vmem:[%s7511_s9 + $0x130] sm:$0xff] }
 0x58a   :  { %5284 = vmatmul.mubr.msk.f32.vlgmr.msra.gmra.mrb[120].mxu1 %vm3280_vm9, %v3288_v34  ;;  %v3510_v41 = vld [vmem:[#allocation5 + $0x5] sm:$0xff]  ;;  %v5610_v31 = vpack.c.bf16 %v4448_v50, %v4447_v27 }
 0x58b   :  { %5577 = vmatpush3.bf16.msra.mxu1 %v7337_v6  ;;  %v3279_v61 = vmax.f32 %v3274_v25, 0.0  ;;  %v5586_v6 = vpack.c.bf16 %v4432_v9, %v4431_v5  ;;  %v3626_v16 = vld [vmem:[#allocation5 + $0x6] sm:$0xff] }
 0x58c   :  { %5579 = vmatprep.subr.bf16.mxu1 %v5578_v53  ;;  %v3302_v1 = vld [vmem:[#allocation5 + $0x9] sm:$0xff] }
 0x58d   :  { %v3289_v7 = vld [vmem:[#allocation5 + $0x10] sm:$0xff]  ;;  %3286 = vst.msk [vmem:[#allocation5 + $0x20] sm:$0x3f] %vm3285_vm10, %v3279_v61  ;;  %5258 = vmatmul.mubr.msk.f32.vlgmr.msra.gmra.mrb[148].mxu0 %vm3280_vm9, %v3302_v1  ;;  %v3871_v27 = vld [vmem:[%s7514_s13 + $0x18] sm:$0xff] }
 0x58e   :  { %5286 = vmatprep.mubr.msk.f32.mxu1 %vm3280_vm9, %v3289_v7  ;;  %v3511_v30 = vld [vmem:[#allocation5 + $0xd] sm:$0xff] }
 0x58f   :  { %5581 = vmatpush3.bf16.msra.mxu1 %v5578_v53  ;;  %v3627_v37 = vld [vmem:[#allocation5 + $0xe] sm:$0xff] }
 0x590   :  { %5583 = vmatprep.subr.bf16.mxu1 %v5582_v60  ;;  %v3303_v43 = vld [vmem:[#allocation5 + $0x11] sm:$0xff] }
 0x591   :  { %v3290_v48 = vld [vmem:[#allocation5 + $0x18] sm:$0xff]  ;;  %5260 = vmatprep.mubr.msk.f32.mxu0 %vm3280_vm9, %v3303_v43 }
 0x592   :  { %5287 = vmatmul.mubr.msk.f32.gmra.mrb[122].mxu1 %vm3280_vm9, %v3290_v48  ;;  %v3512_v47 = vld [vmem:[#allocation5 + $0x15] sm:$0xff] }
 0x593   :  { %5585 = vmatpush3.bf16.msra.mxu1 %v5582_v60  ;;  %5309 = vmatprep.mubr.msk.f32.mxu1 %vm3280_vm9, %v3510_v41  ;;  %v3628_v42 = vld [vmem:[#allocation5 + $0x16] sm:$0xff] }
 0x594   :  { %5587 = vmatprep.subr.bf16.mxu1 %v5586_v6  ;;  %v3304_v20 = vld [vmem:[#allocation5 + $0x19] sm:$0xff] }
 0x595   :  { %5261 = vmatmul.mubr.msk.f32.gmra.mrb[150].mxu0 %vm3280_vm9, %v3304_v20  ;;  %v3513_v49 = vld [vmem:[#allocation5 + $0x1d] sm:$0xff] }
 0x596   :  { %5349 = vmatprep.mubr.msk.f32.mxu0 %vm5860_vm0, %v7545_v11  ;;  %v3629_v12 = vld [vmem:[#allocation5 + $0x1e] sm:$0xff] }
 0x597   :  { %5589 = vmatpush3.bf16.msra.mxu1 %v5586_v6 }
 0x598   :  { %5591 = vmatprep.subr.bf16.mxu1 %v5590_v56 }
 0x59b   :  { %5593 = vmatpush3.bf16.msra.mxu1 %v5590_v56 }
 0x59c   :  { %5595 = vmatprep.subr.bf16.mxu1 %v5594_v14 }
 0x59e   :  { %5310 = vmatmul.mubr.msk.f32.vlgmr.msra.gmra.mrb[120].mxu1 %vm3280_vm9, %v3511_v30 }
 0x59f   :  { %5312 = vmatprep.mubr.msk.f32.mxu1 %vm3280_vm9, %v3512_v47  ;;  %5597 = vmatpush3.bf16.msra.mxu1 %v5594_v14 }
 0x5a0   :  { %5599 = vmatprep.subr.bf16.mxu1 %v5598_v13 }
 0x5a2   :  { %5313 = vmatmul.mubr.msk.f32.gmra.mrb[122].mxu1 %vm3280_vm9, %v3513_v49  ;;  %v3869_v49 = vld [vmem:[%s7514_s13 + $0x8] sm:$0xff] }
 0x5a3   :  { %5601 = vmatpush3.bf16.msra.mxu1 %v5598_v13  ;;  %5335 = vmatprep.mubr.msk.f32.mxu1 %vm3280_vm9, %v3626_v16 }
 0x5a4   :  { %5603 = vmatprep.subr.bf16.mxu1 %v5602_v54 }
 0x5a7   :  { %5605 = vmatpush3.bf16.msra.mxu1 %v5602_v54  ;;  %v3868_v54 = vld [vmem:[%s7514_s13] sm:$0xff] }
 0x5a8   :  { %5607 = vmatprep.subr.bf16.mxu1 %v5606_v26  ;;  %v5622_v16 = vpack.c.bf16 %v3869_v49, %v3868_v54 }
 0x5ab   :  { %5609 = vmatpush3.bf16.msra.mxu1 %v5606_v26  ;;  %v3870_v26 = vld [vmem:[%s7514_s13 + $0x10] sm:$0xff] }
 0x5ac   :  { %5611 = vmatprep.subr.bf16.mxu1 %v5610_v31  ;;  %v5625_v50 = vpack.c.bf16 %v3871_v27, %v3870_v26 }
 0x5af   :  { %5613 = vmatpush3.bf16.msra.mxu1 %v5610_v31  ;;  %v3872_v31 = vld [vmem:[%s7514_s13 + $0x20] sm:$0xff] }
 0x5b2   :  { %5336 = vmatmul.mubr.msk.f32.vlgmr.msra.gmra.mrb[120].mxu1 %vm3280_vm9, %v3627_v37  ;;  %v3873_v37 = vld [vmem:[%s7514_s13 + $0x28] sm:$0xff] }
 0x5b3   :  { %5338 = vmatprep.mubr.msk.f32.mxu1 %vm3280_vm9, %v3628_v42  ;;  %v5628_v42 = vpack.c.bf16 %v3873_v37, %v3872_v31 }
 0x5b6   :  { %5339 = vmatmul.mubr.msk.f32.gmra.mrb[122].mxu1 %vm3280_vm9, %v3629_v12  ;;  %v3874_v12 = vld [vmem:[%s7514_s13 + $0x30] sm:$0xff] }
 0x660   :  { %v5259_v19 = vpop.f32.mrb[148].mxu0 }
 0x661   :  { %v3394_v10 = vpop.f32.mrb[149].mxu0 }
 0x668   :  { %v5262_v35 = vpop.f32.mrb[150].mxu0 }
 0x669   :  { %v3404_v33 = vpop.f32.mrb[151].mxu0 }
 0x685   :  { %v5337_v8 = vpop.f32.mrb[120].mxu1 }
 0x686   :  { %v5636_v24 = vadd.f32 %v5337_v8, %v5259_v19  ;;  %v3719_v52 = vpop.f32.mrb[121].mxu1  ;;  %v3875_v19 = vld [vmem:[%s7514_s13 + $0x38] sm:$0xff] }
 0x687   :  { %v5637_v39 = vadd.f32 %v3719_v52, %v3394_v10  ;;  %v5631_v10 = vpack.c.bf16 %v3875_v19, %v3874_v12  ;;  %v3962_v52 = vld [vmem:[%s7516_s15] sm:$0x1f] }
 0x688   :  { %v3750_v15 = vadd.f32 %v5636_v24, %v4453_v0 }
 0x689   :  { %v3749_v55 = vadd.f32 %v5637_v39, %v4453_v0  ;;  %v5340_v58 = vpop.f32.mrb[122].mxu1 }
 0x68a   :  { %v3754_v18 = vmax.f32 %v3750_v15, 0.0  ;;  %v5638_v22 = vadd.f32 %v5340_v58, %v5262_v35  ;;  %v3729_v29 = vpop.f32.mrb[123].mxu1  ;;  %v3876_v35 = vld [vmem:[%s7514_s13 + $0x40] sm:$0xff] }
 0x68b   :  { %v3753_v46 = vmax.f32 %v3749_v55, 0.0  ;;  %v5639_v45 = vadd.f32 %v3729_v29, %v3404_v33  ;;  %v3877_v33 = vld [vmem:[%s7514_s13 + $0x48] sm:$0xff] }
 0x68c   :  { %3758 = vst.msk [vmem:[#allocation6 + $0x8] sm:$0xff] %vm3280_vm9, %v3754_v18  ;;  %v3752_v63 = vadd.f32 %v5638_v22, %v4453_v0  ;;  %v5634_v8 = vpack.c.bf16 %v3877_v33, %v3876_v35 }
 0x68d   :  { %3757 = vst.msk [vmem:[#allocation6] sm:$0xff] %vm3280_vm9, %v3753_v46  ;;  %v3751_v3 = vadd.f32 %v5639_v45, %v4453_v0  ;;  %v4051_v46 = vld [vmem:[%s7518_s17] sm:$0x1f]  ;;  %v24_v45 = vstv %s7519_s18 }
 0x68e   :  { %v3756_v4 = vmax.f32 %v3752_v63, 0.0  ;;  %25 = vst [vmem:[#allocation7] sm:$0x1] %v24_v45  ;;  %v4458_v63 = vld [vmem:[%s7520_s16] ss:$0 sm:$0xff] }
 0x68f   :  { %v3755_v53 = vmax.f32 %v3751_v3, 0.0 }
 0x690   :  { %3760 = vst.msk [vmem:[#allocation6 + $0x18] sm:$0xff] %vm3280_vm9, %v3756_v4 }
 0x691   :  { %3759 = vst.msk [vmem:[#allocation6 + $0x10] sm:$0xff] %vm3280_vm9, %v3755_v53 }
 0x693   :  { %v3762_v25 = vld [vmem:[#allocation6 + $0x8] sm:$0xff] }
 0x694   :  { %v3761_v28 = vld [vmem:[#allocation6] sm:$0xff] }
 0x695   :  { %v3765_v23 = vld [vmem:[#allocation6 + $0x1] sm:$0xff] }
 0x696   :  { %v3773_v34 = vld [vmem:[#allocation6 + $0x5] sm:$0xff]  ;;  %v3769_v61 = vmax.f32 %v3761_v28, %v3765_v23 }
 0x697   :  { %v3777_v38 = vld [vmem:[#allocation6 + $0x6] sm:$0xff]  ;;  %v3764_v5 = vld [vmem:[#allocation6 + $0x18] sm:$0x3]  ;;  %v3776_v7 = vld [vmem:[#allocation6 + $0x1d] sm:$0x3] }
 0x698   :  { %v3781_v60 = vmax.f32 %v3773_v34, %v3777_v38  ;;  %v3768_v1 = vld [vmem:[#allocation6 + $0x19] sm:$0x3]  ;;  %v3766_v9 = vld [vmem:[#allocation6 + $0x9] sm:$0xff]  ;;  %v3767_v41 = vld [vmem:[#allocation6 + $0x11] sm:$0xff] }
 0x699   :  { %v3774_v6 = vld [vmem:[#allocation6 + $0xd] sm:$0xff]  ;;  %v3770_v43 = vmax.f32 %v3762_v25, %v3766_v9  ;;  %v3772_v56 = vmax.f32 %v3764_v5, %v3768_v1  ;;  %v3775_v20 = vld [vmem:[#allocation6 + $0x15] sm:$0xff]  ;;  %v3780_v14 = vld [vmem:[#allocation6 + $0x1e] sm:$0x3] }
 0x69a   :  { %v3778_v21 = vld [vmem:[#allocation6 + $0xe] sm:$0xff]  ;;  %v3779_v51 = vld [vmem:[#allocation6 + $0x16] sm:$0xff]  ;;  %v3785_v57 = vmax.f32 %v3769_v61, %v3781_v60  ;;  %v3784_v30 = vmax.f32 %v3776_v7, %v3780_v14  ;;  %v4461_v38 = vld [vmem:[#allocation7] ss:$0 sm:$0xff] }
 0x69b   :  { %v3782_v48 = vmax.f32 %v3774_v6, %v3778_v21  ;;  %v3763_v36 = vld [vmem:[#allocation6 + $0x10] sm:$0xff]  ;;  %v3783_v13 = vmax.f32 %v3775_v20, %v3779_v51 }
 0x69c   :  { %v3771_v59 = vmax.f32 %v3763_v36, %v3767_v41  ;;  %v3788_v47 = vmax.f32 %v3772_v56, %v3784_v30 }
 0x69d   :  { %v3786_v44 = vmax.f32 %v3770_v43, %v3782_v48 }
 0x69e   :  { %v3787_v17 = vmax.f32 %v3771_v59, %v3783_v13 }
 0x69f   :  { %v5615_v40 = vpack.c.bf16 %v3786_v44, %v3785_v57 }
 0x6a0   :  { %v5618_v62 = vpack.c.bf16 %v3788_v47, %v3787_v17 }
 0x6a1   :  { %5616 = vmatpush3.bf16.msra.mxu0 %v5615_v40 }
 0x6a2   :  { %5617 = vmatprep.subr.bf16.mxu0 %v5861_v2 }
 0x6a5   :  { %5620 = vmatpush3.bf16.msk.msra.mxu0 %vm5619_vm12, %v5618_v62 }
 0x6a6   :  { %5621 = vmatprep.subr.bf16.mxu0 %v5861_v2 }
 0x6a8   :  { %5350 = vmatmul.mubr.msk.f32.vlgmr.msra.gmra.mrb[152].mxu0 %vm3790_vm13, %v3789_v32 }
 0x6a9   :  { %5623 = vmatpush3.bf16.msra.mxu0 %v5622_v16  ;;  %5372 = vmatprep.mubr.msk.f32.mxu0 %vm5860_vm0, %v7545_v11 }
 0x6aa   :  { %5624 = vmatprep.subr.bf16.mxu0 %v5861_v2 }
 0x6ad   :  { %5626 = vmatpush3.bf16.msra.mxu0 %v5625_v50 }
 0x6ae   :  { %5627 = vmatprep.subr.bf16.mxu0 %v5861_v2 }
 0x6b1   :  { %5629 = vmatpush3.bf16.msra.mxu0 %v5628_v42 }
 0x6b2   :  { %5630 = vmatprep.subr.bf16.mxu0 %v5861_v2 }
 0x6b5   :  { %5632 = vmatpush3.bf16.msra.mxu0 %v5631_v10 }
 0x6b6   :  { %5633 = vmatprep.subr.bf16.mxu0 %v5861_v2  ;;  %v4456_v2 = vld [vmem:[%s7517_s14] ss:$0 sm:$0xff] }
 0x6b9   :  { %5635 = vmatpush3.bf16.msra.mxu0 %v5634_v8 }
 0x6ba   :  { %5375 = vmatprep.subr.mxu0 %v7545_v11 }
 0x77b   :  { %v3864_v0 = vpop.f32.mrb[152].mxu0 }
 0x77c   :  { %v5351_v24 = vpop.f32.mrb[153].mxu0  ;;  %5373 = vmatmul.mubr.msk.f32.vlgmr.msra.gmra.mrb[154].mxu0 %vm3280_vm9, %v3864_v0 }
 0x77d   :  { %5377 = vmatprep.mubr.msk.f32.mxu0 %vm5860_vm0, %v7545_v11  ;;  %5376 = vmatpush3.msk.msra.mxu0 %vm2117_vm4, %v3962_v52 }
 0x77e   :  { %5380 = vmatprep.subr.mxu0 %v7545_v11 }
 0x84f   :  { %v3954_v39 = vpop.f32.mrb[154].mxu0 }
 0x850   :  { %v3955_v15 = vadd.f32 %v4456_v2, %v3954_v39  ;;  %v5374_v55 = vpop.f32.mrb[155].mxu0 }
 0x852   :  { %v3958_v58 = vmul.f32 0.5, %v3955_v15 }
 0x854   :  { %5853 = vtanh.f32 %v3958_v58 }
 0x85e   :  { %v5854_v18 = vpop.eup %5853 }
 0x85f   :  { %v3960_v22 = vadd.f32 1.0, %v5854_v18 }
 0x861   :  { %v3961_v29 = vmul.f32 0.5, %v3960_v22 }
 0x863   :  { %5378 = vmatmul.mubr.msk.f32.vlgmr.msra.gmra.mrb[156].mxu0 %vm3970_vm14, %v3961_v29 }
 0x864   :  { %5382 = vmatprep.mubr.msk.f32.mxu0 %vm5860_vm0, %v7545_v11  ;;  %5381 = vmatpush3.msk.msra.mxu0 %vm2117_vm4, %v4051_v46 }
 0x936   :  { %v4043_v3 = vpop.f32.mrb[156].mxu0 }
 0x937   :  { %v4044_v4 = vadd.f32 %v4458_v63, %v4043_v3  ;;  %v5379_v53 = vpop.f32.mrb[157].mxu0 }
 0x939   :  { %v4047_v28 = vmul.f32 0.5, %v4044_v4 }
 0x93b   :  { %5855 = vtanh.f32 %v4047_v28 }
 0x945   :  { %v5856_v11 = vpop.eup %5855 }
 0x946   :  { %v4049_v23 = vadd.f32 1.0, %v5856_v11 }
 0x948   :  { %v4050_v34 = vmul.f32 0.5, %v4049_v23 }
 0x94a   :  { %5383 = vmatmul.mubr.msk.f32.vlgmr.msra.gmra.mrb[158].mxu0 %vm3970_vm14, %v4050_v34 }
 0xa1d   :  { %v4131_v25 = vpop.f32.mrb[158].mxu0 }
 0xa1e   :  { %v4132_v61 = vadd.f32 %v4461_v38, %v4131_v25  ;;  %v5384_v60 = vpop.f32.mrb[159].mxu0 }
 0xa20   :  { %v4135_v5 = vmul.f32 0.5, %v4132_v61 }
 0xa22   :  { %5857 = vtanh.f32 %v4135_v5 }
 0xa2c   :  { %v5858_v1 = vpop.eup %5857 }
 0xa2d   :  { %v4137_v7 = vadd.f32 1.0, %v5858_v1 }
 0xa2f   :  { %v4138_v9 = vmul.f32 0.5, %v4137_v7 }
 0xa31   :  { %4140 = vst.msk [vmem:[%s7521_s19] sm:$0x3] %vm4139_vm15, %v4138_v9 }

</bundles_post_ra>
